<compile_context>
chip_gen: v7x
topology: tpu7x:2x2x1
jax: 0.10.0
libtpu: 0.0.40
codegen_flags: <defaults>
</compile_context>

<pallas_src>
import jax
import jax.numpy as jnp
from jax import lax
from jax.experimental import pallas as pl
from jax.experimental.pallas import tpu as pltpu

D_IN = 512
D_HID = 2048
# Hidden-dim shards: 2 is the sweet spot for v6e/v7x (weight DMA dominated,
# keeps per-grid-step overhead minimal); raise to 4 on v5e for tighter
# DMA/compute pipelining if needed.
HID_SPLIT = 2
D_HID_BLK = D_HID // HID_SPLIT
EPS = 1e-5
INV_SQRT2 = 0.7071067811865476


def _fused_mlp_kernel(x1_ref, x2_ref, gamma_ref, beta_ref,
                      w1_ref, b1_ref, w2_ref, b2_ref,
                      out_ref, xn_scratch):
    c = pl.program_id(0)

    @pl.when(c == 0)
    def _():
        # residual add + LayerNorm (biased var) + affine, computed once and
        # cached as bf16 in VMEM for all hidden-dim steps.
        x = x1_ref[...] + x2_ref[...]                           # (R, 512) f32
        mean = jnp.mean(x, axis=-1, keepdims=True)
        xc = x - mean
        var = jnp.mean(xc * xc, axis=-1, keepdims=True)
        xn = xc * lax.rsqrt(var + EPS)
        xn = xn * gamma_ref[...] + beta_ref[...]
        xn_scratch[...] = xn.astype(jnp.bfloat16)
        # Initialize the resident f32 output accumulator with the output bias.
        out_ref[...] = jnp.broadcast_to(b2_ref[...], out_ref.shape).astype(
            out_ref.dtype)

    # Linear 512 -> D_HID_BLK (this step's shard of the 2048 hidden units).
    # bf16 operands on the MXU, f32 accumulation.
    h = jnp.dot(xn_scratch[...], w1_ref[...],
                preferred_element_type=jnp.float32)             # (R, blk) f32
    h = h + b1_ref[...]

    # GELU, exact ('none' approximation): 0.5 * x * (1 + erf(x / sqrt(2)))
    h = 0.5 * h * (1.0 + lax.erf(h * jnp.float32(INV_SQRT2)))

    # Dropout p=0.0 -> identity.

    # Linear D_HID_BLK -> 512 partial; accumulate into the resident output.
    y = jnp.dot(h.astype(jnp.bfloat16), w2_ref[...],
                preferred_element_type=jnp.float32)             # (R, 512) f32
    out_ref[...] += y


@jax.jit
def fused_add_ln_mlp(x203, x217, gamma, beta, w1_bf16, b1, w2_bf16, b2):
    """x203, x217: (N, H, W, 512) f32. Weights pre-cast to bf16 by the caller.

    Returns (N, H, W, 512) f32.
    """
    orig_shape = x203.shape
    rows = int(orig_shape[0] * orig_shape[1] * orig_shape[2])
    x1 = x203.reshape(rows, D_IN)
    x2 = x217.reshape(rows, D_IN)

    out = pl.pallas_call(
        _fused_mlp_kernel,
        out_shape=jax.ShapeDtypeStruct((rows, D_IN), jnp.float32),
        grid_spec=pltpu.PrefetchScalarGridSpec(
            num_scalar_prefetch=0,
            grid=(HID_SPLIT,),
            in_specs=[
                pl.BlockSpec((rows, D_IN), lambda c: (0, 0)),          # x1
                pl.BlockSpec((rows, D_IN), lambda c: (0, 0)),          # x2
                pl.BlockSpec((1, D_IN), lambda c: (0, 0)),             # gamma
                pl.BlockSpec((1, D_IN), lambda c: (0, 0)),             # beta
                pl.BlockSpec((D_IN, D_HID_BLK), lambda c: (0, c)),     # w1 shard
                pl.BlockSpec((1, D_HID_BLK), lambda c: (0, c)),        # b1 shard
                pl.BlockSpec((D_HID_BLK, D_IN), lambda c: (c, 0)),     # w2 shard
                pl.BlockSpec((1, D_IN), lambda c: (0, 0)),             # b2
            ],
            # Same output block for every grid step -> resident accumulator,
            # written back to HBM once at the end.
            out_specs=pl.BlockSpec((rows, D_IN), lambda c: (0, 0)),
            scratch_shapes=[pltpu.VMEM((rows, D_IN), jnp.bfloat16)],   # xn cache
        ),
        compiler_params=pltpu.CompilerParams(
            # Hidden axis is a reduction into the shared output block -> must
            # be "arbitrary" (a "parallel" tag would race on v7x megacore).
            dimension_semantics=("arbitrary",),
            vmem_limit_bytes=32 << 20,
        ),
    )(x1, x2, gamma.reshape(1, D_IN), beta.reshape(1, D_IN),
      w1_bf16, b1.reshape(1, D_HID), w2_bf16, b2.reshape(1, D_IN))

    return out.reshape(orig_shape)


def _reference(x203, x217, gamma, beta, w1, b1, w2, b2):
    x = x203 + x217
    mean = jnp.mean(x, axis=-1, keepdims=True)
    var = jnp.mean((x - mean) ** 2, axis=-1, keepdims=True)
    xn = (x - mean) / jnp.sqrt(var + EPS) * gamma + beta
    h = xn @ w1 + b1
    h = 0.5 * h * (1.0 + lax.erf(h / jnp.sqrt(2.0)))
    return h @ w2 + b2


if __name__ == "__main__":
    key = jax.random.PRNGKey(0)
    k1, k2, k3, k4, k5, k6, k7, k8 = jax.random.split(key, 8)

    # Inputs: same shapes the PyTorch module uses.
    x203 = jax.random.normal(k1, (1, 14, 14, D_IN), dtype=jnp.float32)
    x217 = jax.random.normal(k2, (1, 14, 14, D_IN), dtype=jnp.float32)

    # Deterministic parameter init (synthetic, not a checkpoint).
    gamma = 1.0 + 0.02 * jax.random.normal(k3, (D_IN,), dtype=jnp.float32)
    beta = 0.02 * jax.random.normal(k4, (D_IN,), dtype=jnp.float32)
    # Linear weights stored as (in, out), i.e. torch weight.T
    w1 = jax.random.normal(k5, (D_IN, D_HID), dtype=jnp.float32) * (1.0 / jnp.sqrt(D_IN))
    b1 = 0.01 * jax.random.normal(k6, (D_HID,), dtype=jnp.float32)
    w2 = jax.random.normal(k7, (D_HID, D_IN), dtype=jnp.float32) * (1.0 / jnp.sqrt(D_HID))
    b2 = 0.01 * jax.random.normal(k8, (D_IN,), dtype=jnp.float32)

    # bf16 weight conversion done ONCE, outside the hot path.
    w1_bf = w1.astype(jnp.bfloat16)                             # (512, 2048)
    w2_bf = w2.astype(jnp.bfloat16)                             # (2048, 512)

    out = fused_add_ln_mlp(x203, x217, gamma, beta, w1_bf, b1, w2_bf, b2)
    out = jax.block_until_ready(out)

    ref = _reference(x203, x217, gamma, beta, w1, b1, w2, b2)
    assert out.shape == (1, 14, 14, D_IN), out.shape
    # bf16 weights/operands on the MXU -> loosen tolerance vs the f32 reference.
    max_err = float(jnp.max(jnp.abs(out - ref)))
    assert jnp.allclose(out, ref, atol=5e-2, rtol=5e-2), max_err

    print("KERNEL_OK")
</pallas_src>

<mosaic_0001>
module attributes {stable_mosaic.version = 11 : i64} {
  func.func @_fused_mlp_kernel(%arg0: i32, %arg1: memref<196x512xf32, #tpu.memory_space<vmem>>, %arg2: memref<196x512xf32, #tpu.memory_space<vmem>>, %arg3: memref<1x512xf32, #tpu.memory_space<vmem>>, %arg4: memref<1x512xf32, #tpu.memory_space<vmem>>, %arg5: memref<512x1024xbf16, #tpu.memory_space<vmem>>, %arg6: memref<1x1024xf32, #tpu.memory_space<vmem>>, %arg7: memref<1024x512xbf16, #tpu.memory_space<vmem>>, %arg8: memref<1x512xf32, #tpu.memory_space<vmem>>, %arg9: memref<196x512xf32, #tpu.memory_space<vmem>>, %arg10: memref<196x512xbf16, #tpu.memory_space<vmem>>) attributes {dimension_semantics = [#tpu.dimension_semantics<arbitrary>], iteration_bounds = array<i64: 2>, scalar_prefetch = 0 : i64, scratch_operands = 1 : i64, tpu.core_type = #tpu.core_type<tc>, window_params = [{pipeline_mode = #tpu.pipeline_mode<synchronous>, transform_indices = @transform_0, window_bounds = array<i64: 196, 512>}, {pipeline_mode = #tpu.pipeline_mode<synchronous>, transform_indices = @transform_1, window_bounds = array<i64: 196, 512>}, {pipeline_mode = #tpu.pipeline_mode<synchronous>, transform_indices = @transform_2, window_bounds = array<i64: 1, 512>}, {pipeline_mode = #tpu.pipeline_mode<synchronous>, transform_indices = @transform_3, window_bounds = array<i64: 1, 512>}, {transform_indices = @transform_4, window_bounds = array<i64: 512, 1024>}, {transform_indices = @transform_5, window_bounds = array<i64: 1, 1024>}, {transform_indices = @transform_6, window_bounds = array<i64: 1024, 512>}, {pipeline_mode = #tpu.pipeline_mode<synchronous>, transform_indices = @transform_7, window_bounds = array<i64: 1, 512>}, {pipeline_mode = #tpu.pipeline_mode<synchronous>, transform_indices = @transform_8, window_bounds = array<i64: 196, 512>}]} {
    %c0_i32 = arith.constant 0 : i32
    %0 = arith.cmpi eq, %arg0, %c0_i32 : i32
    %1 = arith.extui %0 : i1 to i32
    %c0_i32_0 = arith.constant 0 : i32
    %2 = arith.cmpi ne, %1, %c0_i32_0 : i32
    scf.if %2 {
      %c0_16 = arith.constant 0 : index
      %c0_17 = arith.constant 0 : index
      %23 = vector.load %arg1[%c0_16, %c0_17] : memref<196x512xf32, #tpu.memory_space<vmem>>, vector<196x512xf32>
      %c0_18 = arith.constant 0 : index
      %c0_19 = arith.constant 0 : index
      %24 = vector.load %arg2[%c0_18, %c0_19] : memref<196x512xf32, #tpu.memory_space<vmem>>, vector<196x512xf32>
      %25 = arith.addf %23, %24 : vector<196x512xf32>
      %cst_20 = arith.constant dense<0.000000e+00> : vector<196xf32>
      %26 = vector.multi_reduction <add>, %25, %cst_20 [1] : vector<196x512xf32> to vector<196xf32>
      %27 = vector.shape_cast %26 : vector<196xf32> to vector<196x1xf32>
      %cst_21 = arith.constant 5.120000e+02 : f32
      %28 = vector.broadcast %cst_21 : f32 to vector<196x1xf32>
      %29 = arith.divf %27, %28 : vector<196x1xf32>
      %30 = vector.broadcast %29 : vector<196x1xf32> to vector<196x512xf32>
      %31 = arith.subf %25, %30 : vector<196x512xf32>
      %32 = arith.mulf %31, %31 : vector<196x512xf32>
      %cst_22 = arith.constant dense<0.000000e+00> : vector<196xf32>
      %33 = vector.multi_reduction <add>, %32, %cst_22 [1] : vector<196x512xf32> to vector<196xf32>
      %34 = vector.shape_cast %33 : vector<196xf32> to vector<196x1xf32>
      %cst_23 = arith.constant 5.120000e+02 : f32
      %35 = vector.broadcast %cst_23 : f32 to vector<196x1xf32>
      %36 = arith.divf %34, %35 : vector<196x1xf32>
      %cst_24 = arith.constant 9.99999974E-6 : f32
      %37 = vector.broadcast %cst_24 : f32 to vector<196x1xf32>
      %38 = arith.addf %36, %37 : vector<196x1xf32>
      %39 = math.rsqrt %38 : vector<196x1xf32>
      %40 = vector.broadcast %39 : vector<196x1xf32> to vector<196x512xf32>
      %41 = arith.mulf %31, %40 : vector<196x512xf32>
      %c0_25 = arith.constant 0 : index
      %c0_26 = arith.constant 0 : index
      %42 = vector.load %arg3[%c0_25, %c0_26] : memref<1x512xf32, #tpu.memory_space<vmem>>, vector<1x512xf32>
      %43 = vector.broadcast %42 : vector<1x512xf32> to vector<196x512xf32>
      %44 = arith.mulf %41, %43 : vector<196x512xf32>
      %c0_27 = arith.constant 0 : index
      %c0_28 = arith.constant 0 : index
      %45 = vector.load %arg4[%c0_27, %c0_28] : memref<1x512xf32, #tpu.memory_space<vmem>>, vector<1x512xf32>
      %46 = vector.broadcast %45 : vector<1x512xf32> to vector<196x512xf32>
      %47 = arith.addf %44, %46 : vector<196x512xf32>
      %48 = arith.truncf %47 : vector<196x512xf32> to vector<196x512xbf16>
      %c0_29 = arith.constant 0 : index
      %c0_30 = arith.constant 0 : index
      %49 = vector.load %arg10[%c0_29, %c0_30] : memref<196x512xbf16, #tpu.memory_space<vmem>>, vector<196x512xbf16>
      tpu.vector_store %arg10[%c0_29, %c0_30], %48 {strides = array<i32>} : memref<196x512xbf16, #tpu.memory_space<vmem>>, vector<196x512xbf16>,
      %c0_31 = arith.constant 0 : index
      %c0_32 = arith.constant 0 : index
      %50 = vector.load %arg8[%c0_31, %c0_32] : memref<1x512xf32, #tpu.memory_space<vmem>>, vector<1x512xf32>
      %51 = vector.shape_cast %50 : vector<1x512xf32> to vector<1x512xf32>
      %52 = vector.broadcast %51 : vector<1x512xf32> to vector<196x512xf32>
      %c0_33 = arith.constant 0 : index
      %c0_34 = arith.constant 0 : index
      %53 = vector.load %arg9[%c0_33, %c0_34] : memref<196x512xf32, #tpu.memory_space<vmem>>, vector<196x512xf32>
      tpu.vector_store %arg9[%c0_33, %c0_34], %52 {strides = array<i32>} : memref<196x512xf32, #tpu.memory_space<vmem>>, vector<196x512xf32>,
    } else {
    }
    %c0 = arith.constant 0 : index
    %c0_1 = arith.constant 0 : index
    %3 = vector.load %arg10[%c0, %c0_1] : memref<196x512xbf16, #tpu.memory_space<vmem>>, vector<196x512xbf16>
    %c0_2 = arith.constant 0 : index
    %c0_3 = arith.constant 0 : index
    %4 = vector.load %arg5[%c0_2, %c0_3] : memref<512x1024xbf16, #tpu.memory_space<vmem>>, vector<512x1024xbf16>
    %cst = arith.constant dense<0.000000e+00> : vector<196x1024xf32>
    %5 = tpu.matmul %3, %4, %cst {dimension_numbers = #tpu.dot_dimension_numbers<[1], [0], [0], [1], [0, 0, 1, 1], [], []>} : vector<196x512xbf16>, vector<512x1024xbf16>, vector<196x1024xf32> -> vector<196x1024xf32>
    %c0_4 = arith.constant 0 : index
    %c0_5 = arith.constant 0 : index
    %6 = vector.load %arg6[%c0_4, %c0_5] : memref<1x1024xf32, #tpu.memory_space<vmem>>, vector<1x1024xf32>
    %7 = vector.broadcast %6 : vector<1x1024xf32> to vector<196x1024xf32>
    %8 = arith.addf %5, %7 : vector<196x1024xf32>
    %cst_6 = arith.constant 5.000000e-01 : f32
    %9 = vector.broadcast %cst_6 : f32 to vector<196x1024xf32>
    %10 = arith.mulf %9, %8 : vector<196x1024xf32>
    %cst_7 = arith.constant 0.707106769 : f32
    %11 = vector.broadcast %cst_7 : f32 to vector<196x1024xf32>
    %12 = arith.mulf %8, %11 : vector<196x1024xf32>
    %13 = math.erf %12 : vector<196x1024xf32>
    %cst_8 = arith.constant 1.000000e+00 : f32
    %14 = vector.broadcast %cst_8 : f32 to vector<196x1024xf32>
    %15 = arith.addf %14, %13 : vector<196x1024xf32>
    %16 = arith.mulf %10, %15 : vector<196x1024xf32>
    %17 = arith.truncf %16 : vector<196x1024xf32> to vector<196x1024xbf16>
    %c0_9 = arith.constant 0 : index
    %c0_10 = arith.constant 0 : index
    %18 = vector.load %arg7[%c0_9, %c0_10] : memref<1024x512xbf16, #tpu.memory_space<vmem>>, vector<1024x512xbf16>
    %cst_11 = arith.constant dense<0.000000e+00> : vector<196x512xf32>
    %19 = tpu.matmul %17, %18, %cst_11 {dimension_numbers = #tpu.dot_dimension_numbers<[1], [0], [0], [1], [0, 0, 1, 1], [], []>} : vector<196x1024xbf16>, vector<1024x512xbf16>, vector<196x512xf32> -> vector<196x512xf32>
    %c0_12 = arith.constant 0 : index
    %c0_13 = arith.constant 0 : index
    %20 = vector.load %arg9[%c0_12, %c0_13] : memref<196x512xf32, #tpu.memory_space<vmem>>, vector<196x512xf32>
    %21 = arith.addf %20, %19 : vector<196x512xf32>
    %c0_14 = arith.constant 0 : index
    %c0_15 = arith.constant 0 : index
    %22 = vector.load %arg9[%c0_14, %c0_15] : memref<196x512xf32, #tpu.memory_space<vmem>>, vector<196x512xf32>
    tpu.vector_store %arg9[%c0_14, %c0_15], %21 {strides = array<i32>} : memref<196x512xf32, #tpu.memory_space<vmem>>, vector<196x512xf32>,
    return
  }
  func.func @transform_0(%arg0: i32) -> (i32, i32) {
    %c0_i32 = arith.constant 0 : i32
    %c0_i32_0 = arith.constant 0 : i32
    %c0_i32_1 = arith.constant 0 : i32
    return %c0_i32, %c0_i32_0 : i32, i32
  }
  func.func @transform_1(%arg0: i32) -> (i32, i32) {
    %c0_i32 = arith.constant 0 : i32
    %c0_i32_0 = arith.constant 0 : i32
    %c0_i32_1 = arith.constant 0 : i32
    return %c0_i32, %c0_i32_0 : i32, i32
  }
  func.func @transform_2(%arg0: i32) -> (i32, i32) {
    %c0_i32 = arith.constant 0 : i32
    %c0_i32_0 = arith.constant 0 : i32
    %c0_i32_1 = arith.constant 0 : i32
    return %c0_i32, %c0_i32_0 : i32, i32
  }
  func.func @transform_3(%arg0: i32) -> (i32, i32) {
    %c0_i32 = arith.constant 0 : i32
    %c0_i32_0 = arith.constant 0 : i32
    %c0_i32_1 = arith.constant 0 : i32
    return %c0_i32, %c0_i32_0 : i32, i32
  }
  func.func @transform_4(%arg0: i32) -> (i32, i32) {
    %c0_i32 = arith.constant 0 : i32
    %c0_i32_0 = arith.constant 0 : i32
    return %c0_i32, %arg0 : i32, i32
  }
  func.func @transform_5(%arg0: i32) -> (i32, i32) {
    %c0_i32 = arith.constant 0 : i32
    %c0_i32_0 = arith.constant 0 : i32
    return %c0_i32, %arg0 : i32, i32
  }
  func.func @transform_6(%arg0: i32) -> (i32, i32) {
    %c0_i32 = arith.constant 0 : i32
    %c0_i32_0 = arith.constant 0 : i32
    return %arg0, %c0_i32 : i32, i32
  }
  func.func @transform_7(%arg0: i32) -> (i32, i32) {
    %c0_i32 = arith.constant 0 : i32
    %c0_i32_0 = arith.constant 0 : i32
    %c0_i32_1 = arith.constant 0 : i32
    return %c0_i32, %c0_i32_0 : i32, i32
  }
  func.func @transform_8(%arg0: i32) -> (i32, i32) {
    %c0_i32 = arith.constant 0 : i32
    %c0_i32_0 = arith.constant 0 : i32
    %c0_i32_1 = arith.constant 0 : i32
    return %c0_i32, %c0_i32_0 : i32, i32
  }
}

</mosaic_0001>

<bundles_post_ra>
// kernel: fused_add_ln_mlp.1
= control target key start
LH: loop header
LB: loop body
LE: loop exit
PB: predicated region body
PF: predicated region fallthrough
CT: control target
= control target key end

     0   :  { %13 = vsyncpa [#allocation5], 0  ;;  %s19109_s0 = inlined_call_operand.vmem [shape: f32[196,512], index: 0, kind: input, shape index: {}]   ;;  %s19110_s1 = inlined_call_operand.vmem [shape: f32[196,512], index: 1, kind: input, shape index: {}]   ;;  %s19111_s2 = inlined_call_operand.vmem [shape: f32[1,512], index: 2, kind: input, shape index: {}]   ;;  %s19112_s3 = inlined_call_operand.vmem [shape: f32[1,512], index: 3, kind: input, shape index: {}]   ;;  %s19113_s4 = inlined_call_operand.vmem [shape: bf16[512,2048], index: 4, kind: input, shape index: {}]   ;;  %s19114_s5 = inlined_call_operand.vmem [shape: f32[1,2048], index: 5, kind: input, shape index: {}]   ;;  %s19115_s6 = inlined_call_operand.hbm [shape: bf16[2048,512], index: 6, kind: input, shape index: {}]   ;;  %s19116_s7 = inlined_call_operand.vmem [shape: f32[1,512], index: 7, kind: input, shape index: {}]   ;;  %s19117_s8 = inlined_call_operand.vmem [shape: f32[196,512], index: 8, kind: output, shape index: {}]  }
   0x1   :  { %15 = vsyncpa [#allocation5 + $0x1], 0  ;;  %s12518_s27 = smov 0   ;;  %s12520_s28 = smov 0  }
   0x2   :  { %s12522_s29 = smov 0   ;;  %s12524_s30 = smov 0  }
   0x3 LB: > { %s12537_s9 = sadd.s32 4294967295, %s12468_s30   ;;  %s12540_s10 = sadd.s32 1, %s12468_s30   ;;  %s12468_s30 = sphi %s12524_s30, %s19885_s30   ;;  %s12464_s29 = sphi %s12522_s29, %s19884_s29   ;;  %s12460_s28 = sphi %s12520_s28, %s19883_s28   ;;  %s12456_s27 = sphi %s12518_s27, %s19882_s27  }
   0x4   : > { %s109_s11 = ssub.s32 %s12468_s30, %s12540_s10  ;;  %s112_s12 = sadd.s32 1, %s12464_s29 }
   0x5   : > { %p110_p0 = scmp.eq.s32.totalorder %s109_s11, 0  ;;  %p119_p1 = scmp.ne.s32.totalorder %s12464_s29, %s12460_s28 }
   0x6   : > { %p120_p2 = scmp.eq.s32.totalorder %s12468_s30, 0  ;;  %p177_p3 = scmp.ne.s32.totalorder %s12460_s28, %s12456_s27 }
   0x7   : > { %s12550_s13 = scalar_select %p110_p0, %s12464_s29, %s112_s12  }
   0x8   : > { %p12552_p4 = por %p120_p2, %p119_p1  ;;  %p178_p5 = scmp.eq.s32.totalorder %s12537_s9, 0 }
   0x9   : > { %p10033_p7 = scmp.ge.s32.totalorder %s12468_s30, 2 }
   0xa   : > { %p12557_p6 = por %p178_p5, %p177_p3 }
   0xb   : > { %254 = sbr.rel (%p10033_p7) target bundleno = 176 (0xb0), region = 36 }
  0x12   : > { %257 = sbr.rel (!%p12552_p4) target bundleno = 150 (0x96), region = 40  ;;  %s259_s16 = sand.u32 (%p12552_p4), 1, %s12464_s29  }
  0x13   : > { %s10662_s17 = sshll.u32 (%p12552_p4), %s12468_s30, 5  ;;  %s10034_s18 = sshll.u32 (%p12552_p4), %s259_s16, 11 }
  0x14   : > { %s12569_s21 = scalar_lea.vmem (%p12552_p4), %s19113_s4, %s10662_s17  ;;  %s12574_s22 = scalar_lea.vmem (%p12552_p4), [#allocation3], %s10034_s18 }
  0x15   : > { %v277_v0 = vld [vmem:[%s12569_s21] sm:$0xff] (%p12552_p4)  ;;  %v279_v1 = vld [vmem:[%s12569_s21 + $0x8] sm:$0xff] (%p12552_p4)  ;;  %v281_v2 = vld [vmem:[%s12569_s21 + $0x10] sm:$0xff] (%p12552_p4) }
  0x16   : > { %278 = vst [vmem:[%s12574_s22] sm:$0xff] (%p12552_p4), %v277_v0  ;;  %280 = vst [vmem:[%s12574_s22 + $0x8] sm:$0xff] (%p12552_p4), %v279_v1  ;;  %v283_v3 = vld [vmem:[%s12569_s21 + $0x18] sm:$0xff] (%p12552_p4)  ;;  %v285_v4 = vld [vmem:[%s12569_s21 + $0x40] sm:$0xff] (%p12552_p4) }
  0x17   : > { %282 = vst [vmem:[%s12574_s22 + $0x10] sm:$0xff] (%p12552_p4), %v281_v2  ;;  %v287_v5 = vld [vmem:[%s12569_s21 + $0x48] sm:$0xff] (%p12552_p4)  ;;  %284 = vst [vmem:[%s12574_s22 + $0x18] sm:$0xff] (%p12552_p4), %v283_v3  ;;  %v289_v6 = vld [vmem:[%s12569_s21 + $0x50] sm:$0xff] (%p12552_p4) }
  0x18   : > { %286 = vst [vmem:[%s12574_s22 + $0x20] sm:$0xff] (%p12552_p4), %v285_v4  ;;  %288 = vst [vmem:[%s12574_s22 + $0x28] sm:$0xff] (%p12552_p4), %v287_v5  ;;  %v291_v7 = vld [vmem:[%s12569_s21 + $0x58] sm:$0xff] (%p12552_p4)  ;;  %v293_v8 = vld [vmem:[%s12569_s21 + $0x80] sm:$0xff] (%p12552_p4) }
  0x19   : > { %290 = vst [vmem:[%s12574_s22 + $0x30] sm:$0xff] %v289_v6  ;;  %292 = vst [vmem:[%s12574_s22 + $0x38] sm:$0xff] %v291_v7  ;;  %v295_v9 = vld [vmem:[%s12569_s21 + $0x88] sm:$0xff]  ;;  %v297_v10 = vld [vmem:[%s12569_s21 + $0x90] sm:$0xff] }
  0x1a   : > { %294 = vst [vmem:[%s12574_s22 + $0x40] sm:$0xff] %v293_v8  ;;  %v299_v11 = vld [vmem:[%s12569_s21 + $0x98] sm:$0xff]  ;;  %296 = vst [vmem:[%s12574_s22 + $0x48] sm:$0xff] %v295_v9  ;;  %v301_v12 = vld [vmem:[%s12569_s21 + $0xc0] sm:$0xff] }
  0x1b   : > { %298 = vst [vmem:[%s12574_s22 + $0x50] sm:$0xff] %v297_v10  ;;  %300 = vst [vmem:[%s12574_s22 + $0x58] sm:$0xff] %v299_v11  ;;  %v303_v13 = vld [vmem:[%s12569_s21 + $0xc8] sm:$0xff]  ;;  %v305_v14 = vld [vmem:[%s12569_s21 + $0xd0] sm:$0xff] }
  0x1c   : > { %302 = vst [vmem:[%s12574_s22 + $0x60] sm:$0xff] %v301_v12  ;;  %304 = vst [vmem:[%s12574_s22 + $0x68] sm:$0xff] %v303_v13  ;;  %v307_v15 = vld [vmem:[%s12569_s21 + $0xd8] sm:$0xff]  ;;  %v309_v16 = vld [vmem:[%s12569_s21 + $0x100] sm:$0xff] }
  0x1d   : > { %306 = vst [vmem:[%s12574_s22 + $0x70] sm:$0xff] %v305_v14  ;;  %v311_v17 = vld [vmem:[%s12569_s21 + $0x108] sm:$0xff]  ;;  %308 = vst [vmem:[%s12574_s22 + $0x78] sm:$0xff] %v307_v15  ;;  %v313_v18 = vld [vmem:[%s12569_s21 + $0x110] sm:$0xff] }
  0x1e   : > { %310 = vst [vmem:[%s12574_s22 + $0x80] sm:$0xff] %v309_v16  ;;  %312 = vst [vmem:[%s12574_s22 + $0x88] sm:$0xff] %v311_v17  ;;  %v315_v19 = vld [vmem:[%s12569_s21 + $0x118] sm:$0xff]  ;;  %v317_v20 = vld [vmem:[%s12569_s21 + $0x140] sm:$0xff] }
  0x1f   : > { %314 = vst [vmem:[%s12574_s22 + $0x90] sm:$0xff] %v313_v18  ;;  %316 = vst [vmem:[%s12574_s22 + $0x98] sm:$0xff] %v315_v19  ;;  %v319_v21 = vld [vmem:[%s12569_s21 + $0x148] sm:$0xff]  ;;  %v321_v22 = vld [vmem:[%s12569_s21 + $0x150] sm:$0xff] }
  0x20   : > { %318 = vst [vmem:[%s12574_s22 + $0xa0] sm:$0xff] %v317_v20  ;;  %v323_v23 = vld [vmem:[%s12569_s21 + $0x158] sm:$0xff]  ;;  %320 = vst [vmem:[%s12574_s22 + $0xa8] sm:$0xff] %v319_v21  ;;  %v325_v24 = vld [vmem:[%s12569_s21 + $0x180] sm:$0xff] }
  0x21   : > { %322 = vst [vmem:[%s12574_s22 + $0xb0] sm:$0xff] %v321_v22  ;;  %324 = vst [vmem:[%s12574_s22 + $0xb8] sm:$0xff] %v323_v23  ;;  %v327_v25 = vld [vmem:[%s12569_s21 + $0x188] sm:$0xff]  ;;  %v329_v26 = vld [vmem:[%s12569_s21 + $0x190] sm:$0xff] }
  0x22   : > { %326 = vst [vmem:[%s12574_s22 + $0xc0] sm:$0xff] %v325_v24  ;;  %328 = vst [vmem:[%s12574_s22 + $0xc8] sm:$0xff] %v327_v25  ;;  %v331_v27 = vld [vmem:[%s12569_s21 + $0x198] sm:$0xff]  ;;  %v333_v28 = vld [vmem:[%s12569_s21 + $0x1c0] sm:$0xff] }
  0x23   : > { %330 = vst [vmem:[%s12574_s22 + $0xd0] sm:$0xff] %v329_v26  ;;  %v335_v29 = vld [vmem:[%s12569_s21 + $0x1c8] sm:$0xff]  ;;  %332 = vst [vmem:[%s12574_s22 + $0xd8] sm:$0xff] %v331_v27  ;;  %v337_v30 = vld [vmem:[%s12569_s21 + $0x1d0] sm:$0xff] }
  0x24   : > { %334 = vst [vmem:[%s12574_s22 + $0xe0] sm:$0xff] %v333_v28  ;;  %336 = vst [vmem:[%s12574_s22 + $0xe8] sm:$0xff] %v335_v29  ;;  %v339_v31 = vld [vmem:[%s12569_s21 + $0x1d8] sm:$0xff]  ;;  %v341_v32 = vld [vmem:[%s12569_s21 + $0x200] sm:$0xff] }
  0x25   : > { %338 = vst [vmem:[%s12574_s22 + $0xf0] sm:$0xff] %v337_v30  ;;  %340 = vst [vmem:[%s12574_s22 + $0xf8] sm:$0xff] %v339_v31  ;;  %v343_v33 = vld [vmem:[%s12569_s21 + $0x208] sm:$0xff]  ;;  %v345_v34 = vld [vmem:[%s12569_s21 + $0x210] sm:$0xff] }
  0x26   : > { %342 = vst [vmem:[%s12574_s22 + $0x100] sm:$0xff] %v341_v32  ;;  %v347_v35 = vld [vmem:[%s12569_s21 + $0x218] sm:$0xff]  ;;  %344 = vst [vmem:[%s12574_s22 + $0x108] sm:$0xff] %v343_v33  ;;  %v349_v36 = vld [vmem:[%s12569_s21 + $0x240] sm:$0xff] }
  0x27   : > { %346 = vst [vmem:[%s12574_s22 + $0x110] sm:$0xff] %v345_v34  ;;  %348 = vst [vmem:[%s12574_s22 + $0x118] sm:$0xff] %v347_v35  ;;  %v351_v37 = vld [vmem:[%s12569_s21 + $0x248] sm:$0xff]  ;;  %v353_v38 = vld [vmem:[%s12569_s21 + $0x250] sm:$0xff] }
  0x28   : > { %350 = vst [vmem:[%s12574_s22 + $0x120] sm:$0xff] %v349_v36  ;;  %352 = vst [vmem:[%s12574_s22 + $0x128] sm:$0xff] %v351_v37  ;;  %v355_v39 = vld [vmem:[%s12569_s21 + $0x258] sm:$0xff]  ;;  %v357_v40 = vld [vmem:[%s12569_s21 + $0x280] sm:$0xff] }
  0x29   : > { %354 = vst [vmem:[%s12574_s22 + $0x130] sm:$0xff] %v353_v38  ;;  %v359_v41 = vld [vmem:[%s12569_s21 + $0x288] sm:$0xff]  ;;  %356 = vst [vmem:[%s12574_s22 + $0x138] sm:$0xff] %v355_v39  ;;  %v361_v42 = vld [vmem:[%s12569_s21 + $0x290] sm:$0xff] }
  0x2a   : > { %358 = vst [vmem:[%s12574_s22 + $0x140] sm:$0xff] %v357_v40  ;;  %360 = vst [vmem:[%s12574_s22 + $0x148] sm:$0xff] %v359_v41  ;;  %v363_v43 = vld [vmem:[%s12569_s21 + $0x298] sm:$0xff]  ;;  %v365_v44 = vld [vmem:[%s12569_s21 + $0x2c0] sm:$0xff] }
  0x2b   : > { %362 = vst [vmem:[%s12574_s22 + $0x150] sm:$0xff] %v361_v42  ;;  %364 = vst [vmem:[%s12574_s22 + $0x158] sm:$0xff] %v363_v43  ;;  %v367_v45 = vld [vmem:[%s12569_s21 + $0x2c8] sm:$0xff]  ;;  %v369_v46 = vld [vmem:[%s12569_s21 + $0x2d0] sm:$0xff] }
  0x2c   : > { %366 = vst [vmem:[%s12574_s22 + $0x160] sm:$0xff] %v365_v44  ;;  %v371_v47 = vld [vmem:[%s12569_s21 + $0x2d8] sm:$0xff]  ;;  %368 = vst [vmem:[%s12574_s22 + $0x168] sm:$0xff] %v367_v45  ;;  %v373_v48 = vld [vmem:[%s12569_s21 + $0x300] sm:$0xff] }
  0x2d   : > { %370 = vst [vmem:[%s12574_s22 + $0x170] sm:$0xff] %v369_v46  ;;  %372 = vst [vmem:[%s12574_s22 + $0x178] sm:$0xff] %v371_v47  ;;  %v375_v49 = vld [vmem:[%s12569_s21 + $0x308] sm:$0xff]  ;;  %v377_v50 = vld [vmem:[%s12569_s21 + $0x310] sm:$0xff] }
  0x2e   : > { %374 = vst [vmem:[%s12574_s22 + $0x180] sm:$0xff] %v373_v48  ;;  %376 = vst [vmem:[%s12574_s22 + $0x188] sm:$0xff] %v375_v49  ;;  %v379_v51 = vld [vmem:[%s12569_s21 + $0x318] sm:$0xff]  ;;  %v381_v52 = vld [vmem:[%s12569_s21 + $0x340] sm:$0xff] }
  0x2f   : > { %378 = vst [vmem:[%s12574_s22 + $0x190] sm:$0xff] %v377_v50  ;;  %v383_v53 = vld [vmem:[%s12569_s21 + $0x348] sm:$0xff]  ;;  %380 = vst [vmem:[%s12574_s22 + $0x198] sm:$0xff] %v379_v51  ;;  %v385_v54 = vld [vmem:[%s12569_s21 + $0x350] sm:$0xff] }
  0x30   : > { %382 = vst [vmem:[%s12574_s22 + $0x1a0] sm:$0xff] %v381_v52  ;;  %384 = vst [vmem:[%s12574_s22 + $0x1a8] sm:$0xff] %v383_v53  ;;  %v387_v55 = vld [vmem:[%s12569_s21 + $0x358] sm:$0xff]  ;;  %v389_v56 = vld [vmem:[%s12569_s21 + $0x380] sm:$0xff] }
  0x31   : > { %386 = vst [vmem:[%s12574_s22 + $0x1b0] sm:$0xff] %v385_v54  ;;  %388 = vst [vmem:[%s12574_s22 + $0x1b8] sm:$0xff] %v387_v55  ;;  %v391_v57 = vld [vmem:[%s12569_s21 + $0x388] sm:$0xff]  ;;  %v393_v58 = vld [vmem:[%s12569_s21 + $0x390] sm:$0xff] }
  0x32   : > { %390 = vst [vmem:[%s12574_s22 + $0x1c0] sm:$0xff] %v389_v56  ;;  %v395_v59 = vld [vmem:[%s12569_s21 + $0x398] sm:$0xff]  ;;  %392 = vst [vmem:[%s12574_s22 + $0x1c8] sm:$0xff] %v391_v57  ;;  %v397_v60 = vld [vmem:[%s12569_s21 + $0x3c0] sm:$0xff] }
  0x33   : > { %394 = vst [vmem:[%s12574_s22 + $0x1d0] sm:$0xff] %v393_v58  ;;  %396 = vst [vmem:[%s12574_s22 + $0x1d8] sm:$0xff] %v395_v59  ;;  %v399_v61 = vld [vmem:[%s12569_s21 + $0x3c8] sm:$0xff]  ;;  %v401_v62 = vld [vmem:[%s12569_s21 + $0x3d0] sm:$0xff] }
  0x34   : > { %398 = vst [vmem:[%s12574_s22 + $0x1e0] sm:$0xff] %v397_v60  ;;  %400 = vst [vmem:[%s12574_s22 + $0x1e8] sm:$0xff] %v399_v61  ;;  %v403_v63 = vld [vmem:[%s12569_s21 + $0x3d8] sm:$0xff]  ;;  %v405_v0 = vld [vmem:[%s12569_s21 + $0x400] sm:$0xff] }
  0x35   : > { %402 = vst [vmem:[%s12574_s22 + $0x1f0] sm:$0xff] %v401_v62  ;;  %v407_v1 = vld [vmem:[%s12569_s21 + $0x408] sm:$0xff]  ;;  %404 = vst [vmem:[%s12574_s22 + $0x1f8] sm:$0xff] %v403_v63  ;;  %v409_v2 = vld [vmem:[%s12569_s21 + $0x410] sm:$0xff] }
  0x36   : > { %406 = vst [vmem:[%s12574_s22 + $0x200] sm:$0xff] %v405_v0  ;;  %408 = vst [vmem:[%s12574_s22 + $0x208] sm:$0xff] %v407_v1  ;;  %v411_v3 = vld [vmem:[%s12569_s21 + $0x418] sm:$0xff]  ;;  %v413_v4 = vld [vmem:[%s12569_s21 + $0x440] sm:$0xff] }
  0x37   : > { %410 = vst [vmem:[%s12574_s22 + $0x210] sm:$0xff] %v409_v2  ;;  %412 = vst [vmem:[%s12574_s22 + $0x218] sm:$0xff] %v411_v3  ;;  %v415_v5 = vld [vmem:[%s12569_s21 + $0x448] sm:$0xff]  ;;  %v417_v6 = vld [vmem:[%s12569_s21 + $0x450] sm:$0xff] }
  0x38   : > { %414 = vst [vmem:[%s12574_s22 + $0x220] sm:$0xff] %v413_v4  ;;  %v419_v7 = vld [vmem:[%s12569_s21 + $0x458] sm:$0xff]  ;;  %416 = vst [vmem:[%s12574_s22 + $0x228] sm:$0xff] %v415_v5  ;;  %v421_v8 = vld [vmem:[%s12569_s21 + $0x480] sm:$0xff] }
  0x39   : > { %418 = vst [vmem:[%s12574_s22 + $0x230] sm:$0xff] %v417_v6  ;;  %420 = vst [vmem:[%s12574_s22 + $0x238] sm:$0xff] %v419_v7  ;;  %v423_v9 = vld [vmem:[%s12569_s21 + $0x488] sm:$0xff]  ;;  %v425_v10 = vld [vmem:[%s12569_s21 + $0x490] sm:$0xff] }
  0x3a   : > { %422 = vst [vmem:[%s12574_s22 + $0x240] sm:$0xff] %v421_v8  ;;  %424 = vst [vmem:[%s12574_s22 + $0x248] sm:$0xff] %v423_v9  ;;  %v427_v11 = vld [vmem:[%s12569_s21 + $0x498] sm:$0xff]  ;;  %v429_v12 = vld [vmem:[%s12569_s21 + $0x4c0] sm:$0xff] }
  0x3b   : > { %426 = vst [vmem:[%s12574_s22 + $0x250] sm:$0xff] %v425_v10  ;;  %v431_v13 = vld [vmem:[%s12569_s21 + $0x4c8] sm:$0xff]  ;;  %428 = vst [vmem:[%s12574_s22 + $0x258] sm:$0xff] %v427_v11  ;;  %v433_v14 = vld [vmem:[%s12569_s21 + $0x4d0] sm:$0xff] }
  0x3c   : > { %430 = vst [vmem:[%s12574_s22 + $0x260] sm:$0xff] %v429_v12  ;;  %432 = vst [vmem:[%s12574_s22 + $0x268] sm:$0xff] %v431_v13  ;;  %v435_v15 = vld [vmem:[%s12569_s21 + $0x4d8] sm:$0xff]  ;;  %v437_v16 = vld [vmem:[%s12569_s21 + $0x500] sm:$0xff] }
  0x3d   : > { %434 = vst [vmem:[%s12574_s22 + $0x270] sm:$0xff] %v433_v14  ;;  %436 = vst [vmem:[%s12574_s22 + $0x278] sm:$0xff] %v435_v15  ;;  %v439_v17 = vld [vmem:[%s12569_s21 + $0x508] sm:$0xff]  ;;  %v441_v18 = vld [vmem:[%s12569_s21 + $0x510] sm:$0xff] }
  0x3e   : > { %438 = vst [vmem:[%s12574_s22 + $0x280] sm:$0xff] %v437_v16  ;;  %v443_v19 = vld [vmem:[%s12569_s21 + $0x518] sm:$0xff]  ;;  %440 = vst [vmem:[%s12574_s22 + $0x288] sm:$0xff] %v439_v17  ;;  %v445_v20 = vld [vmem:[%s12569_s21 + $0x540] sm:$0xff] }
  0x3f   : > { %442 = vst [vmem:[%s12574_s22 + $0x290] sm:$0xff] %v441_v18  ;;  %444 = vst [vmem:[%s12574_s22 + $0x298] sm:$0xff] %v443_v19  ;;  %v447_v21 = vld [vmem:[%s12569_s21 + $0x548] sm:$0xff]  ;;  %v449_v22 = vld [vmem:[%s12569_s21 + $0x550] sm:$0xff] }
  0x40   : > { %446 = vst [vmem:[%s12574_s22 + $0x2a0] sm:$0xff] %v445_v20  ;;  %448 = vst [vmem:[%s12574_s22 + $0x2a8] sm:$0xff] %v447_v21  ;;  %v451_v23 = vld [vmem:[%s12569_s21 + $0x558] sm:$0xff]  ;;  %v453_v24 = vld [vmem:[%s12569_s21 + $0x580] sm:$0xff] }
  0x41   : > { %450 = vst [vmem:[%s12574_s22 + $0x2b0] sm:$0xff] %v449_v22  ;;  %v455_v25 = vld [vmem:[%s12569_s21 + $0x588] sm:$0xff]  ;;  %452 = vst [vmem:[%s12574_s22 + $0x2b8] sm:$0xff] %v451_v23  ;;  %v457_v26 = vld [vmem:[%s12569_s21 + $0x590] sm:$0xff] }
  0x42   : > { %454 = vst [vmem:[%s12574_s22 + $0x2c0] sm:$0xff] %v453_v24  ;;  %456 = vst [vmem:[%s12574_s22 + $0x2c8] sm:$0xff] %v455_v25  ;;  %v459_v27 = vld [vmem:[%s12569_s21 + $0x598] sm:$0xff]  ;;  %v461_v28 = vld [vmem:[%s12569_s21 + $0x5c0] sm:$0xff] }
  0x43   : > { %458 = vst [vmem:[%s12574_s22 + $0x2d0] sm:$0xff] %v457_v26  ;;  %460 = vst [vmem:[%s12574_s22 + $0x2d8] sm:$0xff] %v459_v27  ;;  %v463_v29 = vld [vmem:[%s12569_s21 + $0x5c8] sm:$0xff]  ;;  %v465_v30 = vld [vmem:[%s12569_s21 + $0x5d0] sm:$0xff] }
  0x44   : > { %462 = vst [vmem:[%s12574_s22 + $0x2e0] sm:$0xff] %v461_v28  ;;  %v467_v31 = vld [vmem:[%s12569_s21 + $0x5d8] sm:$0xff]  ;;  %464 = vst [vmem:[%s12574_s22 + $0x2e8] sm:$0xff] %v463_v29  ;;  %v469_v32 = vld [vmem:[%s12569_s21 + $0x600] sm:$0xff] }
  0x45   : > { %466 = vst [vmem:[%s12574_s22 + $0x2f0] sm:$0xff] %v465_v30  ;;  %468 = vst [vmem:[%s12574_s22 + $0x2f8] sm:$0xff] %v467_v31  ;;  %v471_v33 = vld [vmem:[%s12569_s21 + $0x608] sm:$0xff]  ;;  %v473_v34 = vld [vmem:[%s12569_s21 + $0x610] sm:$0xff] }
  0x46   : > { %470 = vst [vmem:[%s12574_s22 + $0x300] sm:$0xff] %v469_v32  ;;  %472 = vst [vmem:[%s12574_s22 + $0x308] sm:$0xff] %v471_v33  ;;  %v475_v35 = vld [vmem:[%s12569_s21 + $0x618] sm:$0xff]  ;;  %v477_v36 = vld [vmem:[%s12569_s21 + $0x640] sm:$0xff] }
  0x47   : > { %474 = vst [vmem:[%s12574_s22 + $0x310] sm:$0xff] %v473_v34  ;;  %v479_v37 = vld [vmem:[%s12569_s21 + $0x648] sm:$0xff]  ;;  %476 = vst [vmem:[%s12574_s22 + $0x318] sm:$0xff] %v475_v35  ;;  %v481_v38 = vld [vmem:[%s12569_s21 + $0x650] sm:$0xff] }
  0x48   : > { %478 = vst [vmem:[%s12574_s22 + $0x320] sm:$0xff] %v477_v36  ;;  %480 = vst [vmem:[%s12574_s22 + $0x328] sm:$0xff] %v479_v37  ;;  %v483_v39 = vld [vmem:[%s12569_s21 + $0x658] sm:$0xff]  ;;  %v485_v40 = vld [vmem:[%s12569_s21 + $0x680] sm:$0xff] }
  0x49   : > { %482 = vst [vmem:[%s12574_s22 + $0x330] sm:$0xff] %v481_v38  ;;  %484 = vst [vmem:[%s12574_s22 + $0x338] sm:$0xff] %v483_v39  ;;  %v487_v41 = vld [vmem:[%s12569_s21 + $0x688] sm:$0xff]  ;;  %v489_v42 = vld [vmem:[%s12569_s21 + $0x690] sm:$0xff] }
  0x4a   : > { %486 = vst [vmem:[%s12574_s22 + $0x340] sm:$0xff] %v485_v40  ;;  %v491_v43 = vld [vmem:[%s12569_s21 + $0x698] sm:$0xff]  ;;  %488 = vst [vmem:[%s12574_s22 + $0x348] sm:$0xff] %v487_v41  ;;  %v493_v44 = vld [vmem:[%s12569_s21 + $0x6c0] sm:$0xff] }
  0x4b   : > { %490 = vst [vmem:[%s12574_s22 + $0x350] sm:$0xff] %v489_v42  ;;  %492 = vst [vmem:[%s12574_s22 + $0x358] sm:$0xff] %v491_v43  ;;  %v495_v45 = vld [vmem:[%s12569_s21 + $0x6c8] sm:$0xff]  ;;  %v497_v46 = vld [vmem:[%s12569_s21 + $0x6d0] sm:$0xff] }
  0x4c   : > { %494 = vst [vmem:[%s12574_s22 + $0x360] sm:$0xff] %v493_v44  ;;  %496 = vst [vmem:[%s12574_s22 + $0x368] sm:$0xff] %v495_v45  ;;  %v499_v47 = vld [vmem:[%s12569_s21 + $0x6d8] sm:$0xff]  ;;  %v501_v48 = vld [vmem:[%s12569_s21 + $0x700] sm:$0xff] }
  0x4d   : > { %498 = vst [vmem:[%s12574_s22 + $0x370] sm:$0xff] %v497_v46  ;;  %v503_v49 = vld [vmem:[%s12569_s21 + $0x708] sm:$0xff]  ;;  %500 = vst [vmem:[%s12574_s22 + $0x378] sm:$0xff] %v499_v47  ;;  %v505_v50 = vld [vmem:[%s12569_s21 + $0x710] sm:$0xff] }
  0x4e   : > { %502 = vst [vmem:[%s12574_s22 + $0x380] sm:$0xff] %v501_v48  ;;  %504 = vst [vmem:[%s12574_s22 + $0x388] sm:$0xff] %v503_v49  ;;  %v507_v51 = vld [vmem:[%s12569_s21 + $0x718] sm:$0xff]  ;;  %v509_v52 = vld [vmem:[%s12569_s21 + $0x740] sm:$0xff] }
  0x4f   : > { %506 = vst [vmem:[%s12574_s22 + $0x390] sm:$0xff] %v505_v50  ;;  %508 = vst [vmem:[%s12574_s22 + $0x398] sm:$0xff] %v507_v51  ;;  %v511_v53 = vld [vmem:[%s12569_s21 + $0x748] sm:$0xff]  ;;  %v513_v54 = vld [vmem:[%s12569_s21 + $0x750] sm:$0xff] }
  0x50   : > { %510 = vst [vmem:[%s12574_s22 + $0x3a0] sm:$0xff] %v509_v52  ;;  %v515_v55 = vld [vmem:[%s12569_s21 + $0x758] sm:$0xff]  ;;  %512 = vst [vmem:[%s12574_s22 + $0x3a8] sm:$0xff] %v511_v53  ;;  %v517_v56 = vld [vmem:[%s12569_s21 + $0x780] sm:$0xff] }
  0x51   : > { %514 = vst [vmem:[%s12574_s22 + $0x3b0] sm:$0xff] %v513_v54  ;;  %516 = vst [vmem:[%s12574_s22 + $0x3b8] sm:$0xff] %v515_v55  ;;  %v519_v57 = vld [vmem:[%s12569_s21 + $0x788] sm:$0xff]  ;;  %v521_v58 = vld [vmem:[%s12569_s21 + $0x790] sm:$0xff] }
  0x52   : > { %518 = vst [vmem:[%s12574_s22 + $0x3c0] sm:$0xff] %v517_v56  ;;  %520 = vst [vmem:[%s12574_s22 + $0x3c8] sm:$0xff] %v519_v57  ;;  %v523_v59 = vld [vmem:[%s12569_s21 + $0x798] sm:$0xff]  ;;  %v525_v60 = vld [vmem:[%s12569_s21 + $0x7c0] sm:$0xff] }
  0x53   : > { %522 = vst [vmem:[%s12574_s22 + $0x3d0] sm:$0xff] %v521_v58  ;;  %v527_v61 = vld [vmem:[%s12569_s21 + $0x7c8] sm:$0xff]  ;;  %524 = vst [vmem:[%s12574_s22 + $0x3d8] sm:$0xff] %v523_v59  ;;  %v529_v62 = vld [vmem:[%s12569_s21 + $0x7d0] sm:$0xff] }
  0x54   : > { %526 = vst [vmem:[%s12574_s22 + $0x3e0] sm:$0xff] %v525_v60  ;;  %528 = vst [vmem:[%s12574_s22 + $0x3e8] sm:$0xff] %v527_v61  ;;  %v531_v63 = vld [vmem:[%s12569_s21 + $0x7d8] sm:$0xff]  ;;  %v533_v0 = vld [vmem:[%s12569_s21 + $0x800] sm:$0xff] }
  0x55   : > { %530 = vst [vmem:[%s12574_s22 + $0x3f0] sm:$0xff] %v529_v62  ;;  %532 = vst [vmem:[%s12574_s22 + $0x3f8] sm:$0xff] %v531_v63  ;;  %v535_v1 = vld [vmem:[%s12569_s21 + $0x808] sm:$0xff]  ;;  %v537_v2 = vld [vmem:[%s12569_s21 + $0x810] sm:$0xff] }
  0x56   : > { %534 = vst [vmem:[%s12574_s22 + $0x400] sm:$0xff] %v533_v0  ;;  %v539_v3 = vld [vmem:[%s12569_s21 + $0x818] sm:$0xff]  ;;  %536 = vst [vmem:[%s12574_s22 + $0x408] sm:$0xff] %v535_v1  ;;  %v541_v4 = vld [vmem:[%s12569_s21 + $0x840] sm:$0xff] }
  0x57   : > { %538 = vst [vmem:[%s12574_s22 + $0x410] sm:$0xff] %v537_v2  ;;  %540 = vst [vmem:[%s12574_s22 + $0x418] sm:$0xff] %v539_v3  ;;  %v543_v5 = vld [vmem:[%s12569_s21 + $0x848] sm:$0xff]  ;;  %v545_v6 = vld [vmem:[%s12569_s21 + $0x850] sm:$0xff] }
  0x58   : > { %542 = vst [vmem:[%s12574_s22 + $0x420] sm:$0xff] %v541_v4  ;;  %544 = vst [vmem:[%s12574_s22 + $0x428] sm:$0xff] %v543_v5  ;;  %v547_v7 = vld [vmem:[%s12569_s21 + $0x858] sm:$0xff]  ;;  %v549_v8 = vld [vmem:[%s12569_s21 + $0x880] sm:$0xff] }
  0x59   : > { %546 = vst [vmem:[%s12574_s22 + $0x430] sm:$0xff] %v545_v6  ;;  %v551_v9 = vld [vmem:[%s12569_s21 + $0x888] sm:$0xff]  ;;  %548 = vst [vmem:[%s12574_s22 + $0x438] sm:$0xff] %v547_v7  ;;  %v553_v10 = vld [vmem:[%s12569_s21 + $0x890] sm:$0xff] }
  0x5a   : > { %550 = vst [vmem:[%s12574_s22 + $0x440] sm:$0xff] %v549_v8  ;;  %552 = vst [vmem:[%s12574_s22 + $0x448] sm:$0xff] %v551_v9  ;;  %v555_v11 = vld [vmem:[%s12569_s21 + $0x898] sm:$0xff]  ;;  %v557_v12 = vld [vmem:[%s12569_s21 + $0x8c0] sm:$0xff] }
  0x5b   : > { %554 = vst [vmem:[%s12574_s22 + $0x450] sm:$0xff] %v553_v10  ;;  %556 = vst [vmem:[%s12574_s22 + $0x458] sm:$0xff] %v555_v11  ;;  %v559_v13 = vld [vmem:[%s12569_s21 + $0x8c8] sm:$0xff]  ;;  %v561_v14 = vld [vmem:[%s12569_s21 + $0x8d0] sm:$0xff] }
  0x5c   : > { %558 = vst [vmem:[%s12574_s22 + $0x460] sm:$0xff] %v557_v12  ;;  %v563_v15 = vld [vmem:[%s12569_s21 + $0x8d8] sm:$0xff]  ;;  %560 = vst [vmem:[%s12574_s22 + $0x468] sm:$0xff] %v559_v13  ;;  %v565_v16 = vld [vmem:[%s12569_s21 + $0x900] sm:$0xff] }
  0x5d   : > { %562 = vst [vmem:[%s12574_s22 + $0x470] sm:$0xff] %v561_v14  ;;  %564 = vst [vmem:[%s12574_s22 + $0x478] sm:$0xff] %v563_v15  ;;  %v567_v17 = vld [vmem:[%s12569_s21 + $0x908] sm:$0xff]  ;;  %v569_v18 = vld [vmem:[%s12569_s21 + $0x910] sm:$0xff] }
  0x5e   : > { %566 = vst [vmem:[%s12574_s22 + $0x480] sm:$0xff] %v565_v16  ;;  %568 = vst [vmem:[%s12574_s22 + $0x488] sm:$0xff] %v567_v17  ;;  %v571_v19 = vld [vmem:[%s12569_s21 + $0x918] sm:$0xff]  ;;  %v573_v20 = vld [vmem:[%s12569_s21 + $0x940] sm:$0xff] }
  0x5f   : > { %570 = vst [vmem:[%s12574_s22 + $0x490] sm:$0xff] %v569_v18  ;;  %v575_v21 = vld [vmem:[%s12569_s21 + $0x948] sm:$0xff]  ;;  %572 = vst [vmem:[%s12574_s22 + $0x498] sm:$0xff] %v571_v19  ;;  %v577_v22 = vld [vmem:[%s12569_s21 + $0x950] sm:$0xff] }
  0x60   : > { %574 = vst [vmem:[%s12574_s22 + $0x4a0] sm:$0xff] %v573_v20  ;;  %576 = vst [vmem:[%s12574_s22 + $0x4a8] sm:$0xff] %v575_v21  ;;  %v579_v23 = vld [vmem:[%s12569_s21 + $0x958] sm:$0xff]  ;;  %v581_v24 = vld [vmem:[%s12569_s21 + $0x980] sm:$0xff] }
  0x61   : > { %578 = vst [vmem:[%s12574_s22 + $0x4b0] sm:$0xff] %v577_v22  ;;  %580 = vst [vmem:[%s12574_s22 + $0x4b8] sm:$0xff] %v579_v23  ;;  %v583_v25 = vld [vmem:[%s12569_s21 + $0x988] sm:$0xff]  ;;  %v585_v26 = vld [vmem:[%s12569_s21 + $0x990] sm:$0xff] }
  0x62   : > { %582 = vst [vmem:[%s12574_s22 + $0x4c0] sm:$0xff] %v581_v24  ;;  %v587_v27 = vld [vmem:[%s12569_s21 + $0x998] sm:$0xff]  ;;  %584 = vst [vmem:[%s12574_s22 + $0x4c8] sm:$0xff] %v583_v25  ;;  %v589_v28 = vld [vmem:[%s12569_s21 + $0x9c0] sm:$0xff] }
  0x63   : > { %586 = vst [vmem:[%s12574_s22 + $0x4d0] sm:$0xff] %v585_v26  ;;  %588 = vst [vmem:[%s12574_s22 + $0x4d8] sm:$0xff] %v587_v27  ;;  %v591_v29 = vld [vmem:[%s12569_s21 + $0x9c8] sm:$0xff]  ;;  %v593_v30 = vld [vmem:[%s12569_s21 + $0x9d0] sm:$0xff] }
  0x64   : > { %590 = vst [vmem:[%s12574_s22 + $0x4e0] sm:$0xff] %v589_v28  ;;  %592 = vst [vmem:[%s12574_s22 + $0x4e8] sm:$0xff] %v591_v29  ;;  %v595_v31 = vld [vmem:[%s12569_s21 + $0x9d8] sm:$0xff]  ;;  %v597_v32 = vld [vmem:[%s12569_s21 + $0xa00] sm:$0xff] }
  0x65   : > { %594 = vst [vmem:[%s12574_s22 + $0x4f0] sm:$0xff] %v593_v30  ;;  %v599_v33 = vld [vmem:[%s12569_s21 + $0xa08] sm:$0xff]  ;;  %596 = vst [vmem:[%s12574_s22 + $0x4f8] sm:$0xff] %v595_v31  ;;  %v601_v34 = vld [vmem:[%s12569_s21 + $0xa10] sm:$0xff] }
  0x66   : > { %598 = vst [vmem:[%s12574_s22 + $0x500] sm:$0xff] %v597_v32  ;;  %600 = vst [vmem:[%s12574_s22 + $0x508] sm:$0xff] %v599_v33  ;;  %v603_v35 = vld [vmem:[%s12569_s21 + $0xa18] sm:$0xff]  ;;  %v605_v36 = vld [vmem:[%s12569_s21 + $0xa40] sm:$0xff] }
  0x67   : > { %602 = vst [vmem:[%s12574_s22 + $0x510] sm:$0xff] %v601_v34  ;;  %604 = vst [vmem:[%s12574_s22 + $0x518] sm:$0xff] %v603_v35  ;;  %v607_v37 = vld [vmem:[%s12569_s21 + $0xa48] sm:$0xff]  ;;  %v609_v38 = vld [vmem:[%s12569_s21 + $0xa50] sm:$0xff] }
  0x68   : > { %606 = vst [vmem:[%s12574_s22 + $0x520] sm:$0xff] %v605_v36  ;;  %v611_v39 = vld [vmem:[%s12569_s21 + $0xa58] sm:$0xff]  ;;  %608 = vst [vmem:[%s12574_s22 + $0x528] sm:$0xff] %v607_v37  ;;  %v613_v40 = vld [vmem:[%s12569_s21 + $0xa80] sm:$0xff] }
  0x69   : > { %610 = vst [vmem:[%s12574_s22 + $0x530] sm:$0xff] %v609_v38  ;;  %612 = vst [vmem:[%s12574_s22 + $0x538] sm:$0xff] %v611_v39  ;;  %v615_v41 = vld [vmem:[%s12569_s21 + $0xa88] sm:$0xff]  ;;  %v617_v42 = vld [vmem:[%s12569_s21 + $0xa90] sm:$0xff] }
  0x6a   : > { %614 = vst [vmem:[%s12574_s22 + $0x540] sm:$0xff] %v613_v40  ;;  %616 = vst [vmem:[%s12574_s22 + $0x548] sm:$0xff] %v615_v41  ;;  %v619_v43 = vld [vmem:[%s12569_s21 + $0xa98] sm:$0xff]  ;;  %v621_v44 = vld [vmem:[%s12569_s21 + $0xac0] sm:$0xff] }
  0x6b   : > { %618 = vst [vmem:[%s12574_s22 + $0x550] sm:$0xff] %v617_v42  ;;  %v623_v45 = vld [vmem:[%s12569_s21 + $0xac8] sm:$0xff]  ;;  %620 = vst [vmem:[%s12574_s22 + $0x558] sm:$0xff] %v619_v43  ;;  %v625_v46 = vld [vmem:[%s12569_s21 + $0xad0] sm:$0xff] }
  0x6c   : > { %622 = vst [vmem:[%s12574_s22 + $0x560] sm:$0xff] %v621_v44  ;;  %624 = vst [vmem:[%s12574_s22 + $0x568] sm:$0xff] %v623_v45  ;;  %v627_v47 = vld [vmem:[%s12569_s21 + $0xad8] sm:$0xff]  ;;  %v629_v48 = vld [vmem:[%s12569_s21 + $0xb00] sm:$0xff] }
  0x6d   : > { %626 = vst [vmem:[%s12574_s22 + $0x570] sm:$0xff] %v625_v46  ;;  %628 = vst [vmem:[%s12574_s22 + $0x578] sm:$0xff] %v627_v47  ;;  %v631_v49 = vld [vmem:[%s12569_s21 + $0xb08] sm:$0xff]  ;;  %v633_v50 = vld [vmem:[%s12569_s21 + $0xb10] sm:$0xff] }
  0x6e   : > { %630 = vst [vmem:[%s12574_s22 + $0x580] sm:$0xff] %v629_v48  ;;  %v635_v51 = vld [vmem:[%s12569_s21 + $0xb18] sm:$0xff]  ;;  %632 = vst [vmem:[%s12574_s22 + $0x588] sm:$0xff] %v631_v49  ;;  %v637_v52 = vld [vmem:[%s12569_s21 + $0xb40] sm:$0xff] }
  0x6f   : > { %634 = vst [vmem:[%s12574_s22 + $0x590] sm:$0xff] %v633_v50  ;;  %636 = vst [vmem:[%s12574_s22 + $0x598] sm:$0xff] %v635_v51  ;;  %v639_v53 = vld [vmem:[%s12569_s21 + $0xb48] sm:$0xff]  ;;  %v641_v54 = vld [vmem:[%s12569_s21 + $0xb50] sm:$0xff] }
  0x70   : > { %638 = vst [vmem:[%s12574_s22 + $0x5a0] sm:$0xff] %v637_v52  ;;  %640 = vst [vmem:[%s12574_s22 + $0x5a8] sm:$0xff] %v639_v53  ;;  %v643_v55 = vld [vmem:[%s12569_s21 + $0xb58] sm:$0xff]  ;;  %v645_v56 = vld [vmem:[%s12569_s21 + $0xb80] sm:$0xff] }
  0x71   : > { %642 = vst [vmem:[%s12574_s22 + $0x5b0] sm:$0xff] %v641_v54  ;;  %v647_v57 = vld [vmem:[%s12569_s21 + $0xb88] sm:$0xff]  ;;  %644 = vst [vmem:[%s12574_s22 + $0x5b8] sm:$0xff] %v643_v55  ;;  %v649_v58 = vld [vmem:[%s12569_s21 + $0xb90] sm:$0xff] }
  0x72   : > { %646 = vst [vmem:[%s12574_s22 + $0x5c0] sm:$0xff] %v645_v56  ;;  %648 = vst [vmem:[%s12574_s22 + $0x5c8] sm:$0xff] %v647_v57  ;;  %v651_v59 = vld [vmem:[%s12569_s21 + $0xb98] sm:$0xff]  ;;  %v653_v60 = vld [vmem:[%s12569_s21 + $0xbc0] sm:$0xff] }
  0x73   : > { %650 = vst [vmem:[%s12574_s22 + $0x5d0] sm:$0xff] %v649_v58  ;;  %652 = vst [vmem:[%s12574_s22 + $0x5d8] sm:$0xff] %v651_v59  ;;  %v655_v61 = vld [vmem:[%s12569_s21 + $0xbc8] sm:$0xff]  ;;  %v657_v62 = vld [vmem:[%s12569_s21 + $0xbd0] sm:$0xff] }
  0x74   : > { %654 = vst [vmem:[%s12574_s22 + $0x5e0] sm:$0xff] %v653_v60  ;;  %v659_v63 = vld [vmem:[%s12569_s21 + $0xbd8] sm:$0xff]  ;;  %656 = vst [vmem:[%s12574_s22 + $0x5e8] sm:$0xff] %v655_v61  ;;  %v661_v0 = vld [vmem:[%s12569_s21 + $0xc00] sm:$0xff] }
  0x75   : > { %658 = vst [vmem:[%s12574_s22 + $0x5f0] sm:$0xff] %v657_v62  ;;  %660 = vst [vmem:[%s12574_s22 + $0x5f8] sm:$0xff] %v659_v63  ;;  %v663_v1 = vld [vmem:[%s12569_s21 + $0xc08] sm:$0xff]  ;;  %v665_v2 = vld [vmem:[%s12569_s21 + $0xc10] sm:$0xff] }
  0x76   : > { %662 = vst [vmem:[%s12574_s22 + $0x600] sm:$0xff] %v661_v0  ;;  %664 = vst [vmem:[%s12574_s22 + $0x608] sm:$0xff] %v663_v1  ;;  %v667_v3 = vld [vmem:[%s12569_s21 + $0xc18] sm:$0xff]  ;;  %v669_v4 = vld [vmem:[%s12569_s21 + $0xc40] sm:$0xff] }
  0x77   : > { %666 = vst [vmem:[%s12574_s22 + $0x610] sm:$0xff] %v665_v2  ;;  %v671_v5 = vld [vmem:[%s12569_s21 + $0xc48] sm:$0xff]  ;;  %668 = vst [vmem:[%s12574_s22 + $0x618] sm:$0xff] %v667_v3  ;;  %v673_v6 = vld [vmem:[%s12569_s21 + $0xc50] sm:$0xff] }
  0x78   : > { %670 = vst [vmem:[%s12574_s22 + $0x620] sm:$0xff] %v669_v4  ;;  %672 = vst [vmem:[%s12574_s22 + $0x628] sm:$0xff] %v671_v5  ;;  %v675_v7 = vld [vmem:[%s12569_s21 + $0xc58] sm:$0xff]  ;;  %v677_v8 = vld [vmem:[%s12569_s21 + $0xc80] sm:$0xff] }
  0x79   : > { %674 = vst [vmem:[%s12574_s22 + $0x630] sm:$0xff] %v673_v6  ;;  %676 = vst [vmem:[%s12574_s22 + $0x638] sm:$0xff] %v675_v7  ;;  %v679_v9 = vld [vmem:[%s12569_s21 + $0xc88] sm:$0xff]  ;;  %v681_v10 = vld [vmem:[%s12569_s21 + $0xc90] sm:$0xff] }
  0x7a   : > { %678 = vst [vmem:[%s12574_s22 + $0x640] sm:$0xff] %v677_v8  ;;  %v683_v11 = vld [vmem:[%s12569_s21 + $0xc98] sm:$0xff]  ;;  %680 = vst [vmem:[%s12574_s22 + $0x648] sm:$0xff] %v679_v9  ;;  %v685_v12 = vld [vmem:[%s12569_s21 + $0xcc0] sm:$0xff] }
  0x7b   : > { %682 = vst [vmem:[%s12574_s22 + $0x650] sm:$0xff] %v681_v10  ;;  %684 = vst [vmem:[%s12574_s22 + $0x658] sm:$0xff] %v683_v11  ;;  %v687_v13 = vld [vmem:[%s12569_s21 + $0xcc8] sm:$0xff]  ;;  %v689_v14 = vld [vmem:[%s12569_s21 + $0xcd0] sm:$0xff] }
  0x7c   : > { %686 = vst [vmem:[%s12574_s22 + $0x660] sm:$0xff] %v685_v12  ;;  %688 = vst [vmem:[%s12574_s22 + $0x668] sm:$0xff] %v687_v13  ;;  %v691_v15 = vld [vmem:[%s12569_s21 + $0xcd8] sm:$0xff]  ;;  %v693_v16 = vld [vmem:[%s12569_s21 + $0xd00] sm:$0xff] }
  0x7d   : > { %690 = vst [vmem:[%s12574_s22 + $0x670] sm:$0xff] %v689_v14  ;;  %v695_v17 = vld [vmem:[%s12569_s21 + $0xd08] sm:$0xff]  ;;  %692 = vst [vmem:[%s12574_s22 + $0x678] sm:$0xff] %v691_v15  ;;  %v697_v18 = vld [vmem:[%s12569_s21 + $0xd10] sm:$0xff] }
  0x7e   : > { %694 = vst [vmem:[%s12574_s22 + $0x680] sm:$0xff] %v693_v16  ;;  %696 = vst [vmem:[%s12574_s22 + $0x688] sm:$0xff] %v695_v17  ;;  %v699_v19 = vld [vmem:[%s12569_s21 + $0xd18] sm:$0xff]  ;;  %v701_v20 = vld [vmem:[%s12569_s21 + $0xd40] sm:$0xff] }
  0x7f   : > { %698 = vst [vmem:[%s12574_s22 + $0x690] sm:$0xff] %v697_v18  ;;  %700 = vst [vmem:[%s12574_s22 + $0x698] sm:$0xff] %v699_v19  ;;  %v703_v21 = vld [vmem:[%s12569_s21 + $0xd48] sm:$0xff]  ;;  %v705_v22 = vld [vmem:[%s12569_s21 + $0xd50] sm:$0xff] }
  0x80   : > { %702 = vst [vmem:[%s12574_s22 + $0x6a0] sm:$0xff] %v701_v20  ;;  %v707_v23 = vld [vmem:[%s12569_s21 + $0xd58] sm:$0xff]  ;;  %704 = vst [vmem:[%s12574_s22 + $0x6a8] sm:$0xff] %v703_v21  ;;  %v709_v24 = vld [vmem:[%s12569_s21 + $0xd80] sm:$0xff] }
  0x81   : > { %706 = vst [vmem:[%s12574_s22 + $0x6b0] sm:$0xff] %v705_v22  ;;  %708 = vst [vmem:[%s12574_s22 + $0x6b8] sm:$0xff] %v707_v23  ;;  %v711_v25 = vld [vmem:[%s12569_s21 + $0xd88] sm:$0xff]  ;;  %v713_v26 = vld [vmem:[%s12569_s21 + $0xd90] sm:$0xff] }
  0x82   : > { %710 = vst [vmem:[%s12574_s22 + $0x6c0] sm:$0xff] %v709_v24  ;;  %712 = vst [vmem:[%s12574_s22 + $0x6c8] sm:$0xff] %v711_v25  ;;  %v715_v27 = vld [vmem:[%s12569_s21 + $0xd98] sm:$0xff]  ;;  %v717_v28 = vld [vmem:[%s12569_s21 + $0xdc0] sm:$0xff] }
  0x83   : > { %714 = vst [vmem:[%s12574_s22 + $0x6d0] sm:$0xff] %v713_v26  ;;  %v719_v29 = vld [vmem:[%s12569_s21 + $0xdc8] sm:$0xff]  ;;  %716 = vst [vmem:[%s12574_s22 + $0x6d8] sm:$0xff] %v715_v27  ;;  %v721_v30 = vld [vmem:[%s12569_s21 + $0xdd0] sm:$0xff] }
  0x84   : > { %718 = vst [vmem:[%s12574_s22 + $0x6e0] sm:$0xff] %v717_v28  ;;  %720 = vst [vmem:[%s12574_s22 + $0x6e8] sm:$0xff] %v719_v29  ;;  %v723_v31 = vld [vmem:[%s12569_s21 + $0xdd8] sm:$0xff]  ;;  %v725_v32 = vld [vmem:[%s12569_s21 + $0xe00] sm:$0xff] }
  0x85   : > { %722 = vst [vmem:[%s12574_s22 + $0x6f0] sm:$0xff] %v721_v30  ;;  %724 = vst [vmem:[%s12574_s22 + $0x6f8] sm:$0xff] %v723_v31  ;;  %v727_v33 = vld [vmem:[%s12569_s21 + $0xe08] sm:$0xff]  ;;  %v729_v34 = vld [vmem:[%s12569_s21 + $0xe10] sm:$0xff] }
  0x86   : > { %726 = vst [vmem:[%s12574_s22 + $0x700] sm:$0xff] %v725_v32  ;;  %v731_v35 = vld [vmem:[%s12569_s21 + $0xe18] sm:$0xff]  ;;  %728 = vst [vmem:[%s12574_s22 + $0x708] sm:$0xff] %v727_v33  ;;  %v733_v36 = vld [vmem:[%s12569_s21 + $0xe40] sm:$0xff] }
  0x87   : > { %730 = vst [vmem:[%s12574_s22 + $0x710] sm:$0xff] %v729_v34  ;;  %732 = vst [vmem:[%s12574_s22 + $0x718] sm:$0xff] %v731_v35  ;;  %v735_v37 = vld [vmem:[%s12569_s21 + $0xe48] sm:$0xff]  ;;  %v737_v38 = vld [vmem:[%s12569_s21 + $0xe50] sm:$0xff] }
  0x88   : > { %734 = vst [vmem:[%s12574_s22 + $0x720] sm:$0xff] %v733_v36  ;;  %736 = vst [vmem:[%s12574_s22 + $0x728] sm:$0xff] %v735_v37  ;;  %v739_v39 = vld [vmem:[%s12569_s21 + $0xe58] sm:$0xff]  ;;  %v741_v40 = vld [vmem:[%s12569_s21 + $0xe80] sm:$0xff] }
  0x89   : > { %738 = vst [vmem:[%s12574_s22 + $0x730] sm:$0xff] %v737_v38  ;;  %v743_v41 = vld [vmem:[%s12569_s21 + $0xe88] sm:$0xff]  ;;  %740 = vst [vmem:[%s12574_s22 + $0x738] sm:$0xff] %v739_v39  ;;  %v745_v42 = vld [vmem:[%s12569_s21 + $0xe90] sm:$0xff] }
  0x8a   : > { %742 = vst [vmem:[%s12574_s22 + $0x740] sm:$0xff] %v741_v40  ;;  %744 = vst [vmem:[%s12574_s22 + $0x748] sm:$0xff] %v743_v41  ;;  %v747_v43 = vld [vmem:[%s12569_s21 + $0xe98] sm:$0xff]  ;;  %v749_v44 = vld [vmem:[%s12569_s21 + $0xec0] sm:$0xff] }
  0x8b   : > { %746 = vst [vmem:[%s12574_s22 + $0x750] sm:$0xff] %v745_v42  ;;  %748 = vst [vmem:[%s12574_s22 + $0x758] sm:$0xff] %v747_v43  ;;  %v751_v45 = vld [vmem:[%s12569_s21 + $0xec8] sm:$0xff]  ;;  %v753_v46 = vld [vmem:[%s12569_s21 + $0xed0] sm:$0xff] }
  0x8c   : > { %750 = vst [vmem:[%s12574_s22 + $0x760] sm:$0xff] %v749_v44  ;;  %v755_v47 = vld [vmem:[%s12569_s21 + $0xed8] sm:$0xff]  ;;  %752 = vst [vmem:[%s12574_s22 + $0x768] sm:$0xff] %v751_v45  ;;  %v757_v48 = vld [vmem:[%s12569_s21 + $0xf00] sm:$0xff] }
  0x8d   : > { %754 = vst [vmem:[%s12574_s22 + $0x770] sm:$0xff] %v753_v46  ;;  %756 = vst [vmem:[%s12574_s22 + $0x778] sm:$0xff] %v755_v47  ;;  %v759_v49 = vld [vmem:[%s12569_s21 + $0xf08] sm:$0xff]  ;;  %v761_v50 = vld [vmem:[%s12569_s21 + $0xf10] sm:$0xff] }
  0x8e   : > { %758 = vst [vmem:[%s12574_s22 + $0x780] sm:$0xff] %v757_v48  ;;  %760 = vst [vmem:[%s12574_s22 + $0x788] sm:$0xff] %v759_v49  ;;  %v763_v51 = vld [vmem:[%s12569_s21 + $0xf18] sm:$0xff]  ;;  %v765_v52 = vld [vmem:[%s12569_s21 + $0xf40] sm:$0xff] }
  0x8f   : > { %762 = vst [vmem:[%s12574_s22 + $0x790] sm:$0xff] %v761_v50  ;;  %v767_v53 = vld [vmem:[%s12569_s21 + $0xf48] sm:$0xff]  ;;  %764 = vst [vmem:[%s12574_s22 + $0x798] sm:$0xff] %v763_v51  ;;  %v769_v54 = vld [vmem:[%s12569_s21 + $0xf50] sm:$0xff] }
  0x90   : > { %766 = vst [vmem:[%s12574_s22 + $0x7a0] sm:$0xff] %v765_v52  ;;  %768 = vst [vmem:[%s12574_s22 + $0x7a8] sm:$0xff] %v767_v53  ;;  %v771_v55 = vld [vmem:[%s12569_s21 + $0xf58] sm:$0xff]  ;;  %v773_v56 = vld [vmem:[%s12569_s21 + $0xf80] sm:$0xff] }
  0x91   : > { %770 = vst [vmem:[%s12574_s22 + $0x7b0] sm:$0xff] %v769_v54  ;;  %772 = vst [vmem:[%s12574_s22 + $0x7b8] sm:$0xff] %v771_v55  ;;  %v775_v57 = vld [vmem:[%s12569_s21 + $0xf88] sm:$0xff]  ;;  %v777_v58 = vld [vmem:[%s12569_s21 + $0xf90] sm:$0xff] }
  0x92   : > { %774 = vst [vmem:[%s12574_s22 + $0x7c0] sm:$0xff] %v773_v56  ;;  %v779_v59 = vld [vmem:[%s12569_s21 + $0xf98] sm:$0xff]  ;;  %776 = vst [vmem:[%s12574_s22 + $0x7c8] sm:$0xff] %v775_v57  ;;  %v781_v60 = vld [vmem:[%s12569_s21 + $0xfc0] sm:$0xff] }
  0x93   : > { %778 = vst [vmem:[%s12574_s22 + $0x7d0] sm:$0xff] %v777_v58  ;;  %780 = vst [vmem:[%s12574_s22 + $0x7d8] sm:$0xff] %v779_v59  ;;  %v783_v61 = vld [vmem:[%s12569_s21 + $0xfc8] sm:$0xff]  ;;  %v785_v62 = vld [vmem:[%s12569_s21 + $0xfd0] sm:$0xff] }
  0x94   : > { %782 = vst [vmem:[%s12574_s22 + $0x7e0] sm:$0xff] %v781_v60  ;;  %784 = vst [vmem:[%s12574_s22 + $0x7e8] sm:$0xff] %v783_v61  ;;  %v787_v63 = vld [vmem:[%s12569_s21 + $0xfd8] sm:$0xff] }
  0x95   : > { %786 = vst [vmem:[%s12574_s22 + $0x7f0] sm:$0xff] %v785_v62  ;;  %788 = vst [vmem:[%s12574_s22 + $0x7f8] sm:$0xff] %v787_v63 }
  0x96 PF: > { %s803_s23 = sand.u32 1, %s12464_s29   ;;  %s10664_s24 = sshll.u32 %s12468_s30, 15 }
  0x97   : > { %s10037_s25 = sshll.u32 %s803_s23, 11  ;;  %s13090_s11 = scalar_lea.hbm %s19115_s6, %s10664_s24 }
  0x98   : > { %s807_s12 = scalar_lea.vmem [#allocation4], %s10037_s25  ;;  %s13094_s17 = scalar_lea.sflag [#allocation5], %s803_s23 }
  0x99   : > { %s815_s16 = sshll.u32 %s807_s12, 4  ;;  %s12406_s18 = scalar_lea.hbm %s13090_s11, 32768  ;;  %s13092_s16 = int_to_ptr.vmem [resolvable:$true] %s815_s16 }
  0x9a   : > { %p12407_p8 = scmp.ne.s32.totalorder %s13090_s11, %s12406_s18  ;;  %s12410_s21 = scalar_lea.hbm %s19115_s6, 65536 }
  0x9b   : > { %p12411_p11 = scmp.lt.u32.totalorder %s13090_s11, %s19115_s6  ;;  %p12412_p12 = scmp.lt.u32.totalorder %s12410_s21, %s12406_s18 }
  0x9c   : > { %p12408_p9 = pnand %p12407_p8, %p12552_p4  ;;  %p12414_p0 = scmp.lt.u32.totalorder %s12406_s18, %s13090_s11 }
  0x9d   : > { %p12413_p13 = por %p12412_p12, %p12411_p11 }
  0x9e   : > { %p12409_p10 = pneg %p12408_p9 }
  0x9f   : > { %p12415_p1 = por %p12414_p0, %p12413_p13 }
  0xa1   : > { %p12416_p2 = pnand %p12415_p1, %p12409_p10 }
  0xa3   : > { %12419 = shalt.err (!%p12416_p2)
}
  0xa4   : > { %s12420_s23 = scalar_lea.vmem %s13092_s16, 32768  ;;  %s12470_s25 = smov [#allocation4]  }
  0xa5   : > { %p12421_p3 = scmp.ne.s32.totalorder %s13092_s16, %s12420_s23  ;;  %s12424_s26 = sshll.u32 %s12470_s25, 4  ;;  %s12425_s26 = int_to_ptr.vmem [resolvable:$false] %s12424_s26 }
  0xa6   : > { %s12426_s27 = scalar_lea.vmem %s12425_s26, 65536  ;;  %p12427_p8 = scmp.lt.s32.totalorder %s13092_s16, %s12425_s26 }
  0xa7   : > { %p12422_p5 = pnand %p12421_p3, %p12552_p4  ;;  %p12428_p9 = scmp.lt.s32.totalorder %s12426_s27, %s12420_s23 }
  0xa9   : > { %p12423_p7 = pneg %p12422_p5  ;;  %p12429_p11 = por %p12428_p9, %p12427_p8 }
  0xab   : > { %p12430_p12 = pnand %p12429_p11, %p12423_p7 }
  0xad   : > { %12433 = shalt.err (!%p12430_p12)
}
  0xae   : > { %s12471_s12 = smov 256   ;;  %s12472_s18 = smov 16  }
  0xaf   : > { %11411 = dma.hbm_to_vmem [thread:$0]  (%p12552_p4), %s13090_s11, 32768, %s13092_s16, %s13094_s17, %s12471_s12, %s12471_s12, %s12472_s18  }
  0xb0 PF: > { %p10041_p10 = scmp.ge.s32.totalorder %s12468_s30, 1  ;;  %p823_p13 = scmp.lt.s32.totalorder %s12468_s30, 3 }
  0xb2   : > { %p824_p0 = pnand %p10041_p10, %p823_p13 }
  0xb4   : > { %827 = sbr.rel (%p824_p0) target bundleno = 1802 (0x70a), region = 71 }
  0xbb   : > { %s830_s19 = sand.u32 1, %s12460_s28  }
  0xbc   : > { %s10042_s20 = sshll.u32 %s830_s19, 11  ;;  %s837_s22 = scalar_lea.sflag [#allocation5], %s830_s19 }
  0xbd   : > { %s13121_s21 = scalar_lea.vmem [#allocation3], %s10042_s20  ;;  %s13123_s24 = scalar_lea.vmem [#allocation4], %s10042_s20 }
  0xbe   : > { %12451 = dma.done.wait (%p12557_p6), %s837_s22, 32768  }
  0xbf   : > { %12453 = vsyncadd (%p12557_p6), %s837_s22, 4294934528  ;;  %s10044_s14 = sshll.u32 %s12537_s9, 3  ;;  %p10045_p1 = scmp.ne.s32.totalorder %s12537_s9, 0 }
  0xc0   : > { %p878_p4 = scmp.lt.s32.totalorder %s10044_s14, 15 }
  0xc1   : > { %886 = sbr.rel (%p10045_p1) target bundleno = 636 (0x27c), region = 83 }
  0xc2   : > { %s19887_s14 = smov (!%p878_p4, %s10044_s14), 15 }
  0xc3   : > { %s13133_s16 = scalar_lea.vmem %s19114_s5, %s19887_s14 }
  0xc8   : > { %v891_v0 = vld [vmem:[%s19109_s0 + $0x20] sm:$0xff]  ;;  %v892_v1 = vld [vmem:[%s19109_s0 + $0x28] sm:$0xff]  ;;  %v893_v2 = vld [vmem:[%s19109_s0 + $0x30] sm:$0xff]  ;;  %vm1307_vm0 = vcmask 1043456  }
  0xc9   : > { %v894_v3 = vld [vmem:[%s19109_s0 + $0x38] sm:$0xff]  ;;  %v991_v4 = vld [vmem:[%s19110_s1 + $0x20] sm:$0xff]  ;;  %v992_v5 = vld [vmem:[%s19110_s1 + $0x28] sm:$0xff] }
  0xca   : > { %v993_v6 = vld [vmem:[%s19110_s1 + $0x30] sm:$0xff]  ;;  %v994_v7 = vld [vmem:[%s19110_s1 + $0x38] sm:$0xff]  ;;  %v13160_v8 = vadd.f32 %v991_v4, %v891_v0  ;;  %v13162_v9 = vadd.f32 %v992_v5, %v892_v1  ;;  %v887_v10 = vld [vmem:[%s19109_s0] sm:$0xff] }
  0xcb   : > { %v13167_v11 = vadd.f32 %v993_v6, %v893_v2  ;;  %v888_v12 = vld [vmem:[%s19109_s0 + $0x8] sm:$0xff]  ;;  %v889_v13 = vld [vmem:[%s19109_s0 + $0x10] sm:$0xff]  ;;  %v890_v14 = vld [vmem:[%s19109_s0 + $0x18] sm:$0xff]  ;;  %v13178_v15 = vadd.f32 %v994_v7, %v894_v3 }
  0xcc   : > { %v1192_v16 = vadd.f32 %v13162_v9, %v13160_v8  ;;  %v987_v17 = vld [vmem:[%s19110_s1] sm:$0xff]  ;;  %v988_v18 = vld [vmem:[%s19110_s1 + $0x8] sm:$0xff]  ;;  %v989_v19 = vld [vmem:[%s19110_s1 + $0x10] sm:$0xff] }
  0xcd   : > { %v990_v20 = vld [vmem:[%s19110_s1 + $0x18] sm:$0xff]  ;;  %v13194_v21 = vadd.f32 %v987_v17, %v887_v10  ;;  %v13196_v22 = vadd.f32 %v988_v18, %v888_v12  ;;  %v13198_v23 = vadd.f32 %v989_v19, %v889_v13  ;;  %v895_v24 = vld [vmem:[%s19109_s0 + $0x40] sm:$0xff]  ;;  %v896_v25 = vld [vmem:[%s19109_s0 + $0x48] sm:$0xff] }
  0xce   : > { %v1193_v26 = vadd.f32 %v1192_v16, %v13167_v11  ;;  %v897_v27 = vld [vmem:[%s19109_s0 + $0x50] sm:$0xff]  ;;  %v898_v28 = vld [vmem:[%s19109_s0 + $0x58] sm:$0xff]  ;;  %v995_v29 = vld [vmem:[%s19110_s1 + $0x40] sm:$0xff]  ;;  %v13216_v30 = vadd.f32 %v990_v20, %v890_v14 }
  0xcf   : > { %v1187_v31 = vadd.f32 %v13196_v22, %v13194_v21  ;;  %v996_v32 = vld [vmem:[%s19110_s1 + $0x48] sm:$0xff]  ;;  %v997_v33 = vld [vmem:[%s19110_s1 + $0x50] sm:$0xff]  ;;  %v998_v34 = vld [vmem:[%s19110_s1 + $0x58] sm:$0xff]  ;;  %v13229_v35 = vadd.f32 %v995_v29, %v895_v24 }
  0xd0   : > { %v1194_v36 = vadd.f32 %v1193_v26, %v13178_v15  ;;  %v13232_v37 = vadd.f32 %v996_v32, %v896_v25  ;;  %v13234_v38 = vadd.f32 %v997_v33, %v897_v27  ;;  %v899_v39 = vld [vmem:[%s19109_s0 + $0x60] sm:$0xff]  ;;  %v900_v40 = vld [vmem:[%s19109_s0 + $0x68] sm:$0xff]  ;;  %v901_v41 = vld [vmem:[%s19109_s0 + $0x70] sm:$0xff]  ;;  %v13255_v46 = vadd.f32 %v998_v34, %v898_v28 }
  0xd1   : > { %v1188_v42 = vadd.f32 %v1187_v31, %v13198_v23  ;;  %v902_v43 = vld [vmem:[%s19109_s0 + $0x78] sm:$0xff]  ;;  %v999_v44 = vld [vmem:[%s19110_s1 + $0x60] sm:$0xff]  ;;  %v1000_v45 = vld [vmem:[%s19110_s1 + $0x68] sm:$0xff] }
  0xd2   : > { %1195 = vadd.xlane.f32.xlu1 %v1194_v36  ;;  %v1197_v47 = vadd.f32 %v13232_v37, %v13229_v35  ;;  %v1001_v48 = vld [vmem:[%s19110_s1 + $0x70] sm:$0xff]  ;;  %v1002_v49 = vld [vmem:[%s19110_s1 + $0x78] sm:$0xff]  ;;  %v13265_v50 = vadd.f32 %v999_v44, %v899_v39  ;;  %v13267_v51 = vadd.f32 %v1000_v45, %v900_v40  ;;  %v903_v52 = vld [vmem:[%s19109_s0 + $0x80] sm:$0xff] }
  0xd3   : > { %v1189_v53 = vadd.f32 %v1188_v42, %v13216_v30  ;;  %v13273_v54 = vadd.f32 %v1001_v48, %v901_v41  ;;  %v904_v55 = vld [vmem:[%s19109_s0 + $0x88] sm:$0xff]  ;;  %v905_v56 = vld [vmem:[%s19109_s0 + $0x90] sm:$0xff]  ;;  %v906_v57 = vld [vmem:[%s19109_s0 + $0x98] sm:$0xff]  ;;  %v13285_v59 = vadd.f32 %v1002_v49, %v902_v43 }
  0xd4   : > { %v1198_v58 = vadd.f32 %v1197_v47, %v13234_v38  ;;  %v1202_v60 = vadd.f32 %v13267_v51, %v13265_v50  ;;  %v1003_v61 = vld [vmem:[%s19110_s1 + $0x80] sm:$0xff]  ;;  %v1004_v62 = vld [vmem:[%s19110_s1 + $0x88] sm:$0xff]  ;;  %v1005_v63 = vld [vmem:[%s19110_s1 + $0x90] sm:$0xff] }
  0xd5   : > { %1190 = vadd.xlane.f32.xlu0 %v1189_v53  ;;  %v1006_v0 = vld [vmem:[%s19110_s1 + $0x98] sm:$0xff]  ;;  %v13301_v1 = vadd.f32 %v1003_v61, %v903_v52  ;;  %v13303_v2 = vadd.f32 %v1004_v62, %v904_v55  ;;  %v13305_v3 = vadd.f32 %v1005_v63, %v905_v56  ;;  %v983_v4 = vld [vmem:[%s19109_s0 + $0x300] sm:$0xf]  ;;  %v984_v5 = vld [vmem:[%s19109_s0 + $0x308] sm:$0xf] }
  0xd6   : > { %v1199_v6 = vadd.f32 %v1198_v58, %v13255_v46  ;;  %v1203_v7 = vadd.f32 %v1202_v60, %v13273_v54  ;;  %v985_v10 = vld [vmem:[%s19109_s0 + $0x310] sm:$0xf]  ;;  %v986_v12 = vld [vmem:[%s19109_s0 + $0x318] sm:$0xf]  ;;  %v1083_v13 = vld [vmem:[%s19110_s1 + $0x300] sm:$0xf]  ;;  %v13324_v14 = vadd.f32 %v1006_v0, %v906_v57 }
  0xd7   : > { %v1207_v16 = vadd.f32 %v13303_v2, %v13301_v1  ;;  %v1084_v17 = vld [vmem:[%s19110_s1 + $0x308] sm:$0xf]  ;;  %v1085_v18 = vld [vmem:[%s19110_s1 + $0x310] sm:$0xf]  ;;  %v1086_v19 = vld [vmem:[%s19110_s1 + $0x318] sm:$0xf]  ;;  %v13337_v20 = vadd.f32 %v1083_v13, %v983_v4 }
  0xd8   : > { %1200 = vadd.xlane.f32.xlu1 %v1199_v6  ;;  %v1204_v24 = vadd.f32 %v1203_v7, %v13285_v59  ;;  %v13340_v25 = vadd.f32 %v1084_v17, %v984_v5  ;;  %v13342_v26 = vadd.f32 %v1085_v18, %v985_v10  ;;  %v13344_v27 = vadd.f32 %v1086_v19, %v986_v12  ;;  %v911_v28 = vld [vmem:[%s19109_s0 + $0xc0] sm:$0xff]  ;;  %v912_v29 = vld [vmem:[%s19109_s0 + $0xc8] sm:$0xff]  ;;  %v913_v31 = vld [vmem:[%s19109_s0 + $0xd0] sm:$0xff] }
  0xd9   : > { %v1208_v32 = vadd.f32 %v1207_v16, %v13305_v3  ;;  %v1308_v33 = vsel %vm1307_vm0, %v13337_v20, 0.0  ;;  %v914_v34 = vld [vmem:[%s19109_s0 + $0xd8] sm:$0xff]  ;;  %v1011_v36 = vld [vmem:[%s19110_s1 + $0xc0] sm:$0xff]  ;;  %v1012_v39 = vld [vmem:[%s19110_s1 + $0xc8] sm:$0xff] }
  0xda   : > { %19274 = vst [vmem:[#allocation7_spill] sm:$0xff] %v13344_v27  ;;  %1205 = vadd.xlane.f32.xlu0 %v1204_v24  ;;  %v1309_v40 = vsel %vm1307_vm0, %v13340_v25, 0.0  ;;  %v1311_v41 = vsel %vm1307_vm0, %v13342_v26, 0.0  ;;  %v1013_v42 = vld [vmem:[%s19110_s1 + $0xd0] sm:$0xff]  ;;  %v1014_v43 = vld [vmem:[%s19110_s1 + $0xd8] sm:$0xff]  ;;  %v13377_v44 = vadd.f32 %v1011_v36, %v911_v28  ;;  %v907_v45 = vld [vmem:[%s19109_s0 + $0xa0] sm:$0xff]  ;;  %v13383_v49 = vadd.f32 %v1012_v39, %v912_v29 }
  0xdb   : > { %v1209_v47 = vadd.f32 %v1208_v32, %v13324_v14  ;;  %v1310_v48 = vadd.f32 %v1309_v40, %v1308_v33  ;;  %v13385_v52 = vadd.f32 %v1013_v42, %v913_v31  ;;  %v908_v53 = vld [vmem:[%s19109_s0 + $0xa8] sm:$0xff]  ;;  %v909_v55 = vld [vmem:[%s19109_s0 + $0xb0] sm:$0xff]  ;;  %v910_v56 = vld [vmem:[%s19109_s0 + $0xb8] sm:$0xff]  ;;  %v1313_v57 = vsel %vm1307_vm0, %v13344_v27, 0.0 }
  0xdc   : > { %v13398_v58 = vadd.f32 %v1014_v43, %v914_v34  ;;  %v1007_v60 = vld [vmem:[%s19110_s1 + $0xa0] sm:$0xff]  ;;  %v1008_v61 = vld [vmem:[%s19110_s1 + $0xa8] sm:$0xff]  ;;  %v1009_v62 = vld [vmem:[%s19110_s1 + $0xb0] sm:$0xff]  ;;  %v1217_v0 = vadd.f32 %v13383_v49, %v13377_v44 }
  0xdd   : > { %1210 = vadd.xlane.f32.xlu1 %v1209_v47  ;;  %v1312_v63 = vadd.f32 %v1311_v41, %v1310_v48  ;;  %v1010_v4 = vld [vmem:[%s19110_s1 + $0xb8] sm:$0xff]  ;;  %v13414_v5 = vadd.f32 %v1007_v60, %v907_v45  ;;  %v13416_v6 = vadd.f32 %v1008_v61, %v908_v53  ;;  %v919_v7 = vld [vmem:[%s19109_s0 + $0x100] sm:$0xff]  ;;  %v920_v10 = vld [vmem:[%s19109_s0 + $0x108] sm:$0xff]  ;;  %v13424_v12 = vadd.f32 %v1009_v62, %v909_v55 }
  0xde   : > { %v13426_v13 = vadd.f32 %v1010_v4, %v910_v56  ;;  %v921_v16 = vld [vmem:[%s19109_s0 + $0x110] sm:$0xff]  ;;  %v922_v17 = vld [vmem:[%s19109_s0 + $0x118] sm:$0xff]  ;;  %v1019_v18 = vld [vmem:[%s19110_s1 + $0x100] sm:$0xff]  ;;  %v1218_v24 = vadd.f32 %v1217_v0, %v13385_v52 }
  0xdf   : > { %v1314_v19 = vadd.f32 %v1313_v57, %v1312_v63  ;;  %v1212_v28 = vadd.f32 %v13416_v6, %v13414_v5  ;;  %v1020_v29 = vld [vmem:[%s19110_s1 + $0x108] sm:$0xff]  ;;  %v1021_v31 = vld [vmem:[%s19110_s1 + $0x110] sm:$0xff]  ;;  %v1022_v32 = vld [vmem:[%s19110_s1 + $0x118] sm:$0xff]  ;;  %v13449_v33 = vadd.f32 %v1019_v18, %v919_v7 }
  0xe0   : > { %v13451_v34 = vadd.f32 %v1020_v29, %v920_v10  ;;  %v13453_v36 = vadd.f32 %v1021_v31, %v921_v16  ;;  %v915_v39 = vld [vmem:[%s19109_s0 + $0xe0] sm:$0xff]  ;;  %v916_v40 = vld [vmem:[%s19109_s0 + $0xe8] sm:$0xff]  ;;  %v917_v41 = vld [vmem:[%s19109_s0 + $0xf0] sm:$0xff]  ;;  %v1219_v42 = vadd.f32 %v1218_v24, %v13398_v58  ;;  %v13475_v53 = vadd.f32 %v1022_v32, %v922_v17 }
  0xe1   : > { %1315 = vadd.xlane.f32.xlu0 %v1314_v19  ;;  %v1213_v43 = vadd.f32 %v1212_v28, %v13424_v12  ;;  %v918_v45 = vld [vmem:[%s19109_s0 + $0xf8] sm:$0xff]  ;;  %v1015_v47 = vld [vmem:[%s19110_s1 + $0xe0] sm:$0xff]  ;;  %v1016_v48 = vld [vmem:[%s19110_s1 + $0xe8] sm:$0xff] }
  0xe2   : > { %v1227_v55 = vadd.f32 %v13451_v34, %v13449_v33  ;;  %v1017_v56 = vld [vmem:[%s19110_s1 + $0xf0] sm:$0xff]  ;;  %v1018_v57 = vld [vmem:[%s19110_s1 + $0xf8] sm:$0xff]  ;;  %v13485_v60 = vadd.f32 %v1015_v47, %v915_v39  ;;  %v13487_v61 = vadd.f32 %v1016_v48, %v916_v40  ;;  %v927_v62 = vld [vmem:[%s19109_s0 + $0x140] sm:$0xff]  ;;  %1220 = vadd.xlane.f32.xlu1 %v1219_v42 }
  0xe3   : > { %v1214_v63 = vadd.f32 %v1213_v43, %v13426_v13  ;;  %v13493_v0 = vadd.f32 %v1017_v56, %v917_v41  ;;  %v928_v4 = vld [vmem:[%s19109_s0 + $0x148] sm:$0xff]  ;;  %v929_v7 = vld [vmem:[%s19109_s0 + $0x150] sm:$0xff]  ;;  %v930_v10 = vld [vmem:[%s19109_s0 + $0x158] sm:$0xff]  ;;  %v13505_v17 = vadd.f32 %v1018_v57, %v918_v45 }
  0xe4   : > { %v1228_v16 = vadd.f32 %v1227_v55, %v13453_v36  ;;  %v1222_v18 = vadd.f32 %v13487_v61, %v13485_v60  ;;  %v1027_v19 = vld [vmem:[%s19110_s1 + $0x140] sm:$0xff]  ;;  %v1028_v24 = vld [vmem:[%s19110_s1 + $0x148] sm:$0xff]  ;;  %v1029_v28 = vld [vmem:[%s19110_s1 + $0x150] sm:$0xff] }
  0xe5   : > { %1215 = vadd.xlane.f32.xlu0 %v1214_v63  ;;  %v1030_v29 = vld [vmem:[%s19110_s1 + $0x158] sm:$0xff]  ;;  %v13521_v31 = vadd.f32 %v1027_v19, %v927_v62  ;;  %v13523_v32 = vadd.f32 %v1028_v24, %v928_v4  ;;  %v13525_v39 = vadd.f32 %v1029_v28, %v929_v7  ;;  %v923_v40 = vld [vmem:[%s19109_s0 + $0x120] sm:$0xff]  ;;  %v924_v41 = vld [vmem:[%s19109_s0 + $0x128] sm:$0xff] }
  0xe6   : > { %v1229_v42 = vadd.f32 %v1228_v16, %v13475_v53  ;;  %v1223_v43 = vadd.f32 %v1222_v18, %v13493_v0  ;;  %v925_v45 = vld [vmem:[%s19109_s0 + $0x130] sm:$0xff]  ;;  %v926_v47 = vld [vmem:[%s19109_s0 + $0x138] sm:$0xff]  ;;  %v1023_v48 = vld [vmem:[%s19110_s1 + $0x120] sm:$0xff]  ;;  %v13544_v55 = vadd.f32 %v1030_v29, %v930_v10 }
  0xe7   : > { %v1237_v56 = vadd.f32 %v13523_v32, %v13521_v31  ;;  %v1024_v57 = vld [vmem:[%s19110_s1 + $0x128] sm:$0xff]  ;;  %v1025_v62 = vld [vmem:[%s19110_s1 + $0x130] sm:$0xff]  ;;  %v1026_v63 = vld [vmem:[%s19110_s1 + $0x138] sm:$0xff]  ;;  %v13557_v4 = vadd.f32 %v1023_v48, %v923_v40 }
  0xe8   : > { %19275 = vst [vmem:[#allocation8_spill] sm:$0xff] %v13544_v55  ;;  %1230 = vadd.xlane.f32.xlu1 %v1229_v42  ;;  %v1224_v7 = vadd.f32 %v1223_v43, %v13505_v17  ;;  %v13560_v10 = vadd.f32 %v1024_v57, %v924_v41  ;;  %v13562_v16 = vadd.f32 %v1025_v62, %v925_v45  ;;  %v935_v18 = vld [vmem:[%s19109_s0 + $0x180] sm:$0xff]  ;;  %v936_v19 = vld [vmem:[%s19109_s0 + $0x188] sm:$0xff]  ;;  %v937_v24 = vld [vmem:[%s19109_s0 + $0x190] sm:$0xff] }
  0xe9   : > { %19276 = vst [vmem:[#allocation9_spill] sm:$0xff] %v13557_v4  ;;  %v1238_v28 = vadd.f32 %v1237_v56, %v13525_v39  ;;  %v938_v29 = vld [vmem:[%s19109_s0 + $0x198] sm:$0xff]  ;;  %v1035_v40 = vld [vmem:[%s19110_s1 + $0x180] sm:$0xff]  ;;  %v1036_v41 = vld [vmem:[%s19110_s1 + $0x188] sm:$0xff]  ;;  %v13583_v42 = vadd.f32 %v1026_v63, %v926_v47 }
  0xea   : > { %19277 = vst [vmem:[#allocation10_spill] sm:$0xff] %v13560_v10  ;;  %19278 = vst [vmem:[#allocation11_spill] sm:$0xff] %v13562_v16  ;;  %1225 = vadd.xlane.f32.xlu0 %v1224_v7  ;;  %v1232_v43 = vadd.f32 %v13560_v10, %v13557_v4  ;;  %v1037_v45 = vld [vmem:[%s19110_s1 + $0x190] sm:$0xff]  ;;  %v1038_v48 = vld [vmem:[%s19110_s1 + $0x198] sm:$0xff]  ;;  %v13593_v56 = vadd.f32 %v1035_v40, %v935_v18  ;;  %v13595_v57 = vadd.f32 %v1036_v41, %v936_v19 }
  0xeb   : > { %19279 = vst [vmem:[#allocation12_spill] sm:$0xff] %v13583_v42  ;;  %v931_v47 = vld [vmem:[%s19109_s0 + $0x160] sm:$0xff]  ;;  %v1239_v62 = vadd.f32 %v1238_v28, %v13544_v55  ;;  %v13601_v63 = vadd.f32 %v1037_v45, %v937_v24  ;;  %v932_v7 = vld [vmem:[%s19109_s0 + $0x168] sm:$0xff]  ;;  %v933_v27 = vld [vmem:[%s19109_s0 + $0x170] sm:$0xff]  ;;  %v13613_v40 = vadd.f32 %v1038_v48, %v938_v29 }
  0xec   : > { %19280 = vst [vmem:[#allocation13_spill] sm:$0xff] %v13593_v56  ;;  %19281 = vst [vmem:[#allocation14_spill] sm:$0xff] %v13595_v57  ;;  %v934_v18 = vld [vmem:[%s19109_s0 + $0x178] sm:$0xff]  ;;  %v1233_v19 = vadd.f32 %v1232_v43, %v13562_v16  ;;  %v1247_v24 = vadd.f32 %v13595_v57, %v13593_v56  ;;  %v1031_v28 = vld [vmem:[%s19110_s1 + $0x160] sm:$0xff] }
  0xed   : > { %19282 = vst [vmem:[#allocation15_spill] sm:$0xff] %v13601_v63  ;;  %19283 = vst [vmem:[#allocation16_spill] sm:$0xff] %v13613_v40  ;;  %v1032_v41 = vld [vmem:[%s19110_s1 + $0x168] sm:$0xff]  ;;  %v1033_v45 = vld [vmem:[%s19110_s1 + $0x170] sm:$0xff]  ;;  %1240 = vadd.xlane.f32.xlu1 %v1239_v62  ;;  %v13629_v43 = vadd.f32 %v1031_v28, %v931_v47 }
  0xee   : > { %v1034_v29 = vld [vmem:[%s19110_s1 + $0x178] sm:$0xff]  ;;  %v13631_v48 = vadd.f32 %v1032_v41, %v932_v7  ;;  %v13633_v16 = vadd.f32 %v1033_v45, %v933_v27  ;;  %v943_v57 = vld [vmem:[%s19109_s0 + $0x1c0] sm:$0xff]  ;;  %v944_v56 = vld [vmem:[%s19109_s0 + $0x1c8] sm:$0xff]  ;;  %v1234_v62 = vadd.f32 %v1233_v19, %v13583_v42  ;;  %v1248_v55 = vadd.f32 %v1247_v24, %v13601_v63 }
  0xef   : > { %19284 = vst [vmem:[#allocation17_spill] sm:$0xff] %v13629_v43  ;;  %v945_v47 = vld [vmem:[%s19109_s0 + $0x1d0] sm:$0xff]  ;;  %v946_v27 = vld [vmem:[%s19109_s0 + $0x1d8] sm:$0xff]  ;;  %v1043_v7 = vld [vmem:[%s19110_s1 + $0x1c0] sm:$0xff]  ;;  %v13652_v28 = vadd.f32 %v1034_v29, %v934_v18 }
  0xf0   : > { %19285 = vst [vmem:[#allocation18_spill] sm:$0xff] %v13631_v48  ;;  %19286 = vst [vmem:[#allocation19_spill] sm:$0xff] %v13633_v16  ;;  %v1242_v41 = vadd.f32 %v13631_v48, %v13629_v43  ;;  %v1044_v19 = vld [vmem:[%s19110_s1 + $0x1c8] sm:$0xff]  ;;  %v1045_v24 = vld [vmem:[%s19110_s1 + $0x1d0] sm:$0xff]  ;;  %v13665_v63 = vadd.f32 %v1043_v7, %v943_v57  ;;  %1235 = vadd.xlane.f32.xlu0 %v1234_v62  ;;  %v1249_v18 = vadd.f32 %v1248_v55, %v13613_v40 }
  0xf1   : > { %19287 = vst [vmem:[#allocation20_spill] sm:$0xff] %v13652_v28  ;;  %v1046_v45 = vld [vmem:[%s19110_s1 + $0x1d8] sm:$0xff]  ;;  %v13668_v29 = vadd.f32 %v1044_v19, %v944_v56  ;;  %v13670_v48 = vadd.f32 %v1045_v24, %v945_v47  ;;  %v939_v43 = vld [vmem:[%s19109_s0 + $0x1a0] sm:$0xff]  ;;  %v940_v42 = vld [vmem:[%s19109_s0 + $0x1a8] sm:$0xff] }
  0xf2   : > { %19288 = vst [vmem:[#allocation21_spill] sm:$0xff] %v13665_v63  ;;  %v941_v57 = vld [vmem:[%s19109_s0 + $0x1b0] sm:$0xff]  ;;  %v1243_v62 = vadd.f32 %v1242_v41, %v13633_v16  ;;  %v942_v55 = vld [vmem:[%s19109_s0 + $0x1b8] sm:$0xff]  ;;  %v1039_v56 = vld [vmem:[%s19110_s1 + $0x1a0] sm:$0xff]  ;;  %1250 = vadd.xlane.f32.xlu1 %v1249_v18  ;;  %v13691_v7 = vadd.f32 %v1046_v45, %v946_v27 }
  0xf3   : > { %19289 = vst [vmem:[#allocation22_spill] sm:$0xff] %v13668_v29  ;;  %19290 = vst [vmem:[#allocation23_spill] sm:$0xff] %v13670_v48  ;;  %v1040_v47 = vld [vmem:[%s19110_s1 + $0x1a8] sm:$0xff]  ;;  %v1257_v19 = vadd.f32 %v13668_v29, %v13665_v63  ;;  %v1041_v41 = vld [vmem:[%s19110_s1 + $0x1b0] sm:$0xff]  ;;  %v13701_v16 = vadd.f32 %v1039_v56, %v939_v43 }
  0xf4   : > { %19291 = vst [vmem:[#allocation24_spill] sm:$0xff] %v13691_v7  ;;  %v1042_v24 = vld [vmem:[%s19110_s1 + $0x1b8] sm:$0xff]  ;;  %v13703_v40 = vadd.f32 %v1040_v47, %v940_v42  ;;  %v951_v27 = vld [vmem:[%s19109_s0 + $0x200] sm:$0xff]  ;;  %v1244_v45 = vadd.f32 %v1243_v62, %v13652_v28  ;;  %v13709_v18 = vadd.f32 %v1041_v41, %v941_v57  ;;  %v952_v29 = vld [vmem:[%s19109_s0 + $0x208] sm:$0xff] }
  0xf5   : > { %19292 = vst [vmem:[#allocation25_spill] sm:$0xff] %v13701_v16  ;;  %v953_v63 = vld [vmem:[%s19109_s0 + $0x210] sm:$0xff]  ;;  %v954_v42 = vld [vmem:[%s19109_s0 + $0x218] sm:$0xff]  ;;  %v1258_v43 = vadd.f32 %v1257_v19, %v13670_v48  ;;  %v13721_v56 = vadd.f32 %v1042_v24, %v942_v55  ;;  %v1051_v62 = vld [vmem:[%s19110_s1 + $0x200] sm:$0xff] }
  0xf6   : > { %19293 = vst [vmem:[#allocation26_spill] sm:$0xff] %v13703_v40  ;;  %19294 = vst [vmem:[#allocation27_spill] sm:$0xff] %v13709_v18  ;;  %v1252_v57 = vadd.f32 %v13703_v40, %v13701_v16  ;;  %v1052_v47 = vld [vmem:[%s19110_s1 + $0x208] sm:$0xff]  ;;  %v1053_v41 = vld [vmem:[%s19110_s1 + $0x210] sm:$0xff]  ;;  %1245 = vadd.xlane.f32.xlu0 %v1244_v45  ;;  %v13737_v19 = vadd.f32 %v1051_v62, %v951_v27 }
  0xf7   : > { %19295 = vst [vmem:[#allocation28_spill] sm:$0xff] %v13721_v56  ;;  %v1054_v55 = vld [vmem:[%s19110_s1 + $0x218] sm:$0xff]  ;;  %v13739_v24 = vadd.f32 %v1052_v47, %v952_v29  ;;  %v13741_v48 = vadd.f32 %v1053_v41, %v953_v63  ;;  %v947_v40 = vld [vmem:[%s19109_s0 + $0x1e0] sm:$0xff]  ;;  %v948_v16 = vld [vmem:[%s19109_s0 + $0x1e8] sm:$0xff]  ;;  %v1259_v45 = vadd.f32 %v1258_v43, %v13691_v7 }
  0xf8   : > { %19296 = vst [vmem:[#allocation29_spill] sm:$0xff] %v13737_v19  ;;  %v1253_v28 = vadd.f32 %v1252_v57, %v13709_v18  ;;  %v949_v27 = vld [vmem:[%s19109_s0 + $0x1f0] sm:$0xff]  ;;  %v950_v63 = vld [vmem:[%s19109_s0 + $0x1f8] sm:$0xff]  ;;  %v1047_v29 = vld [vmem:[%s19110_s1 + $0x1e0] sm:$0xff]  ;;  %v13760_v62 = vadd.f32 %v1054_v55, %v954_v42 }
  0xf9   : > { %19297 = vst [vmem:[#allocation30_spill] sm:$0xff] %v13739_v24  ;;  %19298 = vst [vmem:[#allocation31_spill] sm:$0xff] %v13741_v48  ;;  %v1267_v47 = vadd.f32 %v13739_v24, %v13737_v19  ;;  %v1048_v43 = vld [vmem:[%s19110_s1 + $0x1e8] sm:$0xff]  ;;  %v1049_v57 = vld [vmem:[%s19110_s1 + $0x1f0] sm:$0xff]  ;;  %v13773_v18 = vadd.f32 %v1047_v29, %v947_v40  ;;  %1260 = vadd.xlane.f32.xlu1 %v1259_v45 }
  0xfa   : > { %19299 = vst [vmem:[#allocation32_spill] sm:$0xff] %v13760_v62  ;;  %v1050_v41 = vld [vmem:[%s19110_s1 + $0x1f8] sm:$0xff]  ;;  %v1254_v42 = vadd.f32 %v1253_v28, %v13721_v56  ;;  %v13776_v55 = vadd.f32 %v1048_v43, %v948_v16  ;;  %v13778_v24 = vadd.f32 %v1049_v57, %v949_v27  ;;  %v959_v19 = vld [vmem:[%s19109_s0 + $0x240] sm:$0xff]  ;;  %v960_v7 = vld [vmem:[%s19109_s0 + $0x248] sm:$0xff] }
  0xfb   : > { %19300 = vst [vmem:[#allocation33_spill] sm:$0xff] %v13773_v18  ;;  %v961_v40 = vld [vmem:[%s19109_s0 + $0x250] sm:$0xff]  ;;  %v1268_v45 = vadd.f32 %v1267_v47, %v13741_v48  ;;  %v962_v16 = vld [vmem:[%s19109_s0 + $0x258] sm:$0xff]  ;;  %v1059_v28 = vld [vmem:[%s19110_s1 + $0x240] sm:$0xff]  ;;  %v13799_v29 = vadd.f32 %v1050_v41, %v950_v63 }
  0xfc   : > { %19301 = vst [vmem:[#allocation34_spill] sm:$0xff] %v13776_v55  ;;  %19302 = vst [vmem:[#allocation35_spill] sm:$0xff] %v13778_v24  ;;  %v1060_v27 = vld [vmem:[%s19110_s1 + $0x248] sm:$0xff]  ;;  %1255 = vadd.xlane.f32.xlu0 %v1254_v42  ;;  %v1262_v43 = vadd.f32 %v13776_v55, %v13773_v18  ;;  %v1061_v47 = vld [vmem:[%s19110_s1 + $0x250] sm:$0xff]  ;;  %v13809_v48 = vadd.f32 %v1059_v28, %v959_v19 }
  0xfd   : > { %19303 = vst [vmem:[#allocation36_spill] sm:$0xff] %v13799_v29  ;;  %v1062_v57 = vld [vmem:[%s19110_s1 + $0x258] sm:$0xff]  ;;  %v13811_v56 = vadd.f32 %v1060_v27, %v960_v7  ;;  %v955_v63 = vld [vmem:[%s19109_s0 + $0x220] sm:$0xff]  ;;  %v1269_v41 = vadd.f32 %v1268_v45, %v13760_v62  ;;  %v13817_v42 = vadd.f32 %v1061_v47, %v961_v40  ;;  %v956_v55 = vld [vmem:[%s19109_s0 + $0x228] sm:$0xff] }
  0xfe   : > { %19304 = vst [vmem:[#allocation37_spill] sm:$0xff] %v13809_v48  ;;  %v957_v18 = vld [vmem:[%s19109_s0 + $0x230] sm:$0xff]  ;;  %v958_v7 = vld [vmem:[%s19109_s0 + $0x238] sm:$0xff]  ;;  %v1263_v19 = vadd.f32 %v1262_v43, %v13778_v24  ;;  %v13829_v28 = vadd.f32 %v1062_v57, %v962_v16  ;;  %v1055_v45 = vld [vmem:[%s19110_s1 + $0x220] sm:$0xff] }
  0xff   : > { %19305 = vst [vmem:[#allocation38_spill] sm:$0xff] %v13811_v56  ;;  %19306 = vst [vmem:[#allocation39_spill] sm:$0xff] %v13817_v42  ;;  %v1277_v40 = vadd.f32 %v13811_v56, %v13809_v48  ;;  %v1056_v27 = vld [vmem:[%s19110_s1 + $0x228] sm:$0xff]  ;;  %v1057_v47 = vld [vmem:[%s19110_s1 + $0x230] sm:$0xff]  ;;  %1270 = vadd.xlane.f32.xlu1 %v1269_v41  ;;  %v13845_v43 = vadd.f32 %v1055_v45, %v955_v63 }
 0x100   : > { %19307 = vst [vmem:[#allocation40_spill] sm:$0xff] %v13829_v28  ;;  %v1058_v16 = vld [vmem:[%s19110_s1 + $0x238] sm:$0xff]  ;;  %v13847_v57 = vadd.f32 %v1056_v27, %v956_v55  ;;  %v13849_v56 = vadd.f32 %v1057_v47, %v957_v18  ;;  %v967_v24 = vld [vmem:[%s19109_s0 + $0x280] sm:$0xff]  ;;  %v968_v62 = vld [vmem:[%s19109_s0 + $0x288] sm:$0xff]  ;;  %v1264_v41 = vadd.f32 %v1263_v19, %v13799_v29 }
 0x101   : > { %19308 = vst [vmem:[#allocation41_spill] sm:$0xff] %v13845_v43  ;;  %v1278_v48 = vadd.f32 %v1277_v40, %v13817_v42  ;;  %v969_v63 = vld [vmem:[%s19109_s0 + $0x290] sm:$0xff]  ;;  %v970_v18 = vld [vmem:[%s19109_s0 + $0x298] sm:$0xff]  ;;  %v1067_v55 = vld [vmem:[%s19110_s1 + $0x280] sm:$0xff]  ;;  %v13868_v45 = vadd.f32 %v1058_v16, %v958_v7 }
 0x102   : > { %19309 = vst [vmem:[#allocation42_spill] sm:$0xff] %v13847_v57  ;;  %19310 = vst [vmem:[#allocation43_spill] sm:$0xff] %v13849_v56  ;;  %v1272_v27 = vadd.f32 %v13847_v57, %v13845_v43  ;;  %v1068_v19 = vld [vmem:[%s19110_s1 + $0x288] sm:$0xff]  ;;  %v1069_v40 = vld [vmem:[%s19110_s1 + $0x290] sm:$0xff]  ;;  %v13881_v42 = vadd.f32 %v1067_v55, %v967_v24  ;;  %1265 = vadd.xlane.f32.xlu0 %v1264_v41 }
 0x103   : > { %19311 = vst [vmem:[#allocation44_spill] sm:$0xff] %v13868_v45  ;;  %v1070_v47 = vld [vmem:[%s19110_s1 + $0x298] sm:$0xff]  ;;  %v1279_v7 = vadd.f32 %v1278_v48, %v13829_v28  ;;  %v13884_v16 = vadd.f32 %v1068_v19, %v968_v62  ;;  %v13886_v57 = vadd.f32 %v1069_v40, %v969_v63  ;;  %v963_v29 = vld [vmem:[%s19109_s0 + $0x260] sm:$0xff]  ;;  %v964_v43 = vld [vmem:[%s19109_s0 + $0x268] sm:$0xff] }
 0x104   : > { %19312 = vst [vmem:[#allocation45_spill] sm:$0xff] %v13881_v42  ;;  %v965_v24 = vld [vmem:[%s19109_s0 + $0x270] sm:$0xff]  ;;  %v1273_v41 = vadd.f32 %v1272_v27, %v13849_v56  ;;  %v966_v48 = vld [vmem:[%s19109_s0 + $0x278] sm:$0xff]  ;;  %v1063_v62 = vld [vmem:[%s19110_s1 + $0x260] sm:$0xff]  ;;  %v13907_v55 = vadd.f32 %v1070_v47, %v970_v18 }
 0x105   : > { %19313 = vst [vmem:[#allocation46_spill] sm:$0xff] %v13884_v16  ;;  %19314 = vst [vmem:[#allocation47_spill] sm:$0xff] %v13886_v57  ;;  %v1064_v63 = vld [vmem:[%s19110_s1 + $0x268] sm:$0xff]  ;;  %1280 = vadd.xlane.f32.xlu1 %v1279_v7  ;;  %v1287_v19 = vadd.f32 %v13884_v16, %v13881_v42  ;;  %v1065_v27 = vld [vmem:[%s19110_s1 + $0x270] sm:$0xff]  ;;  %v13917_v56 = vadd.f32 %v1063_v62, %v963_v29 }
 0x106   : > { %19315 = vst [vmem:[#allocation48_spill] sm:$0xff] %v13907_v55  ;;  %v1066_v40 = vld [vmem:[%s19110_s1 + $0x278] sm:$0xff]  ;;  %v13919_v28 = vadd.f32 %v1064_v63, %v964_v43  ;;  %v975_v18 = vld [vmem:[%s19109_s0 + $0x2c0] sm:$0xff]  ;;  %v1274_v47 = vadd.f32 %v1273_v41, %v13868_v45  ;;  %v13925_v7 = vadd.f32 %v1065_v27, %v965_v24  ;;  %v976_v16 = vld [vmem:[%s19109_s0 + $0x2c8] sm:$0xff] }
 0x107   : > { %19316 = vst [vmem:[#allocation49_spill] sm:$0xff] %v13917_v56  ;;  %v977_v42 = vld [vmem:[%s19109_s0 + $0x2d0] sm:$0xff]  ;;  %v978_v29 = vld [vmem:[%s19109_s0 + $0x2d8] sm:$0xff]  ;;  %v1288_v43 = vadd.f32 %v1287_v19, %v13886_v57  ;;  %v13937_v62 = vadd.f32 %v1066_v40, %v966_v48  ;;  %v1075_v41 = vld [vmem:[%s19110_s1 + $0x2c0] sm:$0xff] }
 0x108   : > { %19317 = vst [vmem:[#allocation50_spill] sm:$0xff] %v13919_v28  ;;  %19318 = vst [vmem:[#allocation51_spill] sm:$0xff] %v13925_v7  ;;  %v1282_v24 = vadd.f32 %v13919_v28, %v13917_v56  ;;  %v1076_v63 = vld [vmem:[%s19110_s1 + $0x2c8] sm:$0xff]  ;;  %v1077_v27 = vld [vmem:[%s19110_s1 + $0x2d0] sm:$0xff]  ;;  %1275 = vadd.xlane.f32.xlu0 %v1274_v47  ;;  %v13953_v19 = vadd.f32 %v1075_v41, %v975_v18 }
 0x109   : > { %19319 = vst [vmem:[#allocation52_spill] sm:$0xff] %v13937_v62  ;;  %v1078_v48 = vld [vmem:[%s19110_s1 + $0x2d8] sm:$0xff]  ;;  %v13955_v40 = vadd.f32 %v1076_v63, %v976_v16  ;;  %v13957_v57 = vadd.f32 %v1077_v27, %v977_v42  ;;  %v971_v45 = vld [vmem:[%s19109_s0 + $0x2a0] sm:$0xff]  ;;  %v972_v28 = vld [vmem:[%s19109_s0 + $0x2a8] sm:$0xff]  ;;  %v1289_v47 = vadd.f32 %v1288_v43, %v13907_v55 }
 0x10a   : > { %19320 = vst [vmem:[#allocation53_spill] sm:$0xff] %v13953_v19  ;;  %v1283_v56 = vadd.f32 %v1282_v24, %v13925_v7  ;;  %v973_v18 = vld [vmem:[%s19109_s0 + $0x2b0] sm:$0xff]  ;;  %v974_v42 = vld [vmem:[%s19109_s0 + $0x2b8] sm:$0xff]  ;;  %v1071_v16 = vld [vmem:[%s19110_s1 + $0x2a0] sm:$0xff]  ;;  %v13976_v41 = vadd.f32 %v1078_v48, %v978_v29 }
 0x10b   : > { %19321 = vst [vmem:[#allocation54_spill] sm:$0xff] %v13955_v40  ;;  %19322 = vst [vmem:[#allocation55_spill] sm:$0xff] %v13957_v57  ;;  %v1297_v63 = vadd.f32 %v13955_v40, %v13953_v19  ;;  %v1072_v43 = vld [vmem:[%s19110_s1 + $0x2a8] sm:$0xff]  ;;  %v1073_v24 = vld [vmem:[%s19110_s1 + $0x2b0] sm:$0xff]  ;;  %v13989_v7 = vadd.f32 %v1071_v16, %v971_v45  ;;  %1290 = vadd.xlane.f32.xlu1 %v1289_v47 }
 0x10c   : > { %v1074_v27 = vld [vmem:[%s19110_s1 + $0x2b8] sm:$0xff]  ;;  %v1284_v29 = vadd.f32 %v1283_v56, %v13937_v62  ;;  %v13992_v48 = vadd.f32 %v1072_v43, %v972_v28  ;;  %v13994_v55 = vadd.f32 %v1073_v24, %v973_v18  ;;  %v979_v40 = vld [vmem:[%s19109_s0 + $0x2e0] sm:$0xff]  ;;  %v980_v19 = vld [vmem:[%s19109_s0 + $0x2e8] sm:$0xff] }
 0x10d   : > { %19323 = vst [vmem:[#allocation56_spill] sm:$0xff] %v13989_v7  ;;  %v981_v45 = vld [vmem:[%s19109_s0 + $0x2f0] sm:$0xff]  ;;  %v1298_v47 = vadd.f32 %v1297_v63, %v13957_v57  ;;  %v982_v56 = vld [vmem:[%s19109_s0 + $0x2f8] sm:$0xff]  ;;  %v1079_v28 = vld [vmem:[%s19110_s1 + $0x2e0] sm:$0xff]  ;;  %v14015_v16 = vadd.f32 %v1074_v27, %v974_v42 }
 0x10e   : > { %19324 = vst [vmem:[#allocation57_spill] sm:$0xff] %v13992_v48  ;;  %v1080_v18 = vld [vmem:[%s19110_s1 + $0x2e8] sm:$0xff]  ;;  %1285 = vadd.xlane.f32.xlu0 %v1284_v29  ;;  %v1292_v43 = vadd.f32 %v13992_v48, %v13989_v7  ;;  %v1081_v63 = vld [vmem:[%s19110_s1 + $0x2f0] sm:$0xff]  ;;  %v1082_v24 = vld [vmem:[%s19110_s1 + $0x2f8] sm:$0xff]  ;;  %v14025_v57 = vadd.f32 %v1079_v28, %v979_v40  ;;  %v1849_v40 = vlaneseq }
 0x10f   : > { %v14027_v62 = vadd.f32 %v1080_v18, %v980_v19  ;;  %v1299_v10 = vadd.f32 %v1298_v47, %v13976_v41  ;;  %v14030_v29 = vadd.f32 %v1081_v63, %v981_v45  ;;  %v14033_v27 = vadd.f32 %v1082_v24, %v982_v56  ;;  %v2445_v45 = vld [vmem:[%s19116_s7] sm:$0xf] }
 0x110   : > { %v1293_v42 = vadd.f32 %v1292_v43, %v13994_v55  ;;  %v1850_v47 = vshrl.u32 %v1849_v40, 7 }
 0x111   : > { %v1302_v48 = vadd.f32 %v14027_v62, %v14025_v57  ;;  %1300 = vadd.xlane.f32.xlu1 %v1299_v10 }
 0x112   : > { %v1294_v7 = vadd.f32 %v1293_v42, %v14015_v16  ;;  %v14043_v56 = vsub.s32 0, %v1850_v47  ;;  %v14045_v28 = vsub.s32 1, %v1850_v47  ;;  %v14047_v18 = vsub.s32 2, %v1850_v47 }
 0x113   : > { %v1303_v4 = vadd.f32 %v1302_v48, %v14030_v29  ;;  %v14049_v10 = vsub.s32 3, %v1850_v47 }
 0x114   : > { %1295 = vadd.xlane.f32.xlu0 %v1294_v7  ;;  %v14052_v48 = vrot.slane %v2445_v45, %v14043_v56  ;;  %v14058_v7 = vrot.slane %v2445_v45, %v14047_v18 }
 0x115   : > { %v1304_v19 = vadd.f32 %v1303_v4, %v14033_v27  ;;  %v14055_v4 = vrot.slane %v2445_v45, %v14045_v28  ;;  %v14061_v43 = vrot.slane %v2445_v45, %v14049_v10 }
 0x116   : > { %2467 = vst [vmem:[%s19117_s8] sm:$0xff] %v14052_v48  ;;  %2469 = vst [vmem:[%s19117_s8 + $0x10] sm:$0xff] %v14058_v7 }
 0x117   : > { %2468 = vst [vmem:[%s19117_s8 + $0x8] sm:$0xff] %v14055_v4  ;;  %2470 = vst [vmem:[%s19117_s8 + $0x18] sm:$0xff] %v14061_v43 }
 0x118   : > { %1305 = vadd.xlane.f32.xlu0 %v1304_v19  ;;  %2471 = vst [vmem:[%s19117_s8 + $0x20] sm:$0xff] %v14052_v48  ;;  %2472 = vst [vmem:[%s19117_s8 + $0x28] sm:$0xff] %v14055_v4 }
 0x119   : > { %2473 = vst [vmem:[%s19117_s8 + $0x30] sm:$0xff] %v14058_v7  ;;  %2474 = vst [vmem:[%s19117_s8 + $0x38] sm:$0xff] %v14061_v43 }
 0x11a   : > { %2475 = vst [vmem:[%s19117_s8 + $0x40] sm:$0xff] %v14052_v48  ;;  %2476 = vst [vmem:[%s19117_s8 + $0x48] sm:$0xff] %v14055_v4 }
 0x11b   : > { %2477 = vst [vmem:[%s19117_s8 + $0x50] sm:$0xff] %v14058_v7  ;;  %2478 = vst [vmem:[%s19117_s8 + $0x58] sm:$0xff] %v14061_v43 }
 0x11c   : > { %2479 = vst [vmem:[%s19117_s8 + $0x60] sm:$0xff] %v14052_v48  ;;  %2480 = vst [vmem:[%s19117_s8 + $0x68] sm:$0xff] %v14055_v4 }
 0x11d   : > { %2481 = vst [vmem:[%s19117_s8 + $0x70] sm:$0xff] %v14058_v7  ;;  %2482 = vst [vmem:[%s19117_s8 + $0x78] sm:$0xff] %v14061_v43 }
 0x11e   : > { %2483 = vst [vmem:[%s19117_s8 + $0x80] sm:$0xff] %v14052_v48  ;;  %2484 = vst [vmem:[%s19117_s8 + $0x88] sm:$0xff] %v14055_v4 }
 0x11f   : > { %2485 = vst [vmem:[%s19117_s8 + $0x90] sm:$0xff] %v14058_v7  ;;  %2486 = vst [vmem:[%s19117_s8 + $0x98] sm:$0xff] %v14061_v43 }
 0x120   : > { %2487 = vst [vmem:[%s19117_s8 + $0xa0] sm:$0xff] %v14052_v48  ;;  %2488 = vst [vmem:[%s19117_s8 + $0xa8] sm:$0xff] %v14055_v4 }
 0x121   : > { %2489 = vst [vmem:[%s19117_s8 + $0xb0] sm:$0xff] %v14058_v7  ;;  %2490 = vst [vmem:[%s19117_s8 + $0xb8] sm:$0xff] %v14061_v43 }
 0x122   : > { %2491 = vst [vmem:[%s19117_s8 + $0xc0] sm:$0xff] %v14052_v48  ;;  %2492 = vst [vmem:[%s19117_s8 + $0xc8] sm:$0xff] %v14055_v4 }
 0x123   : > { %2493 = vst [vmem:[%s19117_s8 + $0xd0] sm:$0xff] %v14058_v7  ;;  %2494 = vst [vmem:[%s19117_s8 + $0xd8] sm:$0xff] %v14061_v43 }
 0x124   : > { %2495 = vst [vmem:[%s19117_s8 + $0xe0] sm:$0xff] %v14052_v48  ;;  %2496 = vst [vmem:[%s19117_s8 + $0xe8] sm:$0xff] %v14055_v4 }
 0x125   : > { %2497 = vst [vmem:[%s19117_s8 + $0xf0] sm:$0xff] %v14058_v7  ;;  %2498 = vst [vmem:[%s19117_s8 + $0xf8] sm:$0xff] %v14061_v43 }
 0x126   : > { %2499 = vst [vmem:[%s19117_s8 + $0x100] sm:$0xff] %v14052_v48  ;;  %2500 = vst [vmem:[%s19117_s8 + $0x108] sm:$0xff] %v14055_v4 }
 0x127   : > { %2501 = vst [vmem:[%s19117_s8 + $0x110] sm:$0xff] %v14058_v7  ;;  %2502 = vst [vmem:[%s19117_s8 + $0x118] sm:$0xff] %v14061_v43 }
 0x128   : > { %2503 = vst [vmem:[%s19117_s8 + $0x120] sm:$0xff] %v14052_v48  ;;  %2504 = vst [vmem:[%s19117_s8 + $0x128] sm:$0xff] %v14055_v4 }
 0x129   : > { %2505 = vst [vmem:[%s19117_s8 + $0x130] sm:$0xff] %v14058_v7  ;;  %2506 = vst [vmem:[%s19117_s8 + $0x138] sm:$0xff] %v14061_v43 }
 0x12a   : > { %2507 = vst [vmem:[%s19117_s8 + $0x140] sm:$0xff] %v14052_v48  ;;  %2508 = vst [vmem:[%s19117_s8 + $0x148] sm:$0xff] %v14055_v4 }
 0x12b   : > { %2509 = vst [vmem:[%s19117_s8 + $0x150] sm:$0xff] %v14058_v7  ;;  %2510 = vst [vmem:[%s19117_s8 + $0x158] sm:$0xff] %v14061_v43 }
 0x12c   : > { %2511 = vst [vmem:[%s19117_s8 + $0x160] sm:$0xff] %v14052_v48  ;;  %2512 = vst [vmem:[%s19117_s8 + $0x168] sm:$0xff] %v14055_v4 }
 0x12d   : > { %2513 = vst [vmem:[%s19117_s8 + $0x170] sm:$0xff] %v14058_v7  ;;  %2514 = vst [vmem:[%s19117_s8 + $0x178] sm:$0xff] %v14061_v43 }
 0x12e   : > { %2515 = vst [vmem:[%s19117_s8 + $0x180] sm:$0xff] %v14052_v48  ;;  %2516 = vst [vmem:[%s19117_s8 + $0x188] sm:$0xff] %v14055_v4 }
 0x12f   : > { %2517 = vst [vmem:[%s19117_s8 + $0x190] sm:$0xff] %v14058_v7  ;;  %2518 = vst [vmem:[%s19117_s8 + $0x198] sm:$0xff] %v14061_v43 }
 0x130   : > { %2519 = vst [vmem:[%s19117_s8 + $0x1a0] sm:$0xff] %v14052_v48  ;;  %2520 = vst [vmem:[%s19117_s8 + $0x1a8] sm:$0xff] %v14055_v4 }
 0x131   : > { %2521 = vst [vmem:[%s19117_s8 + $0x1b0] sm:$0xff] %v14058_v7  ;;  %2522 = vst [vmem:[%s19117_s8 + $0x1b8] sm:$0xff] %v14061_v43 }
 0x132   : > { %2523 = vst [vmem:[%s19117_s8 + $0x1c0] sm:$0xff] %v14052_v48  ;;  %2524 = vst [vmem:[%s19117_s8 + $0x1c8] sm:$0xff] %v14055_v4 }
 0x133   : > { %2525 = vst [vmem:[%s19117_s8 + $0x1d0] sm:$0xff] %v14058_v7  ;;  %2526 = vst [vmem:[%s19117_s8 + $0x1d8] sm:$0xff] %v14061_v43 }
 0x134   : > { %2527 = vst [vmem:[%s19117_s8 + $0x1e0] sm:$0xff] %v14052_v48  ;;  %2528 = vst [vmem:[%s19117_s8 + $0x1e8] sm:$0xff] %v14055_v4 }
 0x135   : > { %2529 = vst [vmem:[%s19117_s8 + $0x1f0] sm:$0xff] %v14058_v7  ;;  %2530 = vst [vmem:[%s19117_s8 + $0x1f8] sm:$0xff] %v14061_v43 }
 0x136   : > { %2531 = vst [vmem:[%s19117_s8 + $0x200] sm:$0xff] %v14052_v48  ;;  %2532 = vst [vmem:[%s19117_s8 + $0x208] sm:$0xff] %v14055_v4 }
 0x137   : > { %2533 = vst [vmem:[%s19117_s8 + $0x210] sm:$0xff] %v14058_v7  ;;  %2534 = vst [vmem:[%s19117_s8 + $0x218] sm:$0xff] %v14061_v43 }
 0x138   : > { %2535 = vst [vmem:[%s19117_s8 + $0x220] sm:$0xff] %v14052_v48  ;;  %2536 = vst [vmem:[%s19117_s8 + $0x228] sm:$0xff] %v14055_v4 }
 0x139   : > { %2537 = vst [vmem:[%s19117_s8 + $0x230] sm:$0xff] %v14058_v7  ;;  %2538 = vst [vmem:[%s19117_s8 + $0x238] sm:$0xff] %v14061_v43 }
 0x13a   : > { %2539 = vst [vmem:[%s19117_s8 + $0x240] sm:$0xff] %v14052_v48  ;;  %2540 = vst [vmem:[%s19117_s8 + $0x248] sm:$0xff] %v14055_v4 }
 0x13b   : > { %2541 = vst [vmem:[%s19117_s8 + $0x250] sm:$0xff] %v14058_v7  ;;  %2542 = vst [vmem:[%s19117_s8 + $0x258] sm:$0xff] %v14061_v43 }
 0x13c   : > { %2543 = vst [vmem:[%s19117_s8 + $0x260] sm:$0xff] %v14052_v48  ;;  %2544 = vst [vmem:[%s19117_s8 + $0x268] sm:$0xff] %v14055_v4 }
 0x13d   : > { %2545 = vst [vmem:[%s19117_s8 + $0x270] sm:$0xff] %v14058_v7  ;;  %2546 = vst [vmem:[%s19117_s8 + $0x278] sm:$0xff] %v14061_v43 }
 0x13e   : > { %2547 = vst [vmem:[%s19117_s8 + $0x280] sm:$0xff] %v14052_v48  ;;  %2548 = vst [vmem:[%s19117_s8 + $0x288] sm:$0xff] %v14055_v4 }
 0x13f   : > { %2549 = vst [vmem:[%s19117_s8 + $0x290] sm:$0xff] %v14058_v7  ;;  %2550 = vst [vmem:[%s19117_s8 + $0x298] sm:$0xff] %v14061_v43 }
 0x140   : > { %2551 = vst [vmem:[%s19117_s8 + $0x2a0] sm:$0xff] %v14052_v48  ;;  %2552 = vst [vmem:[%s19117_s8 + $0x2a8] sm:$0xff] %v14055_v4 }
 0x141   : > { %2553 = vst [vmem:[%s19117_s8 + $0x2b0] sm:$0xff] %v14058_v7  ;;  %2554 = vst [vmem:[%s19117_s8 + $0x2b8] sm:$0xff] %v14061_v43 }
 0x142   : > { %2555 = vst [vmem:[%s19117_s8 + $0x2c0] sm:$0xff] %v14052_v48  ;;  %2556 = vst [vmem:[%s19117_s8 + $0x2c8] sm:$0xff] %v14055_v4 }
 0x143   : > { %2557 = vst [vmem:[%s19117_s8 + $0x2d0] sm:$0xff] %v14058_v7  ;;  %2558 = vst [vmem:[%s19117_s8 + $0x2d8] sm:$0xff] %v14061_v43 }
 0x144   : > { %2559 = vst [vmem:[%s19117_s8 + $0x2e0] sm:$0xff] %v14052_v48  ;;  %2560 = vst [vmem:[%s19117_s8 + $0x2e8] sm:$0xff] %v14055_v4 }
 0x145   : > { %2561 = vst [vmem:[%s19117_s8 + $0x2f0] sm:$0xff] %v14058_v7  ;;  %2562 = vst [vmem:[%s19117_s8 + $0x2f8] sm:$0xff] %v14061_v43 }
 0x146   : > { %2563 = vst [vmem:[%s19117_s8 + $0x300] sm:$0xf] %v14052_v48  ;;  %2564 = vst [vmem:[%s19117_s8 + $0x308] sm:$0xf] %v14055_v4 }
 0x147   : > { %2565 = vst [vmem:[%s19117_s8 + $0x310] sm:$0xf] %v14058_v7  ;;  %2566 = vst [vmem:[%s19117_s8 + $0x318] sm:$0xf] %v14061_v43 }
 0x15f   : > { %v1196_v63 = vpop.xlane.xlu1 %1195 }
 0x160   : > { %v1319_v24 = vmul.f32 0.001953125, %v1196_v63 }
 0x162   : > { %v14464_v42 = vsub.f32 %v13160_v8, %v1319_v24  ;;  %v14467_v19 = vsub.f32 %v13162_v9, %v1319_v24  ;;  %v1191_v40 = vpop.xlane.xlu0 %1190  ;;  %v14470_v47 = vsub.f32 %v13167_v11, %v1319_v24  ;;  %v14473_v48 = vsub.f32 %v13178_v15, %v1319_v24 }
 0x163   : > { %v1318_v45 = vmul.f32 0.001953125, %v1191_v40 }
 0x164   : > { %19325 = vst [vmem:[#allocation58_spill] sm:$0xff] %v14464_v42  ;;  %19326 = vst [vmem:[#allocation59_spill] sm:$0xff] %v14467_v19  ;;  %v1447_v4 = vmul.f32 %v14464_v42, %v14464_v42  ;;  %v1448_v7 = vmul.f32 %v14467_v19, %v14467_v19  ;;  %v1449_v24 = vmul.f32 %v14470_v47, %v14470_v47 }
 0x165   : > { %19327 = vst [vmem:[#allocation60_spill] sm:$0xff] %v14470_v47  ;;  %19328 = vst [vmem:[#allocation61_spill] sm:$0xff] %v14473_v48  ;;  %v14480_v8 = vsub.f32 %v13194_v21, %v1318_v45  ;;  %v14483_v9 = vsub.f32 %v13196_v22, %v1318_v45  ;;  %v1201_v43 = vpop.xlane.xlu1 %1200  ;;  %v14486_v11 = vsub.f32 %v13198_v23, %v1318_v45 }
 0x166   : > { %v14489_v63 = vsub.f32 %v13216_v30, %v1318_v45  ;;  %v1320_v15 = vmul.f32 0.001953125, %v1201_v43  ;;  %v1548_v40 = vadd.f32 %v1448_v7, %v1447_v4  ;;  %v1450_v21 = vmul.f32 %v14473_v48, %v14473_v48 }
 0x167   : > { %19329 = vst [vmem:[#allocation62_spill] sm:$0xff] %v14480_v8  ;;  %19330 = vst [vmem:[#allocation63_spill] sm:$0xff] %v14483_v9  ;;  %v1206_v42 = vpop.xlane.xlu0 %1205  ;;  %v1443_v22 = vmul.f32 %v14480_v8, %v14480_v8  ;;  %v1444_v19 = vmul.f32 %v14483_v9, %v14483_v9  ;;  %v1445_v4 = vmul.f32 %v14486_v11, %v14486_v11 }
 0x168   : > { %19331 = vst [vmem:[#allocation64_spill] sm:$0xff] %v14486_v11  ;;  %v14500_v23 = vsub.f32 %v13229_v35, %v1320_v15  ;;  %v14503_v30 = vsub.f32 %v13232_v37, %v1320_v15  ;;  %v1321_v45 = vmul.f32 0.001953125, %v1206_v42  ;;  %v1549_v43 = vadd.f32 %v1548_v40, %v1449_v24 }
 0x169   : > { %v1446_v7 = vmul.f32 %v14489_v63, %v14489_v63  ;;  %v1543_v48 = vadd.f32 %v1444_v19, %v1443_v22  ;;  %v14510_v8 = vsub.f32 %v13234_v38, %v1320_v15  ;;  %v14521_v11 = vsub.f32 %v13255_v46, %v1320_v15 }
 0x16a   : > { %v14513_v9 = vsub.f32 %v13265_v50, %v1321_v45  ;;  %v14516_v35 = vsub.f32 %v13267_v51, %v1321_v45  ;;  %v1211_v37 = vpop.xlane.xlu1 %1210  ;;  %v1550_v47 = vadd.f32 %v1549_v43, %v1450_v21  ;;  %v1451_v42 = vmul.f32 %v14500_v23, %v14500_v23 }
 0x16b   : > { %v1322_v24 = vmul.f32 0.001953125, %v1211_v37  ;;  %v1544_v40 = vadd.f32 %v1543_v48, %v1445_v4  ;;  %v1452_v38 = vmul.f32 %v14503_v30, %v14503_v30  ;;  %v1453_v50 = vmul.f32 %v14510_v8, %v14510_v8 }
 0x16c   : > { %1551 = vadd.xlane.f32.xlu0 %v1550_v47  ;;  %v14528_v51 = vsub.f32 %v13273_v54, %v1321_v45  ;;  %v14531_v19 = vsub.f32 %v13285_v59, %v1321_v45  ;;  %v1455_v21 = vmul.f32 %v14513_v9, %v14513_v9  ;;  %v1456_v43 = vmul.f32 %v14516_v35, %v14516_v35 }
 0x16d   : > { %v14536_v48 = vsub.f32 %v13301_v1, %v1322_v24  ;;  %v14539_v46 = vsub.f32 %v13303_v2, %v1322_v24  ;;  %v1545_v15 = vadd.f32 %v1544_v40, %v1446_v7  ;;  %v1553_v47 = vadd.f32 %v1452_v38, %v1451_v42 }
 0x16e   : > { %v1316_v22 = vpop.xlane.xlu0 %1315  ;;  %v14544_v54 = vsub.f32 %v13305_v3, %v1322_v24  ;;  %v1454_v45 = vmul.f32 %v14521_v11, %v14521_v11  ;;  %v1457_v7 = vmul.f32 %v14528_v51, %v14528_v51  ;;  %v1558_v37 = vadd.f32 %v1456_v43, %v1455_v21 }
 0x16f   : > { %19332 = vst [vmem:[#allocation65_spill] sm:$0xff] %v14539_v46  ;;  %v14546_v59 = vmul.f32 0.001953125, %v1316_v22  ;;  %1546 = vadd.xlane.f32.xlu1 %v1545_v15  ;;  %v1554_v1 = vadd.f32 %v1553_v47, %v1453_v50  ;;  %v1459_v2 = vmul.f32 %v14536_v48, %v14536_v48  ;;  %v1221_v4 = vpop.xlane.xlu1 %1220  ;;  %v14555_v42 = vsub.f32 %v13324_v14, %v1322_v24 }
 0x170   : > { %19333 = vst [vmem:[#allocation66_spill] sm:$0xff] %v14544_v54  ;;  %v1460_v3 = vmul.f32 %v14539_v46, %v14539_v46  ;;  %v1324_v40 = vmul.f32 0.001953125, %v1221_v4  ;;  %v1458_v15 = vmul.f32 %v14531_v19, %v14531_v19  ;;  %v1461_v50 = vmul.f32 %v14544_v54, %v14544_v54 }
 0x171   : > { %v1555_v38 = vadd.f32 %v1554_v1, %v1454_v45  ;;  %v14565_v47 = vsub.f32 %v13337_v20, %v14546_v59  ;;  %v14569_v21 = vsub.f32 %v13340_v25, %v14546_v59  ;;  %v1559_v24 = vadd.f32 %v1558_v37, %v1457_v7 }
 0x172   : > { %v1216_v14 = vpop.xlane.xlu0 %1215  ;;  %v1563_v22 = vadd.f32 %v1460_v3, %v1459_v2  ;;  %v14572_v43 = vsub.f32 %v13377_v44, %v1324_v40  ;;  %v14575_v45 = vsub.f32 %v13383_v49, %v1324_v40  ;;  %v14578_v4 = vsub.f32 %v13385_v52, %v1324_v40 }
 0x173   : > { %19334 = vst [vmem:[#allocation67_spill] sm:$0xff] %v14569_v21  ;;  %v1323_v1 = vmul.f32 0.001953125, %v1216_v14  ;;  %1556 = vadd.xlane.f32.xlu1 %v1555_v38  ;;  %v1560_v20 = vadd.f32 %v1559_v24, %v1458_v15  ;;  %v1462_v54 = vmul.f32 %v14555_v42, %v14555_v42  ;;  %v14583_v46 = vsub.f32 %v13398_v58, %v1324_v40 }
 0x174   : > { %v1564_v25 = vadd.f32 %v1563_v22, %v1461_v50  ;;  %v1467_v7 = vmul.f32 %v14572_v43, %v14572_v43  ;;  %v1468_v52 = vmul.f32 %v14575_v45, %v14575_v45  ;;  %v1469_v58 = vmul.f32 %v14578_v4, %v14578_v4 }
 0x175   : > { %v14586_v2 = vsub.f32 %v13414_v5, %v1323_v1  ;;  %v14589_v44 = vsub.f32 %v13416_v6, %v1323_v1  ;;  %v1231_v49 = vpop.xlane.xlu1 %1230  ;;  %1561 = vadd.xlane.f32.xlu0 %v1560_v20  ;;  %v14599_v5 = vsub.f32 %v13342_v26, %v14546_v59  ;;  %v14602_v38 = vsub.f32 %v13424_v12, %v1323_v1 }
 0x176   : > { %v1326_v37 = vmul.f32 0.001953125, %v1231_v49  ;;  %v1565_v3 = vadd.f32 %v1564_v25, %v1462_v54  ;;  %v1573_v6 = vadd.f32 %v1468_v52, %v1467_v7  ;;  %v14605_v15 = vsub.f32 %v13426_v13, %v1323_v1 }
 0x177   : > { %19335 = vst [vmem:[#allocation68_spill] sm:$0xff] %v14599_v5  ;;  %v1226_v40 = vpop.xlane.xlu0 %1225  ;;  %v1463_v50 = vmul.f32 %v14586_v2, %v14586_v2  ;;  %v1464_v26 = vmul.f32 %v14589_v44, %v14589_v44  ;;  %v1470_v12 = vmul.f32 %v14583_v46, %v14583_v46  ;;  %v1465_v13 = vmul.f32 %v14602_v38, %v14602_v38 }
 0x178   : > { %19336 = vst [vmem:[#allocation69_spill] sm:$0xff] %v14605_v15  ;;  %v14610_v54 = vsub.f32 %v13449_v33, %v1326_v37  ;;  %v14613_v14 = vsub.f32 %v13451_v34, %v1326_v37  ;;  %v1325_v24 = vmul.f32 0.001953125, %v1226_v40  ;;  %1566 = vadd.xlane.f32.xlu1 %v1565_v3  ;;  %v1574_v22 = vadd.f32 %v1573_v6, %v1469_v58 }
 0x179   : > { %v14622_v1 = vsub.f32 %v13453_v36, %v1326_v37  ;;  %v1568_v25 = vadd.f32 %v1464_v26, %v1463_v50  ;;  %v14631_v49 = vsub.f32 %v13475_v53, %v1326_v37 }
 0x17a   : > { %19337 = vst [vmem:[#allocation70_spill] sm:$0xff] %v14610_v54  ;;  %19338 = vst [vmem:[#allocation71_spill] sm:$0xff] %v14613_v14  ;;  %v14625_v33 = vsub.f32 %v13485_v60, %v1325_v24  ;;  %v14628_v34 = vsub.f32 %v13487_v61, %v1325_v24  ;;  %v1241_v20 = vpop.xlane.xlu1 %1240  ;;  %v1575_v52 = vadd.f32 %v1574_v22, %v1470_v12 }
 0x17b   : > { %19339 = vst [vmem:[#allocation72_spill] sm:$0xff] %v14622_v1  ;;  %19342 = vst [vmem:[#allocation75_spill] sm:$0xff] %v14631_v49  ;;  %v1328_v7 = vmul.f32 0.001953125, %v1241_v20  ;;  %v1475_v3 = vmul.f32 %v14610_v54, %v14610_v54  ;;  %v1476_v36 = vmul.f32 %v14613_v14, %v14613_v14  ;;  %v1466_v60 = vmul.f32 %v14605_v15, %v14605_v15 }
 0x17c   : > { %19340 = vst [vmem:[#allocation73_spill] sm:$0xff] %v14625_v33  ;;  %19341 = vst [vmem:[#allocation74_spill] sm:$0xff] %v14628_v34  ;;  %v1569_v58 = vadd.f32 %v1568_v25, %v1465_v13  ;;  %v1477_v61 = vmul.f32 %v14622_v1, %v14622_v1  ;;  %v14642_v40 = vsub.f32 %v13493_v0, %v1325_v24  ;;  %1576 = vadd.xlane.f32.xlu1 %v1575_v52 }
 0x17d   : > { %v14645_v53 = vsub.f32 %v13521_v31, %v1328_v7  ;;  %v14648_v37 = vsub.f32 %v13523_v32, %v1328_v7  ;;  %v1236_v6 = vpop.xlane.xlu0 %1235  ;;  %v1583_v50 = vadd.f32 %v1476_v36, %v1475_v3  ;;  %v14651_v26 = vsub.f32 %v13505_v17, %v1325_v24  ;;  %v19348_v17 = vld [vmem:[#allocation9_spill] sm:$0xff]  ;;  %v19350_v3 = vld [vmem:[#allocation10_spill] sm:$0xff] }
 0x17e   : > { %19343 = vst [vmem:[#allocation76_spill] sm:$0xff] %v14642_v40  ;;  %v1327_v12 = vmul.f32 0.001953125, %v1236_v6  ;;  %v1570_v22 = vadd.f32 %v1569_v58, %v1466_v60  ;;  %v1471_v13 = vmul.f32 %v14625_v33, %v14625_v33  ;;  %v1472_v0 = vmul.f32 %v14628_v34, %v14628_v34  ;;  %v19352_v34 = vld [vmem:[#allocation8_spill] sm:$0xff] }
 0x17f   : > { %19344 = vst [vmem:[#allocation77_spill] sm:$0xff] %v14645_v53  ;;  %19345 = vst [vmem:[#allocation78_spill] sm:$0xff] %v14648_v37  ;;  %v1251_v20 = vpop.xlane.xlu1 %1250  ;;  %v1478_v31 = vmul.f32 %v14631_v49, %v14631_v49  ;;  %v1584_v32 = vadd.f32 %v1583_v50, %v1477_v61  ;;  %v1473_v25 = vmul.f32 %v14642_v40, %v14642_v40  ;;  %v19354_v50 = vld [vmem:[#allocation13_spill] sm:$0xff] }
 0x180   : > { %19346 = vst [vmem:[#allocation79_spill] sm:$0xff] %v14651_v26  ;;  %v14662_v52 = vsub.f32 %v13525_v39, %v1328_v7  ;;  %v14665_v24 = vsub.f32 %v19348_v17, %v1327_v12  ;;  %v14668_v36 = vsub.f32 %v19350_v3, %v1327_v12  ;;  %v1330_v60 = vmul.f32 0.001953125, %v1251_v20  ;;  %1571 = vadd.xlane.f32.xlu0 %v1570_v22  ;;  %v19356_v17 = vld [vmem:[#allocation14_spill] sm:$0xff]  ;;  %v19358_v20 = vld [vmem:[#allocation11_spill] sm:$0xff] }
 0x181   : > { %v1578_v58 = vadd.f32 %v1472_v0, %v1471_v13  ;;  %v1585_v6 = vadd.f32 %v1584_v32, %v1478_v31  ;;  %v14671_v33 = vsub.f32 %v19352_v34, %v1328_v7  ;;  %v1483_v61 = vmul.f32 %v14645_v53, %v14645_v53 }
 0x182   : > { %19347 = vst [vmem:[#allocation80_spill] sm:$0xff] %v14662_v52  ;;  %19349 = vst [vmem:[#allocation9_spill] sm:$0xff] %v14665_v24  ;;  %v1484_v39 = vmul.f32 %v14648_v37, %v14648_v37  ;;  %v14678_v40 = vsub.f32 %v19354_v50, %v1330_v60  ;;  %v14681_v49 = vsub.f32 %v19356_v17, %v1330_v60  ;;  %v19360_v50 = vld [vmem:[#allocation12_spill] sm:$0xff] }
 0x183   : > { %19351 = vst [vmem:[#allocation10_spill] sm:$0xff] %v14668_v36  ;;  %19353 = vst [vmem:[#allocation8_spill] sm:$0xff] %v14671_v33  ;;  %v1246_v3 = vpop.xlane.xlu0 %1245  ;;  %v1474_v22 = vmul.f32 %v14651_v26, %v14651_v26  ;;  %v1579_v13 = vadd.f32 %v1578_v58, %v1473_v25  ;;  %1586 = vadd.xlane.f32.xlu1 %v1585_v6  ;;  %v1485_v34 = vmul.f32 %v14662_v52, %v14662_v52  ;;  %v19362_v25 = vld [vmem:[#allocation17_spill] sm:$0xff]  ;;  %v19364_v6 = vld [vmem:[#allocation18_spill] sm:$0xff] }
 0x184   : > { %19355 = vst [vmem:[#allocation13_spill] sm:$0xff] %v14678_v40  ;;  %19357 = vst [vmem:[#allocation14_spill] sm:$0xff] %v14681_v49  ;;  %v1329_v0 = vmul.f32 0.001953125, %v1246_v3  ;;  %v1593_v7 = vadd.f32 %v1484_v39, %v1483_v61  ;;  %v14688_v31 = vsub.f32 %v19358_v20, %v1327_v12  ;;  %v14691_v37 = vsub.f32 %v19360_v50, %v1327_v12  ;;  %v19366_v50 = vld [vmem:[#allocation15_spill] sm:$0xff]  ;;  %v19368_v52 = vld [vmem:[#allocation16_spill] sm:$0xff] }
 0x185   : > { %v1580_v32 = vadd.f32 %v1579_v13, %v1474_v22  ;;  %v1479_v17 = vmul.f32 %v14665_v24, %v14665_v24  ;;  %v1480_v53 = vmul.f32 %v14668_v36, %v14668_v36  ;;  %v1486_v39 = vmul.f32 %v14671_v33, %v14671_v33 }
 0x186   : > { %19359 = vst [vmem:[#allocation11_spill] sm:$0xff] %v14688_v31  ;;  %19361 = vst [vmem:[#allocation12_spill] sm:$0xff] %v14691_v37  ;;  %v14698_v58 = vsub.f32 %v19362_v25, %v1329_v0  ;;  %v14701_v3 = vsub.f32 %v19364_v6, %v1329_v0  ;;  %v1261_v61 = vpop.xlane.xlu1 %1260  ;;  %v1594_v22 = vadd.f32 %v1593_v7, %v1485_v34 }
 0x187   : > { %v1332_v13 = vmul.f32 0.001953125, %v1261_v61  ;;  %1581 = vadd.xlane.f32.xlu0 %v1580_v32  ;;  %v1481_v12 = vmul.f32 %v14688_v31, %v14688_v31  ;;  %v1588_v20 = vadd.f32 %v1480_v53, %v1479_v17  ;;  %v14708_v24 = vsub.f32 %v19366_v50, %v1330_v60  ;;  %v19370_v53 = vld [vmem:[#allocation7_spill] sm:$0xff]  ;;  %v19372_v50 = vld [vmem:[#allocation21_spill] sm:$0xff] }
 0x188   : > { %19363 = vst [vmem:[#allocation17_spill] sm:$0xff] %v14698_v58  ;;  %19365 = vst [vmem:[#allocation18_spill] sm:$0xff] %v14701_v3  ;;  %v1595_v25 = vadd.f32 %v1594_v22, %v1486_v39  ;;  %v14711_v26 = vsub.f32 %v19368_v52, %v1330_v60  ;;  %v1491_v6 = vmul.f32 %v14678_v40, %v14678_v40  ;;  %v19374_v22 = vld [vmem:[#allocation19_spill] sm:$0xff] }
 0x189   : > { %19367 = vst [vmem:[#allocation15_spill] sm:$0xff] %v14708_v24  ;;  %v1256_v36 = vpop.xlane.xlu0 %1255  ;;  %v1492_v34 = vmul.f32 %v14681_v49, %v14681_v49  ;;  %v1482_v32 = vmul.f32 %v14691_v37, %v14691_v37  ;;  %v1589_v61 = vadd.f32 %v1588_v20, %v1481_v12  ;;  %v14721_v17 = vsub.f32 %v19370_v53, %v14546_v59  ;;  %v19378_v20 = vld [vmem:[#allocation20_spill] sm:$0xff] }
 0x18a   : > { %19369 = vst [vmem:[#allocation16_spill] sm:$0xff] %v14711_v26  ;;  %v1331_v7 = vmul.f32 0.001953125, %v1256_v36  ;;  %v14724_v39 = vsub.f32 %v19372_v50, %v1332_v13  ;;  %1596 = vadd.xlane.f32.xlu1 %v1595_v25  ;;  %v1493_v52 = vmul.f32 %v14708_v24, %v14708_v24  ;;  %v14729_v40 = vsub.f32 %v19374_v22, %v1329_v0  ;;  %v19376_v36 = vld [vmem:[#allocation22_spill] sm:$0xff] }
 0x18b   : > { %19371 = vst [vmem:[#allocation7_spill] sm:$0xff] %v14721_v17  ;;  %v1603_v60 = vadd.f32 %v1492_v34, %v1491_v6  ;;  %v14732_v49 = vsub.f32 %v19376_v36, %v1332_v13  ;;  %v1590_v12 = vadd.f32 %v1589_v61, %v1482_v32  ;;  %v1494_v59 = vmul.f32 %v14711_v26, %v14711_v26  ;;  %v19380_v34 = vld [vmem:[#allocation25_spill] sm:$0xff]  ;;  %v19382_v36 = vld [vmem:[#allocation26_spill] sm:$0xff]  ;;  %v19384_v32 = vld [vmem:[#allocation23_spill] sm:$0xff] }
 0x18c   : > { %19373 = vst [vmem:[#allocation21_spill] sm:$0xff] %v14724_v39  ;;  %19375 = vst [vmem:[#allocation19_spill] sm:$0xff] %v14729_v40  ;;  %v1271_v37 = vpop.xlane.xlu1 %1270  ;;  %v14737_v53 = vsub.f32 %v19378_v20, %v1329_v0  ;;  %v1487_v24 = vmul.f32 %v14698_v58, %v14698_v58  ;;  %v1488_v6 = vmul.f32 %v14701_v3, %v14701_v3  ;;  %v19386_v0 = vld [vmem:[#allocation24_spill] sm:$0xff]  ;;  %v19388_v58 = vld [vmem:[#allocation29_spill] sm:$0xff] }
 0x18d   : > { %19377 = vst [vmem:[#allocation22_spill] sm:$0xff] %v14732_v49  ;;  %v1334_v50 = vmul.f32 0.001953125, %v1271_v37  ;;  %v1604_v25 = vadd.f32 %v1603_v60, %v1493_v52  ;;  %v14744_v22 = vsub.f32 %v19380_v34, %v1331_v7  ;;  %v14747_v31 = vsub.f32 %v19382_v36, %v1331_v7  ;;  %1591 = vadd.xlane.f32.xlu0 %v1590_v12 }
 0x18e   : > { %19379 = vst [vmem:[#allocation20_spill] sm:$0xff] %v14737_v53  ;;  %v14750_v61 = vsub.f32 %v19384_v32, %v1332_v13  ;;  %v14753_v20 = vsub.f32 %v19386_v0, %v1332_v13  ;;  %v1489_v60 = vmul.f32 %v14729_v40, %v14729_v40  ;;  %v1490_v3 = vmul.f32 %v14737_v53, %v14737_v53  ;;  %v19390_v32 = vld [vmem:[#allocation30_spill] sm:$0xff]  ;;  %v19394_v40 = vld [vmem:[#allocation28_spill] sm:$0xff] }
 0x18f   : > { %19381 = vst [vmem:[#allocation25_spill] sm:$0xff] %v14744_v22  ;;  %19383 = vst [vmem:[#allocation26_spill] sm:$0xff] %v14747_v31  ;;  %v1266_v37 = vpop.xlane.xlu0 %1265  ;;  %v1605_v52 = vadd.f32 %v1604_v25, %v1494_v59  ;;  %v1598_v34 = vadd.f32 %v1488_v6, %v1487_v24  ;;  %v14760_v26 = vsub.f32 %v19388_v58, %v1334_v50  ;;  %v19392_v24 = vld [vmem:[#allocation27_spill] sm:$0xff] }
 0x190   : > { %19385 = vst [vmem:[#allocation23_spill] sm:$0xff] %v14750_v61  ;;  %19387 = vst [vmem:[#allocation24_spill] sm:$0xff] %v14753_v20  ;;  %v1333_v36 = vmul.f32 0.001953125, %v1266_v37  ;;  %v1499_v12 = vmul.f32 %v14724_v39, %v14724_v39  ;;  %v1500_v13 = vmul.f32 %v14732_v49, %v14732_v49  ;;  %v14767_v0 = vsub.f32 %v19390_v32, %v1334_v50  ;;  %v19396_v49 = vld [vmem:[#allocation33_spill] sm:$0xff] }
 0x191   : > { %19389 = vst [vmem:[#allocation29_spill] sm:$0xff] %v14760_v26  ;;  %1606 = vadd.xlane.f32.xlu1 %v1605_v52  ;;  %v1599_v25 = vadd.f32 %v1598_v34, %v1489_v60  ;;  %v1501_v53 = vmul.f32 %v14750_v61, %v14750_v61  ;;  %v14772_v6 = vsub.f32 %v19392_v24, %v1331_v7  ;;  %v19398_v34 = vld [vmem:[#allocation34_spill] sm:$0xff] }
 0x192   : > { %19391 = vst [vmem:[#allocation30_spill] sm:$0xff] %v14767_v0  ;;  %v1281_v59 = vpop.xlane.xlu1 %1280  ;;  %v1502_v37 = vmul.f32 %v14753_v20, %v14753_v20  ;;  %v1613_v39 = vadd.f32 %v1500_v13, %v1499_v12  ;;  %v14777_v33 = vsub.f32 %v19394_v40, %v1331_v7  ;;  %v14780_v32 = vsub.f32 %v19396_v49, %v1333_v36  ;;  %v19402_v7 = vld [vmem:[#allocation31_spill] sm:$0xff] }
 0x193   : > { %19393 = vst [vmem:[#allocation27_spill] sm:$0xff] %v14772_v6  ;;  %v1336_v58 = vmul.f32 0.001953125, %v1281_v59  ;;  %v1600_v1 = vadd.f32 %v1599_v25, %v1490_v3  ;;  %v1495_v52 = vmul.f32 %v14744_v22, %v14744_v22  ;;  %v1496_v60 = vmul.f32 %v14747_v31, %v14747_v31  ;;  %v19400_v59 = vld [vmem:[#allocation37_spill] sm:$0xff]  ;;  %v19404_v22 = vld [vmem:[#allocation32_spill] sm:$0xff] }
 0x194   : > { %19395 = vst [vmem:[#allocation28_spill] sm:$0xff] %v14777_v33  ;;  %19397 = vst [vmem:[#allocation33_spill] sm:$0xff] %v14780_v32  ;;  %v14787_v24 = vsub.f32 %v19398_v34, %v1333_v36  ;;  %v1614_v13 = vadd.f32 %v1613_v39, %v1501_v53  ;;  %v1497_v40 = vmul.f32 %v14772_v6, %v14772_v6  ;;  %v19406_v39 = vld [vmem:[#allocation35_spill] sm:$0xff]  ;;  %v19408_v6 = vld [vmem:[#allocation38_spill] sm:$0xff] }
 0x195   : > { %v14790_v61 = vsub.f32 %v19400_v59, %v1336_v58  ;;  %v1276_v12 = vpop.xlane.xlu0 %1275  ;;  %1601 = vadd.xlane.f32.xlu0 %v1600_v1  ;;  %v1608_v3 = vadd.f32 %v1496_v60, %v1495_v52  ;;  %v14795_v25 = vsub.f32 %v19402_v7, %v1334_v50  ;;  %v14798_v20 = vsub.f32 %v19404_v22, %v1334_v50  ;;  %v19410_v1 = vld [vmem:[#allocation41_spill] sm:$0xff] }
 0x196   : > { %19399 = vst [vmem:[#allocation34_spill] sm:$0xff] %v14787_v24  ;;  %v1335_v49 = vmul.f32 0.001953125, %v1276_v12  ;;  %v1615_v31 = vadd.f32 %v1614_v13, %v1502_v37  ;;  %v1507_v34 = vmul.f32 %v14760_v26, %v14760_v26  ;;  %v1508_v59 = vmul.f32 %v14767_v0, %v14767_v0  ;;  %v19412_v0 = vld [vmem:[#allocation36_spill] sm:$0xff]  ;;  %v19414_v26 = vld [vmem:[#allocation42_spill] sm:$0xff] }
 0x197   : > { %19401 = vst [vmem:[#allocation37_spill] sm:$0xff] %v14790_v61  ;;  %19403 = vst [vmem:[#allocation31_spill] sm:$0xff] %v14795_v25  ;;  %v14805_v53 = vsub.f32 %v19406_v39, %v1333_v36  ;;  %v14808_v12 = vsub.f32 %v19408_v6, %v1336_v58  ;;  %v1498_v50 = vmul.f32 %v14777_v33, %v14777_v33  ;;  %v19435_v33 = vld [vmem:[#allocation51_spill] sm:$0xff] }
 0x198   : > { %19405 = vst [vmem:[#allocation32_spill] sm:$0xff] %v14798_v20  ;;  %v14811_v52 = vsub.f32 %v19410_v1, %v1335_v49  ;;  %v1291_v60 = vpop.xlane.xlu1 %1290  ;;  %v1609_v22 = vadd.f32 %v1608_v3, %v1497_v40  ;;  %1616 = vadd.xlane.f32.xlu1 %v1615_v31  ;;  %v1509_v13 = vmul.f32 %v14795_v25, %v14795_v25 }
 0x199   : > { %19407 = vst [vmem:[#allocation35_spill] sm:$0xff] %v14805_v53  ;;  %19409 = vst [vmem:[#allocation38_spill] sm:$0xff] %v14808_v12  ;;  %v1338_v37 = vmul.f32 0.001953125, %v1291_v60  ;;  %v1623_v7 = vadd.f32 %v1508_v59, %v1507_v34  ;;  %v14818_v39 = vsub.f32 %v19412_v0, %v1333_v36  ;;  %v14821_v6 = vsub.f32 %v19414_v26, %v1335_v49  ;;  %v19416_v0 = vld [vmem:[#allocation45_spill] sm:$0xff]  ;;  %v19418_v59 = vld [vmem:[#allocation39_spill] sm:$0xff] }
 0x19a   : > { %19411 = vst [vmem:[#allocation41_spill] sm:$0xff] %v14811_v52  ;;  %v1610_v1 = vadd.f32 %v1609_v22, %v1498_v50  ;;  %v1503_v54 = vmul.f32 %v14780_v32, %v14780_v32  ;;  %v1504_v40 = vmul.f32 %v14787_v24, %v14787_v24  ;;  %v1510_v31 = vmul.f32 %v14798_v20, %v14798_v20  ;;  %v19420_v22 = vld [vmem:[#allocation40_spill] sm:$0xff]  ;;  %v19422_v24 = vld [vmem:[#allocation46_spill] sm:$0xff] }
 0x19b   : > { %19413 = vst [vmem:[#allocation36_spill] sm:$0xff] %v14818_v39  ;;  %19415 = vst [vmem:[#allocation42_spill] sm:$0xff] %v14821_v6  ;;  %v1286_v14 = vpop.xlane.xlu0 %1285  ;;  %v1624_v60 = vadd.f32 %v1623_v7, %v1509_v13  ;;  %v1505_v36 = vmul.f32 %v14805_v53, %v14805_v53  ;;  %v14832_v34 = vsub.f32 %v19416_v0, %v1338_v37  ;;  %v19423_v0 = vld [vmem:[#allocation49_spill] sm:$0xff] }
 0x19c   : > { %v1337_v3 = vmul.f32 0.001953125, %v1286_v14  ;;  %1611 = vadd.xlane.f32.xlu0 %v1610_v1  ;;  %v1618_v26 = vadd.f32 %v1504_v40, %v1503_v54  ;;  %v14835_v50 = vsub.f32 %v19418_v59, %v1336_v58  ;;  %v14838_v32 = vsub.f32 %v19420_v22, %v1336_v58  ;;  %v19424_v59 = vld [vmem:[#allocation50_spill] sm:$0xff] }
 0x19d   : > { %19417 = vst [vmem:[#allocation45_spill] sm:$0xff] %v14832_v34  ;;  %v14841_v14 = vsub.f32 %v19422_v24, %v1338_v37  ;;  %v1625_v20 = vadd.f32 %v1624_v60, %v1510_v31  ;;  %v1506_v13 = vmul.f32 %v14818_v39, %v14818_v39  ;;  %v1515_v7 = vmul.f32 %v14790_v61, %v14790_v61  ;;  %v19425_v24 = vld [vmem:[#allocation43_spill] sm:$0xff]  ;;  %v19427_v60 = vld [vmem:[#allocation44_spill] sm:$0xff] }
 0x19e   : > { %19419 = vst [vmem:[#allocation39_spill] sm:$0xff] %v14835_v50  ;;  %19421 = vst [vmem:[#allocation40_spill] sm:$0xff] %v14838_v32  ;;  %v1301_v25 = vpop.xlane.xlu1 %1300  ;;  %v14848_v1 = vsub.f32 %v19423_v0, %v1337_v3  ;;  %v1619_v40 = vadd.f32 %v1618_v26, %v1505_v36  ;;  %v1516_v58 = vmul.f32 %v14808_v12, %v14808_v12 }
 0x19f   : > { %v1340_v54 = vmul.f32 0.001953125, %v1301_v25  ;;  %v14853_v22 = vsub.f32 %v19424_v59, %v1337_v3  ;;  %1626 = vadd.xlane.f32.xlu1 %v1625_v20  ;;  %v14856_v31 = vsub.f32 %v19425_v24, %v1335_v49  ;;  %v14859_v39 = vsub.f32 %v19427_v60, %v1335_v49  ;;  %v19429_v59 = vld [vmem:[#allocation53_spill] sm:$0xff]  ;;  %v19430_v24 = vld [vmem:[#allocation54_spill] sm:$0xff] }
 0x1a0   : > { %v1511_v61 = vmul.f32 %v14811_v52, %v14811_v52  ;;  %v1620_v53 = vadd.f32 %v1619_v40, %v1506_v13  ;;  %v1517_v25 = vmul.f32 %v14835_v50, %v14835_v50  ;;  %v1518_v36 = vmul.f32 %v14838_v32, %v14838_v32  ;;  %v19431_v40 = vld [vmem:[#allocation47_spill] sm:$0xff] }
 0x1a1   : > { %19426 = vst [vmem:[#allocation46_spill] sm:$0xff] %v14856_v31  ;;  %19428 = vst [vmem:[#allocation49_spill] sm:$0xff] %v14859_v39  ;;  %v1296_v0 = vpop.xlane.xlu0 %1295  ;;  %v1633_v26 = vadd.f32 %v1516_v58, %v1515_v7  ;;  %v14868_v20 = vsub.f32 %v19429_v59, %v1340_v54  ;;  %v14871_v12 = vsub.f32 %v19430_v24, %v1340_v54  ;;  %v19432_v24 = vld [vmem:[#allocation48_spill] sm:$0xff] }
 0x1a2   : > { %v1339_v49 = vmul.f32 0.001953125, %v1296_v0  ;;  %v1512_v60 = vmul.f32 %v14821_v6, %v14821_v6  ;;  %1621 = vadd.xlane.f32.xlu0 %v1620_v53  ;;  %v1513_v13 = vmul.f32 %v14856_v31, %v14856_v31  ;;  %v14878_v50 = vsub.f32 %v19431_v40, %v1338_v37  ;;  %v19434_v31 = vld [vmem:[#allocation57_spill] sm:$0xff] }
 0x1a3   : > { %v1634_v52 = vadd.f32 %v1633_v26, %v1517_v25  ;;  %v1523_v7 = vmul.f32 %v14832_v34, %v14832_v34  ;;  %v1514_v58 = vmul.f32 %v14859_v39, %v14859_v39  ;;  %v14885_v0 = vsub.f32 %v19432_v24, %v1338_v37  ;;  %v19433_v25 = vld [vmem:[#allocation56_spill] sm:$0xff] }
 0x1a4   : > { %v1628_v59 = vadd.f32 %v1512_v60, %v1511_v61  ;;  %v1524_v53 = vmul.f32 %v14841_v14, %v14841_v14  ;;  %v14890_v26 = vsub.f32 %v19433_v25, %v1339_v49  ;;  %v14893_v6 = vsub.f32 %v19434_v31, %v1339_v49  ;;  %v19436_v60 = vld [vmem:[#allocation52_spill] sm:$0xff] }
 0x1a5   : > { %v1306_v40 = vpop.xlane.xlu0 %1305  ;;  %v1635_v32 = vadd.f32 %v1634_v52, %v1518_v36  ;;  %v14896_v34 = vsub.f32 %v19435_v33, %v1337_v3  ;;  %v1525_v61 = vmul.f32 %v14878_v50, %v14878_v50  ;;  %v14901_v24 = vsub.f32 %v19436_v60, %v1337_v3  ;;  %v19437_v52 = vld [vmem:[#allocation55_spill] sm:$0xff] }
 0x1a6   : > { %v1341_v15 = vmul.f32 0.001953125, %v1306_v40  ;;  %v1629_v39 = vadd.f32 %v1628_v59, %v1513_v13  ;;  %v1643_v37 = vadd.f32 %v1524_v53, %v1523_v7  ;;  %v1519_v25 = vmul.f32 %v14848_v1, %v14848_v1 }
 0x1a7   : > { %1636 = vadd.xlane.f32.xlu1 %v1635_v32  ;;  %v1520_v31 = vmul.f32 %v14853_v22, %v14853_v22  ;;  %v14908_v36 = vsub.f32 %v19437_v52, %v1340_v54  ;;  %v1526_v13 = vmul.f32 %v14885_v0, %v14885_v0  ;;  %v1521_v32 = vmul.f32 %v14896_v34, %v14896_v34 }
 0x1a8   : > { %v1630_v33 = vadd.f32 %v1629_v39, %v1514_v58  ;;  %v1644_v59 = vadd.f32 %v1643_v37, %v1525_v61  ;;  %v14915_v3 = vsub.f32 %v14025_v57, %v1341_v15  ;;  %v14918_v53 = vsub.f32 %v13976_v41, %v1340_v54 }
 0x1a9   : > { %v1638_v7 = vadd.f32 %v1520_v31, %v1519_v25  ;;  %v1531_v40 = vmul.f32 %v14868_v20, %v14868_v20  ;;  %v14923_v60 = vsub.f32 %v14027_v62, %v1341_v15  ;;  %v1532_v58 = vmul.f32 %v14871_v12, %v14871_v12 }
 0x1aa   : > { %19438 = vst [vmem:[#allocation50_spill] sm:$0xff] %v14915_v3  ;;  %1631 = vadd.xlane.f32.xlu0 %v1630_v33  ;;  %v1645_v39 = vadd.f32 %v1644_v59, %v1526_v13  ;;  %v14928_v61 = vsub.f32 %v13994_v55, %v1339_v49  ;;  %v1522_v57 = vmul.f32 %v14901_v24, %v14901_v24 }
 0x1ab   : > { %19439 = vst [vmem:[#allocation43_spill] sm:$0xff] %v14923_v60  ;;  %v1639_v37 = vadd.f32 %v1638_v7, %v1521_v32  ;;  %v1533_v41 = vmul.f32 %v14908_v36, %v14908_v36  ;;  %v1527_v54 = vmul.f32 %v14890_v26, %v14890_v26  ;;  %v1653_v62 = vadd.f32 %v1532_v58, %v1531_v40 }
 0x1ac   : > { %1646 = vadd.xlane.f32.xlu1 %v1645_v39  ;;  %v14937_v25 = vsub.f32 %v14015_v16, %v1339_v49  ;;  %v1528_v31 = vmul.f32 %v14893_v6, %v14893_v6  ;;  %v1539_v55 = vmul.f32 %v14565_v47, %v14565_v47  ;;  %v1534_v33 = vmul.f32 %v14918_v53, %v14918_v53 }
 0x1ad   : > { %v1640_v52 = vadd.f32 %v1639_v37, %v1522_v57  ;;  %v1540_v13 = vmul.f32 %v14569_v21, %v14569_v21  ;;  %v1541_v59 = vmul.f32 %v14599_v5, %v14599_v5  ;;  %v1654_v32 = vadd.f32 %v1653_v62, %v1533_v41 }
 0x1ae   : > { %v1529_v16 = vmul.f32 %v14928_v61, %v14928_v61  ;;  %v1648_v49 = vadd.f32 %v1528_v31, %v1527_v54  ;;  %v1663_v7 = vsel %vm1307_vm0, %v1539_v55, 0.0  ;;  %v1542_v40 = vmul.f32 %v14721_v17, %v14721_v17 }
 0x1af   : > { %1641 = vadd.xlane.f32.xlu0 %v1640_v52  ;;  %v1664_v39 = vsel %vm1307_vm0, %v1540_v13, 0.0  ;;  %v14956_v58 = vsub.f32 %v14030_v29, %v1341_v15  ;;  %v1655_v57 = vadd.f32 %v1654_v32, %v1534_v33  ;;  %v1530_v37 = vmul.f32 %v14937_v25, %v14937_v25 }
 0x1b0   : > { %v1649_v41 = vadd.f32 %v1648_v49, %v1529_v16  ;;  %v1665_v62 = vadd.f32 %v1664_v39, %v1663_v7  ;;  %v1666_v5 = vsel %vm1307_vm0, %v1541_v59, 0.0  ;;  %v14962_v54 = vsub.f32 %v14033_v27, %v1341_v15 }
 0x1b1   : > { %19440 = vst [vmem:[#allocation44_spill] sm:$0xff] %v14956_v58  ;;  %v1535_v31 = vmul.f32 %v14915_v3, %v14915_v3  ;;  %v1536_v55 = vmul.f32 %v14923_v60, %v14923_v60  ;;  %1656 = vadd.xlane.f32.xlu1 %v1655_v57  ;;  %v1668_v33 = vsel %vm1307_vm0, %v1542_v40, 0.0  ;;  %v1537_v13 = vmul.f32 %v14956_v58, %v14956_v58 }
 0x1b2   : > { %19441 = vst [vmem:[#allocation53_spill] sm:$0xff] %v14962_v54  ;;  %v1650_v29 = vadd.f32 %v1649_v41, %v1530_v37  ;;  %v1667_v52 = vadd.f32 %v1666_v5, %v1665_v62  ;;  %v1538_v27 = vmul.f32 %v14962_v54, %v14962_v54  ;;  %v1847_v62 = vld [vmem:[%s19111_s2] sm:$0xf] }
 0x1b3   : > { %v1658_v32 = vadd.f32 %v1536_v55, %v1535_v31 }
 0x1b4   : > { %1651 = vadd.xlane.f32.xlu0 %v1650_v29  ;;  %v1669_v59 = vadd.f32 %v1668_v33, %v1667_v52  ;;  %v1969_v29 = vld [vmem:[%s19112_s3] sm:$0xf] }
 0x1b5   : > { %v1659_v15 = vadd.f32 %v1658_v32, %v1537_v13  ;;  %v14980_v13 = vrot.slane %v1847_v62, %v14043_v56  ;;  %v14983_v32 = vrot.slane %v1847_v62, %v14045_v28 }
 0x1b6   : > { %1670 = vadd.xlane.f32.xlu1 %v1669_v59 }
 0x1b7   : > { %v1660_v16 = vadd.f32 %v1659_v15, %v1538_v27  ;;  %v14986_v15 = vrot.slane %v1847_v62, %v14047_v18 }
 0x1b9   : > { %1661 = vadd.xlane.f32.xlu0 %v1660_v16  ;;  %v14989_v16 = vrot.slane %v1847_v62, %v14049_v10 }
 0x1f9   : > { %v1552_v49 = vpop.xlane.xlu0 %1551 }
 0x1fa   : > { %v1673_v7 = vmul.f32 0.001953125, %v1552_v49  ;;  %v14992_v49 = vrot.slane %v1969_v29, %v14043_v56  ;;  %v19445_v56 = vld [vmem:[#allocation61_spill] sm:$0xff] }
 0x1fc   : > { %v1547_v39 = vpop.xlane.xlu1 %1546  ;;  %v1698_v57 = vadd.f32 1e-05, %v1673_v7  ;;  %v14995_v7 = vrot.slane %v1969_v29, %v14045_v28 }
 0x1fd   : > { %v1672_v5 = vmul.f32 0.001953125, %v1547_v39 }
 0x1fe   : > { %11447 = vrsqrt.f32 %v1698_v57  ;;  %v14998_v57 = vrot.slane %v1969_v29, %v14047_v18 }
 0x1ff   : > { %v1697_v40 = vadd.f32 1e-05, %v1672_v5  ;;  %v15001_v5 = vrot.slane %v1969_v29, %v14049_v10 }
 0x200   : > { %v1557_v37 = vpop.xlane.xlu1 %1556 }
 0x201   : > { %11449 = vrsqrt.f32 %v1697_v40  ;;  %v1674_v41 = vmul.f32 0.001953125, %v1557_v37  ;;  %v19442_v37 = vld [vmem:[#allocation58_spill] sm:$0xff] }
 0x202   : > { %v1562_v55 = vpop.xlane.xlu0 %1561 }
 0x203   : > { %v1699_v31 = vadd.f32 1e-05, %v1674_v41  ;;  %v1675_v52 = vmul.f32 0.001953125, %v1562_v55  ;;  %v19444_v55 = vld [vmem:[#allocation60_spill] sm:$0xff] }
 0x205   : > { %11451 = vrsqrt.f32 %v1699_v31  ;;  %v1567_v33 = vpop.xlane.xlu1 %1566  ;;  %v1700_v59 = vadd.f32 1e-05, %v1675_v52  ;;  %v19443_v31 = vld [vmem:[#allocation59_spill] sm:$0xff] }
 0x206   : > { %v1676_v27 = vmul.f32 0.001953125, %v1567_v33 }
 0x207   : > { %11453 = vrsqrt.f32 %v1700_v59  ;;  %v19446_v59 = vld [vmem:[#allocation62_spill] sm:$0xff] }
 0x208   : > { %v11448_v39 = vpop.eup %11447  ;;  %v1701_v40 = vadd.f32 1e-05, %v1676_v27 }
 0x209   : > { %v1751_v41 = vmul.f32 %v11448_v39, %v19442_v37  ;;  %v1752_v62 = vmul.f32 %v11448_v39, %v19443_v31  ;;  %v1753_v52 = vmul.f32 %v11448_v39, %v19444_v55  ;;  %v1754_v33 = vmul.f32 %v11448_v39, %v19445_v56  ;;  %v1577_v28 = vpop.xlane.xlu1 %1576  ;;  %v19447_v37 = vld [vmem:[#allocation63_spill] sm:$0xff]  ;;  %v19448_v31 = vld [vmem:[#allocation64_spill] sm:$0xff] }
 0x20a   : > { %11455 = vrsqrt.f32 %v1701_v40 }
 0x20b   : > { %v11450_v54 = vpop.eup %11449  ;;  %v1873_v58 = vmul.f32 %v14980_v13, %v1751_v41  ;;  %v1874_v18 = vmul.f32 %v14983_v32, %v1752_v62  ;;  %v1875_v10 = vmul.f32 %v14986_v15, %v1753_v52  ;;  %v1876_v29 = vmul.f32 %v14989_v16, %v1754_v33 }
 0x20c   : > { %v1747_v27 = vmul.f32 %v11450_v54, %v19446_v59  ;;  %v1748_v60 = vmul.f32 %v11450_v54, %v19447_v37  ;;  %v1749_v3 = vmul.f32 %v11450_v54, %v19448_v31  ;;  %v1750_v55 = vmul.f32 %v11450_v54, %v14489_v63 }
 0x20d   : > { %v1995_v39 = vadd.f32 %v14992_v49, %v1873_v58  ;;  %v1996_v40 = vadd.f32 %v14995_v7, %v1874_v18  ;;  %v1997_v41 = vadd.f32 %v14998_v57, %v1875_v10  ;;  %v1998_v62 = vadd.f32 %v15001_v5, %v1876_v29  ;;  %v1572_v56 = vpop.xlane.xlu0 %1571 }
 0x20e   : > { %v1869_v52 = vmul.f32 %v14980_v13, %v1747_v27  ;;  %v1870_v33 = vmul.f32 %v14983_v32, %v1748_v60  ;;  %v1871_v59 = vmul.f32 %v14986_v15, %v1749_v3  ;;  %v1872_v37 = vmul.f32 %v14989_v16, %v1750_v55 }
 0x20f   : > { %v11452_v31 = vpop.eup %11451  ;;  %v10667_v17 = vpack.c.bf16 %v1996_v40, %v1995_v39  ;;  %v10668_v63 = vpack.c.bf16 %v1998_v62, %v1997_v41  ;;  %v1678_v54 = vmul.f32 0.001953125, %v1577_v28  ;;  %v1677_v58 = vmul.f32 0.001953125, %v1572_v56 }
 0x210   : > { %v1991_v18 = vadd.f32 %v14992_v49, %v1869_v52  ;;  %v1992_v10 = vadd.f32 %v14995_v7, %v1870_v33  ;;  %v1993_v29 = vadd.f32 %v14998_v57, %v1871_v59  ;;  %v1994_v21 = vadd.f32 %v15001_v5, %v1872_v37  ;;  %v1587_v27 = vpop.xlane.xlu1 %1586 }
 0x211   : > { %2397 = vst [vmem:[#allocation2 + $0x10] sm:$0xff] %v10667_v17  ;;  %2398 = vst [vmem:[#allocation2 + $0x18] sm:$0xff] %v10668_v63  ;;  %v1755_v3 = vmul.f32 %v11452_v31, %v14500_v23  ;;  %v1756_v60 = vmul.f32 %v11452_v31, %v14503_v30  ;;  %v1757_v55 = vmul.f32 %v11452_v31, %v14510_v8  ;;  %v11454_v39 = vpop.eup %11453  ;;  %v1703_v62 = vadd.f32 1e-05, %v1678_v54 }
 0x212   : > { %v1758_v28 = vmul.f32 %v11452_v31, %v14521_v11  ;;  %v10665_v40 = vpack.c.bf16 %v1992_v10, %v1991_v18  ;;  %v10666_v41 = vpack.c.bf16 %v1994_v21, %v1993_v29  ;;  %v1702_v56 = vadd.f32 1e-05, %v1677_v58 }
 0x213   : > { %v1877_v52 = vmul.f32 %v14980_v13, %v1755_v3  ;;  %v1878_v33 = vmul.f32 %v14983_v32, %v1756_v60  ;;  %v1879_v17 = vmul.f32 %v14986_v15, %v1757_v55  ;;  %v1759_v8 = vmul.f32 %v11454_v39, %v14513_v9  ;;  %v19449_v60 = vld [vmem:[#allocation65_spill] sm:$0xff] }
 0x214   : > { %v1880_v59 = vmul.f32 %v14989_v16, %v1758_v28  ;;  %v11456_v23 = vpop.eup %11455  ;;  %2395 = vst [vmem:[#allocation2] sm:$0xff] %v10665_v40  ;;  %2396 = vst [vmem:[#allocation2 + $0x8] sm:$0xff] %v10666_v41  ;;  %v1760_v11 = vmul.f32 %v11454_v39, %v14516_v35  ;;  %v1761_v30 = vmul.f32 %v11454_v39, %v14528_v51  ;;  %v1582_v37 = vpop.xlane.xlu0 %1581  ;;  %11457 = vrsqrt.f32 %v1703_v62 }
 0x215   : > { %v1762_v21 = vmul.f32 %v11454_v39, %v14531_v19  ;;  %v1999_v31 = vadd.f32 %v14992_v49, %v1877_v52  ;;  %v2000_v63 = vadd.f32 %v14995_v7, %v1878_v33  ;;  %v2001_v54 = vadd.f32 %v14998_v57, %v1879_v17  ;;  %v19450_v52 = vld [vmem:[#allocation66_spill] sm:$0xff] }
 0x216   : > { %v2002_v58 = vadd.f32 %v15001_v5, %v1880_v59  ;;  %v1881_v18 = vmul.f32 %v14980_v13, %v1759_v8  ;;  %v1882_v10 = vmul.f32 %v14983_v32, %v1760_v11  ;;  %v1883_v9 = vmul.f32 %v14986_v15, %v1761_v30 }
 0x217   : > { %v1884_v35 = vmul.f32 %v14989_v16, %v1762_v21  ;;  %v1597_v51 = vpop.xlane.xlu1 %1596  ;;  %v10669_v29 = vpack.c.bf16 %v2000_v63, %v1999_v31  ;;  %v1763_v3 = vmul.f32 %v11456_v23, %v14536_v48  ;;  %v1764_v55 = vmul.f32 %v11456_v23, %v19449_v60 }
 0x218   : > { %v10670_v19 = vpack.c.bf16 %v2002_v58, %v2001_v54  ;;  %v2003_v28 = vadd.f32 %v14992_v49, %v1881_v18  ;;  %v2004_v39 = vadd.f32 %v14995_v7, %v1882_v10  ;;  %v2005_v40 = vadd.f32 %v14998_v57, %v1883_v9 }
 0x219   : > { %v2006_v41 = vadd.f32 %v15001_v5, %v1884_v35  ;;  %2399 = vst [vmem:[#allocation2 + $0x20] sm:$0xff] %v10669_v29  ;;  %v1765_v33 = vmul.f32 %v11456_v23, %v19450_v52  ;;  %v1766_v17 = vmul.f32 %v11456_v23, %v14555_v42  ;;  %v1885_v59 = vmul.f32 %v14980_v13, %v1763_v3 }
 0x21a   : > { %2400 = vst [vmem:[#allocation2 + $0x28] sm:$0xff] %v10670_v19  ;;  %v1886_v48 = vmul.f32 %v14983_v32, %v1764_v55  ;;  %v10671_v8 = vpack.c.bf16 %v2004_v39, %v2003_v28  ;;  %v1680_v30 = vmul.f32 0.001953125, %v1587_v27  ;;  %v1592_v21 = vpop.xlane.xlu0 %1591  ;;  %11459 = vrsqrt.f32 %v1702_v56 }
 0x21b   : > { %v10672_v11 = vpack.c.bf16 %v2006_v41, %v2005_v40  ;;  %v1887_v31 = vmul.f32 %v14986_v15, %v1765_v33  ;;  %v1888_v63 = vmul.f32 %v14989_v16, %v1766_v17  ;;  %v2007_v54 = vadd.f32 %v14992_v49, %v1885_v59 }
 0x21c   : > { %v2008_v58 = vadd.f32 %v14995_v7, %v1886_v48  ;;  %2401 = vst [vmem:[#allocation2 + $0x30] sm:$0xff] %v10671_v8  ;;  %v1705_v42 = vadd.f32 1e-05, %v1680_v30  ;;  %v1679_v23 = vmul.f32 0.001953125, %v1582_v37  ;;  %v1682_v18 = vmul.f32 0.001953125, %v1597_v51 }
 0x21d   : > { %2402 = vst [vmem:[#allocation2 + $0x38] sm:$0xff] %v10672_v11  ;;  %v2009_v9 = vadd.f32 %v14998_v57, %v1887_v31  ;;  %v2010_v27 = vadd.f32 %v15001_v5, %v1888_v63  ;;  %v1681_v35 = vmul.f32 0.001953125, %v1592_v21 }
 0x21e   : > { %v1607_v10 = vpop.xlane.xlu1 %1606  ;;  %v10673_v62 = vpack.c.bf16 %v2008_v58, %v2007_v54  ;;  %11461 = vrsqrt.f32 %v1705_v42  ;;  %v1704_v29 = vadd.f32 1e-05, %v1679_v23  ;;  %v1707_v19 = vadd.f32 1e-05, %v1682_v18  ;;  %v11458_v40 = vpop.eup %11457 }
 0x21f   : > { %v1684_v3 = vmul.f32 0.001953125, %v1607_v10  ;;  %v10674_v60 = vpack.c.bf16 %v2010_v27, %v2009_v9  ;;  %v1706_v55 = vadd.f32 1e-05, %v1681_v35  ;;  %v1771_v52 = vmul.f32 %v11458_v40, %v14572_v43 }
 0x220   : > { %2403 = vst [vmem:[#allocation2 + $0x40] sm:$0xff] %v10673_v62  ;;  %11463 = vrsqrt.f32 %v1704_v29  ;;  %v1772_v33 = vmul.f32 %v11458_v40, %v14575_v45  ;;  %v1773_v17 = vmul.f32 %v11458_v40, %v14578_v4  ;;  %v1774_v59 = vmul.f32 %v11458_v40, %v14583_v46  ;;  %v19451_v46 = vld [vmem:[#allocation69_spill] sm:$0xff]  ;;  %v19452_v29 = vld [vmem:[#allocation70_spill] sm:$0xff]  ;;  %v19454_v40 = vld [vmem:[#allocation72_spill] sm:$0xff] }
 0x221   : > { %v1709_v28 = vadd.f32 1e-05, %v1684_v3  ;;  %2404 = vst [vmem:[#allocation2 + $0x48] sm:$0xff] %v10674_v60  ;;  %11465 = vrsqrt.f32 %v1707_v19  ;;  %v1893_v11 = vmul.f32 %v14980_v13, %v1771_v52  ;;  %v19453_v3 = vld [vmem:[#allocation71_spill] sm:$0xff] }
 0x222   : > { %v1602_v39 = vpop.xlane.xlu0 %1601  ;;  %11467 = vrsqrt.f32 %v1706_v55  ;;  %v1894_v30 = vmul.f32 %v14983_v32, %v1772_v33  ;;  %v1895_v21 = vmul.f32 %v14986_v15, %v1773_v17  ;;  %v1896_v31 = vmul.f32 %v14989_v16, %v1774_v59  ;;  %v19455_v52 = vld [vmem:[#allocation75_spill] sm:$0xff] }
 0x223   : > { %v1683_v56 = vmul.f32 0.001953125, %v1602_v39  ;;  %11469 = vrsqrt.f32 %v1709_v28  ;;  %v2015_v42 = vadd.f32 %v14992_v49, %v1893_v11 }
 0x224   : > { %v11460_v48 = vpop.eup %11459  ;;  %v2016_v23 = vadd.f32 %v14995_v7, %v1894_v30  ;;  %v2017_v18 = vadd.f32 %v14998_v57, %v1895_v21  ;;  %v2018_v10 = vadd.f32 %v15001_v5, %v1896_v31  ;;  %v19456_v21 = vld [vmem:[#allocation73_spill] sm:$0xff] }
 0x225   : > { %v1708_v37 = vadd.f32 1e-05, %v1683_v56  ;;  %v1617_v51 = vpop.xlane.xlu1 %1616  ;;  %v1767_v43 = vmul.f32 %v11460_v48, %v14586_v2  ;;  %v1768_v45 = vmul.f32 %v11460_v48, %v14589_v44  ;;  %v1769_v4 = vmul.f32 %v11460_v48, %v14602_v38 }
 0x226   : > { %v1686_v41 = vmul.f32 0.001953125, %v1617_v51  ;;  %v1770_v54 = vmul.f32 %v11460_v48, %v19451_v46  ;;  %v10677_v62 = vpack.c.bf16 %v2016_v23, %v2015_v42  ;;  %v10678_v35 = vpack.c.bf16 %v2018_v10, %v2017_v18  ;;  %v19458_v10 = vld [vmem:[#allocation76_spill] sm:$0xff] }
 0x227   : > { %11471 = vrsqrt.f32 %v1708_v37  ;;  %v1889_v9 = vmul.f32 %v14980_v13, %v1767_v43  ;;  %v1890_v2 = vmul.f32 %v14983_v32, %v1768_v45  ;;  %v1891_v44 = vmul.f32 %v14986_v15, %v1769_v4  ;;  %v19457_v43 = vld [vmem:[#allocation74_spill] sm:$0xff] }
 0x228   : > { %v15067_v8 = vadd.f32 1e-05, %v1686_v41  ;;  %v11462_v63 = vpop.eup %11461  ;;  %v1892_v38 = vmul.f32 %v14989_v16, %v1770_v54  ;;  %2407 = vst [vmem:[#allocation2 + $0x60] sm:$0xff] %v10677_v62  ;;  %2408 = vst [vmem:[#allocation2 + $0x68] sm:$0xff] %v10678_v35 }
 0x229   : > { %v15077_v58 = vpop.xlane.xlu0 %1611  ;;  %v1779_v19 = vmul.f32 %v11462_v63, %v19452_v29  ;;  %v1780_v60 = vmul.f32 %v11462_v63, %v19453_v3  ;;  %v2011_v28 = vadd.f32 %v14992_v49, %v1889_v9  ;;  %v2012_v39 = vadd.f32 %v14995_v7, %v1890_v2  ;;  %v19459_v2 = vld [vmem:[#allocation79_spill] sm:$0xff]  ;;  %v19460_v3 = vld [vmem:[#allocation77_spill] sm:$0xff] }
 0x22a   : > { %v11464_v27 = vpop.eup %11463  ;;  %v2013_v56 = vadd.f32 %v14998_v57, %v1891_v44  ;;  %v2014_v37 = vadd.f32 %v15001_v5, %v1892_v38  ;;  %v1781_v41 = vmul.f32 %v11462_v63, %v19454_v40  ;;  %v1782_v33 = vmul.f32 %v11462_v63, %v19455_v52  ;;  %v19461_v40 = vld [vmem:[#allocation78_spill] sm:$0xff]  ;;  %v19462_v52 = vld [vmem:[#allocation80_spill] sm:$0xff] }
 0x22b   : > { %v11466_v55 = vpop.eup %11465  ;;  %v1901_v17 = vmul.f32 %v14980_v13, %v1779_v19  ;;  %v1902_v59 = vmul.f32 %v14983_v32, %v1780_v60  ;;  %v10675_v11 = vpack.c.bf16 %v2012_v39, %v2011_v28  ;;  %v1775_v31 = vmul.f32 %v11464_v27, %v19456_v21 }
 0x22c   : > { %v11468_v51 = vpop.eup %11467  ;;  %v10676_v30 = vpack.c.bf16 %v2014_v37, %v2013_v56  ;;  %v1776_v45 = vmul.f32 %v11464_v27, %v19457_v43  ;;  %v15101_v4 = vpop.xlane.xlu1 %1626  ;;  %v1903_v54 = vmul.f32 %v14986_v15, %v1781_v41  ;;  %v1904_v63 = vmul.f32 %v14989_v16, %v1782_v33 }
 0x22d   : > { %v15097_v48 = vpop.eup %11469  ;;  %v2023_v42 = vadd.f32 %v14992_v49, %v1901_v17  ;;  %v2024_v23 = vadd.f32 %v14995_v7, %v1902_v59  ;;  %2405 = vst [vmem:[#allocation2 + $0x50] sm:$0xff] %v10675_v11  ;;  %v1777_v9 = vmul.f32 %v11464_v27, %v19458_v10  ;;  %v1778_v44 = vmul.f32 %v11464_v27, %v19459_v2  ;;  %v19463_v17 = vld [vmem:[#allocation8_spill] sm:$0xff]  ;;  %v19465_v2 = vld [vmem:[#allocation10_spill] sm:$0xff] }
 0x22e   : > { %2406 = vst [vmem:[#allocation2 + $0x58] sm:$0xff] %v10676_v30  ;;  %v1897_v38 = vmul.f32 %v14980_v13, %v1775_v31  ;;  %v1898_v62 = vmul.f32 %v14983_v32, %v1776_v45  ;;  %v2025_v35 = vadd.f32 %v14998_v57, %v1903_v54  ;;  %v2026_v29 = vadd.f32 %v15001_v5, %v1904_v63 }
 0x22f   : > { %v15103_v46 = vpop.xlane.xlu0 %1621  ;;  %v10681_v19 = vpack.c.bf16 %v2024_v23, %v2023_v42  ;;  %v1787_v60 = vmul.f32 %v11466_v55, %v19460_v3  ;;  %v1899_v28 = vmul.f32 %v14986_v15, %v1777_v9  ;;  %v1900_v39 = vmul.f32 %v14989_v16, %v1778_v44  ;;  %v19464_v23 = vld [vmem:[#allocation9_spill] sm:$0xff]  ;;  %v19467_v3 = vld [vmem:[#allocation12_spill] sm:$0xff] }
 0x230   : > { %v2019_v56 = vadd.f32 %v14992_v49, %v1897_v38  ;;  %v2020_v37 = vadd.f32 %v14995_v7, %v1898_v62  ;;  %v10682_v27 = vpack.c.bf16 %v2026_v29, %v2025_v35  ;;  %v1788_v41 = vmul.f32 %v11466_v55, %v19461_v40  ;;  %v19466_v38 = vld [vmem:[#allocation11_spill] sm:$0xff] }
 0x231   : > { %v15109_v18 = vpop.eup %11471  ;;  %2411 = vst [vmem:[#allocation2 + $0x80] sm:$0xff] %v10681_v19  ;;  %v1789_v33 = vmul.f32 %v11466_v55, %v19462_v52  ;;  %v1790_v59 = vmul.f32 %v11466_v55, %v19463_v17  ;;  %v2021_v11 = vadd.f32 %v14998_v57, %v1899_v28  ;;  %v2022_v30 = vadd.f32 %v15001_v5, %v1900_v39 }
 0x232   : > { %v10679_v21 = vpack.c.bf16 %v2020_v37, %v2019_v56  ;;  %v1909_v31 = vmul.f32 %v14980_v13, %v1787_v60  ;;  %2412 = vst [vmem:[#allocation2 + $0x88] sm:$0xff] %v10682_v27  ;;  %v1910_v54 = vmul.f32 %v14983_v32, %v1788_v41  ;;  %v1783_v55 = vmul.f32 %v11468_v51, %v19464_v23  ;;  %v19468_v37 = vld [vmem:[#allocation13_spill] sm:$0xff] }
 0x233   : > { %v1911_v63 = vmul.f32 %v14986_v15, %v1789_v33  ;;  %v1912_v42 = vmul.f32 %v14989_v16, %v1790_v59  ;;  %v10680_v10 = vpack.c.bf16 %v2022_v30, %v2021_v11  ;;  %v1784_v44 = vmul.f32 %v11468_v51, %v19465_v2  ;;  %v19469_v33 = vld [vmem:[#allocation14_spill] sm:$0xff]  ;;  %v19470_v30 = vld [vmem:[#allocation15_spill] sm:$0xff] }
 0x234   : > { %v15128_v43 = vpop.xlane.xlu1 %1636  ;;  %2409 = vst [vmem:[#allocation2 + $0x70] sm:$0xff] %v10679_v21  ;;  %v2031_v9 = vadd.f32 %v14992_v49, %v1909_v31  ;;  %v1785_v62 = vmul.f32 %v11468_v51, %v19466_v38  ;;  %v2032_v35 = vadd.f32 %v14995_v7, %v1910_v54  ;;  %v1786_v60 = vmul.f32 %v11468_v51, %v19467_v3 }
 0x235   : > { %v2033_v29 = vadd.f32 %v14998_v57, %v1911_v63  ;;  %v2034_v19 = vadd.f32 %v15001_v5, %v1912_v42  ;;  %2410 = vst [vmem:[#allocation2 + $0x78] sm:$0xff] %v10680_v10  ;;  %v1905_v28 = vmul.f32 %v14980_v13, %v1783_v55  ;;  %v1906_v39 = vmul.f32 %v14983_v32, %v1784_v44  ;;  %v19471_v42 = vld [vmem:[#allocation16_spill] sm:$0xff]  ;;  %v19472_v44 = vld [vmem:[#allocation17_spill] sm:$0xff] }
 0x236   : > { %v1907_v56 = vmul.f32 %v14986_v15, %v1785_v62  ;;  %v1795_v27 = vmul.f32 %v15097_v48, %v19468_v37  ;;  %v10685_v40 = vpack.c.bf16 %v2032_v35, %v2031_v9  ;;  %v1908_v52 = vmul.f32 %v14989_v16, %v1786_v60  ;;  %v19473_v62 = vld [vmem:[#allocation18_spill] sm:$0xff] }
 0x237   : > { %v15130_v45 = vpop.xlane.xlu0 %1631  ;;  %v10686_v41 = vpack.c.bf16 %v2034_v19, %v2033_v29  ;;  %v1796_v17 = vmul.f32 %v15097_v48, %v19469_v33  ;;  %v2027_v59 = vadd.f32 %v14992_v49, %v1905_v28  ;;  %v2028_v51 = vadd.f32 %v14995_v7, %v1906_v39  ;;  %v19474_v28 = vld [vmem:[#allocation19_spill] sm:$0xff] }
 0x238   : > { %v2029_v11 = vadd.f32 %v14998_v57, %v1907_v56  ;;  %v1797_v21 = vmul.f32 %v15097_v48, %v19470_v30  ;;  %2415 = vst [vmem:[#allocation2 + $0xa0] sm:$0xff] %v10685_v40  ;;  %v2030_v63 = vadd.f32 %v15001_v5, %v1908_v52  ;;  %v1798_v23 = vmul.f32 %v15097_v48, %v19471_v42  ;;  %v19475_v56 = vld [vmem:[#allocation20_spill] sm:$0xff] }
 0x239   : > { %v1647_v31 = vpop.xlane.xlu1 %1646  ;;  %2416 = vst [vmem:[#allocation2 + $0xa8] sm:$0xff] %v10686_v41  ;;  %v1917_v55 = vmul.f32 %v14980_v13, %v1795_v27  ;;  %v1918_v10 = vmul.f32 %v14983_v32, %v1796_v17  ;;  %v10683_v9 = vpack.c.bf16 %v2028_v51, %v2027_v59  ;;  %v1791_v38 = vmul.f32 %v15109_v18, %v19472_v44 }
 0x23a   : > { %v1919_v2 = vmul.f32 %v14986_v15, %v1797_v21  ;;  %v1792_v35 = vmul.f32 %v15109_v18, %v19473_v62  ;;  %v10684_v29 = vpack.c.bf16 %v2030_v63, %v2029_v11  ;;  %v1920_v19 = vmul.f32 %v14989_v16, %v1798_v23 }
 0x23b   : > { %v2039_v3 = vadd.f32 %v14992_v49, %v1917_v55  ;;  %v2040_v48 = vadd.f32 %v14995_v7, %v1918_v10  ;;  %2413 = vst [vmem:[#allocation2 + $0x90] sm:$0xff] %v10683_v9  ;;  %v1793_v39 = vmul.f32 %v15109_v18, %v19474_v28  ;;  %v1794_v37 = vmul.f32 %v15109_v18, %v19475_v56 }
 0x23c   : > { %v1642_v54 = vpop.xlane.xlu0 %1641  ;;  %v2041_v60 = vadd.f32 %v14998_v57, %v1919_v2  ;;  %v1913_v27 = vmul.f32 %v14980_v13, %v1791_v38  ;;  %2414 = vst [vmem:[#allocation2 + $0x98] sm:$0xff] %v10684_v29  ;;  %v2042_v40 = vadd.f32 %v15001_v5, %v1920_v19  ;;  %v1914_v52 = vmul.f32 %v14983_v32, %v1792_v35 }
 0x23d   : > { %v10689_v41 = vpack.c.bf16 %v2040_v48, %v2039_v3  ;;  %11473 = vrsqrt.f32 %v15067_v8  ;;  %v1915_v33 = vmul.f32 %v14986_v15, %v1793_v39  ;;  %v1916_v17 = vmul.f32 %v14989_v16, %v1794_v37 }
 0x23e   : > { %v2035_v59 = vadd.f32 %v14992_v49, %v1913_v27  ;;  %v1685_v51 = vmul.f32 0.001953125, %v15077_v58  ;;  %v1657_v11 = vpop.xlane.xlu1 %1656  ;;  %v10690_v30 = vpack.c.bf16 %v2042_v40, %v2041_v60  ;;  %v2036_v21 = vadd.f32 %v14995_v7, %v1914_v52  ;;  %v19477_v27 = vld [vmem:[#allocation22_spill] sm:$0xff]  ;;  %v19479_v52 = vld [vmem:[#allocation24_spill] sm:$0xff] }
 0x23f   : > { %2419 = vst [vmem:[#allocation2 + $0xc0] sm:$0xff] %v10689_v41  ;;  %v1688_v63 = vmul.f32 0.001953125, %v15101_v4  ;;  %v1687_v42 = vmul.f32 0.001953125, %v15103_v46  ;;  %v2037_v8 = vadd.f32 %v14998_v57, %v1915_v33  ;;  %v2038_v23 = vadd.f32 %v15001_v5, %v1916_v17 }
 0x240   : > { %v1710_v55 = vadd.f32 1e-05, %v1685_v51  ;;  %v1690_v10 = vmul.f32 0.001953125, %v15128_v43  ;;  %2420 = vst [vmem:[#allocation2 + $0xc8] sm:$0xff] %v10690_v30  ;;  %v10687_v9 = vpack.c.bf16 %v2036_v21, %v2035_v59  ;;  %v1689_v44 = vmul.f32 0.001953125, %v15130_v45 }
 0x241   : > { %v1652_v18 = vpop.xlane.xlu0 %1651  ;;  %v1713_v58 = vadd.f32 1e-05, %v1688_v63  ;;  %v1712_v2 = vadd.f32 1e-05, %v1687_v42  ;;  %v10688_v38 = vpack.c.bf16 %v2038_v23, %v2037_v8  ;;  %v1692_v35 = vmul.f32 0.001953125, %v1647_v31  ;;  %v19476_v31 = vld [vmem:[#allocation21_spill] sm:$0xff] }
 0x242   : > { %11475 = vrsqrt.f32 %v1710_v55  ;;  %v1715_v62 = vadd.f32 1e-05, %v1690_v10  ;;  %2417 = vst [vmem:[#allocation2 + $0xb0] sm:$0xff] %v10687_v9  ;;  %v1714_v4 = vadd.f32 1e-05, %v1689_v44  ;;  %v1691_v46 = vmul.f32 0.001953125, %v1642_v54 }
 0x243   : > { %11477 = vrsqrt.f32 %v1713_v58  ;;  %v1694_v29 = vmul.f32 0.001953125, %v1657_v11  ;;  %2418 = vst [vmem:[#allocation2 + $0xb8] sm:$0xff] %v10688_v38  ;;  %v1717_v19 = vadd.f32 1e-05, %v1692_v35  ;;  %v1671_v3 = vpop.xlane.xlu1 %1670  ;;  %v1693_v60 = vmul.f32 0.001953125, %v1652_v18  ;;  %v19478_v54 = vld [vmem:[#allocation23_spill] sm:$0xff] }
 0x244   : > { %11479 = vrsqrt.f32 %v1712_v2  ;;  %v1716_v48 = vadd.f32 1e-05, %v1691_v46  ;;  %v1696_v39 = vmul.f32 0.001953125, %v1671_v3  ;;  %v19480_v9 = vld [vmem:[#allocation25_spill] sm:$0xff]  ;;  %v19481_v2 = vld [vmem:[#allocation26_spill] sm:$0xff]  ;;  %v19482_v38 = vld [vmem:[#allocation27_spill] sm:$0xff] }
 0x245   : > { %11481 = vrsqrt.f32 %v1715_v62  ;;  %v1719_v45 = vadd.f32 1e-05, %v1694_v29  ;;  %v15197_v18 = vadd.f32 1e-05, %v1693_v60  ;;  %v19483_v35 = vld [vmem:[#allocation28_spill] sm:$0xff]  ;;  %v19484_v3 = vld [vmem:[#allocation29_spill] sm:$0xff] }
 0x246   : > { %v1662_v43 = vpop.xlane.xlu0 %1661  ;;  %11483 = vrsqrt.f32 %v1714_v4  ;;  %v15199_v30 = vadd.f32 1e-05, %v1696_v39 }
 0x247   : > { %v11474_v28 = vpop.eup %11473  ;;  %11485 = vrsqrt.f32 %v1717_v19  ;;  %v1695_v56 = vmul.f32 0.001953125, %v1662_v43 }
 0x248   : > { %v1803_v37 = vmul.f32 %v11474_v28, %v19476_v31  ;;  %v1804_v40 = vmul.f32 %v11474_v28, %v19477_v27  ;;  %v1805_v41 = vmul.f32 %v11474_v28, %v19478_v54  ;;  %v1806_v33 = vmul.f32 %v11474_v28, %v19479_v52  ;;  %v19486_v27 = vld [vmem:[#allocation31_spill] sm:$0xff]  ;;  %v19487_v54 = vld [vmem:[#allocation32_spill] sm:$0xff] }
 0x249   : > { %11487 = vrsqrt.f32 %v1716_v48  ;;  %v15201_v21 = vadd.f32 1e-05, %v1695_v56  ;;  %v19485_v48 = vld [vmem:[#allocation30_spill] sm:$0xff] }
 0x24a   : > { %v1925_v17 = vmul.f32 %v14980_v13, %v1803_v37  ;;  %v1926_v59 = vmul.f32 %v14983_v32, %v1804_v40  ;;  %v1927_v51 = vmul.f32 %v14986_v15, %v1805_v41  ;;  %v1928_v11 = vmul.f32 %v14989_v16, %v1806_v33 }
 0x24b   : > { %11489 = vrsqrt.f32 %v1719_v45 }
 0x24c   : > { %v11476_v63 = vpop.eup %11475  ;;  %v2047_v42 = vadd.f32 %v14992_v49, %v1925_v17  ;;  %v2048_v8 = vadd.f32 %v14995_v7, %v1926_v59  ;;  %v2049_v23 = vadd.f32 %v14998_v57, %v1927_v51  ;;  %v2050_v55 = vadd.f32 %v15001_v5, %v1928_v11 }
 0x24d   : > { %v11478_v10 = vpop.eup %11477  ;;  %v1799_v58 = vmul.f32 %v11476_v63, %v19480_v9  ;;  %v1800_v44 = vmul.f32 %v11476_v63, %v19481_v2  ;;  %v1801_v62 = vmul.f32 %v11476_v63, %v19482_v38  ;;  %v1802_v4 = vmul.f32 %v11476_v63, %v19483_v35  ;;  %v19488_v2 = vld [vmem:[#allocation33_spill] sm:$0xff]  ;;  %v19489_v38 = vld [vmem:[#allocation34_spill] sm:$0xff] }
 0x24e   : > { %v11480_v46 = vpop.eup %11479  ;;  %v10693_v29 = vpack.c.bf16 %v2048_v8, %v2047_v42  ;;  %v10694_v19 = vpack.c.bf16 %v2050_v55, %v2049_v23  ;;  %v1811_v43 = vmul.f32 %v11478_v10, %v19484_v3  ;;  %v1812_v60 = vmul.f32 %v11478_v10, %v19485_v48  ;;  %v19491_v48 = vld [vmem:[#allocation36_spill] sm:$0xff] }
 0x24f   : > { %v11482_v28 = vpop.eup %11481  ;;  %v1921_v45 = vmul.f32 %v14980_v13, %v1799_v58  ;;  %v1922_v39 = vmul.f32 %v14983_v32, %v1800_v44  ;;  %v1923_v56 = vmul.f32 %v14986_v15, %v1801_v62  ;;  %v1924_v31 = vmul.f32 %v14989_v16, %v1802_v4 }
 0x250   : > { %v11484_v37 = vpop.eup %11483  ;;  %2423 = vst [vmem:[#allocation2 + $0xe0] sm:$0xff] %v10693_v29  ;;  %2424 = vst [vmem:[#allocation2 + $0xe8] sm:$0xff] %v10694_v19  ;;  %v1813_v40 = vmul.f32 %v11478_v10, %v19486_v27  ;;  %v1814_v41 = vmul.f32 %v11478_v10, %v19487_v54  ;;  %v1933_v52 = vmul.f32 %v14980_v13, %v1811_v43  ;;  %v19490_v19 = vld [vmem:[#allocation35_spill] sm:$0xff]  ;;  %v19493_v54 = vld [vmem:[#allocation38_spill] sm:$0xff]  ;;  %11491 = vrsqrt.f32 %v15197_v18 }
 0x251   : > { %v1934_v33 = vmul.f32 %v14983_v32, %v1812_v60  ;;  %v15221_v17 = vpop.eup %11485  ;;  %v2043_v59 = vadd.f32 %v14992_v49, %v1921_v45  ;;  %v2044_v51 = vadd.f32 %v14995_v7, %v1922_v39  ;;  %v2045_v11 = vadd.f32 %v14998_v57, %v1923_v56  ;;  %v19492_v56 = vld [vmem:[#allocation37_spill] sm:$0xff] }
 0x252   : > { %v2046_v63 = vadd.f32 %v15001_v5, %v1924_v31  ;;  %v1935_v42 = vmul.f32 %v14986_v15, %v1813_v40  ;;  %v1936_v8 = vmul.f32 %v14989_v16, %v1814_v41  ;;  %v2055_v23 = vadd.f32 %v14992_v49, %v1933_v52  ;;  %v19494_v52 = vld [vmem:[#allocation39_spill] sm:$0xff] }
 0x253   : > { %v2056_v55 = vadd.f32 %v14995_v7, %v1934_v33  ;;  %v15231_v10 = vpop.eup %11487  ;;  %v10691_v9 = vpack.c.bf16 %v2044_v51, %v2043_v59  ;;  %v1807_v44 = vmul.f32 %v11480_v46, %v19488_v2  ;;  %v1808_v62 = vmul.f32 %v11480_v46, %v19489_v38 }
 0x254   : > { %v10692_v58 = vpack.c.bf16 %v2046_v63, %v2045_v11  ;;  %v2057_v35 = vadd.f32 %v14998_v57, %v1935_v42  ;;  %v2058_v4 = vadd.f32 %v15001_v5, %v1936_v8  ;;  %v1809_v3 = vmul.f32 %v11480_v46, %v19490_v19  ;;  %v19495_v11 = vld [vmem:[#allocation40_spill] sm:$0xff] }
 0x255   : > { %v10697_v29 = vpack.c.bf16 %v2056_v55, %v2055_v23  ;;  %v15238_v43 = vpop.eup %11489  ;;  %2421 = vst [vmem:[#allocation2 + $0xd0] sm:$0xff] %v10691_v9  ;;  %v1810_v60 = vmul.f32 %v11480_v46, %v19491_v48  ;;  %v1929_v45 = vmul.f32 %v14980_v13, %v1807_v44  ;;  %v1930_v39 = vmul.f32 %v14983_v32, %v1808_v62  ;;  %v19496_v44 = vld [vmem:[#allocation41_spill] sm:$0xff]  ;;  %v19498_v48 = vld [vmem:[#allocation46_spill] sm:$0xff] }
 0x256   : > { %2422 = vst [vmem:[#allocation2 + $0xd8] sm:$0xff] %v10692_v58  ;;  %v1819_v31 = vmul.f32 %v11482_v28, %v19492_v56  ;;  %v10698_v27 = vpack.c.bf16 %v2058_v4, %v2057_v35  ;;  %v1931_v40 = vmul.f32 %v14986_v15, %v1809_v3  ;;  %v1820_v41 = vmul.f32 %v11482_v28, %v19493_v54  ;;  %v19497_v4 = vld [vmem:[#allocation42_spill] sm:$0xff] }
 0x257   : > { %2427 = vst [vmem:[#allocation2 + $0x100] sm:$0xff] %v10697_v29  ;;  %v1821_v33 = vmul.f32 %v11482_v28, %v19494_v52  ;;  %v1932_v59 = vmul.f32 %v14989_v16, %v1810_v60  ;;  %v2051_v51 = vadd.f32 %v14992_v49, %v1929_v45  ;;  %v2052_v46 = vadd.f32 %v14995_v7, %v1930_v39  ;;  %v19499_v45 = vld [vmem:[#allocation49_spill] sm:$0xff] }
 0x258   : > { %v1822_v63 = vmul.f32 %v11482_v28, %v19495_v11  ;;  %2428 = vst [vmem:[#allocation2 + $0x108] sm:$0xff] %v10698_v27  ;;  %v2053_v42 = vadd.f32 %v14998_v57, %v1931_v40  ;;  %v1941_v8 = vmul.f32 %v14980_v13, %v1819_v31  ;;  %v1942_v23 = vmul.f32 %v14983_v32, %v1820_v41  ;;  %v19500_v40 = vld [vmem:[#allocation45_spill] sm:$0xff] }
 0x259   : > { %v1943_v55 = vmul.f32 %v14986_v15, %v1821_v33  ;;  %v2054_v9 = vadd.f32 %v15001_v5, %v1932_v59  ;;  %v10695_v58 = vpack.c.bf16 %v2052_v46, %v2051_v51  ;;  %v1815_v38 = vmul.f32 %v11484_v37, %v19496_v44 }
 0x25a   : > { %v1944_v2 = vmul.f32 %v14989_v16, %v1822_v63  ;;  %v2063_v62 = vadd.f32 %v14992_v49, %v1941_v8  ;;  %v2064_v28 = vadd.f32 %v14995_v7, %v1942_v23  ;;  %v1816_v29 = vmul.f32 %v11484_v37, %v19497_v4  ;;  %v11492_v18 = vpop.eup %11491 }
 0x25b   : > { %v2065_v35 = vadd.f32 %v14998_v57, %v1943_v55  ;;  %v10696_v19 = vpack.c.bf16 %v2054_v9, %v2053_v42  ;;  %2425 = vst [vmem:[#allocation2 + $0xf0] sm:$0xff] %v10695_v58  ;;  %v1817_v60 = vmul.f32 %v11484_v37, %v19498_v48  ;;  %v1818_v39 = vmul.f32 %v11484_v37, %v19499_v45 }
 0x25c   : > { %v2066_v3 = vadd.f32 %v15001_v5, %v1944_v2  ;;  %v10701_v56 = vpack.c.bf16 %v2064_v28, %v2063_v62  ;;  %v1937_v31 = vmul.f32 %v14980_v13, %v1815_v38  ;;  %v1938_v27 = vmul.f32 %v14983_v32, %v1816_v29 }
 0x25d   : > { %v1827_v54 = vmul.f32 %v15221_v17, %v19500_v40  ;;  %2426 = vst [vmem:[#allocation2 + $0xf8] sm:$0xff] %v10696_v19  ;;  %v1939_v52 = vmul.f32 %v14986_v15, %v1817_v60  ;;  %v1940_v33 = vmul.f32 %v14989_v16, %v1818_v39  ;;  %v1828_v59 = vmul.f32 %v15221_v17, %v14841_v14 }
 0x25e   : > { %v10702_v41 = vpack.c.bf16 %v2066_v3, %v2065_v35  ;;  %2431 = vst [vmem:[#allocation2 + $0x120] sm:$0xff] %v10701_v56  ;;  %v2059_v37 = vadd.f32 %v14992_v49, %v1937_v31  ;;  %v2060_v51 = vadd.f32 %v14995_v7, %v1938_v27  ;;  %v1829_v46 = vmul.f32 %v15221_v17, %v14878_v50 }
 0x25f   : > { %v1830_v11 = vmul.f32 %v15221_v17, %v14885_v0  ;;  %v2061_v63 = vadd.f32 %v14998_v57, %v1939_v52  ;;  %v2062_v42 = vadd.f32 %v15001_v5, %v1940_v33  ;;  %v1949_v8 = vmul.f32 %v14980_v13, %v1827_v54 }
 0x260   : > { %2432 = vst [vmem:[#allocation2 + $0x128] sm:$0xff] %v10702_v41  ;;  %v1950_v14 = vmul.f32 %v14983_v32, %v1828_v59  ;;  %v10699_v23 = vpack.c.bf16 %v2060_v51, %v2059_v37  ;;  %v1951_v55 = vmul.f32 %v14986_v15, %v1829_v46  ;;  %v1823_v50 = vmul.f32 %v15231_v10, %v14848_v1 }
 0x261   : > { %v1952_v9 = vmul.f32 %v14989_v16, %v1830_v11  ;;  %v10700_v58 = vpack.c.bf16 %v2062_v42, %v2061_v63  ;;  %v2071_v0 = vadd.f32 %v14992_v49, %v1949_v8  ;;  %v1824_v2 = vmul.f32 %v15231_v10, %v14853_v22  ;;  %v19501_v11 = vld [vmem:[#allocation67_spill] sm:$0xff]  ;;  %v19502_v42 = vld [vmem:[#allocation68_spill] sm:$0xff] }
 0x262   : > { %v2072_v17 = vadd.f32 %v14995_v7, %v1950_v14  ;;  %2429 = vst [vmem:[#allocation2 + $0x110] sm:$0xff] %v10699_v23  ;;  %v2073_v44 = vadd.f32 %v14998_v57, %v1951_v55  ;;  %v1825_v62 = vmul.f32 %v15231_v10, %v14896_v34  ;;  %v1826_v28 = vmul.f32 %v15231_v10, %v14901_v24  ;;  %v19503_v14 = vld [vmem:[#allocation7_spill] sm:$0xff] }
 0x263   : > { %v2074_v38 = vadd.f32 %v15001_v5, %v1952_v9  ;;  %2430 = vst [vmem:[#allocation2 + $0x118] sm:$0xff] %v10700_v58  ;;  %v1945_v35 = vmul.f32 %v14980_v13, %v1823_v50  ;;  %v1946_v4 = vmul.f32 %v14983_v32, %v1824_v2  ;;  %v1835_v22 = vmul.f32 %v15238_v43, %v14868_v20 }
 0x264   : > { %v10705_v1 = vpack.c.bf16 %v2072_v17, %v2071_v0  ;;  %v1947_v19 = vmul.f32 %v14986_v15, %v1825_v62  ;;  %v1948_v3 = vmul.f32 %v14989_v16, %v1826_v28  ;;  %v1836_v34 = vmul.f32 %v15238_v43, %v14871_v12 }
 0x265   : > { %v10706_v29 = vpack.c.bf16 %v2074_v38, %v2073_v44  ;;  %v2067_v24 = vadd.f32 %v14992_v49, %v1945_v35  ;;  %v2068_v10 = vadd.f32 %v14995_v7, %v1946_v4  ;;  %v1837_v48 = vmul.f32 %v15238_v43, %v14908_v36  ;;  %v19504_v4 = vld [vmem:[#allocation50_spill] sm:$0xff] }
 0x266   : > { %2435 = vst [vmem:[#allocation2 + $0x140] sm:$0xff] %v10705_v1  ;;  %v1838_v60 = vmul.f32 %v15238_v43, %v14918_v53  ;;  %v2069_v20 = vadd.f32 %v14998_v57, %v1947_v19  ;;  %v2070_v45 = vadd.f32 %v15001_v5, %v1948_v3  ;;  %v1957_v39 = vmul.f32 %v14980_v13, %v1835_v22 }
 0x267   : > { %2436 = vst [vmem:[#allocation2 + $0x148] sm:$0xff] %v10706_v29  ;;  %v1958_v12 = vmul.f32 %v14983_v32, %v1836_v34  ;;  %v10703_v56 = vpack.c.bf16 %v2068_v10, %v2067_v24  ;;  %v1959_v31 = vmul.f32 %v14986_v15, %v1837_v48  ;;  %11493 = vrsqrt.f32 %v15199_v30  ;;  %v19505_v29 = vld [vmem:[#allocation43_spill] sm:$0xff]  ;;  %v19506_v24 = vld [vmem:[#allocation44_spill] sm:$0xff]  ;;  %v19507_v48 = vld [vmem:[#allocation53_spill] sm:$0xff] }
 0x268   : > { %v1960_v27 = vmul.f32 %v14989_v16, %v1838_v60  ;;  %v10704_v36 = vpack.c.bf16 %v2070_v45, %v2069_v20  ;;  %v2079_v40 = vadd.f32 %v14992_v49, %v1957_v39  ;;  %11495 = vrsqrt.f32 %v15201_v21 }
 0x269   : > { %v2080_v53 = vadd.f32 %v14995_v7, %v1958_v12  ;;  %2433 = vst [vmem:[#allocation2 + $0x130] sm:$0xff] %v10703_v56  ;;  %v2081_v43 = vadd.f32 %v14998_v57, %v1959_v31  ;;  %v1831_v59 = vmul.f32 %v11492_v18, %v14890_v26  ;;  %v1832_v37 = vmul.f32 %v11492_v18, %v14893_v6 }
 0x26a   : > { %v2082_v54 = vadd.f32 %v15001_v5, %v1960_v27  ;;  %2434 = vst [vmem:[#allocation2 + $0x138] sm:$0xff] %v10704_v36  ;;  %v1833_v30 = vmul.f32 %v11492_v18, %v14928_v61  ;;  %v1834_v51 = vmul.f32 %v11492_v18, %v14937_v25 }
 0x26b   : > { %v10709_v41 = vpack.c.bf16 %v2080_v53, %v2079_v40  ;;  %v1953_v23 = vmul.f32 %v14980_v13, %v1831_v59  ;;  %v1954_v55 = vmul.f32 %v14983_v32, %v1832_v37 }
 0x26c   : > { %v10710_v52 = vpack.c.bf16 %v2082_v54, %v2081_v43  ;;  %v1955_v26 = vmul.f32 %v14986_v15, %v1833_v30  ;;  %v1956_v6 = vmul.f32 %v14989_v16, %v1834_v51 }
 0x26d   : > { %2439 = vst [vmem:[#allocation2 + $0x160] sm:$0xff] %v10709_v41  ;;  %v2075_v58 = vadd.f32 %v14992_v49, %v1953_v23  ;;  %v2076_v0 = vadd.f32 %v14995_v7, %v1954_v55 }
 0x26e   : > { %2440 = vst [vmem:[#allocation2 + $0x168] sm:$0xff] %v10710_v52  ;;  %v2077_v17 = vadd.f32 %v14998_v57, %v1955_v26  ;;  %v2078_v2 = vadd.f32 %v15001_v5, %v1956_v6 }
 0x26f   : > { %v10707_v1 = vpack.c.bf16 %v2076_v0, %v2075_v58 }
 0x270   : > { %v10708_v35 = vpack.c.bf16 %v2078_v2, %v2077_v17 }
 0x271   : > { %v11494_v33 = vpop.eup %11493  ;;  %2437 = vst [vmem:[#allocation2 + $0x150] sm:$0xff] %v10707_v1 }
 0x272   : > { %v1843_v46 = vmul.f32 %v11494_v33, %v14565_v47  ;;  %v1844_v63 = vmul.f32 %v11494_v33, %v19501_v11  ;;  %v1845_v8 = vmul.f32 %v11494_v33, %v19502_v42  ;;  %v1846_v21 = vmul.f32 %v11494_v33, %v19503_v14  ;;  %v11496_v9 = vpop.eup %11495  ;;  %2438 = vst [vmem:[#allocation2 + $0x158] sm:$0xff] %v10708_v35 }
 0x273   : > { %v1839_v22 = vmul.f32 %v11496_v9, %v19504_v4  ;;  %v1840_v19 = vmul.f32 %v11496_v9, %v19505_v29  ;;  %v1841_v10 = vmul.f32 %v11496_v9, %v19506_v24  ;;  %v1842_v60 = vmul.f32 %v11496_v9, %v19507_v48 }
 0x274   : > { %v1965_v61 = vmul.f32 %v14980_v13, %v1843_v46  ;;  %v1966_v25 = vmul.f32 %v14983_v32, %v1844_v63  ;;  %v1967_v47 = vmul.f32 %v14986_v15, %v1845_v8  ;;  %v1968_v50 = vmul.f32 %v14989_v16, %v1846_v21 }
 0x275   : > { %v1961_v20 = vmul.f32 %v14980_v13, %v1839_v22  ;;  %v1962_v45 = vmul.f32 %v14983_v32, %v1840_v19  ;;  %v1963_v39 = vmul.f32 %v14986_v15, %v1841_v10  ;;  %v1964_v12 = vmul.f32 %v14989_v16, %v1842_v60 }
 0x276   : > { %v2087_v44 = vadd.f32 %v14992_v49, %v1965_v61  ;;  %v2088_v38 = vadd.f32 %v14995_v7, %v1966_v25  ;;  %v2089_v62 = vadd.f32 %v14998_v57, %v1967_v47  ;;  %v2090_v28 = vadd.f32 %v15001_v5, %v1968_v50 }
 0x277   : > { %v2083_v56 = vadd.f32 %v14992_v49, %v1961_v20  ;;  %v2084_v31 = vadd.f32 %v14995_v7, %v1962_v45  ;;  %v2085_v27 = vadd.f32 %v14998_v57, %v1963_v39  ;;  %v2086_v36 = vadd.f32 %v15001_v5, %v1964_v12 }
 0x278   : > { %v10713_v3 = vpack.c.bf16 %v2088_v38, %v2087_v44  ;;  %v10714_v34 = vpack.c.bf16 %v2090_v28, %v2089_v62 }
 0x279   : > { %v10711_v40 = vpack.c.bf16 %v2084_v31, %v2083_v56  ;;  %v10712_v53 = vpack.c.bf16 %v2086_v36, %v2085_v27 }
 0x27a   : > { %2443 = vst [vmem:[#allocation2 + $0x180] sm:$0x33] %v10713_v3  ;;  %2444 = vst [vmem:[#allocation2 + $0x188] sm:$0x33] %v10714_v34 }
 0x27b   : > { %2441 = vst [vmem:[#allocation2 + $0x170] sm:$0xff] %v10711_v40  ;;  %2442 = vst [vmem:[#allocation2 + $0x178] sm:$0xff] %v10712_v53 }
 0x27c PF: > { %v2617_v13 = vld [vmem:[%s13121_s21] sm:$0xff]  ;;  %v2618_v15 = vld [vmem:[%s13121_s21 + $0x8] sm:$0xff] }
 0x27d   : > { %v2621_v32 = vld [vmem:[%s13121_s21 + $0x20] sm:$0xff]  ;;  %v2622_v49 = vld [vmem:[%s13121_s21 + $0x28] sm:$0xff] }
 0x27e   : > { %v10149_v16 = vcombine.high %v2617_v13, %v2621_v32  ;;  %v10148_v7 = vcombine.low %v2617_v13, %v2621_v32  ;;  %v2625_v57 = vld [vmem:[%s13121_s21 + $0x40] sm:$0xff]  ;;  %v10151_v43 = vcombine.high %v2618_v15, %v2622_v49  ;;  %v10150_v54 = vcombine.low %v2618_v15, %v2622_v49  ;;  %v2626_v52 = vld [vmem:[%s13121_s21 + $0x48] sm:$0xff] }
 0x27f   : > { %v2629_v5 = vld [vmem:[%s13121_s21 + $0x60] sm:$0xff]  ;;  %v2630_v18 = vld [vmem:[%s13121_s21 + $0x68] sm:$0xff] }
 0x280   : > { %v10157_v41 = vcombine.high %v2625_v57, %v2629_v5  ;;  %v2633_v33 = vld [vmem:[%s13121_s21 + $0x80] sm:$0xff]  ;;  %4449 = vmatprep.subr.bf16.mxu0 %v10149_v16  ;;  %v10159_v59 = vcombine.high %v2626_v52, %v2630_v18  ;;  %v2634_v30 = vld [vmem:[%s13121_s21 + $0x88] sm:$0xff]  ;;  %4771 = vmatprep.subr.bf16.mxu1 %v10151_v43  ;;  %v10156_v46 = vcombine.low %v2625_v57, %v2629_v5 }
 0x281   : > { %v2637_v37 = vld [vmem:[%s13121_s21 + $0xa0] sm:$0xff]  ;;  %v2638_v51 = vld [vmem:[%s13121_s21 + $0xa8] sm:$0xff]  ;;  %4450 = vmatpush1.bf16.msra.mxu0 %v10148_v7  ;;  %4772 = vmatpush1.bf16.msra.mxu1 %v10150_v54  ;;  %v10158_v11 = vcombine.low %v2626_v52, %v2630_v18 }
 0x282   : > { %4451 = vmatprep.subr.bf16.mxu0 %v10157_v41  ;;  %v10165_v63 = vcombine.high %v2633_v33, %v2637_v37  ;;  %4773 = vmatprep.subr.bf16.mxu1 %v10159_v59  ;;  %v10167_v42 = vcombine.high %v2634_v30, %v2638_v51  ;;  %v2641_v8 = vld [vmem:[%s13121_s21 + $0xc0] sm:$0xff]  ;;  %v2642_v21 = vld [vmem:[%s13121_s21 + $0xc8] sm:$0xff]  ;;  %v10164_v55 = vcombine.low %v2633_v33, %v2637_v37 }
 0x283   : > { %v2645_v14 = vld [vmem:[%s13121_s21 + $0xe0] sm:$0xff]  ;;  %v2646_v23 = vld [vmem:[%s13121_s21 + $0xe8] sm:$0xff]  ;;  %v10166_v26 = vcombine.low %v2634_v30, %v2638_v51 }
 0x284   : > { %v10173_v6 = vcombine.high %v2641_v8, %v2645_v14  ;;  %v10175_v9 = vcombine.high %v2642_v21, %v2646_v23  ;;  %v2649_v61 = vld [vmem:[%s13121_s21 + $0x100] sm:$0xff]  ;;  %v2650_v47 = vld [vmem:[%s13121_s21 + $0x108] sm:$0xff]  ;;  %v10172_v58 = vcombine.low %v2641_v8, %v2645_v14  ;;  %v10174_v0 = vcombine.low %v2642_v21, %v2646_v23 }
 0x285   : > { %4452 = vmatpush1.bf16.msra.mxu0 %v10156_v46  ;;  %4774 = vmatpush1.bf16.msra.mxu1 %v10158_v11  ;;  %v2653_v25 = vld [vmem:[%s13121_s21 + $0x120] sm:$0xff]  ;;  %v2654_v50 = vld [vmem:[%s13121_s21 + $0x128] sm:$0xff] }
 0x286   : > { %4453 = vmatprep.subr.bf16.mxu0 %v10165_v63  ;;  %4775 = vmatprep.subr.bf16.mxu1 %v10167_v42  ;;  %v10181_v17 = vcombine.high %v2649_v61, %v2653_v25  ;;  %v10183_v2 = vcombine.high %v2650_v47, %v2654_v50  ;;  %v2657_v44 = vld [vmem:[%s13121_s21 + $0x140] sm:$0xff]  ;;  %v2658_v62 = vld [vmem:[%s13121_s21 + $0x148] sm:$0xff]  ;;  %v10180_v1 = vcombine.low %v2649_v61, %v2653_v25 }
 0x287   : > { %v2661_v38 = vld [vmem:[%s13121_s21 + $0x160] sm:$0xff]  ;;  %v2662_v28 = vld [vmem:[%s13121_s21 + $0x168] sm:$0xff]  ;;  %v10182_v35 = vcombine.low %v2650_v47, %v2654_v50 }
 0x288   : > { %v10189_v4 = vcombine.high %v2657_v44, %v2661_v38  ;;  %v10191_v22 = vcombine.high %v2658_v62, %v2662_v28  ;;  %v2665_v29 = vld [vmem:[%s13121_s21 + $0x180] sm:$0xff]  ;;  %v2666_v3 = vld [vmem:[%s13121_s21 + $0x188] sm:$0xff]  ;;  %v10188_v24 = vcombine.low %v2657_v44, %v2661_v38  ;;  %v10190_v10 = vcombine.low %v2658_v62, %v2662_v28 }
 0x289   : > { %4454 = vmatpush1.bf16.msra.mxu0 %v10164_v55  ;;  %4776 = vmatpush1.bf16.msra.mxu1 %v10166_v26  ;;  %v2669_v19 = vld [vmem:[%s13121_s21 + $0x1a0] sm:$0xff]  ;;  %v2670_v34 = vld [vmem:[%s13121_s21 + $0x1a8] sm:$0xff] }
 0x28a   : > { %4455 = vmatprep.subr.bf16.mxu0 %v10173_v6  ;;  %4777 = vmatprep.subr.bf16.mxu1 %v10175_v9  ;;  %v10197_v48 = vcombine.high %v2665_v29, %v2669_v19  ;;  %v10199_v60 = vcombine.high %v2666_v3, %v2670_v34  ;;  %v2673_v20 = vld [vmem:[%s13121_s21 + $0x1c0] sm:$0xff]  ;;  %v2674_v12 = vld [vmem:[%s13121_s21 + $0x1c8] sm:$0xff]  ;;  %v10196_v31 = vcombine.low %v2665_v29, %v2669_v19 }
 0x28b   : > { %v2677_v45 = vld [vmem:[%s13121_s21 + $0x1e0] sm:$0xff]  ;;  %v2678_v56 = vld [vmem:[%s13121_s21 + $0x1e8] sm:$0xff]  ;;  %v10198_v27 = vcombine.low %v2666_v3, %v2670_v34 }
 0x28c   : > { %v11497_v39 = vld [vmem:[#allocation2 + $0x4] ss:$16 sps:$4 sm:$0xff]   ;;  %v10205_v36 = vcombine.high %v2673_v20, %v2677_v45  ;;  %v10207_v40 = vcombine.high %v2674_v12, %v2678_v56  ;;  %v2682_v32 = vld [vmem:[%s13121_s21 + $0x208] sm:$0xff]  ;;  %v10204_v16 = vcombine.low %v2673_v20, %v2677_v45  ;;  %v10206_v49 = vcombine.low %v2674_v12, %v2678_v56 }
 0x28d   : > { %4456 = vmatpush1.bf16.msra.mxu0 %v10172_v58  ;;  %4778 = vmatpush1.bf16.msra.mxu1 %v10174_v0  ;;  %v2681_v53 = vld [vmem:[%s13121_s21 + $0x200] sm:$0xff]  ;;  %v2686_v15 = vld [vmem:[%s13121_s21 + $0x228] sm:$0xff] }
 0x28e   : > { %4457 = vmatprep.subr.bf16.mxu0 %v10181_v17  ;;  %4779 = vmatprep.subr.bf16.mxu1 %v10183_v2  ;;  %v2685_v13 = vld [vmem:[%s13121_s21 + $0x220] sm:$0xff]  ;;  %v10215_v57 = vcombine.high %v2682_v32, %v2686_v15  ;;  %v2690_v54 = vld [vmem:[%s13121_s21 + $0x248] sm:$0xff]  ;;  %v10214_v18 = vcombine.low %v2682_v32, %v2686_v15 }
 0x28f   : > { %4481 = vmatprep.mubr.bf16.mxu0 %v11497_v39  ;;  %4803 = vmatprep.mubr.bf16.mxu1 %v11497_v39  ;;  %v10213_v7 = vcombine.high %v2681_v53, %v2685_v13  ;;  %v2689_v5 = vld [vmem:[%s13121_s21 + $0x240] sm:$0xff]  ;;  %v2694_v41 = vld [vmem:[%s13121_s21 + $0x268] sm:$0xff]  ;;  %v10212_v52 = vcombine.low %v2681_v53, %v2685_v13 }
 0x290   : > { %v2693_v43 = vld [vmem:[%s13121_s21 + $0x260] sm:$0xff]  ;;  %v10223_v59 = vcombine.high %v2690_v54, %v2694_v41  ;;  %v2698_v51 = vld [vmem:[%s13121_s21 + $0x288] sm:$0xff]  ;;  %v10222_v63 = vcombine.low %v2690_v54, %v2694_v41 }
 0x291   : > { %4458 = vmatpush1.bf16.msra.mxu0 %v10180_v1  ;;  %4780 = vmatpush1.bf16.msra.mxu1 %v10182_v35  ;;  %v10221_v33 = vcombine.high %v2689_v5, %v2693_v43  ;;  %v2697_v37 = vld [vmem:[%s13121_s21 + $0x280] sm:$0xff]  ;;  %v2702_v46 = vld [vmem:[%s13121_s21 + $0x2a8] sm:$0xff]  ;;  %v10220_v11 = vcombine.low %v2689_v5, %v2693_v43 }
 0x292   : > { %4459 = vmatprep.subr.bf16.mxu0 %v10189_v4  ;;  %4781 = vmatprep.subr.bf16.mxu1 %v10191_v22  ;;  %v2701_v30 = vld [vmem:[%s13121_s21 + $0x2a0] sm:$0xff]  ;;  %v10231_v8 = vcombine.high %v2698_v51, %v2702_v46  ;;  %v2706_v23 = vld [vmem:[%s13121_s21 + $0x2c8] sm:$0xff]  ;;  %v10230_v6 = vcombine.low %v2698_v51, %v2702_v46 }
 0x293   : > { %v10229_v42 = vcombine.high %v2697_v37, %v2701_v30  ;;  %v2705_v14 = vld [vmem:[%s13121_s21 + $0x2c0] sm:$0xff]  ;;  %v2710_v55 = vld [vmem:[%s13121_s21 + $0x2e8] sm:$0xff]  ;;  %v10228_v26 = vcombine.low %v2697_v37, %v2701_v30 }
 0x294   : > { %v2709_v21 = vld [vmem:[%s13121_s21 + $0x2e0] sm:$0xff]  ;;  %v10239_v61 = vcombine.high %v2706_v23, %v2710_v55  ;;  %v2714_v50 = vld [vmem:[%s13121_s21 + $0x308] sm:$0xff]  ;;  %v10238_v17 = vcombine.low %v2706_v23, %v2710_v55 }
 0x295   : > { %4460 = vmatpush1.bf16.msra.mxu0 %v10188_v24  ;;  %4782 = vmatpush1.bf16.msra.mxu1 %v10190_v10  ;;  %v10237_v9 = vcombine.high %v2705_v14, %v2709_v21  ;;  %v2713_v25 = vld [vmem:[%s13121_s21 + $0x300] sm:$0xff]  ;;  %v2718_v58 = vld [vmem:[%s13121_s21 + $0x328] sm:$0xff]  ;;  %v10236_v0 = vcombine.low %v2705_v14, %v2709_v21 }
 0x296   : > { %4461 = vmatprep.subr.bf16.mxu0 %v10197_v48  ;;  %4783 = vmatprep.subr.bf16.mxu1 %v10199_v60  ;;  %v2717_v47 = vld [vmem:[%s13121_s21 + $0x320] sm:$0xff]  ;;  %v10247_v44 = vcombine.high %v2714_v50, %v2718_v58  ;;  %v2722_v28 = vld [vmem:[%s13121_s21 + $0x348] sm:$0xff]  ;;  %v10246_v4 = vcombine.low %v2714_v50, %v2718_v58 }
 0x297   : > { %v10245_v2 = vcombine.high %v2713_v25, %v2717_v47  ;;  %v2721_v38 = vld [vmem:[%s13121_s21 + $0x340] sm:$0xff]  ;;  %v2726_v1 = vld [vmem:[%s13121_s21 + $0x368] sm:$0xff]  ;;  %v10244_v35 = vcombine.low %v2713_v25, %v2717_v47 }
 0x298   : > { %v2725_v62 = vld [vmem:[%s13121_s21 + $0x360] sm:$0xff]  ;;  %v10255_v29 = vcombine.high %v2722_v28, %v2726_v1  ;;  %v2730_v34 = vld [vmem:[%s13121_s21 + $0x388] sm:$0xff]  ;;  %v10254_v48 = vcombine.low %v2722_v28, %v2726_v1 }
 0x299   : > { %4462 = vmatpush1.bf16.msra.mxu0 %v10196_v31  ;;  %4784 = vmatpush1.bf16.msra.mxu1 %v10198_v27  ;;  %v10253_v22 = vcombine.high %v2721_v38, %v2725_v62  ;;  %v2729_v19 = vld [vmem:[%s13121_s21 + $0x380] sm:$0xff]  ;;  %v2734_v24 = vld [vmem:[%s13121_s21 + $0x3a8] sm:$0xff]  ;;  %v10252_v10 = vcombine.low %v2721_v38, %v2725_v62 }
 0x29a   : > { %4463 = vmatprep.subr.bf16.mxu0 %v10205_v36  ;;  %4785 = vmatprep.subr.bf16.mxu1 %v10207_v40  ;;  %v2733_v3 = vld [vmem:[%s13121_s21 + $0x3a0] sm:$0xff]  ;;  %v10263_v20 = vcombine.high %v2730_v34, %v2734_v24  ;;  %v2738_v12 = vld [vmem:[%s13121_s21 + $0x3c8] sm:$0xff]  ;;  %v10262_v27 = vcombine.low %v2730_v34, %v2734_v24 }
 0x29b   : > { %v10261_v60 = vcombine.high %v2729_v19, %v2733_v3  ;;  %v2737_v45 = vld [vmem:[%s13121_s21 + $0x3c0] sm:$0xff]  ;;  %v2742_v56 = vld [vmem:[%s13121_s21 + $0x3e8] sm:$0xff]  ;;  %v10260_v31 = vcombine.low %v2729_v19, %v2733_v3 }
 0x29c   : > { %v2741_v39 = vld [vmem:[%s13121_s21 + $0x3e0] sm:$0xff]  ;;  %v10271_v40 = vcombine.high %v2738_v12, %v2742_v56  ;;  %v2746_v32 = vld [vmem:[%s13121_s21 + $0x408] sm:$0xff] }
 0x29d   : > { %4464 = vmatpush1.bf16.msra.mxu0 %v10204_v16  ;;  %4786 = vmatpush1.bf16.msra.mxu1 %v10206_v49  ;;  %v10269_v36 = vcombine.high %v2737_v45, %v2741_v39  ;;  %v2745_v53 = vld [vmem:[%s13121_s21 + $0x400] sm:$0xff]  ;;  %v2750_v15 = vld [vmem:[%s13121_s21 + $0x428] sm:$0xff]  ;;  %v10268_v16 = vcombine.low %v2737_v45, %v2741_v39  ;;  %v10270_v49 = vcombine.low %v2738_v12, %v2742_v56 }
 0x29e   : > { %4465 = vmatprep.subr.bf16.mxu0 %v10213_v7  ;;  %4787 = vmatprep.subr.bf16.mxu1 %v10215_v57  ;;  %v2749_v13 = vld [vmem:[%s13121_s21 + $0x420] sm:$0xff]  ;;  %v10279_v57 = vcombine.high %v2746_v32, %v2750_v15  ;;  %v2786_v19 = vld [vmem:[%s13121_s21 + $0x548] sm:$0xff] }
 0x29f   : > { %v10277_v7 = vcombine.high %v2745_v53, %v2749_v13  ;;  %v11499_v5 = vld [vmem:[#allocation2] ss:$16 sps:$4 sm:$0xff]   ;;  %v10276_v41 = vcombine.low %v2745_v53, %v2749_v13  ;;  %v2790_v3 = vld [vmem:[%s13121_s21 + $0x568] sm:$0xff] }
 0x2a0   : > { %v2753_v43 = vld [vmem:[%s13121_s21 + $0x440] sm:$0xff]  ;;  %v2794_v45 = vld [vmem:[%s13121_s21 + $0x588] sm:$0xff] }
 0x2a1   : > { %4466 = vmatpush1.bf16.msra.mxu0 %v10212_v52  ;;  %4788 = vmatpush1.bf16.msra.mxu1 %v10214_v18  ;;  %v2757_v54 = vld [vmem:[%s13121_s21 + $0x460] sm:$0xff]  ;;  %v2754_v52 = vld [vmem:[%s13121_s21 + $0x448] sm:$0xff] }
 0x2a2   : > { %4467 = vmatprep.subr.bf16.mxu0 %v10221_v33  ;;  %4789 = vmatprep.subr.bf16.mxu1 %v10223_v59  ;;  %v2758_v18 = vld [vmem:[%s13121_s21 + $0x468] sm:$0xff]  ;;  %v10278_v33 = vcombine.low %v2746_v32, %v2750_v15  ;;  %v11500_v59 = vld [vmem:[#allocation2 + $0x24] ss:$16 sps:$4 sm:$0xff]   ;;  %v10285_v37 = vcombine.high %v2753_v43, %v2757_v54  ;;  %v11502_v14 = vld [vmem:[#allocation2 + $0x20] ss:$16 sps:$4 sm:$0xff]  }
 0x2a3   : > { %v2761_v30 = vld [vmem:[%s13121_s21 + $0x480] sm:$0xff]  ;;  %v10287_v46 = vcombine.high %v2754_v52, %v2758_v18  ;;  %v2798_v39 = vld [vmem:[%s13121_s21 + $0x5a8] sm:$0xff] }
 0x2a4   : > { %v2765_v51 = vld [vmem:[%s13121_s21 + $0x4a0] sm:$0xff]  ;;  %v2802_v13 = vld [vmem:[%s13121_s21 + $0x5c8] sm:$0xff]  ;;  %v10327_v15 = vcombine.high %v2794_v45, %v2798_v39 }
 0x2a5   : > { %4468 = vmatpush1.bf16.msra.mxu0 %v10220_v11  ;;  %4790 = vmatpush1.bf16.msra.mxu1 %v10222_v63  ;;  %v2762_v11 = vld [vmem:[%s13121_s21 + $0x488] sm:$0xff]  ;;  %v10293_v21 = vcombine.high %v2761_v30, %v2765_v51  ;;  %v2769_v55 = vld [vmem:[%s13121_s21 + $0x4c0] sm:$0xff]  ;;  %v10292_v25 = vcombine.low %v2761_v30, %v2765_v51 }
 0x2a6   : > { %4469 = vmatprep.subr.bf16.mxu0 %v10229_v42  ;;  %4791 = vmatprep.subr.bf16.mxu1 %v10231_v8  ;;  %v2766_v63 = vld [vmem:[%s13121_s21 + $0x4a8] sm:$0xff]  ;;  %v10284_v42 = vcombine.low %v2753_v43, %v2757_v54  ;;  %v10286_v8 = vcombine.low %v2754_v52, %v2758_v18  ;;  %v2777_v47 = vld [vmem:[%s13121_s21 + $0x500] sm:$0xff] }
 0x2a7   : > { %v10295_v23 = vcombine.high %v2762_v11, %v2766_v63  ;;  %v2781_v50 = vld [vmem:[%s13121_s21 + $0x520] sm:$0xff]  ;;  %v10294_v58 = vcombine.low %v2762_v11, %v2766_v63  ;;  %v2806_v32 = vld [vmem:[%s13121_s21 + $0x5e8] sm:$0xff] }
 0x2a8   : > { %v11505_v62 = vld [vmem:[#allocation2 + $0x40] ss:$16 sps:$4 sm:$0xff]   ;;  %v10309_v1 = vcombine.high %v2777_v47, %v2781_v50  ;;  %v10308_v34 = vcombine.low %v2777_v47, %v2781_v50  ;;  %v10335_v43 = vcombine.high %v2802_v13, %v2806_v32  ;;  %v2810_v54 = vld [vmem:[%s13121_s21 + $0x608] sm:$0xff]  ;;  %v10334_v30 = vcombine.low %v2802_v13, %v2806_v32  ;;  %v11515_v50 = vld [vmem:[#allocation2 + $0xc4] ss:$16 sps:$4 sm:$0xff]  }
 0x2a9   : > { %4470 = vmatpush1.bf16.msra.mxu0 %v10228_v26  ;;  %4792 = vmatpush1.bf16.msra.mxu1 %v10230_v6  ;;  %v2773_v26 = vld [vmem:[%s13121_s21 + $0x4e0] sm:$0xff]  ;;  %v2770_v6 = vld [vmem:[%s13121_s21 + $0x4c8] sm:$0xff] }
 0x2aa   : > { %4471 = vmatprep.subr.bf16.mxu0 %v10237_v9  ;;  %4793 = vmatprep.subr.bf16.mxu1 %v10239_v61  ;;  %v11503_v9 = vld [vmem:[#allocation2 + $0x44] ss:$16 sps:$4 sm:$0xff]   ;;  %v2774_v61 = vld [vmem:[%s13121_s21 + $0x4e8] sm:$0xff]  ;;  %v10300_v38 = vcombine.low %v2769_v55, %v2773_v26  ;;  %v11508_v12 = vld [vmem:[#allocation2 + $0x60] ss:$16 sps:$4 sm:$0xff]  }
 0x2ab   : > { %v10302_v28 = vcombine.low %v2770_v6, %v2774_v61  ;;  %v2793_v24 = vld [vmem:[%s13121_s21 + $0x580] sm:$0xff]  ;;  %v2822_v11 = vld [vmem:[%s13121_s21 + $0x668] sm:$0xff] }
 0x2ac   : > { %v11511_v52 = vld [vmem:[#allocation2 + $0x80] ss:$16 sps:$4 sm:$0xff]   ;;  %v2862_v13 = vld [vmem:[%s13121_s21 + $0x7a8] sm:$0xff] }
 0x2ad   : > { %4472 = vmatpush1.bf16.msra.mxu0 %v10236_v0  ;;  %4794 = vmatpush1.bf16.msra.mxu1 %v10238_v17  ;;  %v2778_v0 = vld [vmem:[%s13121_s21 + $0x508] sm:$0xff]  ;;  %v2837_v47 = vld [vmem:[%s13121_s21 + $0x6e0] sm:$0xff] }
 0x2ae   : > { %4473 = vmatprep.subr.bf16.mxu0 %v10245_v2  ;;  %4795 = vmatprep.subr.bf16.mxu1 %v10247_v44  ;;  %v2782_v17 = vld [vmem:[%s13121_s21 + $0x528] sm:$0xff]  ;;  %v10301_v2 = vcombine.high %v2769_v55, %v2773_v26  ;;  %v10303_v44 = vcombine.high %v2770_v6, %v2774_v61  ;;  %v11520_v32 = vld [vmem:[#allocation2 + $0xe0] ss:$16 sps:$4 sm:$0xff]  }
 0x2af   : > { %v2826_v26 = vld [vmem:[%s13121_s21 + $0x688] sm:$0xff] }
 0x2b0   : > { %v2830_v6 = vld [vmem:[%s13121_s21 + $0x6a8] sm:$0xff] }
 0x2b1   : > { %4474 = vmatpush1.bf16.msra.mxu0 %v10244_v35  ;;  %4796 = vmatpush1.bf16.msra.mxu1 %v10246_v4  ;;  %v11506_v35 = vld [vmem:[#allocation2 + $0x64] ss:$16 sps:$4 sm:$0xff]   ;;  %v10311_v4 = vcombine.high %v2778_v0, %v2782_v17 }
 0x2b2   : > { %4475 = vmatprep.subr.bf16.mxu0 %v10253_v22  ;;  %4797 = vmatprep.subr.bf16.mxu1 %v10255_v29  ;;  %v2785_v22 = vld [vmem:[%s13121_s21 + $0x540] sm:$0xff] }
 0x2b3   : > { %v2789_v29 = vld [vmem:[%s13121_s21 + $0x560] sm:$0xff] }
 0x2b4   : > { %v10316_v56 = vcombine.low %v2785_v22, %v2789_v29 }
 0x2b5   : > { %4476 = vmatpush1.bf16.msra.mxu0 %v10252_v10  ;;  %4798 = vmatpush1.bf16.msra.mxu1 %v10254_v48  ;;  %v2797_v10 = vld [vmem:[%s13121_s21 + $0x5a0] sm:$0xff]  ;;  %v10310_v48 = vcombine.low %v2778_v0, %v2782_v17  ;;  %v2834_v17 = vld [vmem:[%s13121_s21 + $0x6c8] sm:$0xff] }
 0x2b6   : > { %4477 = vmatprep.subr.bf16.mxu0 %v10261_v60  ;;  %4799 = vmatprep.subr.bf16.mxu1 %v10263_v20  ;;  %v10317_v60 = vcombine.high %v2785_v22, %v2789_v29  ;;  %v10319_v20 = vcombine.high %v2786_v19, %v2790_v3  ;;  %v10325_v53 = vcombine.high %v2793_v24, %v2797_v10  ;;  %v2842_v22 = vld [vmem:[%s13121_s21 + $0x708] sm:$0xff] }
 0x2b7   : > { %v2846_v29 = vld [vmem:[%s13121_s21 + $0x728] sm:$0xff] }
 0x2b9   : > { %4478 = vmatpush1.bf16.msra.mxu0 %v10260_v31  ;;  %4800 = vmatpush1.bf16.msra.mxu1 %v10262_v27  ;;  %v2801_v31 = vld [vmem:[%s13121_s21 + $0x5c0] sm:$0xff] }
 0x2ba   : > { %4479 = vmatprep.subr.bf16.mxu0 %v10269_v36  ;;  %4801 = vmatprep.subr.bf16.mxu1 %v10271_v40  ;;  %v2805_v27 = vld [vmem:[%s13121_s21 + $0x5e0] sm:$0xff]  ;;  %v10318_v40 = vcombine.low %v2786_v19, %v2790_v3 }
 0x2bb   : > { %v11509_v36 = vld [vmem:[#allocation2 + $0x84] ss:$16 sps:$4 sm:$0xff]   ;;  %v10332_v18 = vcombine.low %v2801_v31, %v2805_v27  ;;  %v11517_v19 = vld [vmem:[#allocation2 + $0xc0] ss:$16 sps:$4 sm:$0xff]  }
 0x2bd   : > { %4480 = vmatpush1.bf16.msra.mxu0 %v10268_v16  ;;  %4802 = vmatpush1.bf16.msra.mxu1 %v10270_v49  ;;  %v10324_v16 = vcombine.low %v2793_v24, %v2797_v10  ;;  %v2809_v49 = vld [vmem:[%s13121_s21 + $0x600] sm:$0xff] }
 0x2be   : > { %4610 = vmatprep.subr.bf16.mxu0 %v10277_v7  ;;  %4932 = vmatprep.subr.bf16.mxu1 %v10279_v57  ;;  %v2813_v7 = vld [vmem:[%s13121_s21 + $0x620] sm:$0xff]  ;;  %v10326_v57 = vcombine.low %v2794_v45, %v2798_v39  ;;  %v2854_v45 = vld [vmem:[%s13121_s21 + $0x768] sm:$0xff]  ;;  %v10375_v39 = vcombine.high %v2842_v22, %v2846_v29 }
 0x2bf   : > { %v10341_v51 = vcombine.high %v2809_v49, %v2813_v7  ;;  %v2853_v24 = vld [vmem:[%s13121_s21 + $0x760] sm:$0xff] }
 0x2c0   : > { %4482 = vmatmul.mubr.bf16.vlgmr.msra.gmra.mrb[0].mxu0 %v11499_v5  ;;  %4804 = vmatmul.mubr.bf16.vlgmr.msra.gmra.mrb[0].mxu1 %v11499_v5  ;;  %v10333_v5 = vcombine.high %v2801_v31, %v2805_v27  ;;  %v11518_v10 = vld [vmem:[#allocation2 + $0xe4] ss:$16 sps:$4 sm:$0xff]   ;;  %v10374_v27 = vcombine.low %v2842_v22, %v2846_v29  ;;  %v2640_v22 = vld [vmem:[%s13121_s21 + $0xb8] sm:$0xff] }
 0x2c1   : > { %4611 = vmatpush1.bf16.msra.mxu0 %v10276_v41  ;;  %4933 = vmatpush1.bf16.msra.mxu1 %v10278_v33  ;;  %v2814_v41 = vld [vmem:[%s13121_s21 + $0x628] sm:$0xff]  ;;  %v2817_v33 = vld [vmem:[%s13121_s21 + $0x640] sm:$0xff] }
 0x2c2   : > { %4491 = vmatprep.mubr.bf16.mxu0 %v11500_v59  ;;  %4612 = vmatprep.subr.bf16.mxu0 %v10285_v37  ;;  %v11512_v37 = vld [vmem:[#allocation2 + $0xa4] ss:$16 sps:$4 sm:$0xff]   ;;  %v10343_v63 = vcombine.high %v2810_v54, %v2814_v41 }
 0x2c3   : > { %4813 = vmatprep.mubr.bf16.mxu1 %v11500_v59  ;;  %4934 = vmatprep.subr.bf16.mxu1 %v10287_v46  ;;  %v2821_v59 = vld [vmem:[%s13121_s21 + $0x660] sm:$0xff]  ;;  %v2818_v46 = vld [vmem:[%s13121_s21 + $0x648] sm:$0xff] }
 0x2c4   : > { %v10351_v55 = vcombine.high %v2818_v46, %v2822_v11  ;;  %v10348_v61 = vcombine.low %v2817_v33, %v2821_v59  ;;  %v2861_v31 = vld [vmem:[%s13121_s21 + $0x7a0] sm:$0xff] }
 0x2c5   : > { %4613 = vmatpush1.bf16.msra.mxu0 %v10284_v42  ;;  %4935 = vmatpush1.bf16.msra.mxu1 %v10286_v8  ;;  %v10340_v42 = vcombine.low %v2809_v49, %v2813_v7  ;;  %v2825_v8 = vld [vmem:[%s13121_s21 + $0x680] sm:$0xff] }
 0x2c6   : > { %4614 = vmatprep.subr.bf16.mxu0 %v10293_v21  ;;  %4936 = vmatprep.subr.bf16.mxu1 %v10295_v23  ;;  %v10342_v21 = vcombine.low %v2810_v54, %v2814_v41  ;;  %v10349_v23 = vcombine.high %v2817_v33, %v2821_v59  ;;  %v2870_v41 = vld [vmem:[%s13121_s21 + $0x7e8] sm:$0xff]  ;;  %v15492_v33 = vld [vmem:[%s13121_s21 + $0x30] sm:$0xff] }
 0x2c8   : > { %4492 = vmatmul.mubr.bf16.gmra.mrb[4].mxu0 %v11502_v14  ;;  %4814 = vmatmul.mubr.bf16.gmra.mrb[4].mxu1 %v11502_v14  ;;  %v2829_v14 = vld [vmem:[%s13121_s21 + $0x6a0] sm:$0xff] }
 0x2c9   : > { %4615 = vmatpush1.bf16.msra.mxu0 %v10292_v25  ;;  %4937 = vmatpush1.bf16.msra.mxu1 %v10294_v58  ;;  %v2833_v25 = vld [vmem:[%s13121_s21 + $0x6c0] sm:$0xff]  ;;  %v10350_v58 = vcombine.low %v2818_v46, %v2822_v11  ;;  %v10357_v0 = vcombine.high %v2825_v8, %v2829_v14  ;;  %v15498_v46 = vld [vmem:[%s13121_s21 + $0x38] sm:$0xff] }
 0x2ca   : > { %4501 = vmatprep.mubr.bf16.mxu0 %v11503_v9  ;;  %4823 = vmatprep.mubr.bf16.mxu1 %v11503_v9  ;;  %v11514_v9 = vld [vmem:[#allocation2 + $0xa0] ss:$16 sps:$4 sm:$0xff]   ;;  %v10364_v3 = vcombine.low %v2833_v25, %v2837_v47 }
 0x2cb   : > { %4616 = vmatprep.subr.bf16.mxu0 %v10301_v2  ;;  %4938 = vmatprep.subr.bf16.mxu1 %v10303_v44  ;;  %v2838_v2 = vld [vmem:[%s13121_s21 + $0x6e8] sm:$0xff]  ;;  %v10359_v44 = vcombine.high %v2826_v26, %v2830_v6  ;;  %v11523_v11 = vld [vmem:[#allocation2 + $0x100] ss:$16 sps:$4 sm:$0xff]  }
 0x2cd   : > { %4617 = vmatpush1.bf16.msra.mxu0 %v10300_v38  ;;  %4939 = vmatpush1.bf16.msra.mxu1 %v10302_v28  ;;  %v10356_v38 = vcombine.low %v2825_v8, %v2829_v14  ;;  %v2845_v28 = vld [vmem:[%s13121_s21 + $0x720] sm:$0xff] }
 0x2ce   : > { %4618 = vmatprep.subr.bf16.mxu0 %v10309_v1  ;;  %4940 = vmatprep.subr.bf16.mxu1 %v10311_v4  ;;  %v10358_v1 = vcombine.low %v2826_v26, %v2830_v6  ;;  %v10367_v4 = vcombine.high %v2834_v17, %v2838_v2  ;;  %v11529_v26 = vld [vmem:[#allocation2 + $0x140] ss:$16 sps:$4 sm:$0xff]   ;;  %v11530_v6 = vld [vmem:[#allocation2 + $0x164] ss:$16 sps:$4 sm:$0xff]  }
 0x2d0   : > { %4502 = vmatmul.mubr.bf16.gmra.mrb[8].mxu0 %v11505_v62  ;;  %4824 = vmatmul.mubr.bf16.gmra.mrb[8].mxu1 %v11505_v62  ;;  %v2841_v62 = vld [vmem:[%s13121_s21 + $0x700] sm:$0xff] }
 0x2d1   : > { %4511 = vmatprep.mubr.bf16.mxu0 %v11506_v35  ;;  %4833 = vmatprep.mubr.bf16.mxu1 %v11506_v35  ;;  %v10365_v35 = vcombine.high %v2833_v25, %v2837_v47  ;;  %v11537_v47 = vld [vmem:[#allocation2 + $0xc] ss:$16 sps:$4 sm:$0xff]  }
 0x2d2   : > { %4619 = vmatpush1.bf16.msra.mxu0 %v10308_v34  ;;  %4941 = vmatpush1.bf16.msra.mxu1 %v10310_v48  ;;  %v2849_v34 = vld [vmem:[%s13121_s21 + $0x740] sm:$0xff]  ;;  %v10366_v48 = vcombine.low %v2834_v17, %v2838_v2  ;;  %v2631_v17 = vld [vmem:[%s13121_s21 + $0x70] sm:$0xff]  ;;  %v2628_v2 = vld [vmem:[%s13121_s21 + $0x58] sm:$0xff] }
 0x2d3   : > { %4620 = vmatprep.subr.bf16.mxu0 %v10317_v60  ;;  %4942 = vmatprep.subr.bf16.mxu1 %v10319_v20  ;;  %v10373_v60 = vcombine.high %v2841_v62, %v2845_v28  ;;  %v2850_v20 = vld [vmem:[%s13121_s21 + $0x748] sm:$0xff] }
 0x2d4   : > { %v10382_v49 = vcombine.low %v2850_v20, %v2854_v45 }
 0x2d6   : > { %4621 = vmatpush1.bf16.msra.mxu0 %v10316_v56  ;;  %4943 = vmatpush1.bf16.msra.mxu1 %v10318_v40  ;;  %v2857_v56 = vld [vmem:[%s13121_s21 + $0x780] sm:$0xff]  ;;  %v10383_v40 = vcombine.high %v2850_v20, %v2854_v45  ;;  %v2644_v45 = vld [vmem:[%s13121_s21 + $0xd8] sm:$0xff] }
 0x2d7   : > { %4622 = vmatprep.subr.bf16.mxu0 %v10325_v53  ;;  %4944 = vmatprep.subr.bf16.mxu1 %v10327_v15  ;;  %v2858_v53 = vld [vmem:[%s13121_s21 + $0x788] sm:$0xff]  ;;  %v10380_v15 = vcombine.low %v2849_v34, %v2853_v24  ;;  %v10389_v7 = vcombine.high %v2857_v56, %v2861_v31 }
 0x2d8   : > { %4512 = vmatmul.mubr.bf16.gmra.mrb[12].mxu0 %v11508_v12  ;;  %4834 = vmatmul.mubr.bf16.gmra.mrb[12].mxu1 %v11508_v12  ;;  %v10372_v12 = vcombine.low %v2841_v62, %v2845_v28  ;;  %v10391_v54 = vcombine.high %v2858_v53, %v2862_v13  ;;  %v10390_v59 = vcombine.low %v2858_v53, %v2862_v13  ;;  %v2635_v28 = vld [vmem:[%s13121_s21 + $0x90] sm:$0xff]  ;;  %v2656_v53 = vld [vmem:[%s13121_s21 + $0x138] sm:$0xff] }
 0x2d9   : > { %4521 = vmatprep.mubr.bf16.mxu0 %v11509_v36  ;;  %4843 = vmatprep.mubr.bf16.mxu1 %v11509_v36  ;;  %v10381_v36 = vcombine.high %v2849_v34, %v2853_v24  ;;  %v11540_v24 = vld [vmem:[#allocation2 + $0x28] ss:$16 sps:$4 sm:$0xff]  }
 0x2da   : > { %4623 = vmatpush1.bf16.msra.mxu0 %v10324_v16  ;;  %4945 = vmatpush1.bf16.msra.mxu1 %v10326_v57  ;;  %v11521_v16 = vld [vmem:[#allocation2 + $0x104] ss:$16 sps:$4 sm:$0xff]  }
 0x2db   : > { %4624 = vmatprep.subr.bf16.mxu0 %v10333_v5  ;;  %4946 = vmatprep.subr.bf16.mxu1 %v10335_v43  ;;  %v2865_v57 = vld [vmem:[%s13121_s21 + $0x7c0] sm:$0xff]  ;;  %v2866_v43 = vld [vmem:[%s13121_s21 + $0x7c8] sm:$0xff] }
 0x2dc   : > { %v2869_v5 = vld [vmem:[%s13121_s21 + $0x7e0] sm:$0xff]  ;;  %v10398_v8 = vcombine.low %v2866_v43, %v2870_v41 }
 0x2de   : > { %4625 = vmatpush1.bf16.msra.mxu0 %v10332_v18  ;;  %4947 = vmatpush1.bf16.msra.mxu1 %v10334_v30  ;;  %v15489_v18 = vld [vmem:[%s13121_s21 + $0x10] sm:$0xff]  ;;  %v10399_v30 = vcombine.high %v2866_v43, %v2870_v41  ;;  %v11544_v43 = vld [vmem:[#allocation2 + $0x6c] ss:$16 sps:$4 sm:$0xff]  }
 0x2df   : > { %4626 = vmatprep.subr.bf16.mxu0 %v10341_v51  ;;  %4948 = vmatprep.subr.bf16.mxu1 %v10343_v63  ;;  %v15495_v51 = vld [vmem:[%s13121_s21 + $0x18] sm:$0xff]  ;;  %v10396_v63 = vcombine.low %v2865_v57, %v2869_v5  ;;  %v10153_v14 = vcombine.high %v15489_v18, %v15492_v33  ;;  %v10152_v62 = vcombine.low %v15489_v18, %v15492_v33  ;;  %v2667_v33 = vld [vmem:[%s13121_s21 + $0x190] sm:$0xff] }
 0x2e0   : > { %4522 = vmatmul.mubr.bf16.gmra.mrb[16].mxu0 %v11511_v52  ;;  %4844 = vmatmul.mubr.bf16.gmra.mrb[16].mxu1 %v11511_v52  ;;  %v10388_v52 = vcombine.low %v2857_v56, %v2861_v31  ;;  %v2651_v31 = vld [vmem:[%s13121_s21 + $0x110] sm:$0xff]  ;;  %v2660_v41 = vld [vmem:[%s13121_s21 + $0x158] sm:$0xff] }
 0x2e1   : > { %4531 = vmatprep.mubr.bf16.mxu0 %v11512_v37  ;;  %4853 = vmatprep.mubr.bf16.mxu1 %v11512_v37  ;;  %v10397_v37 = vcombine.high %v2865_v57, %v2869_v5  ;;  %v2659_v57 = vld [vmem:[%s13121_s21 + $0x150] sm:$0xff] }
 0x2e2   : > { %4627 = vmatpush1.bf16.msra.mxu0 %v10340_v42  ;;  %4949 = vmatpush1.bf16.msra.mxu1 %v10342_v21  ;;  %v11524_v42 = vld [vmem:[#allocation2 + $0x124] ss:$16 sps:$4 sm:$0xff]   ;;  %v10155_v21 = vcombine.high %v15495_v51, %v15498_v46 }
 0x2e3   : > { %4628 = vmatprep.subr.bf16.mxu0 %v10349_v23  ;;  %4950 = vmatprep.subr.bf16.mxu1 %v10351_v55  ;;  %v11526_v23 = vld [vmem:[#allocation2 + $0x120] ss:$16 sps:$4 sm:$0xff]   ;;  %v11527_v55 = vld [vmem:[#allocation2 + $0x144] ss:$16 sps:$4 sm:$0xff]  }
 0x2e4   : > { %v2663_v5 = vld [vmem:[%s13121_s21 + $0x170] sm:$0xff] }
 0x2e6   : > { %4629 = vmatpush1.bf16.msra.mxu0 %v10348_v61  ;;  %4951 = vmatpush1.bf16.msra.mxu1 %v10350_v58  ;;  %v11532_v61 = vld [vmem:[#allocation2 + $0x160] ss:$16 sps:$4 sm:$0xff]   ;;  %v11535_v58 = vld [vmem:[#allocation2 + $0x8] ss:$16 sps:$4 sm:$0xff]  }
 0x2e7   : > { %4630 = vmatprep.subr.bf16.mxu0 %v10357_v0  ;;  %4952 = vmatprep.subr.bf16.mxu1 %v10359_v44  ;;  %v2627_v0 = vld [vmem:[%s13121_s21 + $0x50] sm:$0xff]  ;;  %v2632_v44 = vld [vmem:[%s13121_s21 + $0x78] sm:$0xff] }
 0x2e8   : > { %4532 = vmatmul.mubr.bf16.gmra.mrb[20].mxu0 %v11514_v9  ;;  %4854 = vmatmul.mubr.bf16.gmra.mrb[20].mxu1 %v11514_v9  ;;  %v2615_v9 = vld [vmem:[#allocation2 + $0x180] sm:$0x33]  ;;  %v10161_v29 = vcombine.high %v2627_v0, %v2631_v17  ;;  %v10162_v34 = vcombine.low %v2628_v2, %v2632_v44 }
 0x2e9   : > { %4541 = vmatprep.mubr.bf16.mxu0 %v11515_v50  ;;  %4863 = vmatprep.mubr.bf16.mxu1 %v11515_v50  ;;  %v15504_v25 = vcombine.high %v2615_v9, %v2615_v9  ;;  %v15508_v50 = vcombine.low %v2615_v9, %v2615_v9  ;;  %v2680_v9 = vld [vmem:[%s13121_s21 + $0x1f8] sm:$0xff] }
 0x2ea   : > { %4631 = vmatpush1.bf16.msra.mxu0 %v10356_v38  ;;  %4953 = vmatpush1.bf16.msra.mxu1 %v10358_v1  ;;  %v11538_v38 = vld [vmem:[#allocation2 + $0x2c] ss:$16 sps:$4 sm:$0xff]   ;;  %v2639_v1 = vld [vmem:[%s13121_s21 + $0xb0] sm:$0xff] }
 0x2eb   : > { %4632 = vmatprep.subr.bf16.mxu0 %v10365_v35  ;;  %4954 = vmatprep.subr.bf16.mxu1 %v10367_v4  ;;  %v10154_v35 = vcombine.low %v15495_v51, %v15498_v46  ;;  %v2636_v4 = vld [vmem:[%s13121_s21 + $0x98] sm:$0xff]  ;;  %v10168_v56 = vcombine.low %v2635_v28, %v2639_v1 }
 0x2ec   : > { %v10171_v20 = vcombine.high %v2636_v4, %v2640_v22  ;;  %v2668_v46 = vld [vmem:[%s13121_s21 + $0x198] sm:$0xff] }
 0x2ee   : > { %4633 = vmatpush1.bf16.msra.mxu0 %v10364_v3  ;;  %4955 = vmatpush1.bf16.msra.mxu1 %v10366_v48  ;;  %v10160_v3 = vcombine.low %v2627_v0, %v2631_v17  ;;  %v2643_v48 = vld [vmem:[%s13121_s21 + $0xd0] sm:$0xff] }
 0x2ef   : > { %4634 = vmatprep.subr.bf16.mxu0 %v10373_v60  ;;  %4956 = vmatprep.subr.bf16.mxu1 %v10375_v39  ;;  %v2647_v60 = vld [vmem:[%s13121_s21 + $0xf0] sm:$0xff]  ;;  %v2648_v39 = vld [vmem:[%s13121_s21 + $0xf8] sm:$0xff] }
 0x2f0   : > { %4542 = vmatmul.mubr.bf16.gmra.mrb[24].mxu0 %v11517_v19  ;;  %4864 = vmatmul.mubr.bf16.gmra.mrb[24].mxu1 %v11517_v19  ;;  %v10163_v19 = vcombine.high %v2628_v2, %v2632_v44  ;;  %v10177_v13 = vcombine.high %v2643_v48, %v2647_v60  ;;  %v2683_v17 = vld [vmem:[%s13121_s21 + $0x210] sm:$0xff]  ;;  %v2684_v44 = vld [vmem:[%s13121_s21 + $0x218] sm:$0xff] }
 0x2f1   : > { %4551 = vmatprep.mubr.bf16.mxu0 %v11518_v10  ;;  %4873 = vmatprep.mubr.bf16.mxu1 %v11518_v10  ;;  %v10169_v10 = vcombine.high %v2635_v28, %v2639_v1  ;;  %v2687_v2 = vld [vmem:[%s13121_s21 + $0x230] sm:$0xff] }
 0x2f2   : > { %4635 = vmatpush1.bf16.msra.mxu0 %v10372_v12  ;;  %4957 = vmatpush1.bf16.msra.mxu1 %v10374_v27  ;;  %v11541_v12 = vld [vmem:[#allocation2 + $0x4c] ss:$16 sps:$4 sm:$0xff]   ;;  %v2655_v27 = vld [vmem:[%s13121_s21 + $0x130] sm:$0xff]  ;;  %v10217_v1 = vcombine.high %v2683_v17, %v2687_v2 }
 0x2f3   : > { %4636 = vmatprep.subr.bf16.mxu0 %v10381_v36  ;;  %4958 = vmatprep.subr.bf16.mxu1 %v10383_v40  ;;  %v10170_v36 = vcombine.low %v2636_v4, %v2640_v22  ;;  %v2652_v40 = vld [vmem:[%s13121_s21 + $0x118] sm:$0xff]  ;;  %v10184_v18 = vcombine.low %v2651_v31, %v2655_v27  ;;  %v2691_v22 = vld [vmem:[%s13121_s21 + $0x250] sm:$0xff] }
 0x2f6   : > { %4637 = vmatpush1.bf16.msra.mxu0 %v10380_v15  ;;  %4959 = vmatpush1.bf16.msra.mxu1 %v10382_v49  ;;  %v10176_v15 = vcombine.low %v2643_v48, %v2647_v60  ;;  %v10178_v49 = vcombine.low %v2644_v45, %v2648_v39 }
 0x2f7   : > { %4638 = vmatprep.subr.bf16.mxu0 %v10389_v7  ;;  %4960 = vmatprep.subr.bf16.mxu1 %v10391_v54  ;;  %v10185_v7 = vcombine.high %v2651_v31, %v2655_v27  ;;  %v10187_v54 = vcombine.high %v2652_v40, %v2656_v53 }
 0x2f8   : > { %4552 = vmatmul.mubr.bf16.gmra.mrb[28].mxu0 %v11520_v32  ;;  %4874 = vmatmul.mubr.bf16.gmra.mrb[28].mxu1 %v11520_v32  ;;  %v10179_v32 = vcombine.high %v2644_v45, %v2648_v39  ;;  %v2703_v45 = vld [vmem:[%s13121_s21 + $0x2b0] sm:$0xff]  ;;  %v2700_v39 = vld [vmem:[%s13121_s21 + $0x298] sm:$0xff] }
 0x2f9   : > { %4561 = vmatprep.mubr.bf16.mxu0 %v11521_v16  ;;  %4883 = vmatprep.mubr.bf16.mxu1 %v11521_v16  ;;  %v11543_v16 = vld [vmem:[#allocation2 + $0x48] ss:$16 sps:$4 sm:$0xff]  }
 0x2fa   : > { %4639 = vmatpush1.bf16.msra.mxu0 %v10388_v52  ;;  %4961 = vmatpush1.bf16.msra.mxu1 %v10390_v59  ;;  %v2664_v52 = vld [vmem:[%s13121_s21 + $0x178] sm:$0xff]  ;;  %v2671_v59 = vld [vmem:[%s13121_s21 + $0x1b0] sm:$0xff] }
 0x2fb   : > { %4640 = vmatprep.subr.bf16.mxu0 %v10397_v37  ;;  %4962 = vmatprep.subr.bf16.mxu1 %v10399_v30  ;;  %v10186_v37 = vcombine.low %v2652_v40, %v2656_v53  ;;  %v10193_v30 = vcombine.high %v2659_v57, %v2663_v5  ;;  %v10195_v51 = vcombine.high %v2660_v41, %v2664_v52  ;;  %v2707_v53 = vld [vmem:[%s13121_s21 + $0x2d0] sm:$0xff] }
 0x2fe   : > { %4641 = vmatpush1.bf16.msra.mxu0 %v10396_v63  ;;  %4963 = vmatpush1.bf16.msra.mxu1 %v10398_v8  ;;  %v11546_v63 = vld [vmem:[#allocation2 + $0x68] ss:$16 sps:$4 sm:$0xff]   ;;  %v2675_v8 = vld [vmem:[%s13121_s21 + $0x1d0] sm:$0xff] }
 0x2ff   : > { %5093 = vmatprep.subr.bf16.mxu0 %v10153_v14  ;;  %5415 = vmatprep.subr.bf16.mxu1 %v10155_v21  ;;  %v2679_v14 = vld [vmem:[%s13121_s21 + $0x1f0] sm:$0xff]  ;;  %v11547_v21 = vld [vmem:[#allocation2 + $0x8c] ss:$16 sps:$4 sm:$0xff]  }
 0x300   : > { %4562 = vmatmul.mubr.bf16.gmra.mrb[32].mxu0 %v11523_v11  ;;  %4884 = vmatmul.mubr.bf16.gmra.mrb[32].mxu1 %v11523_v11  ;;  %v2672_v11 = vld [vmem:[%s13121_s21 + $0x1b8] sm:$0xff] }
 0x301   : > { %4571 = vmatprep.mubr.bf16.mxu0 %v11524_v42  ;;  %4893 = vmatprep.mubr.bf16.mxu1 %v11524_v42  ;;  %v10192_v42 = vcombine.low %v2659_v57, %v2663_v5 }
 0x308   : > { %4572 = vmatmul.mubr.bf16.gmra.mrb[36].mxu0 %v11526_v23  ;;  %4894 = vmatmul.mubr.bf16.gmra.mrb[36].mxu1 %v11526_v23  ;;  %v10194_v23 = vcombine.low %v2660_v41, %v2664_v52  ;;  %v2716_v41 = vld [vmem:[%s13121_s21 + $0x318] sm:$0xff] }
 0x309   : > { %4581 = vmatprep.mubr.bf16.mxu0 %v11527_v55  ;;  %4903 = vmatprep.mubr.bf16.mxu1 %v11527_v55  ;;  %v10201_v55 = vcombine.high %v2667_v33, %v2671_v59  ;;  %v2720_v52 = vld [vmem:[%s13121_s21 + $0x338] sm:$0xff] }
 0x310   : > { %4582 = vmatmul.mubr.bf16.gmra.mrb[40].mxu0 %v11529_v26  ;;  %4904 = vmatmul.mubr.bf16.gmra.mrb[40].mxu1 %v11529_v26  ;;  %v2676_v26 = vld [vmem:[%s13121_s21 + $0x1d8] sm:$0xff] }
 0x311   : > { %4591 = vmatprep.mubr.bf16.mxu0 %v11530_v6  ;;  %4913 = vmatprep.mubr.bf16.mxu1 %v11530_v6  ;;  %v10203_v6 = vcombine.high %v2668_v46, %v2672_v11  ;;  %v10211_v0 = vcombine.high %v2676_v26, %v2680_v9  ;;  %v10210_v28 = vcombine.low %v2676_v26, %v2680_v9  ;;  %v2735_v26 = vld [vmem:[%s13121_s21 + $0x3b0] sm:$0xff]  ;;  %v2736_v9 = vld [vmem:[%s13121_s21 + $0x3b8] sm:$0xff] }
 0x318   : > { %4592 = vmatmul.mubr.bf16.gmra.mrb[44].mxu0 %v11532_v61  ;;  %4914 = vmatmul.mubr.bf16.gmra.mrb[44].mxu1 %v11532_v61  ;;  %v10200_v61 = vcombine.low %v2667_v33, %v2671_v59 }
 0x319   : > { %4601 = vmatprep.mubr.bf16.mxu0 %v15504_v25  ;;  %4923 = vmatprep.mubr.bf16.mxu1 %v15504_v25 }
 0x320   : > { %4602 = vmatmul.mubr.bf16.gmra.mrb[48].mxu0 %v15508_v50  ;;  %4924 = vmatmul.mubr.bf16.gmra.mrb[48].mxu1 %v15508_v50 }
 0x321   : > { %4642 = vmatprep.mubr.bf16.mxu0 %v11537_v47  ;;  %4964 = vmatprep.mubr.bf16.mxu1 %v11537_v47  ;;  %v10202_v47 = vcombine.low %v2668_v46, %v2672_v11  ;;  %v2727_v46 = vld [vmem:[%s13121_s21 + $0x370] sm:$0xff]  ;;  %v11556_v11 = vld [vmem:[#allocation2 + $0xec] ss:$16 sps:$4 sm:$0xff]  }
 0x328   : > { %4643 = vmatmul.mubr.bf16.vlgmr.msra.gmra.mrb[0].mxu0 %v11535_v58  ;;  %4965 = vmatmul.mubr.bf16.vlgmr.msra.gmra.mrb[0].mxu1 %v11535_v58  ;;  %v10209_v58 = vcombine.high %v2675_v8, %v2679_v14 }
 0x329   : > { %5094 = vmatpush1.bf16.msra.mxu0 %v10152_v62  ;;  %5416 = vmatpush1.bf16.msra.mxu1 %v10154_v35  ;;  %v10208_v62 = vcombine.low %v2675_v8, %v2679_v14  ;;  %v11549_v35 = vld [vmem:[#allocation2 + $0x88] ss:$16 sps:$4 sm:$0xff]   ;;  %v10250_v14 = vcombine.low %v2716_v41, %v2720_v52 }
 0x32a   : > { %4652 = vmatprep.mubr.bf16.mxu0 %v11538_v38  ;;  %4974 = vmatprep.mubr.bf16.mxu1 %v11538_v38  ;;  %v2688_v38 = vld [vmem:[%s13121_s21 + $0x238] sm:$0xff] }
 0x32b   : > { %5095 = vmatprep.subr.bf16.mxu0 %v10161_v29  ;;  %5417 = vmatprep.subr.bf16.mxu1 %v10163_v19  ;;  %v10219_v4 = vcombine.high %v2684_v44, %v2688_v38  ;;  %v2695_v29 = vld [vmem:[%s13121_s21 + $0x270] sm:$0xff]  ;;  %v11550_v19 = vld [vmem:[#allocation2 + $0xac] ss:$16 sps:$4 sm:$0xff]  }
 0x32c   : > { %v10225_v48 = vcombine.high %v2691_v22, %v2695_v29 }
 0x32d   : > { %5096 = vmatpush1.bf16.msra.mxu0 %v10160_v3  ;;  %5418 = vmatpush1.bf16.msra.mxu1 %v10162_v34  ;;  %v2692_v3 = vld [vmem:[%s13121_s21 + $0x258] sm:$0xff] }
 0x32e   : > { %5097 = vmatprep.subr.bf16.mxu0 %v10169_v10  ;;  %5419 = vmatprep.subr.bf16.mxu1 %v10171_v20  ;;  %v2696_v34 = vld [vmem:[%s13121_s21 + $0x278] sm:$0xff]  ;;  %v10218_v10 = vcombine.low %v2684_v44, %v2688_v38  ;;  %v2699_v20 = vld [vmem:[%s13121_s21 + $0x290] sm:$0xff] }
 0x32f   : > { %v10227_v60 = vcombine.high %v2692_v3, %v2696_v34  ;;  %v10226_v31 = vcombine.low %v2692_v3, %v2696_v34  ;;  %v10233_v27 = vcombine.high %v2699_v20, %v2703_v45  ;;  %v2743_v44 = vld [vmem:[%s13121_s21 + $0x3f0] sm:$0xff]  ;;  %v11559_v38 = vld [vmem:[#allocation2 + $0x10c] ss:$16 sps:$4 sm:$0xff]  }
 0x330   : > { %4653 = vmatmul.mubr.bf16.gmra.mrb[4].mxu0 %v11540_v24  ;;  %4975 = vmatmul.mubr.bf16.gmra.mrb[4].mxu1 %v11540_v24  ;;  %v10216_v24 = vcombine.low %v2683_v17, %v2687_v2  ;;  %v2739_v2 = vld [vmem:[%s13121_s21 + $0x3d0] sm:$0xff]  ;;  %v15583_v3 = vld [vmem:[%s13121_s21 + $0x418] sm:$0xff] }
 0x331   : > { %5098 = vmatpush1.bf16.msra.mxu0 %v10168_v56  ;;  %5420 = vmatpush1.bf16.msra.mxu1 %v10170_v36  ;;  %v10224_v56 = vcombine.low %v2691_v22, %v2695_v29  ;;  %v11552_v36 = vld [vmem:[#allocation2 + $0xa8] ss:$16 sps:$4 sm:$0xff]   ;;  %v15577_v29 = vld [vmem:[%s13121_s21 + $0x410] sm:$0xff] }
 0x332   : > { %4662 = vmatprep.mubr.bf16.mxu0 %v11541_v12  ;;  %4984 = vmatprep.mubr.bf16.mxu1 %v11541_v12  ;;  %v2704_v12 = vld [vmem:[%s13121_s21 + $0x2b8] sm:$0xff] }
 0x333   : > { %5099 = vmatprep.subr.bf16.mxu0 %v10177_v13  ;;  %5421 = vmatprep.subr.bf16.mxu1 %v10179_v32  ;;  %v10235_v40 = vcombine.high %v2700_v39, %v2704_v12  ;;  %v2711_v13 = vld [vmem:[%s13121_s21 + $0x2f0] sm:$0xff]  ;;  %v11553_v32 = vld [vmem:[#allocation2 + $0xcc] ss:$16 sps:$4 sm:$0xff]  }
 0x334   : > { %v10241_v57 = vcombine.high %v2707_v53, %v2711_v13  ;;  %v2752_v34 = vld [vmem:[%s13121_s21 + $0x438] sm:$0xff] }
 0x335   : > { %5100 = vmatpush1.bf16.msra.mxu0 %v10176_v15  ;;  %5422 = vmatpush1.bf16.msra.mxu1 %v10178_v49  ;;  %v2708_v15 = vld [vmem:[%s13121_s21 + $0x2d8] sm:$0xff]  ;;  %v10232_v49 = vcombine.low %v2699_v20, %v2703_v45  ;;  %v10283_v20 = vcombine.high %v15583_v3, %v2752_v34 }
 0x336   : > { %5101 = vmatprep.subr.bf16.mxu0 %v10185_v7  ;;  %5423 = vmatprep.subr.bf16.mxu1 %v10187_v54  ;;  %v10234_v7 = vcombine.low %v2700_v39, %v2704_v12  ;;  %v2719_v54 = vld [vmem:[%s13121_s21 + $0x330] sm:$0xff]  ;;  %v11562_v45 = vld [vmem:[#allocation2 + $0x12c] ss:$16 sps:$4 sm:$0xff]   ;;  %v11564_v39 = vld [vmem:[#allocation2 + $0x128] ss:$16 sps:$4 sm:$0xff]  }
 0x337   : > { %v11565_v12 = vld [vmem:[#allocation2 + $0x14c] ss:$16 sps:$4 sm:$0xff]  }
 0x338   : > { %4663 = vmatmul.mubr.bf16.gmra.mrb[8].mxu0 %v11543_v16  ;;  %4985 = vmatmul.mubr.bf16.gmra.mrb[8].mxu1 %v11543_v16  ;;  %v2712_v16 = vld [vmem:[%s13121_s21 + $0x2f8] sm:$0xff] }
 0x339   : > { %4672 = vmatprep.mubr.bf16.mxu0 %v11544_v43  ;;  %4994 = vmatprep.mubr.bf16.mxu1 %v11544_v43  ;;  %v10243_v5 = vcombine.high %v2708_v15, %v2712_v16  ;;  %v2715_v43 = vld [vmem:[%s13121_s21 + $0x310] sm:$0xff]  ;;  %v10242_v33 = vcombine.low %v2708_v15, %v2712_v16 }
 0x33a   : > { %5102 = vmatpush1.bf16.msra.mxu0 %v10184_v18  ;;  %5424 = vmatpush1.bf16.msra.mxu1 %v10186_v37  ;;  %v10240_v18 = vcombine.low %v2707_v53, %v2711_v13  ;;  %v10249_v59 = vcombine.high %v2715_v43, %v2719_v54  ;;  %v11555_v37 = vld [vmem:[#allocation2 + $0xc8] ss:$16 sps:$4 sm:$0xff]   ;;  %v10248_v8 = vcombine.low %v2715_v43, %v2719_v54  ;;  %v12357_v13 = vld [vmem:[#allocation2 + $0x4] ss:$16 sps:$4 sm:$0xff]  }
 0x33b   : > { %5103 = vmatprep.subr.bf16.mxu0 %v10193_v30  ;;  %5425 = vmatprep.subr.bf16.mxu1 %v10195_v51  ;;  %v10251_v30 = vcombine.high %v2716_v41, %v2720_v52  ;;  %v2723_v51 = vld [vmem:[%s13121_s21 + $0x350] sm:$0xff] }
 0x33c   : > { %v2759_v15 = vld [vmem:[%s13121_s21 + $0x470] sm:$0xff] }
 0x33d   : > { %v2763_v43 = vld [vmem:[%s13121_s21 + $0x490] sm:$0xff] }
 0x33e   : > { %5104 = vmatpush1.bf16.msra.mxu0 %v10192_v42  ;;  %5426 = vmatpush1.bf16.msra.mxu1 %v10194_v23  ;;  %v2728_v42 = vld [vmem:[%s13121_s21 + $0x378] sm:$0xff]  ;;  %v2767_v54 = vld [vmem:[%s13121_s21 + $0x4b0] sm:$0xff] }
 0x33f   : > { %5105 = vmatprep.subr.bf16.mxu0 %v10201_v55  ;;  %5427 = vmatprep.subr.bf16.mxu1 %v10203_v6  ;;  %v2731_v55 = vld [vmem:[%s13121_s21 + $0x390] sm:$0xff]  ;;  %v2732_v6 = vld [vmem:[%s13121_s21 + $0x398] sm:$0xff] }
 0x340   : > { %4673 = vmatmul.mubr.bf16.gmra.mrb[12].mxu0 %v11546_v63  ;;  %4995 = vmatmul.mubr.bf16.gmra.mrb[12].mxu1 %v11546_v63  ;;  %v2724_v63 = vld [vmem:[%s13121_s21 + $0x358] sm:$0xff]  ;;  %v10267_v17 = vcombine.high %v2732_v6, %v2736_v9  ;;  %v12358_v41 = vld [vmem:[#allocation2] ss:$16 sps:$4 sm:$0xff]  }
 0x341   : > { %4682 = vmatprep.mubr.bf16.mxu0 %v11547_v21  ;;  %5004 = vmatprep.mubr.bf16.mxu1 %v11547_v21  ;;  %v10257_v21 = vcombine.high %v2723_v51, %v2727_v46  ;;  %v10259_v23 = vcombine.high %v2724_v63, %v2728_v42 }
 0x342   : > { %5106 = vmatpush1.bf16.msra.mxu0 %v10200_v61  ;;  %5428 = vmatpush1.bf16.msra.mxu1 %v10202_v47  ;;  %v10256_v61 = vcombine.low %v2723_v51, %v2727_v46  ;;  %v10258_v47 = vcombine.low %v2724_v63, %v2728_v42  ;;  %v10297_v51 = vcombine.high %v2763_v43, %v2767_v54  ;;  %v2775_v63 = vld [vmem:[%s13121_s21 + $0x4f0] sm:$0xff] }
 0x343   : > { %5107 = vmatprep.subr.bf16.mxu0 %v10209_v58  ;;  %5429 = vmatprep.subr.bf16.mxu1 %v10211_v0  ;;  %v10265_v58 = vcombine.high %v2731_v55, %v2735_v26  ;;  %v11558_v0 = vld [vmem:[#allocation2 + $0xe8] ss:$16 sps:$4 sm:$0xff]   ;;  %v10296_v42 = vcombine.low %v2763_v43, %v2767_v54 }
 0x344   : > { %v2816_v43 = vld [vmem:[%s13121_s21 + $0x638] sm:$0xff] }
 0x346   : > { %5108 = vmatpush1.bf16.msra.mxu0 %v10208_v62  ;;  %5430 = vmatpush1.bf16.msra.mxu1 %v10210_v28  ;;  %v2740_v62 = vld [vmem:[%s13121_s21 + $0x3d8] sm:$0xff] }
 0x347   : > { %5109 = vmatprep.subr.bf16.mxu0 %v10217_v1  ;;  %5431 = vmatprep.subr.bf16.mxu1 %v10219_v4  ;;  %v2744_v28 = vld [vmem:[%s13121_s21 + $0x3f8] sm:$0xff]  ;;  %v10264_v1 = vcombine.low %v2731_v55, %v2735_v26  ;;  %v10273_v4 = vcombine.high %v2739_v2, %v2743_v44  ;;  %v2779_v55 = vld [vmem:[%s13121_s21 + $0x510] sm:$0xff] }
 0x348   : > { %4683 = vmatmul.mubr.bf16.gmra.mrb[16].mxu0 %v11549_v35  ;;  %5005 = vmatmul.mubr.bf16.gmra.mrb[16].mxu1 %v11549_v35  ;;  %v10266_v35 = vcombine.low %v2732_v6, %v2736_v9  ;;  %v10275_v22 = vcombine.high %v2740_v62, %v2744_v28  ;;  %v2783_v26 = vld [vmem:[%s13121_s21 + $0x530] sm:$0xff] }
 0x349   : > { %4692 = vmatprep.mubr.bf16.mxu0 %v11550_v19  ;;  %5014 = vmatprep.mubr.bf16.mxu1 %v11550_v19  ;;  %v15580_v19 = vld [vmem:[%s13121_s21 + $0x430] sm:$0xff] }
 0x34a   : > { %5110 = vmatpush1.bf16.msra.mxu0 %v10216_v24  ;;  %5432 = vmatpush1.bf16.msra.mxu1 %v10218_v10  ;;  %v10272_v24 = vcombine.low %v2739_v2, %v2743_v44  ;;  %v10274_v10 = vcombine.low %v2740_v62, %v2744_v28  ;;  %v10280_v16 = vcombine.low %v15577_v29, %v15580_v19  ;;  %v12360_v6 = vld [vmem:[#allocation2 + $0x20] ss:$16 sps:$4 sm:$0xff]   ;;  %v2788_v28 = vld [vmem:[%s13121_s21 + $0x558] sm:$0xff] }
 0x34b   : > { %5111 = vmatprep.subr.bf16.mxu0 %v10225_v48  ;;  %5433 = vmatprep.subr.bf16.mxu1 %v10227_v60  ;;  %v10281_v48 = vcombine.high %v15577_v29, %v15580_v19  ;;  %v11561_v60 = vld [vmem:[#allocation2 + $0x108] ss:$16 sps:$4 sm:$0xff]   ;;  %v10313_v2 = vcombine.high %v2779_v55, %v2783_v26  ;;  %v2791_v62 = vld [vmem:[%s13121_s21 + $0x570] sm:$0xff] }
 0x34c   : > { %v12362_v29 = vld [vmem:[#allocation2 + $0x40] ss:$16 sps:$4 sm:$0xff]  }
 0x34e   : > { %5112 = vmatpush1.bf16.msra.mxu0 %v10224_v56  ;;  %5434 = vmatpush1.bf16.msra.mxu1 %v10226_v31  ;;  %v11567_v56 = vld [vmem:[#allocation2 + $0x148] ss:$16 sps:$4 sm:$0xff]   ;;  %v11568_v31 = vld [vmem:[#allocation2 + $0x16c] ss:$16 sps:$4 sm:$0xff]  }
 0x34f   : > { %5113 = vmatprep.subr.bf16.mxu0 %v10233_v27  ;;  %5435 = vmatprep.subr.bf16.mxu1 %v10235_v40  ;;  %v2616_v27 = vld [vmem:[#allocation2 + $0x188] sm:$0x33] }
 0x350   : > { %4693 = vmatmul.mubr.bf16.gmra.mrb[20].mxu0 %v11552_v36  ;;  %5015 = vmatmul.mubr.bf16.gmra.mrb[20].mxu1 %v11552_v36  ;;  %v11570_v36 = vld [vmem:[#allocation2 + $0x168] ss:$16 sps:$4 sm:$0xff]   ;;  %v15589_v40 = vcombine.high %v2616_v27, %v2616_v27  ;;  %v15593_v53 = vcombine.low %v2616_v27, %v2616_v27 }
 0x351   : > { %4702 = vmatprep.mubr.bf16.mxu0 %v11553_v32  ;;  %5024 = vmatprep.mubr.bf16.mxu1 %v11553_v32  ;;  %v2755_v32 = vld [vmem:[%s13121_s21 + $0x450] sm:$0xff]  ;;  %v2808_v27 = vld [vmem:[%s13121_s21 + $0x5f8] sm:$0xff] }
 0x352   : > { %5114 = vmatpush1.bf16.msra.mxu0 %v10232_v49  ;;  %5436 = vmatpush1.bf16.msra.mxu1 %v10234_v7  ;;  %19508 = vst [vmem:[#allocation81_spill] sm:$0xff] %v15589_v40  ;;  %19509 = vst [vmem:[#allocation82_spill] sm:$0xff] %v15593_v53  ;;  %v2756_v49 = vld [vmem:[%s13121_s21 + $0x458] sm:$0xff] }
 0x353   : > { %5115 = vmatprep.subr.bf16.mxu0 %v10241_v57  ;;  %5437 = vmatprep.subr.bf16.mxu1 %v10243_v5  ;;  %v2760_v7 = vld [vmem:[%s13121_s21 + $0x478] sm:$0xff]  ;;  %v10282_v57 = vcombine.low %v15583_v3, %v2752_v34  ;;  %v10289_v5 = vcombine.high %v2755_v32, %v2759_v15  ;;  %v2795_v3 = vld [vmem:[%s13121_s21 + $0x590] sm:$0xff] }
 0x354   : > { %v10291_v52 = vcombine.high %v2756_v49, %v2760_v7  ;;  %v2799_v34 = vld [vmem:[%s13121_s21 + $0x5b0] sm:$0xff] }
 0x356   : > { %5116 = vmatpush1.bf16.msra.mxu0 %v10240_v18  ;;  %5438 = vmatpush1.bf16.msra.mxu1 %v10242_v33  ;;  %v2764_v18 = vld [vmem:[%s13121_s21 + $0x498] sm:$0xff] }
 0x357   : > { %5117 = vmatprep.subr.bf16.mxu0 %v10249_v59  ;;  %5439 = vmatprep.subr.bf16.mxu1 %v10251_v30  ;;  %v2768_v33 = vld [vmem:[%s13121_s21 + $0x4b8] sm:$0xff]  ;;  %v10288_v59 = vcombine.low %v2755_v32, %v2759_v15  ;;  %v10290_v30 = vcombine.low %v2756_v49, %v2760_v7  ;;  %v12364_v15 = vld [vmem:[#allocation2 + $0x60] ss:$16 sps:$4 sm:$0xff]  }
 0x358   : > { %4703 = vmatmul.mubr.bf16.gmra.mrb[24].mxu0 %v11555_v37  ;;  %5025 = vmatmul.mubr.bf16.gmra.mrb[24].mxu1 %v11555_v37  ;;  %v12359_v37 = vld [vmem:[#allocation2 + $0x24] ss:$16 sps:$4 sm:$0xff]   ;;  %v10299_v46 = vcombine.high %v2764_v18, %v2768_v33 }
 0x359   : > { %4712 = vmatprep.mubr.bf16.mxu0 %v11556_v11  ;;  %5034 = vmatprep.mubr.bf16.mxu1 %v11556_v11  ;;  %v2771_v11 = vld [vmem:[%s13121_s21 + $0x4d0] sm:$0xff] }
 0x35a   : > { %5118 = vmatpush1.bf16.msra.mxu0 %v10248_v8  ;;  %5440 = vmatpush1.bf16.msra.mxu1 %v10250_v14  ;;  %v2772_v8 = vld [vmem:[%s13121_s21 + $0x4d8] sm:$0xff]  ;;  %v2811_v49 = vld [vmem:[%s13121_s21 + $0x610] sm:$0xff] }
 0x35b   : > { %5119 = vmatprep.subr.bf16.mxu0 %v10257_v21  ;;  %5441 = vmatprep.subr.bf16.mxu1 %v10259_v23  ;;  %v2776_v14 = vld [vmem:[%s13121_s21 + $0x4f8] sm:$0xff]  ;;  %v10298_v21 = vcombine.low %v2764_v18, %v2768_v33  ;;  %v10305_v23 = vcombine.high %v2771_v11, %v2775_v63  ;;  %v2815_v7 = vld [vmem:[%s13121_s21 + $0x630] sm:$0xff] }
 0x35c   : > { %v10307_v9 = vcombine.high %v2772_v8, %v2776_v14  ;;  %v2819_v33 = vld [vmem:[%s13121_s21 + $0x650] sm:$0xff] }
 0x35e   : > { %5120 = vmatpush1.bf16.msra.mxu0 %v10256_v61  ;;  %5442 = vmatpush1.bf16.msra.mxu1 %v10258_v47  ;;  %v2780_v61 = vld [vmem:[%s13121_s21 + $0x518] sm:$0xff] }
 0x35f   : > { %5121 = vmatprep.subr.bf16.mxu0 %v10265_v58  ;;  %5443 = vmatprep.subr.bf16.mxu1 %v10267_v17  ;;  %v2784_v47 = vld [vmem:[%s13121_s21 + $0x538] sm:$0xff]  ;;  %v10304_v58 = vcombine.low %v2771_v11, %v2775_v63  ;;  %v10306_v17 = vcombine.low %v2772_v8, %v2776_v14  ;;  %v12366_v63 = vld [vmem:[#allocation2 + $0x80] ss:$16 sps:$4 sm:$0xff]  }
 0x360   : > { %4713 = vmatmul.mubr.bf16.gmra.mrb[28].mxu0 %v11558_v0  ;;  %5035 = vmatmul.mubr.bf16.gmra.mrb[28].mxu1 %v11558_v0  ;;  %v12361_v0 = vld [vmem:[#allocation2 + $0x44] ss:$16 sps:$4 sm:$0xff]   ;;  %v10315_v44 = vcombine.high %v2780_v61, %v2784_v47 }
 0x361   : > { %4722 = vmatprep.mubr.bf16.mxu0 %v11559_v38  ;;  %5044 = vmatprep.mubr.bf16.mxu1 %v11559_v38  ;;  %v2787_v38 = vld [vmem:[%s13121_s21 + $0x550] sm:$0xff] }
 0x362   : > { %5122 = vmatpush1.bf16.msra.mxu0 %v10264_v1  ;;  %5444 = vmatpush1.bf16.msra.mxu1 %v10266_v35  ;;  %v2792_v1 = vld [vmem:[%s13121_s21 + $0x578] sm:$0xff]  ;;  %v10312_v35 = vcombine.low %v2779_v55, %v2783_v26  ;;  %v2827_v8 = vld [vmem:[%s13121_s21 + $0x690] sm:$0xff] }
 0x363   : > { %5123 = vmatprep.subr.bf16.mxu0 %v10273_v4  ;;  %5445 = vmatprep.subr.bf16.mxu1 %v10275_v22  ;;  %v10314_v4 = vcombine.low %v2780_v61, %v2784_v47  ;;  %v10321_v22 = vcombine.high %v2787_v38, %v2791_v62  ;;  %v10323_v19 = vcombine.high %v2788_v28, %v2792_v1  ;;  %v2831_v14 = vld [vmem:[%s13121_s21 + $0x6b0] sm:$0xff]  ;;  %v2832_v55 = vld [vmem:[%s13121_s21 + $0x6b8] sm:$0xff] }
 0x364   : > { %v2835_v47 = vld [vmem:[%s13121_s21 + $0x6d0] sm:$0xff] }
 0x366   : > { %5124 = vmatpush1.bf16.msra.mxu0 %v10272_v24  ;;  %5446 = vmatpush1.bf16.msra.mxu1 %v10274_v10  ;;  %v12363_v24 = vld [vmem:[#allocation2 + $0x64] ss:$16 sps:$4 sm:$0xff]   ;;  %v2796_v10 = vld [vmem:[%s13121_s21 + $0x598] sm:$0xff] }
 0x367   : > { %5254 = vmatprep.subr.bf16.mxu0 %v10281_v48  ;;  %5576 = vmatprep.subr.bf16.mxu1 %v10283_v20  ;;  %v2800_v48 = vld [vmem:[%s13121_s21 + $0x5b8] sm:$0xff]  ;;  %v10322_v20 = vcombine.low %v2788_v28, %v2792_v1  ;;  %v2843_v1 = vld [vmem:[%s13121_s21 + $0x710] sm:$0xff] }
 0x368   : > { %4723 = vmatmul.mubr.bf16.gmra.mrb[32].mxu0 %v11561_v60  ;;  %5045 = vmatmul.mubr.bf16.gmra.mrb[32].mxu1 %v11561_v60  ;;  %v10320_v60 = vcombine.low %v2787_v38, %v2791_v62  ;;  %v12368_v62 = vld [vmem:[#allocation2 + $0xa0] ss:$16 sps:$4 sm:$0xff]  }
 0x369   : > { %4732 = vmatprep.mubr.bf16.mxu0 %v11562_v45  ;;  %5054 = vmatprep.mubr.bf16.mxu1 %v11562_v45  ;;  %v10329_v45 = vcombine.high %v2795_v3, %v2799_v34 }
 0x370   : > { %4733 = vmatmul.mubr.bf16.gmra.mrb[36].mxu0 %v11564_v39  ;;  %5055 = vmatmul.mubr.bf16.gmra.mrb[36].mxu1 %v11564_v39  ;;  %v10331_v39 = vcombine.high %v2796_v10, %v2800_v48 }
 0x371   : > { %4742 = vmatprep.mubr.bf16.mxu0 %v11565_v12  ;;  %5064 = vmatprep.mubr.bf16.mxu1 %v11565_v12  ;;  %v2803_v12 = vld [vmem:[%s13121_s21 + $0x5d0] sm:$0xff] }
 0x378   : > { %4743 = vmatmul.mubr.bf16.gmra.mrb[40].mxu0 %v11567_v56  ;;  %5065 = vmatmul.mubr.bf16.gmra.mrb[40].mxu1 %v11567_v56  ;;  %v2807_v56 = vld [vmem:[%s13121_s21 + $0x5f0] sm:$0xff] }
 0x379   : > { %4752 = vmatprep.mubr.bf16.mxu0 %v11568_v31  ;;  %5074 = vmatprep.mubr.bf16.mxu1 %v11568_v31  ;;  %v2804_v31 = vld [vmem:[%s13121_s21 + $0x5d8] sm:$0xff]  ;;  %v10337_v32 = vcombine.high %v2803_v12, %v2807_v56  ;;  %v10336_v54 = vcombine.low %v2803_v12, %v2807_v56  ;;  %v12370_v56 = vld [vmem:[#allocation2 + $0xc0] ss:$16 sps:$4 sm:$0xff]  }
 0x380   : > { %4753 = vmatmul.mubr.bf16.gmra.mrb[44].mxu0 %v11570_v36  ;;  %5075 = vmatmul.mubr.bf16.gmra.mrb[44].mxu1 %v11570_v36  ;;  %v10328_v36 = vcombine.low %v2795_v3, %v2799_v34 }
 0x381   : > { %4762 = vmatprep.mubr.bf16.mxu0 %v15589_v40  ;;  %5084 = vmatprep.mubr.bf16.mxu1 %v15589_v40 }
 0x388   : > { %4763 = vmatmul.mubr.bf16.gmra.mrb[48].mxu0 %v15593_v53  ;;  %5085 = vmatmul.mubr.bf16.gmra.mrb[48].mxu1 %v15593_v53 }
 0x389   : > { %5125 = vmatprep.mubr.bf16.mxu0 %v12357_v13  ;;  %5447 = vmatprep.mubr.bf16.mxu1 %v12357_v13  ;;  %v10330_v13 = vcombine.low %v2796_v10, %v2800_v48  ;;  %v2851_v10 = vld [vmem:[%s13121_s21 + $0x750] sm:$0xff] }
 0x38a   : > { %v2855_v48 = vld [vmem:[%s13121_s21 + $0x770] sm:$0xff] }
 0x38b   : > { %v10385_v12 = vcombine.high %v2851_v10, %v2855_v48 }
 0x390   : > { %5126 = vmatmul.mubr.bf16.vlgmr.msra.gmra.mrb[52].mxu0 %v12358_v41  ;;  %5448 = vmatmul.mubr.bf16.vlgmr.msra.gmra.mrb[52].mxu1 %v12358_v41  ;;  %v10338_v41 = vcombine.low %v2804_v31, %v2808_v27 }
 0x391   : > { %5255 = vmatpush1.bf16.msra.mxu0 %v10280_v16  ;;  %5577 = vmatpush1.bf16.msra.mxu1 %v10282_v57  ;;  %v10339_v16 = vcombine.high %v2804_v31, %v2808_v27  ;;  %v12365_v57 = vld [vmem:[#allocation2 + $0x84] ss:$16 sps:$4 sm:$0xff]  }
 0x392   : > { %5135 = vmatprep.mubr.bf16.mxu0 %v12359_v37  ;;  %5256 = vmatprep.subr.bf16.mxu0 %v10289_v5  ;;  %v2812_v5 = vld [vmem:[%s13121_s21 + $0x618] sm:$0xff]  ;;  %v2859_v27 = vld [vmem:[%s13121_s21 + $0x790] sm:$0xff] }
 0x393   : > { %5457 = vmatprep.mubr.bf16.mxu1 %v12359_v37  ;;  %5578 = vmatprep.subr.bf16.mxu1 %v10291_v52  ;;  %v10345_v52 = vcombine.high %v2811_v49, %v2815_v7  ;;  %v10347_v18 = vcombine.high %v2812_v5, %v2816_v43  ;;  %v2820_v37 = vld [vmem:[%s13121_s21 + $0x658] sm:$0xff] }
 0x395   : > { %5257 = vmatpush1.bf16.msra.mxu0 %v10288_v59  ;;  %5579 = vmatpush1.bf16.msra.mxu1 %v10290_v30  ;;  %v2823_v59 = vld [vmem:[%s13121_s21 + $0x670] sm:$0xff]  ;;  %v2824_v30 = vld [vmem:[%s13121_s21 + $0x678] sm:$0xff] }
 0x396   : > { %5258 = vmatprep.subr.bf16.mxu0 %v10297_v51  ;;  %5580 = vmatprep.subr.bf16.mxu1 %v10299_v46  ;;  %v10344_v51 = vcombine.low %v2811_v49, %v2815_v7  ;;  %v10346_v46 = vcombine.low %v2812_v5, %v2816_v43  ;;  %v10353_v11 = vcombine.high %v2819_v33, %v2823_v59  ;;  %v2867_v5 = vld [vmem:[%s13121_s21 + $0x7d0] sm:$0xff] }
 0x397   : > { %v10352_v26 = vcombine.low %v2819_v33, %v2823_v59  ;;  %v2871_v43 = vld [vmem:[%s13121_s21 + $0x7f0] sm:$0xff] }
 0x398   : > { %5136 = vmatmul.mubr.bf16.gmra.mrb[56].mxu0 %v12360_v6  ;;  %5458 = vmatmul.mubr.bf16.gmra.mrb[56].mxu1 %v12360_v6  ;;  %v10354_v6 = vcombine.low %v2820_v37, %v2824_v30  ;;  %v10401_v33 = vcombine.high %v2867_v5, %v2871_v43  ;;  %v12372_v59 = vld [vmem:[#allocation2 + $0xe0] ss:$16 sps:$4 sm:$0xff]  }
 0x399   : > { %5259 = vmatpush1.bf16.msra.mxu0 %v10296_v42  ;;  %5581 = vmatpush1.bf16.msra.mxu1 %v10298_v21  ;;  %v10355_v42 = vcombine.high %v2820_v37, %v2824_v30  ;;  %v12367_v21 = vld [vmem:[#allocation2 + $0xa4] ss:$16 sps:$4 sm:$0xff]  }
 0x39a   : > { %5145 = vmatprep.mubr.bf16.mxu0 %v12361_v0  ;;  %5467 = vmatprep.mubr.bf16.mxu1 %v12361_v0  ;;  %v2836_v0 = vld [vmem:[%s13121_s21 + $0x6d8] sm:$0xff]  ;;  %v12373_v30 = vld [vmem:[#allocation2 + $0x104] ss:$16 sps:$4 sm:$0xff]  }
 0x39b   : > { %5260 = vmatprep.subr.bf16.mxu0 %v10305_v23  ;;  %5582 = vmatprep.subr.bf16.mxu1 %v10307_v9  ;;  %v2828_v23 = vld [vmem:[%s13121_s21 + $0x698] sm:$0xff]  ;;  %v10361_v9 = vcombine.high %v2827_v8, %v2831_v14 }
 0x39c   : > { %v10363_v61 = vcombine.high %v2828_v23, %v2832_v55 }
 0x39d   : > { %5261 = vmatpush1.bf16.msra.mxu0 %v10304_v58  ;;  %5583 = vmatpush1.bf16.msra.mxu1 %v10306_v17  ;;  %v2839_v58 = vld [vmem:[%s13121_s21 + $0x6f0] sm:$0xff]  ;;  %v2840_v17 = vld [vmem:[%s13121_s21 + $0x6f8] sm:$0xff] }
 0x39e   : > { %5262 = vmatprep.subr.bf16.mxu0 %v10313_v2  ;;  %5584 = vmatprep.subr.bf16.mxu1 %v10315_v44  ;;  %v10360_v2 = vcombine.low %v2827_v8, %v2831_v14  ;;  %v10362_v44 = vcombine.low %v2828_v23, %v2832_v55  ;;  %v10369_v38 = vcombine.high %v2835_v47, %v2839_v58  ;;  %v12375_v8 = vld [vmem:[#allocation2 + $0x124] ss:$16 sps:$4 sm:$0xff]   ;;  %v12376_v14 = vld [vmem:[#allocation2 + $0x120] ss:$16 sps:$4 sm:$0xff]  }
 0x39f   : > { %v10371_v28 = vcombine.high %v2836_v0, %v2840_v17  ;;  %v10370_v3 = vcombine.low %v2836_v0, %v2840_v17  ;;  %v12378_v23 = vld [vmem:[#allocation2 + $0x140] ss:$16 sps:$4 sm:$0xff]   ;;  %v12379_v55 = vld [vmem:[#allocation2 + $0x164] ss:$16 sps:$4 sm:$0xff]  }
 0x3a0   : > { %5146 = vmatmul.mubr.bf16.gmra.mrb[60].mxu0 %v12362_v29  ;;  %5468 = vmatmul.mubr.bf16.gmra.mrb[60].mxu1 %v12362_v29  ;;  %v2848_v29 = vld [vmem:[%s13121_s21 + $0x738] sm:$0xff]  ;;  %v2873_v0 = vld [vmem:[%s13133_s16] sm:$0xff] }
 0x3a1   : > { %5155 = vmatprep.mubr.bf16.mxu0 %v12363_v24  ;;  %5477 = vmatprep.mubr.bf16.mxu1 %v12363_v24 }
 0x3a2   : > { %5263 = vmatpush1.bf16.msra.mxu0 %v10312_v35  ;;  %5585 = vmatpush1.bf16.msra.mxu1 %v10314_v4  ;;  %v2847_v35 = vld [vmem:[%s13121_s21 + $0x730] sm:$0xff] }
 0x3a3   : > { %5264 = vmatprep.subr.bf16.mxu0 %v10321_v22  ;;  %5586 = vmatprep.subr.bf16.mxu1 %v10323_v19  ;;  %v12369_v4 = vld [vmem:[#allocation2 + $0xc4] ss:$16 sps:$4 sm:$0xff]   ;;  %v2844_v22 = vld [vmem:[%s13121_s21 + $0x718] sm:$0xff]  ;;  %v10368_v19 = vcombine.low %v2835_v47, %v2839_v58  ;;  %v10377_v34 = vcombine.high %v2843_v1, %v2847_v35  ;;  %v11573_v58 = vld [vmem:[%s13123_s24] ss:$16 sps:$4 sm:$0xff]  }
 0x3a4   : > { %v10379_v24 = vcombine.high %v2844_v22, %v2848_v29 }
 0x3a6   : > { %5265 = vmatpush1.bf16.msra.mxu0 %v10320_v60  ;;  %5587 = vmatpush1.bf16.msra.mxu1 %v10322_v20  ;;  %v2852_v60 = vld [vmem:[%s13121_s21 + $0x758] sm:$0xff] }
 0x3a7   : > { %5266 = vmatprep.subr.bf16.mxu0 %v10329_v45  ;;  %5588 = vmatprep.subr.bf16.mxu1 %v10331_v39  ;;  %v2856_v20 = vld [vmem:[%s13121_s21 + $0x778] sm:$0xff]  ;;  %v10376_v45 = vcombine.low %v2843_v1, %v2847_v35  ;;  %v10378_v39 = vcombine.low %v2844_v22, %v2848_v29  ;;  %v11587_v22 = vld [vmem:[%s13123_s24 + $0x44] ss:$16 sps:$4 sm:$0xff]  }
 0x3a8   : > { %5156 = vmatmul.mubr.bf16.gmra.mrb[64].mxu0 %v12364_v15  ;;  %5478 = vmatmul.mubr.bf16.gmra.mrb[64].mxu1 %v12364_v15  ;;  %v10387_v31 = vcombine.high %v2852_v60, %v2856_v20  ;;  %v2864_v15 = vld [vmem:[%s13121_s21 + $0x7b8] sm:$0xff]  ;;  %v10386_v49 = vcombine.low %v2852_v60, %v2856_v20 }
 0x3a9   : > { %5165 = vmatprep.mubr.bf16.mxu0 %v12365_v57  ;;  %5487 = vmatprep.mubr.bf16.mxu1 %v12365_v57  ;;  %v12383_v35 = vld [vmem:[#allocation2 + $0x2c] ss:$16 sps:$4 sm:$0xff]  }
 0x3aa   : > { %5267 = vmatpush1.bf16.msra.mxu0 %v10328_v36  ;;  %5589 = vmatpush1.bf16.msra.mxu1 %v10330_v13  ;;  %v2863_v36 = vld [vmem:[%s13121_s21 + $0x7b0] sm:$0xff] }
 0x3ab   : > { %5268 = vmatprep.subr.bf16.mxu0 %v10337_v32  ;;  %5590 = vmatprep.subr.bf16.mxu1 %v10339_v16  ;;  %v12371_v13 = vld [vmem:[#allocation2 + $0xe4] ss:$16 sps:$4 sm:$0xff]   ;;  %v2860_v32 = vld [vmem:[%s13121_s21 + $0x798] sm:$0xff]  ;;  %v10384_v16 = vcombine.low %v2851_v10, %v2855_v48  ;;  %v10393_v7 = vcombine.high %v2859_v27, %v2863_v36 }
 0x3ac   : > { %v10395_v57 = vcombine.high %v2860_v32, %v2864_v15 }
 0x3ae   : > { %5269 = vmatpush1.bf16.msra.mxu0 %v10336_v54  ;;  %5591 = vmatpush1.bf16.msra.mxu1 %v10338_v41  ;;  %v2868_v54 = vld [vmem:[%s13121_s21 + $0x7d8] sm:$0xff] }
 0x3af   : > { %5270 = vmatprep.subr.bf16.mxu0 %v10345_v52  ;;  %5592 = vmatprep.subr.bf16.mxu1 %v10347_v18  ;;  %v2872_v41 = vld [vmem:[%s13121_s21 + $0x7f8] sm:$0xff]  ;;  %v10392_v52 = vcombine.low %v2859_v27, %v2863_v36  ;;  %v10394_v18 = vcombine.low %v2860_v32, %v2864_v15  ;;  %v11593_v15 = vld [vmem:[%s13123_s24 + $0x64] ss:$16 sps:$4 sm:$0xff]  }
 0x3b0   : > { %5166 = vmatmul.mubr.bf16.gmra.mrb[68].mxu0 %v12366_v63  ;;  %5488 = vmatmul.mubr.bf16.gmra.mrb[68].mxu1 %v12366_v63  ;;  %v10403_v37 = vcombine.high %v2868_v54, %v2872_v41  ;;  %v11578_v63 = vld [vmem:[%s13123_s24 + $0xc] ss:$16 sps:$4 sm:$0xff]   ;;  %v11588_v36 = vld [vmem:[%s13123_s24 + $0x48] ss:$16 sps:$4 sm:$0xff]  }
 0x3b1   : > { %5175 = vmatprep.mubr.bf16.mxu0 %v12367_v21  ;;  %5497 = vmatprep.mubr.bf16.mxu1 %v12367_v21  ;;  %v12377_v21 = vld [vmem:[#allocation2 + $0x144] ss:$16 sps:$4 sm:$0xff]  }
 0x3b2   : > { %5271 = vmatpush1.bf16.msra.mxu0 %v10344_v51  ;;  %5593 = vmatpush1.bf16.msra.mxu1 %v10346_v46  ;;  %v10400_v51 = vcombine.low %v2867_v5, %v2871_v43  ;;  %v10402_v46 = vcombine.low %v2868_v54, %v2872_v41  ;;  %v11591_v43 = vld [vmem:[%s13123_s24 + $0x60] ss:$16 sps:$4 sm:$0xff]   ;;  %v12385_v41 = vld [vmem:[#allocation2 + $0x4c] ss:$16 sps:$4 sm:$0xff]  }
 0x3b3   : > { %5272 = vmatprep.subr.bf16.mxu0 %v10353_v11  ;;  %5594 = vmatprep.subr.bf16.mxu1 %v10355_v42  ;;  %v11575_v11 = vld [vmem:[%s13123_s24 + $0x4] ss:$16 sps:$4 sm:$0xff]   ;;  %v12374_v42 = vld [vmem:[#allocation2 + $0x100] ss:$16 sps:$4 sm:$0xff]  }
 0x3b6   : > { %5273 = vmatpush1.bf16.msra.mxu0 %v10352_v26  ;;  %5595 = vmatpush1.bf16.msra.mxu1 %v10354_v6  ;;  %v12380_v26 = vld [vmem:[#allocation2 + $0x160] ss:$16 sps:$4 sm:$0xff]   ;;  %v2875_v6 = vlaneseq }
 0x3b7   : > { %5274 = vmatprep.subr.bf16.mxu0 %v10361_v9  ;;  %5596 = vmatprep.subr.bf16.mxu1 %v10363_v61  ;;  %v12381_v61 = vld [vmem:[#allocation2 + $0xc] ss:$16 sps:$4 sm:$0xff]  }
 0x3b8   : > { %5176 = vmatmul.mubr.bf16.gmra.mrb[72].mxu0 %v12368_v62  ;;  %5498 = vmatmul.mubr.bf16.gmra.mrb[72].mxu1 %v12368_v62  ;;  %v15665_v9 = vshrl.u32 %v2875_v6, 7 }
 0x3b9   : > { %5185 = vmatprep.mubr.bf16.mxu0 %v12369_v4  ;;  %5507 = vmatprep.mubr.bf16.mxu1 %v12369_v4  ;;  %v11582_v4 = vld [vmem:[%s13123_s24 + $0x28] ss:$16 sps:$4 sm:$0xff]  }
 0x3ba   : > { %5275 = vmatpush1.bf16.msra.mxu0 %v10360_v2  ;;  %5597 = vmatpush1.bf16.msra.mxu1 %v10362_v44  ;;  %19510 = vst [vmem:[#allocation83_spill] sm:$0xff] %v15665_v9  ;;  %v2877_v47 = vsub.s32 0, %v15665_v9  ;;  %v2885_v17 = vsub.s32 2, %v15665_v9  ;;  %v11581_v2 = vld [vmem:[%s13123_s24 + $0x24] ss:$16 sps:$4 sm:$0xff]   ;;  %v2881_v1 = vsub.s32 1, %v15665_v9 }
 0x3bb   : > { %5276 = vmatprep.subr.bf16.mxu0 %v10369_v38  ;;  %5598 = vmatprep.subr.bf16.mxu1 %v10371_v28  ;;  %v12382_v44 = vld [vmem:[#allocation2 + $0x8] ss:$16 sps:$4 sm:$0xff]   ;;  %v11579_v28 = vld [vmem:[%s13123_s24 + $0x20] ss:$16 sps:$4 sm:$0xff]  }
 0x3bc   : > { %v15674_v38 = vrot.slane %v2873_v0, %v2877_v47  ;;  %v15677_v62 = vrot.slane %v2873_v0, %v2885_v17 }
 0x3be   : > { %5277 = vmatpush1.bf16.msra.mxu0 %v10368_v19  ;;  %5599 = vmatpush1.bf16.msra.mxu1 %v10370_v3  ;;  %19511 = vst [vmem:[#allocation84_spill] sm:$0xff] %v15674_v38  ;;  %19512 = vst [vmem:[#allocation85_spill] sm:$0xff] %v15677_v62  ;;  %v2889_v19 = vsub.s32 3, %v15665_v9  ;;  %v11590_v3 = vld [vmem:[%s13123_s24 + $0x4c] ss:$16 sps:$4 sm:$0xff]  }
 0x3bf   : > { %5278 = vmatprep.subr.bf16.mxu0 %v10377_v34  ;;  %5600 = vmatprep.subr.bf16.mxu1 %v10379_v24 }
 0x3c0   : > { %5186 = vmatmul.mubr.bf16.gmra.mrb[76].mxu0 %v12370_v56  ;;  %5508 = vmatmul.mubr.bf16.gmra.mrb[76].mxu1 %v12370_v56  ;;  %v15700_v32 = vrot.slane %v2873_v0, %v2889_v19  ;;  %v11611_v19 = vld [vmem:[%s13123_s24 + $0xc4] ss:$16 sps:$4 sm:$0xff]  }
 0x3c1   : > { %5195 = vmatprep.mubr.bf16.mxu0 %v12371_v13  ;;  %5517 = vmatprep.mubr.bf16.mxu1 %v12371_v13 }
 0x3c2   : > { %5279 = vmatpush1.bf16.msra.mxu0 %v10376_v45  ;;  %5601 = vmatpush1.bf16.msra.mxu1 %v10378_v39  ;;  %v11585_v45 = vld [vmem:[%s13123_s24 + $0x40] ss:$16 sps:$4 sm:$0xff]   ;;  %19514 = vst [vmem:[#allocation87_spill] sm:$0xff] %v15700_v32 }
 0x3c3   : > { %5280 = vmatprep.subr.bf16.mxu0 %v10385_v12  ;;  %5602 = vmatprep.subr.bf16.mxu1 %v10387_v31  ;;  %v15693_v12 = vrot.slane %v2873_v0, %v2881_v1  ;;  %v11605_v0 = vld [vmem:[%s13123_s24 + $0xa4] ss:$16 sps:$4 sm:$0xff]   ;;  %v11603_v1 = vld [vmem:[%s13123_s24 + $0xa0] ss:$16 sps:$4 sm:$0xff]  }
 0x3c5   : > { %19513 = vst [vmem:[#allocation86_spill] sm:$0xff] %v15693_v12 }
 0x3c6   : > { %5281 = vmatpush1.bf16.msra.mxu0 %v10384_v16  ;;  %5603 = vmatpush1.bf16.msra.mxu1 %v10386_v49  ;;  %v12384_v49 = vld [vmem:[#allocation2 + $0x28] ss:$16 sps:$4 sm:$0xff]  }
 0x3c7   : > { %5282 = vmatprep.subr.bf16.mxu0 %v10393_v7  ;;  %5604 = vmatprep.subr.bf16.mxu1 %v10395_v57  ;;  %v11596_v7 = vld [vmem:[%s13123_s24 + $0x6c] ss:$16 sps:$4 sm:$0xff]  }
 0x3c8   : > { %5196 = vmatmul.mubr.bf16.gmra.mrb[80].mxu0 %v12372_v59  ;;  %5518 = vmatmul.mubr.bf16.gmra.mrb[80].mxu1 %v12372_v59 }
 0x3c9   : > { %5205 = vmatprep.mubr.bf16.mxu0 %v12373_v30  ;;  %5527 = vmatprep.mubr.bf16.mxu1 %v12373_v30  ;;  %v11602_v30 = vld [vmem:[%s13123_s24 + $0x8c] ss:$16 sps:$4 sm:$0xff]  }
 0x3ca   : > { %5283 = vmatpush1.bf16.msra.mxu0 %v10392_v52  ;;  %5605 = vmatpush1.bf16.msra.mxu1 %v10394_v18  ;;  %v11594_v52 = vld [vmem:[%s13123_s24 + $0x68] ss:$16 sps:$4 sm:$0xff]   ;;  %v11599_v18 = vld [vmem:[%s13123_s24 + $0x84] ss:$16 sps:$4 sm:$0xff]  }
 0x3cb   : > { %5284 = vmatprep.subr.bf16.mxu0 %v10401_v33  ;;  %5606 = vmatprep.subr.bf16.mxu1 %v10403_v37 }
 0x3ce   : > { %5285 = vmatpush1.bf16.msra.mxu0 %v10400_v51  ;;  %5607 = vmatpush1.bf16.msra.mxu1 %v10402_v46 }
 0x3cf   : > { %8377 = vmatprep.subr.bf16.mxu0 %v11575_v11  ;;  %9021 = vmatprep.subr.bf16.mxu1 %v11578_v63 }
 0x3d0   : > { %5206 = vmatmul.mubr.bf16.gmra.mrb[84].mxu0 %v12374_v42  ;;  %5528 = vmatmul.mubr.bf16.gmra.mrb[84].mxu1 %v12374_v42 }
 0x3d1   : > { %5215 = vmatprep.mubr.bf16.mxu0 %v12375_v8  ;;  %5537 = vmatprep.mubr.bf16.mxu1 %v12375_v8  ;;  %v11597_v8 = vld [vmem:[%s13123_s24 + $0x80] ss:$16 sps:$4 sm:$0xff]  }
 0x3d8   : > { %5216 = vmatmul.mubr.bf16.gmra.mrb[88].mxu0 %v12376_v14  ;;  %5538 = vmatmul.mubr.bf16.gmra.mrb[88].mxu1 %v12376_v14 }
 0x3d9   : > { %5225 = vmatprep.mubr.bf16.mxu0 %v12377_v21  ;;  %5547 = vmatprep.mubr.bf16.mxu1 %v12377_v21 }
 0x3e0   : > { %5226 = vmatmul.mubr.bf16.gmra.mrb[92].mxu0 %v12378_v23  ;;  %5548 = vmatmul.mubr.bf16.gmra.mrb[92].mxu1 %v12378_v23 }
 0x3e1   : > { %5235 = vmatprep.mubr.bf16.mxu0 %v12379_v55  ;;  %5557 = vmatprep.mubr.bf16.mxu1 %v12379_v55 }
 0x3e8   : > { %5236 = vmatmul.mubr.bf16.gmra.mrb[96].mxu0 %v12380_v26  ;;  %5558 = vmatmul.mubr.bf16.gmra.mrb[96].mxu1 %v12380_v26  ;;  %v11600_v26 = vld [vmem:[%s13123_s24 + $0x88] ss:$16 sps:$4 sm:$0xff]  }
 0x3e9   : > { %5245 = vmatprep.mubr.bf16.mxu0 %v15504_v25  ;;  %5567 = vmatprep.mubr.bf16.mxu1 %v15504_v25  ;;  %v11576_v25 = vld [vmem:[%s13123_s24 + $0x8] ss:$16 sps:$4 sm:$0xff]  }
 0x3f0   : > { %5246 = vmatmul.mubr.bf16.gmra.mrb[100].mxu0 %v15508_v50  ;;  %5568 = vmatmul.mubr.bf16.gmra.mrb[100].mxu1 %v15508_v50  ;;  %v11584_v50 = vld [vmem:[%s13123_s24 + $0x2c] ss:$16 sps:$4 sm:$0xff]  }
 0x3f1   : > { %5286 = vmatprep.mubr.bf16.mxu0 %v12381_v61  ;;  %5608 = vmatprep.mubr.bf16.mxu1 %v12381_v61 }
 0x3f8   : > { %5287 = vmatmul.mubr.bf16.vlgmr.msra.gmra.mrb[52].mxu0 %v12382_v44  ;;  %5609 = vmatmul.mubr.bf16.vlgmr.msra.gmra.mrb[52].mxu1 %v12382_v44  ;;  %v11608_v44 = vld [vmem:[%s13123_s24 + $0xac] ss:$16 sps:$4 sm:$0xff]  }
 0x3f9   : > { %8378 = vmatpush1.bf16.msra.mxu0 %v11573_v58  ;;  %9022 = vmatpush1.bf16.msra.mxu1 %v11576_v25 }
 0x3fa   : > { %5296 = vmatprep.mubr.bf16.mxu0 %v12383_v35  ;;  %5618 = vmatprep.mubr.bf16.mxu1 %v12383_v35 }
 0x3fb   : > { %v4644_v29 = vpop.f32.mrb[0].mxu0  ;;  %8379 = vmatprep.subr.bf16.mxu0 %v11581_v2  ;;  %v4966_v24 = vpop.f32.mrb[0].mxu1  ;;  %9023 = vmatprep.subr.bf16.mxu1 %v11584_v50  ;;  %v12386_v2 = vld [vmem:[#allocation2 + $0x48] ss:$16 sps:$4 sm:$0xff]  }
 0x3fc   : > { %v15686_v34 = vadd.f32 %v4644_v29, %v15674_v38  ;;  %v4646_v10 = vpop.f32.mrb[1].mxu0  ;;  %v15689_v48 = vadd.f32 %v4966_v24, %v15677_v62  ;;  %v4968_v60 = vpop.f32.mrb[1].mxu1  ;;  %v11606_v29 = vld [vmem:[%s13123_s24 + $0xa8] ss:$16 sps:$4 sm:$0xff]  }
 0x3fd   : > { %v4648_v20 = vpop.f32.mrb[2].mxu0  ;;  %8380 = vmatpush1.bf16.msra.mxu0 %v11579_v28  ;;  %v4970_v31 = vpop.f32.mrb[2].mxu1  ;;  %9024 = vmatpush1.bf16.msra.mxu1 %v11582_v4  ;;  %v15710_v54 = vadd.f32 %v4646_v10, %v15693_v12  ;;  %v15715_v33 = vadd.f32 %v4968_v60, %v15700_v32  ;;  %v12387_v28 = vld [vmem:[#allocation2 + $0x6c] ss:$16 sps:$4 sm:$0xff]  }
 0x3fe   : > { %v5937_v39 = vmul.f32 0.70710677, %v15686_v34  ;;  %v15696_v56 = vadd.f32 %v4648_v20, %v15674_v38  ;;  %v4650_v27 = vpop.f32.mrb[3].mxu0  ;;  %8381 = vmatprep.subr.bf16.mxu0 %v11587_v22  ;;  %v5939_v13 = vmul.f32 0.70710677, %v15689_v48  ;;  %9025 = vmatprep.subr.bf16.mxu1 %v11590_v3  ;;  %v4972_v16 = vpop.f32.mrb[3].mxu1  ;;  %v15706_v5 = vadd.f32 %v4970_v31, %v15677_v62 }
 0x3ff   : > { %v15720_v51 = vadd.f32 %v4650_v27, %v15693_v12  ;;  %v15723_v11 = vadd.f32 %v4972_v16, %v15700_v32  ;;  %v5938_v14 = vmul.f32 0.70710677, %v15710_v54  ;;  %v5940_v6 = vmul.f32 0.70710677, %v15715_v33  ;;  %v11614_v60 = vld [vmem:[%s13123_s24 + $0xcc] ss:$16 sps:$4 sm:$0xff]  }
 0x400   : > { %11957 = verf.f32 %v5937_v39  ;;  %5297 = vmatmul.mubr.bf16.gmra.mrb[56].mxu0 %v12384_v49  ;;  %v5945_v57 = vmul.f32 0.70710677, %v15696_v56  ;;  %5619 = vmatmul.mubr.bf16.gmra.mrb[56].mxu1 %v12384_v49  ;;  %v5947_v59 = vmul.f32 0.70710677, %v15706_v5  ;;  %v5737_v20 = vmul.f32 0.5, %v15686_v34 }
 0x401   : > { %11959 = verf.f32 %v5939_v13  ;;  %8382 = vmatpush1.bf16.msra.mxu0 %v11585_v45  ;;  %9026 = vmatpush1.bf16.msra.mxu1 %v11588_v36  ;;  %v5946_v17 = vmul.f32 0.70710677, %v15720_v51  ;;  %v5948_v50 = vmul.f32 0.70710677, %v15723_v11  ;;  %v11609_v36 = vld [vmem:[%s13123_s24 + $0xc0] ss:$16 sps:$4 sm:$0xff]  }
 0x402   : > { %5306 = vmatprep.mubr.bf16.mxu0 %v12385_v41  ;;  %5628 = vmatprep.mubr.bf16.mxu1 %v12385_v41  ;;  %11961 = verf.f32 %v5945_v57 }
 0x403   : > { %v4654_v37 = vpop.f32.mrb[4].mxu0  ;;  %8383 = vmatprep.subr.bf16.mxu0 %v11593_v15  ;;  %v4976_v46 = vpop.f32.mrb[4].mxu1  ;;  %9027 = vmatprep.subr.bf16.mxu1 %v11596_v7  ;;  %11963 = verf.f32 %v5947_v59  ;;  %v5739_v15 = vmul.f32 0.5, %v15689_v48  ;;  %v11612_v7 = vld [vmem:[%s13123_s24 + $0xc8] ss:$16 sps:$4 sm:$0xff]  }
 0x404   : > { %v4656_v63 = vpop.f32.mrb[5].mxu0  ;;  %v4978_v42 = vpop.f32.mrb[5].mxu1  ;;  %v15728_v21 = vadd.f32 %v4654_v37, %v15674_v38  ;;  %v15733_v61 = vadd.f32 %v4976_v46, %v15677_v62  ;;  %11965 = verf.f32 %v5938_v14  ;;  %v5745_v37 = vmul.f32 0.5, %v15696_v56  ;;  %v11620_v56 = vld [vmem:[%s13123_s24 + $0xec] ss:$16 sps:$4 sm:$0xff]  }
 0x405   : > { %8384 = vmatpush1.bf16.msra.mxu0 %v11591_v43  ;;  %v4658_v23 = vpop.f32.mrb[6].mxu0  ;;  %v4980_v55 = vpop.f32.mrb[6].mxu1  ;;  %9028 = vmatpush1.bf16.msra.mxu1 %v11594_v52  ;;  %v15740_v25 = vadd.f32 %v4656_v63, %v15693_v12  ;;  %v15747_v22 = vadd.f32 %v4978_v42, %v15700_v32  ;;  %11967 = verf.f32 %v5940_v6  ;;  %v5747_v46 = vmul.f32 0.5, %v15706_v5  ;;  %v11617_v42 = vld [vmem:[%s13123_s24 + $0xe4] ss:$16 sps:$4 sm:$0xff]  }
 0x406   : > { %8385 = vmatprep.subr.bf16.mxu0 %v11599_v18  ;;  %v4660_v47 = vpop.f32.mrb[7].mxu0  ;;  %v15735_v58 = vpop.f32.mrb[7].mxu1  ;;  %9029 = vmatprep.subr.bf16.mxu1 %v11602_v30  ;;  %v5953_v4 = vmul.f32 0.70710677, %v15728_v21  ;;  %v5955_v24 = vmul.f32 0.70710677, %v15733_v61  ;;  %11969 = verf.f32 %v5946_v17  ;;  %v15756_v39 = vadd.f32 %v4658_v23, %v15674_v38 }
 0x407   : > { %v5954_v45 = vmul.f32 0.70710677, %v15740_v25  ;;  %11971 = verf.f32 %v5948_v50  ;;  %v15765_v16 = vadd.f32 %v4980_v55, %v15677_v62  ;;  %v5956_v41 = vmul.f32 0.70710677, %v15747_v22  ;;  %v12388_v55 = vld [vmem:[#allocation2 + $0x68] ss:$16 sps:$4 sm:$0xff]  }
 0x408   : > { %5307 = vmatmul.mubr.bf16.gmra.mrb[60].mxu0 %v12386_v2  ;;  %5629 = vmatmul.mubr.bf16.gmra.mrb[60].mxu1 %v12386_v2  ;;  %11973 = verf.f32 %v5953_v4  ;;  %v15774_v52 = vadd.f32 %v4660_v47, %v15693_v12  ;;  %v5961_v14 = vmul.f32 0.70710677, %v15756_v39  ;;  %v15788_v23 = vadd.f32 %v15735_v58, %v15700_v32  ;;  %v12389_v47 = vld [vmem:[#allocation2 + $0x8c] ss:$16 sps:$4 sm:$0xff]   ;;  %v11615_v2 = vld [vmem:[%s13123_s24 + $0xe0] ss:$16 sps:$4 sm:$0xff]  }
 0x409   : > { %5316 = vmatprep.mubr.bf16.mxu0 %v12387_v28  ;;  %5638 = vmatprep.mubr.bf16.mxu1 %v12387_v28  ;;  %11975 = verf.f32 %v5955_v24  ;;  %v5963_v6 = vmul.f32 0.70710677, %v15765_v16 }
 0x40a   : > { %v11958_v35 = vpop.eup %11957  ;;  %8386 = vmatpush1.bf16.msra.mxu0 %v11597_v8  ;;  %9030 = vmatpush1.bf16.msra.mxu1 %v11600_v26  ;;  %11977 = verf.f32 %v5954_v45  ;;  %v5962_v58 = vmul.f32 0.70710677, %v15774_v52 }
 0x40b   : > { %v11960_v3 = vpop.eup %11959  ;;  %v4664_v10 = vpop.f32.mrb[8].mxu0  ;;  %8387 = vmatprep.subr.bf16.mxu0 %v11605_v0  ;;  %9031 = vmatprep.subr.bf16.mxu1 %v11608_v44  ;;  %v6337_v13 = vadd.f32 1.0, %v11958_v35  ;;  %11979 = verf.f32 %v5956_v41  ;;  %v11623_v35 = vld [vmem:[%s13123_s24 + $0x104] ss:$16 sps:$4 sm:$0xff]   ;;  %v5740_v41 = vmul.f32 0.5, %v15715_v33 }
 0x40c   : > { %v15758_v31 = vpop.f32.mrb[8].mxu1  ;;  %v15760_v27 = vpop.f32.mrb[9].mxu0  ;;  %v6339_v43 = vadd.f32 1.0, %v11960_v3  ;;  %v15797_v50 = vadd.f32 %v4664_v10, %v15674_v38  ;;  %11981 = verf.f32 %v5961_v14  ;;  %v11621_v10 = vld [vmem:[%s13123_s24 + $0x100] ss:$16 sps:$4 sm:$0xff]   ;;  %v15841_v14 = vmul.f32 0.5, %v15733_v61 }
 0x40d   : > { %v15767_v34 = vpop.f32.mrb[9].mxu1  ;;  %v15769_v49 = vpop.f32.mrb[10].mxu0  ;;  %v6537_v5 = vmul.f32 %v6337_v13, %v5737_v20  ;;  %11983 = verf.f32 %v5963_v6  ;;  %v15814_v45 = vadd.f32 %v15758_v31, %v15677_v62  ;;  %v15853_v61 = vmul.f32 0.5, %v15747_v22 }
 0x40e   : > { %v11962_v57 = vpop.eup %11961  ;;  %v15776_v18 = vpop.f32.mrb[10].mxu1  ;;  %8388 = vmatpush1.bf16.msra.mxu0 %v11603_v1  ;;  %9032 = vmatpush1.bf16.msra.mxu1 %v11606_v29  ;;  %v6539_v0 = vmul.f32 %v6339_v43, %v5739_v15  ;;  %v11618_v1 = vld [vmem:[%s13123_s24 + $0xe8] ss:$16 sps:$4 sm:$0xff]   ;;  %v5738_v43 = vmul.f32 0.5, %v15710_v54  ;;  %11985 = verf.f32 %v5962_v58  ;;  %v15835_v54 = vmul.f32 0.5, %v15728_v21 }
 0x40f   : > { %v15778_v48 = vpop.f32.mrb[11].mxu0  ;;  %v11964_v59 = vpop.eup %11963  ;;  %v6345_v30 = vadd.f32 1.0, %v11962_v57  ;;  %8389 = vmatprep.subr.bf16.mxu0 %v11611_v19  ;;  %9033 = vmatprep.subr.bf16.mxu1 %v11614_v60  ;;  %v5964_v19 = vmul.f32 0.70710677, %v15788_v23  ;;  %v11626_v60 = vld [vmem:[%s13123_s24 + $0x10c] ss:$16 sps:$4 sm:$0xff]   ;;  %v15868_v22 = vadd.f32 %v15767_v34, %v15700_v32 }
 0x410   : > { %v15782_v63 = vpop.f32.mrb[11].mxu1  ;;  %v6347_v8 = vadd.f32 1.0, %v11964_v59  ;;  %5317 = vmatmul.mubr.bf16.gmra.mrb[64].mxu0 %v12388_v55  ;;  %5639 = vmatmul.mubr.bf16.gmra.mrb[64].mxu1 %v12388_v55  ;;  %v11966_v4 = vpop.eup %11965  ;;  %v11624_v15 = vld [vmem:[%s13123_s24 + $0x108] ss:$16 sps:$4 sm:$0xff]   ;;  %v15825_v59 = vmul.f32 0.5, %v15720_v51  ;;  %v15844_v55 = vmul.f32 0.5, %v15740_v25 }
 0x411   : > { %v6545_v26 = vmul.f32 %v6345_v30, %v5745_v37  ;;  %5326 = vmatprep.mubr.bf16.mxu0 %v12389_v47  ;;  %5648 = vmatprep.mubr.bf16.mxu1 %v12389_v47  ;;  %v11968_v20 = vpop.eup %11967  ;;  %v5969_v33 = vmul.f32 0.70710677, %v15797_v50  ;;  %11987 = verf.f32 %v5964_v19  ;;  %v12390_v21 = vld [vmem:[#allocation2 + $0x88] ss:$16 sps:$4 sm:$0xff]   ;;  %v15856_v25 = vmul.f32 0.5, %v15756_v39 }
 0x412   : > { %v6547_v17 = vmul.f32 %v6347_v8, %v5747_v46  ;;  %8390 = vmatpush1.bf16.msra.mxu0 %v11609_v36  ;;  %9034 = vmatpush1.bf16.msra.mxu1 %v11612_v7  ;;  %v11629_v7 = vld [vmem:[%s13123_s24 + $0x124] ss:$16 sps:$4 sm:$0xff]   ;;  %v11970_v57 = vpop.eup %11969  ;;  %v6338_v46 = vadd.f32 1.0, %v11966_v4  ;;  %v6340_v6 = vadd.f32 1.0, %v11968_v20  ;;  %v5971_v47 = vmul.f32 0.70710677, %v15814_v45 }
 0x413   : > { %v15794_v44 = vpack.c.bf16 %v6545_v26, %v6537_v5  ;;  %v15799_v28 = vpop.f32.mrb[12].mxu0  ;;  %8391 = vmatprep.subr.bf16.mxu0 %v11617_v42  ;;  %v15806_v3 = vpop.f32.mrb[12].mxu1  ;;  %9035 = vmatprep.subr.bf16.mxu1 %v11620_v56  ;;  %v15832_v42 = vmul.f32 0.5, %v15723_v11  ;;  %v15848_v11 = vadd.f32 %v15760_v27, %v15693_v12  ;;  %v11627_v56 = vld [vmem:[%s13123_s24 + $0x120] ss:$16 sps:$4 sm:$0xff]   ;;  %v6346_v58 = vadd.f32 1.0, %v11970_v57 }
 0x414   : > { %v15803_v29 = vpack.c.bf16 %v6547_v17, %v6539_v0  ;;  %v15808_v24 = vpop.f32.mrb[13].mxu0  ;;  %v15816_v36 = vpop.f32.mrb[13].mxu1  ;;  %v11632_v5 = vld [vmem:[%s13123_s24 + $0x12c] ss:$16 sps:$4 sm:$0xff]   ;;  %v11630_v27 = vld [vmem:[%s13123_s24 + $0x128] ss:$16 sps:$4 sm:$0xff]   ;;  %11989 = verf.f32 %v5969_v33  ;;  %v10725_v57 = vadd.f32 %v15769_v49, %v15674_v38  ;;  %v15891_v33 = vadd.f32 %v15776_v18, %v15677_v62 }
 0x415   : > { %19515 = vst [vmem:[#allocation88_spill] sm:$0xff] %v15794_v44  ;;  %v15818_v13 = vpop.f32.mrb[14].mxu0  ;;  %v15827_v37 = vpop.f32.mrb[14].mxu1  ;;  %v12391_v0 = vld [vmem:[#allocation2 + $0xac] ss:$16 sps:$4 sm:$0xff]   ;;  %v15877_v34 = vmul.f32 0.5, %v15788_v23  ;;  %11991 = verf.f32 %v5971_v47 }
 0x416   : > { %19516 = vst [vmem:[#allocation89_spill] sm:$0xff] %v15803_v29  ;;  %v15829_v30 = vpop.f32.mrb[15].mxu0  ;;  %8392 = vmatpush1.bf16.msra.mxu0 %v11615_v2  ;;  %v11972_v31 = vpop.eup %11971  ;;  %9036 = vmatpush1.bf16.msra.mxu1 %v11618_v1  ;;  %v15861_v2 = vmul.f32 0.5, %v15765_v16  ;;  %v15864_v1 = vmul.f32 0.5, %v15774_v52  ;;  %v11635_v39 = vld [vmem:[%s13123_s24 + $0x144] ss:$16 sps:$4 sm:$0xff]  }
 0x417   : > { %v15838_v51 = vpop.f32.mrb[15].mxu1  ;;  %8393 = vmatprep.subr.bf16.mxu0 %v11623_v35  ;;  %v11974_v8 = vpop.eup %11973  ;;  %9037 = vmatprep.subr.bf16.mxu1 %v11626_v60  ;;  %v15871_v35 = vmul.f32 %v6338_v46, %v5738_v43  ;;  %v6348_v4 = vadd.f32 1.0, %v11972_v31  ;;  %v11638_v16 = vld [vmem:[%s13123_s24 + $0x14c] ss:$16 sps:$4 sm:$0xff]   ;;  %v11633_v46 = vld [vmem:[%s13123_s24 + $0x140] ss:$16 sps:$4 sm:$0xff]  }
 0x418   : > { %5327 = vmatmul.mubr.bf16.gmra.mrb[68].mxu0 %v12390_v21  ;;  %v11976_v26 = vpop.eup %11975  ;;  %5649 = vmatmul.mubr.bf16.gmra.mrb[68].mxu1 %v12390_v21  ;;  %v6353_v19 = vadd.f32 1.0, %v11974_v8  ;;  %v11636_v21 = vld [vmem:[%s13123_s24 + $0x148] ss:$16 sps:$4 sm:$0xff]   ;;  %v11641_v29 = vld [vmem:[%s13123_s24 + $0x164] ss:$16 sps:$4 sm:$0xff]  }
 0x419   : > { %5336 = vmatprep.mubr.bf16.mxu0 %v12391_v0  ;;  %v11978_v17 = vpop.eup %11977  ;;  %5658 = vmatprep.mubr.bf16.mxu1 %v12391_v0  ;;  %19517 = vst [vmem:[#allocation90_spill] sm:$0xff] %v15871_v35  ;;  %v6355_v20 = vadd.f32 1.0, %v11976_v26  ;;  %v15899_v26 = vmul.f32 %v6346_v58, %v15825_v59  ;;  %v15920_v58 = vmul.f32 0.5, %v15814_v45  ;;  %v11639_v45 = vld [vmem:[%s13123_s24 + $0x160] ss:$16 sps:$4 sm:$0xff]  }
 0x41a   : > { %8394 = vmatpush1.bf16.msra.mxu0 %v11621_v10  ;;  %9038 = vmatpush1.bf16.msra.mxu1 %v11624_v15  ;;  %v11980_v52 = vpop.eup %11979  ;;  %v5970_v10 = vmul.f32 0.70710677, %v15848_v11  ;;  %v15887_v15 = vmul.f32 %v6340_v6, %v5740_v41  ;;  %v5972_v41 = vmul.f32 0.70710677, %v15868_v22  ;;  %v15907_v6 = vadd.f32 %v15778_v48, %v15693_v12 }
 0x41b   : > { %v15873_v60 = vpop.f32.mrb[16].mxu0  ;;  %8395 = vmatprep.subr.bf16.mxu0 %v11629_v7  ;;  %v15882_v43 = vpop.f32.mrb[16].mxu1  ;;  %9039 = vmatprep.subr.bf16.mxu1 %v11632_v5  ;;  %v6354_v7 = vadd.f32 1.0, %v11978_v17  ;;  %19519 = vst [vmem:[#allocation92_spill] sm:$0xff] %v15899_v26  ;;  %v15902_v5 = vmul.f32 0.5, %v15797_v50  ;;  %v15914_v17 = vmul.f32 %v6348_v4, %v15832_v42  ;;  %v15917_v59 = vmul.f32 %v6353_v19, %v15835_v54 }
 0x41c   : > { %v15884_v31 = vpop.f32.mrb[17].mxu0  ;;  %19518 = vst [vmem:[#allocation91_spill] sm:$0xff] %v15887_v15  ;;  %v15893_v23 = vpop.f32.mrb[17].mxu1  ;;  %v6356_v50 = vadd.f32 1.0, %v11980_v52  ;;  %11993 = verf.f32 %v5970_v10  ;;  %v5977_v42 = vmul.f32 0.70710677, %v10725_v57  ;;  %v15930_v54 = vadd.f32 %v15782_v63, %v15700_v32 }
 0x41d   : > { %v15895_v8 = vpop.f32.mrb[18].mxu0  ;;  %v11982_v49 = vpop.eup %11981  ;;  %19520 = vst [vmem:[#allocation93_spill] sm:$0xff] %v15914_v17  ;;  %19521 = vst [vmem:[#allocation94_spill] sm:$0xff] %v15917_v59  ;;  %v12392_v4 = vld [vmem:[#allocation2 + $0xa8] ss:$16 sps:$4 sm:$0xff]   ;;  %11995 = verf.f32 %v5972_v41 }
 0x41e   : > { %v15909_v18 = vpop.f32.mrb[18].mxu1  ;;  %v15911_v47 = vpop.f32.mrb[19].mxu0  ;;  %8396 = vmatpush1.bf16.msra.mxu0 %v11627_v56  ;;  %9040 = vmatpush1.bf16.msra.mxu1 %v11630_v27  ;;  %v15926_v56 = vmul.f32 %v6355_v20, %v15841_v14  ;;  %v11644_v19 = vld [vmem:[%s13123_s24 + $0x16c] ss:$16 sps:$4 sm:$0xff]   ;;  %v15935_v27 = vmul.f32 %v6354_v7, %v15844_v55  ;;  %v15938_v14 = vmul.f32 0.5, %v15848_v11  ;;  %v15948_v55 = vadd.f32 %v15799_v28, %v15674_v38 }
 0x41f   : > { %v11984_v0 = vpop.eup %11983  ;;  %v15922_v48 = vpop.f32.mrb[19].mxu1  ;;  %8397 = vmatprep.subr.bf16.mxu0 %v11635_v39  ;;  %9041 = vmatprep.subr.bf16.mxu1 %v11638_v16  ;;  %v6361_v39 = vadd.f32 1.0, %v11982_v49  ;;  %v5979_v52 = vmul.f32 0.70710677, %v15891_v33  ;;  %v12393_v20 = vld [vmem:[#allocation2 + $0xcc] ss:$16 sps:$4 sm:$0xff]   ;;  %v15952_v7 = vmul.f32 %v6356_v50, %v15853_v61  ;;  %11997 = verf.f32 %v5977_v42 }
 0x420   : > { %v11986_v9 = vpop.eup %11985  ;;  %19522 = vst [vmem:[#allocation95_spill] sm:$0xff] %v15926_v56  ;;  %5337 = vmatmul.mubr.bf16.gmra.mrb[72].mxu0 %v12392_v4  ;;  %19523 = vst [vmem:[#allocation96_spill] sm:$0xff] %v15935_v27  ;;  %5659 = vmatmul.mubr.bf16.gmra.mrb[72].mxu1 %v12392_v4  ;;  %v11642_v63 = vld [vmem:[%s13123_s24 + $0x168] ss:$16 sps:$4 sm:$0xff]   ;;  %v15943_v16 = vmul.f32 0.5, %v15868_v22  ;;  %v6363_v49 = vadd.f32 1.0, %v11984_v0  ;;  %v15956_v22 = vadd.f32 %v15806_v3, %v15677_v62 }
 0x421   : > { %5346 = vmatprep.mubr.bf16.mxu0 %v12393_v20  ;;  %v11988_v10 = vpop.eup %11987  ;;  %v5978_v56 = vmul.f32 0.70710677, %v15907_v6  ;;  %5668 = vmatprep.mubr.bf16.mxu1 %v12393_v20  ;;  %v11647_v11 = vld [vmem:[%s13123_s24 + $0x184] ss:$16 sps:$4 sm:$0xff]   ;;  %19524 = vst [vmem:[#allocation97_spill] sm:$0xff] %v15952_v7  ;;  %v6362_v4 = vadd.f32 1.0, %v11986_v9  ;;  %v15966_v61 = vadd.f32 %v15808_v24, %v15693_v12  ;;  %11999 = verf.f32 %v5979_v52 }
 0x422   : > { %8398 = vmatpush1.bf16.msra.mxu0 %v11633_v46  ;;  %9042 = vmatpush1.bf16.msra.mxu1 %v11636_v21  ;;  %v11650_v17 = vld [vmem:[%s13123_s24 + $0x18c] ss:$16 sps:$4 sm:$0xff]   ;;  %v15961_v28 = vmul.f32 0.5, %v10725_v57  ;;  %v5980_v46 = vmul.f32 0.70710677, %v15930_v54  ;;  %v11990_v21 = vpop.eup %11989  ;;  %v6364_v57 = vadd.f32 1.0, %v11988_v10  ;;  %v15978_v50 = vadd.f32 %v15816_v36, %v15700_v32 }
 0x423   : > { %v15958_v41 = vpop.f32.mrb[20].mxu0  ;;  %8399 = vmatprep.subr.bf16.mxu0 %v11641_v29  ;;  %v15968_v9 = vpop.f32.mrb[20].mxu1  ;;  %9043 = vmatprep.subr.bf16.mxu1 %v11644_v19  ;;  %v11645_v0 = vld [vmem:[%s13123_s24 + $0x180] ss:$16 sps:$4 sm:$0xff]   ;;  %v15974_v29 = vmul.f32 %v6361_v39, %v15856_v25  ;;  %v11648_v20 = vld [vmem:[%s13123_s24 + $0x188] ss:$16 sps:$4 sm:$0xff]   ;;  %12001 = verf.f32 %v5978_v56  ;;  %v15992_v39 = vadd.f32 %v15818_v13, %v15674_v38  ;;  %v15999_v15 = vmul.f32 %v6363_v49, %v15861_v2 }
 0x424   : > { %v15970_v3 = vpop.f32.mrb[21].mxu0  ;;  %v15980_v42 = vpop.f32.mrb[21].mxu1  ;;  %v11653_v7 = vld [vmem:[%s13123_s24 + $0x1a4] ss:$16 sps:$4 sm:$0xff]   ;;  %v15987_v19 = vmul.f32 0.5, %v15891_v33  ;;  %v16002_v33 = vmul.f32 %v6362_v4, %v15864_v1  ;;  %12003 = verf.f32 %v5980_v46  ;;  %v16015_v1 = vadd.f32 %v15829_v30, %v15693_v12 }
 0x425   : > { %19525 = vst [vmem:[#allocation98_spill] sm:$0xff] %v15974_v29  ;;  %v15982_v24 = vpop.f32.mrb[22].mxu0  ;;  %v5985_v25 = vmul.f32 0.70710677, %v15948_v55  ;;  %v15994_v52 = vpop.f32.mrb[22].mxu1  ;;  %19526 = vst [vmem:[#allocation99_spill] sm:$0xff] %v15999_v15  ;;  %v16007_v29 = vadd.f32 %v15827_v37, %v15677_v62  ;;  %v16019_v37 = vmul.f32 %v6364_v57, %v15877_v34  ;;  %v16032_v34 = vadd.f32 %v15838_v51, %v15700_v32 }
 0x426   : > { %v15996_v36 = vpop.f32.mrb[23].mxu0  ;;  %8400 = vmatpush1.bf16.msra.mxu0 %v11639_v45  ;;  %v11992_v10 = vpop.eup %11991  ;;  %19527 = vst [vmem:[#allocation100_spill] sm:$0xff] %v16002_v33  ;;  %v5987_v56 = vmul.f32 0.70710677, %v15956_v22  ;;  %9044 = vmatpush1.bf16.msra.mxu1 %v11642_v63  ;;  %v11656_v59 = vld [vmem:[%s13123_s24 + $0x1ac] ss:$16 sps:$4 sm:$0xff]  }
 0x427   : > { %v16009_v13 = vpop.f32.mrb[23].mxu1  ;;  %8401 = vmatprep.subr.bf16.mxu0 %v11647_v11  ;;  %v6369_v45 = vadd.f32 1.0, %v11990_v21  ;;  %v5986_v2 = vmul.f32 0.70710677, %v15966_v61  ;;  %v12394_v49 = vld [vmem:[#allocation2 + $0xc8] ss:$16 sps:$4 sm:$0xff]   ;;  %9045 = vmatprep.subr.bf16.mxu1 %v11650_v17  ;;  %v11994_v15 = vpop.eup %11993  ;;  %12005 = verf.f32 %v5985_v25 }
 0x428   : > { %5347 = vmatmul.mubr.bf16.gmra.mrb[76].mxu0 %v12394_v49  ;;  %v11651_v4 = vld [vmem:[%s13123_s24 + $0x1a0] ss:$16 sps:$4 sm:$0xff]   ;;  %19528 = vst [vmem:[#allocation101_spill] sm:$0xff] %v16019_v37  ;;  %v16022_v63 = vmul.f32 0.5, %v15907_v6  ;;  %v16025_v11 = vmul.f32 0.5, %v15930_v54  ;;  %5669 = vmatmul.mubr.bf16.gmra.mrb[76].mxu1 %v12394_v49  ;;  %v6371_v17 = vadd.f32 1.0, %v11992_v10  ;;  %12007 = verf.f32 %v5987_v56  ;;  %v11996_v49 = vpop.eup %11995 }
 0x429   : > { %v5988_v46 = vmul.f32 0.70710677, %v15978_v50  ;;  %v12395_v21 = vld [vmem:[#allocation2 + $0xec] ss:$16 sps:$4 sm:$0xff]   ;;  %v11654_v30 = vld [vmem:[%s13123_s24 + $0x1a8] ss:$16 sps:$4 sm:$0xff]   ;;  %v16041_v10 = vadd.f32 %v15873_v60, %v15674_v38  ;;  %12009 = verf.f32 %v5986_v2  ;;  %v16052_v56 = vadd.f32 %v15882_v43, %v15677_v62  ;;  %v11998_v27 = vpop.eup %11997 }
 0x42a   : > { %5356 = vmatprep.mubr.bf16.mxu0 %v12395_v21  ;;  %v5993_v33 = vmul.f32 0.70710677, %v15992_v39  ;;  %5678 = vmatprep.mubr.bf16.mxu1 %v12395_v21  ;;  %v11659_v6 = vld [vmem:[%s13123_s24 + $0x1c4] ss:$16 sps:$4 sm:$0xff]   ;;  %v16036_v54 = vmul.f32 0.5, %v15948_v55  ;;  %v16060_v37 = vmul.f32 0.5, %v15956_v22  ;;  %v16073_v44 = vmul.f32 %v6371_v17, %v15920_v58 }
 0x42b   : > { %8402 = vmatpush1.bf16.msra.mxu0 %v11645_v0  ;;  %v5995_v57 = vmul.f32 0.70710677, %v16007_v29  ;;  %v16043_v25 = vpop.f32.mrb[24].mxu0  ;;  %9046 = vmatpush1.bf16.msra.mxu1 %v11648_v20  ;;  %v11662_v51 = vld [vmem:[%s13123_s24 + $0x1cc] ss:$16 sps:$4 sm:$0xff]   ;;  %v16047_v0 = vmul.f32 %v6369_v45, %v15902_v5  ;;  %v16054_v60 = vpop.f32.mrb[24].mxu1  ;;  %12011 = verf.f32 %v5988_v46  ;;  %v16064_v5 = vadd.f32 %v15884_v31, %v15693_v12 }
 0x42c   : > { %8403 = vmatprep.subr.bf16.mxu0 %v11653_v7  ;;  %v5994_v55 = vmul.f32 0.70710677, %v16015_v1  ;;  %v16056_v21 = vpop.f32.mrb[25].mxu0  ;;  %9047 = vmatprep.subr.bf16.mxu1 %v11656_v59  ;;  %v11657_v7 = vld [vmem:[%s13123_s24 + $0x1c0] ss:$16 sps:$4 sm:$0xff]   ;;  %v6370_v20 = vadd.f32 1.0, %v11994_v15  ;;  %12013 = verf.f32 %v5993_v33  ;;  %v12000_v46 = vpop.eup %11999 }
 0x42d   : > { %19529 = vst [vmem:[#allocation102_spill] sm:$0xff] %v16047_v0  ;;  %v16066_v45 = vpop.f32.mrb[25].mxu1  ;;  %v16068_v2 = vpop.f32.mrb[26].mxu0  ;;  %v11660_v43 = vld [vmem:[%s13123_s24 + $0x1c8] ss:$16 sps:$4 sm:$0xff]   ;;  %19530 = vst [vmem:[#allocation103_spill] sm:$0xff] %v16073_v44  ;;  %12015 = verf.f32 %v5995_v57 }
 0x42e   : > { %v11665_v0 = vld [vmem:[%s13123_s24 + $0x1e4] ss:$16 sps:$4 sm:$0xff]   ;;  %v16076_v15 = vmul.f32 0.5, %v15966_v61  ;;  %v5996_v59 = vmul.f32 0.70710677, %v16032_v34  ;;  %v16079_v22 = vpop.f32.mrb[26].mxu1  ;;  %v12002_v61 = vpop.eup %12001  ;;  %12017 = verf.f32 %v5994_v55  ;;  %v16107_v55 = vadd.f32 %v15895_v8, %v15674_v38 }
 0x42f   : > { %v16081_v31 = vpop.f32.mrb[27].mxu0  ;;  %8404 = vmatpush1.bf16.msra.mxu0 %v11651_v4  ;;  %v6372_v26 = vadd.f32 1.0, %v11996_v49  ;;  %v16084_v35 = vmul.f32 0.5, %v15978_v50  ;;  %v6001_v58 = vmul.f32 0.70710677, %v16041_v10  ;;  %v16087_v17 = vpop.f32.mrb[27].mxu1  ;;  %9048 = vmatpush1.bf16.msra.mxu1 %v11654_v30  ;;  %v16095_v49 = vadd.f32 %v15893_v23, %v15700_v32 }
 0x430   : > { %8405 = vmatprep.subr.bf16.mxu0 %v11659_v6  ;;  %v16090_v33 = vmul.f32 0.5, %v15992_v39  ;;  %v6003_v4 = vmul.f32 0.70710677, %v16052_v56  ;;  %v12396_v50 = vld [vmem:[#allocation2 + $0xe8] ss:$16 sps:$4 sm:$0xff]   ;;  %9049 = vmatprep.subr.bf16.mxu1 %v11662_v51  ;;  %v16099_v30 = vmul.f32 %v6370_v20, %v15938_v14  ;;  %v16102_v6 = vmul.f32 0.5, %v16007_v29  ;;  %v12004_v44 = vpop.eup %12003 }
 0x431   : > { %5357 = vmatmul.mubr.bf16.gmra.mrb[80].mxu0 %v12396_v50  ;;  %v11668_v57 = vld [vmem:[%s13123_s24 + $0x1ec] ss:$16 sps:$4 sm:$0xff]   ;;  %v6002_v39 = vmul.f32 0.70710677, %v16064_v5  ;;  %5679 = vmatmul.mubr.bf16.gmra.mrb[80].mxu1 %v12396_v50  ;;  %v6377_v51 = vadd.f32 1.0, %v11998_v27  ;;  %v6379_v53 = vadd.f32 1.0, %v12000_v46  ;;  %12019 = verf.f32 %v5996_v59  ;;  %v12006_v59 = vpop.eup %12005 }
 0x432   : > { %19531 = vst [vmem:[#allocation104_spill] sm:$0xff] %v16099_v30  ;;  %v12397_v23 = vld [vmem:[#allocation2 + $0x10c] ss:$16 sps:$4 sm:$0xff]   ;;  %v16111_v14 = vadd.f32 %v15909_v18, %v15677_v62  ;;  %v11663_v29 = vld [vmem:[%s13123_s24 + $0x1e0] ss:$16 sps:$4 sm:$0xff]   ;;  %v6378_v30 = vadd.f32 1.0, %v12002_v61  ;;  %12021 = verf.f32 %v6001_v58  ;;  %v16120_v50 = vadd.f32 %v15911_v47, %v15693_v12 }
 0x433   : > { %5366 = vmatprep.mubr.bf16.mxu0 %v12397_v23  ;;  %5688 = vmatprep.mubr.bf16.mxu1 %v12397_v23  ;;  %v11666_v20 = vld [vmem:[%s13123_s24 + $0x1e8] ss:$16 sps:$4 sm:$0xff]   ;;  %v16116_v8 = vmul.f32 0.5, %v16015_v1  ;;  %v16122_v27 = vpop.f32.mrb[28].mxu0  ;;  %v11671_v18 = vld [vmem:[%s13123_s24 + $0x204] ss:$16 sps:$4 sm:$0xff]   ;;  %12023 = verf.f32 %v6003_v4  ;;  %v16131_v1 = vadd.f32 %v15922_v48, %v15700_v32 }
 0x434   : > { %8406 = vmatpush1.bf16.msra.mxu0 %v11657_v7  ;;  %9050 = vmatpush1.bf16.msra.mxu1 %v11660_v43  ;;  %v16126_v7 = vmul.f32 %v6372_v26, %v15943_v16  ;;  %v6004_v46 = vmul.f32 0.70710677, %v16095_v49  ;;  %v16133_v58 = vpop.f32.mrb[28].mxu1  ;;  %v16135_v47 = vpop.f32.mrb[29].mxu0  ;;  %v11674_v61 = vld [vmem:[%s13123_s24 + $0x20c] ss:$16 sps:$4 sm:$0xff]   ;;  %12025 = verf.f32 %v6002_v39 }
 0x435   : > { %8407 = vmatprep.subr.bf16.mxu0 %v11665_v0  ;;  %19533 = vst [vmem:[#allocation106_spill] sm:$0xff] %v16135_v47  ;;  %9051 = vmatprep.subr.bf16.mxu1 %v11668_v57  ;;  %v12008_v43 = vpop.eup %12007  ;;  %v6380_v0 = vadd.f32 1.0, %v12004_v44  ;;  %v16139_v23 = vmul.f32 0.5, %v16032_v34  ;;  %v6009_v26 = vmul.f32 0.70710677, %v16107_v55  ;;  %v16142_v16 = vpop.f32.mrb[29].mxu1  ;;  %v16150_v47 = vmul.f32 %v6379_v53, %v15987_v19 }
 0x436   : > { %19532 = vst [vmem:[#allocation105_spill] sm:$0xff] %v16126_v7  ;;  %19534 = vst [vmem:[#allocation107_spill] sm:$0xff] %v16142_v16  ;;  %v16144_v4 = vpop.f32.mrb[30].mxu0  ;;  %v12010_v48 = vpop.eup %12009  ;;  %v16147_v7 = vmul.f32 %v6377_v51, %v15961_v28  ;;  %v16153_v57 = vmul.f32 0.5, %v16041_v10  ;;  %v6011_v44 = vmul.f32 0.70710677, %v16111_v14  ;;  %12027 = verf.f32 %v6004_v46 }
 0x437   : > { %19535 = vst [vmem:[#allocation108_spill] sm:$0xff] %v16144_v4  ;;  %19537 = vst [vmem:[#allocation110_spill] sm:$0xff] %v16150_v47  ;;  %v16156_v34 = vpop.f32.mrb[30].mxu1  ;;  %v16158_v39 = vpop.f32.mrb[31].mxu0  ;;  %v16161_v4 = vmul.f32 %v6378_v30, %v16022_v63  ;;  %v6385_v40 = vadd.f32 1.0, %v12006_v59  ;;  %v16164_v28 = vmul.f32 0.5, %v16052_v56  ;;  %v16175_v63 = vadd.f32 %v15958_v41, %v15674_v38 }
 0x438   : > { %19536 = vst [vmem:[#allocation109_spill] sm:$0xff] %v16147_v7  ;;  %8408 = vmatpush1.bf16.msra.mxu0 %v11663_v29  ;;  %v12012_v16 = vpop.eup %12011  ;;  %v6010_v53 = vmul.f32 0.70710677, %v16120_v50  ;;  %v16167_v19 = vpop.f32.mrb[31].mxu1  ;;  %9052 = vmatpush1.bf16.msra.mxu1 %v11666_v20  ;;  %v16170_v51 = vmul.f32 0.5, %v16064_v5  ;;  %v16178_v59 = vmul.f32 %v6380_v0, %v16025_v11  ;;  %v6387_v20 = vadd.f32 1.0, %v12008_v43 }
 0x439   : > { %19538 = vst [vmem:[#allocation111_spill] sm:$0xff] %v16161_v4  ;;  %8538 = vmatprep.subr.bf16.mxu0 %v11671_v18  ;;  %v12014_v10 = vpop.eup %12013  ;;  %v6012_v29 = vmul.f32 0.70710677, %v16131_v1  ;;  %v12398_v30 = vld [vmem:[#allocation2 + $0x108] ss:$16 sps:$4 sm:$0xff]   ;;  %9182 = vmatprep.subr.bf16.mxu1 %v11674_v61  ;;  %12029 = verf.f32 %v6009_v26  ;;  %v16182_v5 = vadd.f32 %v15968_v9, %v15677_v62  ;;  %v6386_v47 = vadd.f32 1.0, %v12010_v48 }
 0x43a   : > { %5367 = vmatmul.mubr.bf16.gmra.mrb[84].mxu0 %v12398_v30  ;;  %v12016_v56 = vpop.eup %12015  ;;  %19539 = vst [vmem:[#allocation112_spill] sm:$0xff] %v16178_v59  ;;  %5689 = vmatmul.mubr.bf16.gmra.mrb[84].mxu1 %v12398_v30  ;;  %v12399_v18 = vld [vmem:[#allocation2 + $0x12c] ss:$16 sps:$4 sm:$0xff]   ;;  %v6388_v41 = vadd.f32 1.0, %v12012_v16  ;;  %12031 = verf.f32 %v6011_v44  ;;  %v10736_v61 = vadd.f32 %v15970_v3, %v15693_v12  ;;  %v16187_v11 = vmul.f32 %v6385_v40, %v16036_v54 }
 0x43b   : > { %5376 = vmatprep.mubr.bf16.mxu0 %v12399_v18  ;;  %v12018_v46 = vpop.eup %12017  ;;  %5698 = vmatprep.mubr.bf16.mxu1 %v12399_v18  ;;  %v6393_v43 = vadd.f32 1.0, %v12014_v10  ;;  %12033 = verf.f32 %v6010_v53  ;;  %v16191_v9 = vadd.f32 %v15980_v42, %v15700_v32  ;;  %v16193_v0 = vpop.f32.mrb[32].mxu0  ;;  %v16196_v48 = vmul.f32 0.5, %v16095_v49 }
 0x43c   : > { %19540 = vst [vmem:[#allocation113_spill] sm:$0xff] %v16187_v11  ;;  %v12020_v26 = vpop.eup %12019  ;;  %v16199_v16 = vmul.f32 0.5, %v16107_v55  ;;  %12035 = verf.f32 %v6012_v29  ;;  %v6017_v3 = vmul.f32 0.70710677, %v16175_v63  ;;  %v16202_v40 = vpop.f32.mrb[32].mxu1  ;;  %v16207_v42 = vmul.f32 %v6387_v20, %v16060_v37 }
 0x43d   : > { %v16204_v54 = vpop.f32.mrb[33].mxu0  ;;  %v12022_v44 = vpop.eup %12021  ;;  %v6395_v53 = vadd.f32 1.0, %v12016_v56  ;;  %v6394_v10 = vadd.f32 1.0, %v12018_v46  ;;  %v6019_v30 = vmul.f32 0.70710677, %v16182_v5  ;;  %v16215_v29 = vmul.f32 %v6386_v47, %v16076_v15 }
 0x43e   : > { %19541 = vst [vmem:[#allocation114_spill] sm:$0xff] %v16207_v42  ;;  %v16210_v49 = vpop.f32.mrb[33].mxu1  ;;  %v16212_v18 = vpop.f32.mrb[34].mxu0  ;;  %v16218_v59 = vmul.f32 %v6388_v41, %v16084_v35  ;;  %v16221_v11 = vmul.f32 0.5, %v16111_v14  ;;  %v6018_v37 = vmul.f32 0.70710677, %v10736_v61  ;;  %v16228_v42 = vmul.f32 %v6393_v43, %v16090_v33 }
 0x43f   : > { %v12024_v55 = vpop.eup %12023  ;;  %19542 = vst [vmem:[#allocation115_spill] sm:$0xff] %v16215_v29  ;;  %v16223_v20 = vpop.f32.mrb[34].mxu1  ;;  %v16231_v7 = vmul.f32 0.5, %v16120_v50  ;;  %v6020_v15 = vmul.f32 0.70710677, %v16191_v9  ;;  %v10737_v35 = vadd.f32 %v15982_v24, %v15674_v38  ;;  %v6396_v14 = vadd.f32 1.0, %v12020_v26 }
 0x440   : > { %19543 = vst [vmem:[#allocation116_spill] sm:$0xff] %v16218_v59  ;;  %v16225_v56 = vpop.f32.mrb[35].mxu0  ;;  %v12026_v46 = vpop.eup %12025  ;;  %19544 = vst [vmem:[#allocation117_spill] sm:$0xff] %v16228_v42  ;;  %v16239_v41 = vmul.f32 0.5, %v16131_v1  ;;  %12037 = verf.f32 %v6017_v3  ;;  %v16243_v59 = vadd.f32 %v15994_v52, %v15677_v62  ;;  %v12400_v33 = vld [vmem:[#allocation2 + $0x128] ss:$16 sps:$4 sm:$0xff]   ;;  %v16246_v50 = vmul.f32 %v6395_v53, %v16102_v6 }
 0x441   : > { %v16236_v47 = vpop.f32.mrb[35].mxu1  ;;  %v16249_v43 = vmul.f32 %v6394_v10, %v16116_v8  ;;  %v6401_v24 = vadd.f32 1.0, %v12022_v44  ;;  %12039 = verf.f32 %v6019_v30  ;;  %v12401_v26 = vld [vmem:[#allocation2 + $0x14c] ss:$16 sps:$4 sm:$0xff]   ;;  %v12028_v1 = vpop.eup %12027  ;;  %v6403_v42 = vadd.f32 1.0, %v12024_v55 }
 0x442   : > { %5377 = vmatmul.mubr.bf16.gmra.mrb[88].mxu0 %v12400_v33  ;;  %19545 = vst [vmem:[#allocation118_spill] sm:$0xff] %v16246_v50  ;;  %5699 = vmatmul.mubr.bf16.gmra.mrb[88].mxu1 %v12400_v33  ;;  %v6402_v3 = vadd.f32 1.0, %v12026_v46  ;;  %12041 = verf.f32 %v6018_v37  ;;  %v10738_v52 = vadd.f32 %v15996_v36, %v15693_v12  ;;  %v16254_v6 = vmul.f32 0.5, %v16175_v63 }
 0x443   : > { %19546 = vst [vmem:[#allocation119_spill] sm:$0xff] %v16249_v43  ;;  %5386 = vmatprep.mubr.bf16.mxu0 %v12401_v26  ;;  %5708 = vmatprep.mubr.bf16.mxu1 %v12401_v26  ;;  %v12030_v29 = vpop.eup %12029  ;;  %12043 = verf.f32 %v6020_v15  ;;  %v6025_v8 = vmul.f32 0.70710677, %v10737_v35  ;;  %v10788_v44 = vadd.f32 %v16009_v13, %v15700_v32  ;;  %v16258_v53 = vpop.f32.mrb[36].mxu0  ;;  %v16261_v30 = vmul.f32 %v6396_v14, %v16139_v23 }
 0x444   : > { %v12032_v10 = vpop.eup %12031  ;;  %v16264_v55 = vmul.f32 0.5, %v16182_v5  ;;  %v16266_v36 = vmul.f32 0.5, %v10736_v61  ;;  %v6027_v37 = vmul.f32 0.70710677, %v16243_v59  ;;  %v16269_v63 = vpop.f32.mrb[36].mxu1  ;;  %v16274_v13 = vmul.f32 %v6401_v24, %v16153_v57 }
 0x445   : > { %19547 = vst [vmem:[#allocation120_spill] sm:$0xff] %v16261_v30  ;;  %v16271_v46 = vpop.f32.mrb[37].mxu0  ;;  %v12034_v15 = vpop.eup %12033  ;;  %v6404_v33 = vadd.f32 1.0, %v12028_v1  ;;  %v16277_v26 = vmul.f32 0.5, %v16191_v9  ;;  %v10739_v23 = vadd.f32 %v16043_v25, %v15674_v38  ;;  %v16284_v14 = vmul.f32 %v6403_v42, %v16164_v28 }
 0x446   : > { %19548 = vst [vmem:[#allocation121_spill] sm:$0xff] %v16274_v13  ;;  %v16281_v5 = vpop.f32.mrb[37].mxu1  ;;  %v12036_v61 = vpop.eup %12035  ;;  %v16287_v50 = vmul.f32 %v6402_v3, %v16170_v51  ;;  %v6409_v30 = vadd.f32 1.0, %v12030_v29  ;;  %v6026_v43 = vmul.f32 0.70710677, %v10738_v52  ;;  %v16289_v57 = vmul.f32 0.5, %v10737_v35 }
 0x447   : > { %19549 = vst [vmem:[#allocation122_spill] sm:$0xff] %v16284_v14  ;;  %12045 = verf.f32 %v6025_v8  ;;  %v6028_v24 = vmul.f32 0.70710677, %v10788_v44  ;;  %v10789_v9 = vadd.f32 %v16054_v60, %v15677_v62  ;;  %v16293_v1 = vpop.f32.mrb[38].mxu0  ;;  %v16295_v25 = vpop.f32.mrb[38].mxu1  ;;  %v6411_v13 = vadd.f32 1.0, %v12032_v10 }
 0x448   : > { %19550 = vst [vmem:[#allocation123_spill] sm:$0xff] %v16287_v50  ;;  %v6410_v4 = vadd.f32 1.0, %v12034_v15  ;;  %12047 = verf.f32 %v6027_v37  ;;  %v10740_v28 = vadd.f32 %v16056_v21, %v15693_v12  ;;  %v16299_v51 = vpop.f32.mrb[39].mxu0  ;;  %v16301_v42 = vpop.f32.mrb[39].mxu1  ;;  %v12402_v29 = vld [vmem:[#allocation2 + $0x148] ss:$16 sps:$4 sm:$0xff]   ;;  %v16304_v35 = vmul.f32 %v6404_v33, %v16196_v48 }
 0x449   : > { %v6412_v60 = vadd.f32 1.0, %v12036_v61  ;;  %v6033_v3 = vmul.f32 0.70710677, %v10739_v23  ;;  %v10790_v8 = vadd.f32 %v16066_v45, %v15700_v32  ;;  %v12403_v10 = vld [vmem:[#allocation2 + $0x16c] ss:$16 sps:$4 sm:$0xff]   ;;  %v16309_v21 = vmul.f32 %v6409_v30, %v16199_v16 }
 0x44a   : > { %5387 = vmatmul.mubr.bf16.gmra.mrb[92].mxu0 %v12402_v29  ;;  %19551 = vst [vmem:[#allocation124_spill] sm:$0xff] %v16304_v35  ;;  %5709 = vmatmul.mubr.bf16.gmra.mrb[92].mxu1 %v12402_v29  ;;  %v12038_v37 = vpop.eup %12037  ;;  %v16312_v15 = vmul.f32 0.5, %v16243_v59  ;;  %12049 = verf.f32 %v6026_v43  ;;  %v10741_v48 = vadd.f32 %v16068_v2, %v15674_v38  ;;  %v16316_v61 = vmul.f32 0.5, %v10738_v52  ;;  %v12404_v50 = vld [vmem:[#allocation2 + $0x168] ss:$16 sps:$4 sm:$0xff]  }
 0x44b   : > { %5396 = vmatprep.mubr.bf16.mxu0 %v12403_v10  ;;  %19552 = vst [vmem:[#allocation125_spill] sm:$0xff] %v16309_v21  ;;  %5718 = vmatprep.mubr.bf16.mxu1 %v12403_v10  ;;  %v12040_v33 = vpop.eup %12039  ;;  %v16318_v14 = vmul.f32 0.5, %v10788_v44  ;;  %12051 = verf.f32 %v6028_v24  ;;  %v6035_v45 = vmul.f32 0.70710677, %v10789_v9  ;;  %v16320_v29 = vpop.f32.mrb[40].mxu0  ;;  %v16323_v16 = vmul.f32 %v6411_v13, %v16221_v11 }
 0x44c   : > { %v12042_v35 = vpop.eup %12041  ;;  %v16326_v59 = vmul.f32 %v6410_v4, %v16231_v7  ;;  %v16328_v43 = vmul.f32 0.5, %v10739_v23  ;;  %v6034_v2 = vmul.f32 0.70710677, %v10740_v28  ;;  %v16330_v30 = vpop.f32.mrb[40].mxu1  ;;  %v16333_v44 = vmul.f32 %v6412_v60, %v16239_v41 }
 0x44d   : > { %19553 = vst [vmem:[#allocation126_spill] sm:$0xff] %v16323_v16  ;;  %v12044_v52 = vpop.eup %12043  ;;  %12053 = verf.f32 %v6033_v3  ;;  %v6036_v24 = vmul.f32 0.70710677, %v10790_v8  ;;  %v10791_v10 = vadd.f32 %v16079_v22, %v15677_v62  ;;  %v16337_v21 = vpop.f32.mrb[41].mxu0  ;;  %v6417_v7 = vadd.f32 1.0, %v12038_v37 }
 0x44e   : > { %19554 = vst [vmem:[#allocation127_spill] sm:$0xff] %v16326_v59  ;;  %19555 = vst [vmem:[#allocation128_spill] sm:$0xff] %v16333_v44  ;;  %v16339_v11 = vpop.f32.mrb[41].mxu1  ;;  %v16341_v4 = vmul.f32 0.5, %v10789_v9  ;;  %v6041_v13 = vmul.f32 0.70710677, %v10741_v48  ;;  %v10742_v23 = vadd.f32 %v16081_v31, %v15693_v12  ;;  %12055 = verf.f32 %v6035_v45 }
 0x44f   : > { %19556 = vst [vmem:[#allocation129_spill] sm:$0xff] %v16339_v11  ;;  %v16345_v16 = vpop.f32.mrb[42].mxu0  ;;  %v16347_v41 = vpop.f32.mrb[42].mxu1  ;;  %v6419_v60 = vadd.f32 1.0, %v12040_v33  ;;  %v16349_v3 = vmul.f32 0.5, %v10740_v28  ;;  %v16353_v22 = vadd.f32 %v16087_v17, %v15700_v32  ;;  %v6418_v37 = vadd.f32 1.0, %v12042_v35 }
 0x450   : > { %19557 = vst [vmem:[#allocation130_spill] sm:$0xff] %v16347_v41  ;;  %v16355_v44 = vpop.f32.mrb[43].mxu0  ;;  %v16357_v9 = vpop.f32.mrb[43].mxu1  ;;  %v6420_v59 = vadd.f32 1.0, %v12044_v52  ;;  %12057 = verf.f32 %v6034_v2  ;;  %v16361_v31 = vadd.f32 %v16122_v27, %v15674_v38  ;;  %v16363_v28 = vmul.f32 0.5, %v10790_v8  ;;  %v19562_v52 = vld [vmem:[#allocation106_spill] sm:$0xff] }
 0x451   : > { %19558 = vst [vmem:[#allocation131_spill] sm:$0xff] %v16355_v44  ;;  %19559 = vst [vmem:[#allocation132_spill] sm:$0xff] %v16357_v9  ;;  %v12046_v33 = vpop.eup %12045  ;;  %12059 = verf.f32 %v6036_v24  ;;  %v6043_v45 = vmul.f32 0.70710677, %v10791_v10  ;;  %v16367_v17 = vadd.f32 %v16133_v58, %v15677_v62  ;;  %v19560_v9 = vld [vmem:[#allocation81_spill] sm:$0xff]  ;;  %v16371_v2 = vmul.f32 %v6417_v7, %v16254_v6  ;;  %v19564_v24 = vld [vmem:[#allocation107_spill] sm:$0xff] }
 0x452   : > { %5397 = vmatmul.mubr.bf16.gmra.mrb[96].mxu0 %v12404_v50  ;;  %5719 = vmatmul.mubr.bf16.gmra.mrb[96].mxu1 %v12404_v50  ;;  %v12048_v35 = vpop.eup %12047  ;;  %12061 = verf.f32 %v6041_v13  ;;  %v6042_v27 = vmul.f32 0.70710677, %v10742_v23  ;;  %v16375_v41 = vadd.f32 %v19562_v52, %v15693_v12  ;;  %v16379_v8 = vmul.f32 %v6419_v60, %v16264_v55 }
 0x453   : > { %5406 = vmatprep.mubr.bf16.mxu0 %v19560_v9  ;;  %19561 = vst [vmem:[#allocation81_spill] sm:$0xff] %v16371_v2  ;;  %5728 = vmatprep.mubr.bf16.mxu1 %v19560_v9  ;;  %v16381_v58 = vmul.f32 0.5, %v10741_v48  ;;  %v6044_v50 = vmul.f32 0.70710677, %v16353_v22  ;;  %v16386_v11 = vadd.f32 %v19564_v24, %v15700_v32  ;;  %v16388_v6 = vpop.f32.mrb[44].mxu0  ;;  %v16391_v13 = vmul.f32 %v6418_v37, %v16266_v36  ;;  %v16397_v48 = vpop.f32.mrb[44].mxu1 }
 0x454   : > { %19563 = vst [vmem:[#allocation106_spill] sm:$0xff] %v16379_v8  ;;  %19565 = vst [vmem:[#allocation107_spill] sm:$0xff] %v16388_v6  ;;  %v12050_v7 = vpop.eup %12049  ;;  %v16394_v52 = vmul.f32 %v6420_v59, %v16277_v26  ;;  %v6425_v9 = vadd.f32 1.0, %v12046_v33  ;;  %v6049_v55 = vmul.f32 0.70710677, %v16361_v31  ;;  %v16399_v60 = vpop.f32.mrb[45].mxu0  ;;  %12063 = verf.f32 %v6043_v45 }
 0x455   : > { %19566 = vst [vmem:[#allocation133_spill] sm:$0xff] %v16391_v13  ;;  %v12052_v8 = vpop.eup %12051  ;;  %v6427_v2 = vadd.f32 1.0, %v12048_v35  ;;  %v6051_v24 = vmul.f32 0.70710677, %v16367_v17  ;;  %v19568_v6 = vld [vmem:[#allocation108_spill] sm:$0xff]  ;;  %v16406_v36 = vpop.f32.mrb[45].mxu1  ;;  %12065 = verf.f32 %v6042_v27  ;;  %v16415_v33 = vadd.f32 %v16156_v34, %v15677_v62 }
 0x456   : > { %19567 = vst [vmem:[#allocation134_spill] sm:$0xff] %v16394_v52  ;;  %v16404_v44 = vadd.f32 %v19568_v6, %v15674_v38  ;;  %19569 = vst [vmem:[#allocation108_spill] sm:$0xff] %v16406_v36  ;;  %v16408_v26 = vpop.f32.mrb[46].mxu0  ;;  %v16410_v59 = vmul.f32 0.5, %v10791_v10  ;;  %v6050_v37 = vmul.f32 0.70710677, %v16375_v41  ;;  %12067 = verf.f32 %v6044_v50 }
 0x457   : > { %19570 = vst [vmem:[#allocation135_spill] sm:$0xff] %v16408_v26  ;;  %v16417_v45 = vpop.f32.mrb[46].mxu1  ;;  %v16419_v35 = vpop.f32.mrb[47].mxu0  ;;  %v6426_v6 = vadd.f32 1.0, %v12050_v7  ;;  %v6052_v13 = vmul.f32 0.70710677, %v16386_v11  ;;  %v16424_v10 = vadd.f32 %v16158_v39, %v15693_v12  ;;  %12069 = verf.f32 %v6049_v55 }
 0x458   : > { %19571 = vst [vmem:[#allocation136_spill] sm:$0xff] %v16419_v35  ;;  %v12054_v52 = vpop.eup %12053  ;;  %v16426_v27 = vpop.f32.mrb[47].mxu1  ;;  %v6428_v36 = vadd.f32 1.0, %v12052_v8  ;;  %v16428_v26 = vmul.f32 0.5, %v10742_v23  ;;  %v16432_v34 = vadd.f32 %v16167_v19, %v15700_v32  ;;  %v19573_v35 = vld [vmem:[#allocation82_spill] sm:$0xff]  ;;  %v16436_v50 = vmul.f32 %v6425_v9, %v16289_v57 }
 0x459   : > { %19572 = vst [vmem:[#allocation137_spill] sm:$0xff] %v16426_v27  ;;  %v12056_v7 = vpop.eup %12055  ;;  %12071 = verf.f32 %v6051_v24  ;;  %v6057_v39 = vmul.f32 0.70710677, %v16404_v44  ;;  %v16441_v27 = vadd.f32 %v16193_v0, %v15674_v38  ;;  %v16445_v8 = vmul.f32 %v6427_v2, %v16312_v15 }
 0x45a   : > { %5407 = vmatmul.mubr.bf16.gmra.mrb[100].mxu0 %v19573_v35  ;;  %19574 = vst [vmem:[#allocation82_spill] sm:$0xff] %v16436_v50  ;;  %5729 = vmatmul.mubr.bf16.gmra.mrb[100].mxu1 %v19573_v35  ;;  %v12058_v23 = vpop.eup %12057  ;;  %v16448_v19 = vmul.f32 0.5, %v16353_v22  ;;  %12073 = verf.f32 %v6050_v37  ;;  %v6059_v57 = vmul.f32 0.70710677, %v16415_v33  ;;  %v16452_v55 = vmul.f32 %v6426_v6, %v16316_v61 }
 0x45b   : > { %19575 = vst [vmem:[#allocation138_spill] sm:$0xff] %v16445_v8  ;;  %v12060_v9 = vpop.eup %12059  ;;  %v6433_v24 = vadd.f32 1.0, %v12054_v52  ;;  %12075 = verf.f32 %v6052_v13  ;;  %v6058_v0 = vmul.f32 0.70710677, %v16424_v10  ;;  %v16455_v50 = vpop.f32.mrb[48].mxu0  ;;  %v16458_v15 = vmul.f32 %v6428_v36, %v16318_v14 }
 0x45c   : > { %19576 = vst [vmem:[#allocation139_spill] sm:$0xff] %v16452_v55  ;;  %19577 = vst [vmem:[#allocation140_spill] sm:$0xff] %v16455_v50  ;;  %v12062_v35 = vpop.eup %12061  ;;  %v16461_v22 = vmul.f32 0.5, %v16361_v31  ;;  %v6060_v2 = vmul.f32 0.70710677, %v16432_v34  ;;  %v16466_v37 = vadd.f32 %v16202_v40, %v15677_v62  ;;  %v16468_v61 = vpop.f32.mrb[48].mxu1  ;;  %12077 = verf.f32 %v6057_v39 }
 0x45d   : > { %19578 = vst [vmem:[#allocation141_spill] sm:$0xff] %v16458_v15  ;;  %19579 = vst [vmem:[#allocation142_spill] sm:$0xff] %v16468_v61  ;;  %v16470_v13 = vpop.f32.mrb[49].mxu0  ;;  %v6435_v52 = vadd.f32 1.0, %v12056_v7  ;;  %v6065_v6 = vmul.f32 0.70710677, %v16441_v27  ;;  %v10748_v14 = vadd.f32 %v16204_v54, %v15693_v12  ;;  %12079 = verf.f32 %v6059_v57 }
 0x45e   : > { %19580 = vst [vmem:[#allocation143_spill] sm:$0xff] %v16470_v13  ;;  %v16475_v36 = vpop.f32.mrb[49].mxu1  ;;  %v6434_v31 = vadd.f32 1.0, %v12058_v23  ;;  %v6436_v50 = vadd.f32 1.0, %v12060_v9  ;;  %v10798_v40 = vadd.f32 %v16210_v49, %v15700_v32  ;;  %v12064_v8 = vpop.eup %12063  ;;  %v6441_v15 = vadd.f32 1.0, %v12062_v35 }
 0x45f   : > { %19581 = vst [vmem:[#allocation144_spill] sm:$0xff] %v16475_v36  ;;  %v5851_v61 = vmul.f32 0.5, %v16367_v17  ;;  %12081 = verf.f32 %v6058_v0  ;;  %v10749_v7 = vadd.f32 %v16212_v18, %v15674_v38  ;;  %v4768_v39 = vpop.f32.mrb[50].mxu0  ;;  %v5090_v13 = vpop.f32.mrb[50].mxu1  ;;  %v16483_v54 = vmul.f32 %v6433_v24, %v16328_v43 }
 0x460   : > { %v12066_v55 = vpop.eup %12065  ;;  %v5850_v23 = vmul.f32 0.5, %v16375_v41  ;;  %12083 = verf.f32 %v6060_v2  ;;  %v6067_v57 = vmul.f32 0.70710677, %v16466_v37  ;;  %v4769_v49 = vpop.f32.mrb[51].mxu0  ;;  %v16488_v17 = vmul.f32 %v6435_v52, %v16341_v4 }
 0x461   : > { %v5091_v9 = vpop.f32.mrb[51].mxu1  ;;  %v12068_v35 = vpop.eup %12067  ;;  %v5852_v0 = vmul.f32 0.5, %v16386_v11  ;;  %12085 = verf.f32 %v6065_v6  ;;  %v6066_v18 = vmul.f32 0.70710677, %v10748_v14  ;;  %v16492_v39 = vmul.f32 %v6434_v31, %v16349_v3 }
 0x462   : > { %v12070_v13 = vpop.eup %12069  ;;  %v16495_v43 = vmul.f32 %v6436_v50, %v16363_v28  ;;  %v5857_v41 = vmul.f32 0.5, %v16404_v44  ;;  %v6068_v24 = vmul.f32 0.70710677, %v10798_v40  ;;  %v16499_v49 = vmul.f32 %v6441_v15, %v16381_v58 }
 0x463   : > { %v12072_v2 = vpop.eup %12071  ;;  %v6443_v4 = vadd.f32 1.0, %v12064_v8  ;;  %v5859_v52 = vmul.f32 0.5, %v16415_v33  ;;  %v6073_v11 = vmul.f32 0.70710677, %v10749_v7  ;;  %v6442_v9 = vadd.f32 1.0, %v12066_v55 }
 0x464   : > { %v12074_v6 = vpop.eup %12073  ;;  %v6444_v36 = vadd.f32 1.0, %v12068_v35  ;;  %12087 = verf.f32 %v6067_v57  ;;  %v10799_v3 = vadd.f32 %v16223_v20, %v15677_v62  ;;  %v6449_v50 = vadd.f32 1.0, %v12070_v13 }
 0x465   : > { %v12076_v28 = vpop.eup %12075  ;;  %v5858_v44 = vmul.f32 0.5, %v16424_v10  ;;  %v5860_v31 = vmul.f32 0.5, %v16432_v34  ;;  %12089 = verf.f32 %v6066_v18  ;;  %v6451_v58 = vadd.f32 1.0, %v12072_v2 }
 0x466   : > { %v5865_v8 = vmul.f32 0.5, %v16441_v27  ;;  %12091 = verf.f32 %v6068_v24  ;;  %v10750_v33 = vadd.f32 %v16225_v56, %v15693_v12  ;;  %v12078_v55 = vpop.eup %12077  ;;  %v16510_v15 = vmul.f32 %v6443_v4, %v16410_v59 }
 0x467   : > { %v6450_v57 = vadd.f32 1.0, %v12074_v6  ;;  %12093 = verf.f32 %v6073_v11  ;;  %v10800_v20 = vadd.f32 %v16236_v47, %v15700_v32  ;;  %v12080_v10 = vpop.eup %12079  ;;  %v16515_v34 = vmul.f32 %v6442_v9, %v16428_v26 }
 0x468   : > { %19582 = vst [vmem:[#allocation145_spill] sm:$0xff] %v16510_v15  ;;  %v16518_v35 = vmul.f32 %v6444_v36, %v16448_v19  ;;  %v6452_v27 = vadd.f32 1.0, %v12076_v28  ;;  %v6075_v18 = vmul.f32 0.70710677, %v10799_v3  ;;  %v16521_v56 = vmul.f32 %v6449_v50, %v16461_v22 }
 0x469   : > { %v12082_v13 = vpop.eup %12081  ;;  %v5867_v59 = vmul.f32 0.5, %v16466_v37  ;;  %v5866_v24 = vmul.f32 0.5, %v10748_v14  ;;  %v5868_v2 = vmul.f32 0.5, %v10798_v40  ;;  %v16524_v11 = vmul.f32 %v6451_v58, %v5851_v61 }
 0x46a   : > { %v12084_v4 = vpop.eup %12083  ;;  %v6457_v47 = vadd.f32 1.0, %v12078_v55  ;;  %v5873_v6 = vmul.f32 0.5, %v10749_v7  ;;  %v6074_v26 = vmul.f32 0.70710677, %v10750_v33  ;;  %v16526_v15 = vmul.f32 %v6450_v57, %v5850_v23 }
 0x46b   : > { %19583 = vst [vmem:[#allocation146_spill] sm:$0xff] %v16524_v11  ;;  %v12086_v9 = vpop.eup %12085  ;;  %v6459_v19 = vadd.f32 1.0, %v12080_v10  ;;  %v6076_v36 = vmul.f32 0.70710677, %v10800_v20  ;;  %v10751_v28 = vadd.f32 %v16258_v53, %v15674_v38  ;;  %v16530_v22 = vmul.f32 %v6452_v27, %v5852_v0 }
 0x46c   : > { %v6458_v50 = vadd.f32 1.0, %v12082_v13  ;;  %12095 = verf.f32 %v6075_v18  ;;  %v10801_v37 = vadd.f32 %v16269_v63, %v15677_v62  ;;  %v6460_v61 = vadd.f32 1.0, %v12084_v4 }
 0x46d   : > { %19584 = vst [vmem:[#allocation147_spill] sm:$0xff] %v16530_v22  ;;  %v16534_v14 = vmul.f32 0.5, %v10799_v3  ;;  %v16536_v40 = vmul.f32 0.5, %v10750_v33  ;;  %v10752_v7 = vadd.f32 %v16271_v46, %v15693_v12  ;;  %v16540_v58 = vmul.f32 %v6457_v47, %v5857_v41 }
 0x46e   : > { %v12088_v23 = vpop.eup %12087  ;;  %v6465_v55 = vadd.f32 1.0, %v12086_v9  ;;  %12097 = verf.f32 %v6074_v26  ;;  %v16542_v53 = vmul.f32 0.5, %v10800_v20  ;;  %v16544_v57 = vmul.f32 %v6459_v19, %v5859_v52 }
 0x46f   : > { %v12090_v0 = vpop.eup %12089  ;;  %12099 = verf.f32 %v6076_v36  ;;  %v6081_v63 = vmul.f32 0.70710677, %v10751_v28  ;;  %v10802_v3 = vadd.f32 %v16281_v5, %v15700_v32  ;;  %v16548_v10 = vmul.f32 %v6458_v50, %v5858_v44 }
 0x470   : > { %19585 = vst [vmem:[#allocation148_spill] sm:$0xff] %v16544_v57  ;;  %v12092_v33 = vpop.eup %12091  ;;  %v16550_v27 = vmul.f32 0.5, %v10751_v28  ;;  %v6083_v46 = vmul.f32 0.70710677, %v10801_v37  ;;  %v10753_v41 = vadd.f32 %v16293_v1, %v15674_v38  ;;  %v16554_v20 = vmul.f32 %v6460_v61, %v5860_v31  ;;  %v11677_v57 = vld [vmem:[%s13123_s24 + $0x224] ss:$16 sps:$4 sm:$0xff]  }
 0x471   : > { %v12094_v18 = vpop.eup %12093  ;;  %v6467_v13 = vadd.f32 1.0, %v12088_v23  ;;  %v16556_v52 = vmul.f32 0.5, %v10801_v37  ;;  %v6082_v4 = vmul.f32 0.70710677, %v10752_v7  ;;  %v16558_v47 = vmul.f32 %v6465_v55, %v5865_v8 }
 0x472   : > { %19586 = vst [vmem:[#allocation149_spill] sm:$0xff] %v16554_v20  ;;  %v6466_v26 = vadd.f32 1.0, %v12090_v0  ;;  %v16560_v5 = vmul.f32 0.5, %v10752_v7  ;;  %v10803_v44 = vadd.f32 %v16295_v25, %v15677_v62  ;;  %v6468_v9 = vadd.f32 1.0, %v12092_v33  ;;  %v11680_v20 = vld [vmem:[%s13123_s24 + $0x22c] ss:$16 sps:$4 sm:$0xff]  }
 0x473   : > { %12101 = verf.f32 %v6081_v63  ;;  %v6084_v19 = vmul.f32 0.70710677, %v10802_v3  ;;  %v10754_v1 = vadd.f32 %v16299_v51, %v15693_v12  ;;  %v6473_v31 = vadd.f32 1.0, %v12094_v18 }
 0x474   : > { %12103 = verf.f32 %v6083_v46  ;;  %v6089_v36 = vmul.f32 0.70710677, %v10753_v41  ;;  %v10804_v28 = vadd.f32 %v16301_v42, %v15700_v32  ;;  %v16568_v8 = vmul.f32 %v6467_v13, %v5867_v59 }
 0x475   : > { %12105 = verf.f32 %v6082_v4  ;;  %v16570_v50 = vmul.f32 0.5, %v10802_v3  ;;  %v10755_v25 = vadd.f32 %v16320_v29, %v15674_v38  ;;  %v16574_v61 = vmul.f32 %v6466_v26, %v5866_v24 }
 0x476   : > { %19587 = vst [vmem:[#allocation150_spill] sm:$0xff] %v16568_v8  ;;  %v12096_v37 = vpop.eup %12095  ;;  %v16576_v7 = vmul.f32 0.5, %v10753_v41  ;;  %v6091_v51 = vmul.f32 0.70710677, %v10803_v44  ;;  %v10756_v23 = vadd.f32 %v16337_v21, %v15693_v12  ;;  %v16580_v55 = vmul.f32 %v6468_v9, %v5868_v2  ;;  %v19589_v2 = vld [vmem:[#allocation131_spill] sm:$0xff] }
 0x477   : > { %12107 = verf.f32 %v6084_v19  ;;  %v6090_v42 = vmul.f32 0.70710677, %v10754_v1  ;;  %v16584_v59 = vadd.f32 %v16345_v16, %v15674_v38  ;;  %v16586_v63 = vmul.f32 %v6473_v31, %v5873_v6  ;;  %v19590_v6 = vld [vmem:[#allocation129_spill] sm:$0xff] }
 0x478   : > { %19588 = vst [vmem:[#allocation151_spill] sm:$0xff] %v16580_v55  ;;  %v12098_v0 = vpop.eup %12097  ;;  %12109 = verf.f32 %v6089_v36  ;;  %v16588_v29 = vmul.f32 0.5, %v10803_v44  ;;  %v6092_v24 = vmul.f32 0.70710677, %v10804_v28  ;;  %v6475_v33 = vadd.f32 1.0, %v12096_v37  ;;  %v19591_v44 = vld [vmem:[#allocation130_spill] sm:$0xff] }
 0x479   : > { %v12100_v3 = vpop.eup %12099  ;;  %v6097_v46 = vmul.f32 0.70710677, %v10755_v25  ;;  %v10805_v21 = vadd.f32 %v16330_v30, %v15677_v62  ;;  %v16594_v41 = vadd.f32 %v19589_v2, %v15693_v12  ;;  %12111 = verf.f32 %v6091_v51  ;;  %v19592_v51 = vld [vmem:[#allocation107_spill] sm:$0xff] }
 0x47a   : > { %v16596_v16 = vmul.f32 0.5, %v10754_v1  ;;  %v6098_v18 = vmul.f32 0.70710677, %v10756_v23  ;;  %v10806_v13 = vadd.f32 %v19590_v6, %v15700_v32  ;;  %v6474_v4 = vadd.f32 1.0, %v12098_v0  ;;  %v19593_v6 = vld [vmem:[#allocation132_spill] sm:$0xff] }
 0x47b   : > { %12113 = verf.f32 %v6090_v42  ;;  %v6105_v26 = vmul.f32 0.70710677, %v16584_v59  ;;  %v16603_v9 = vadd.f32 %v19591_v44, %v15677_v62  ;;  %v6476_v30 = vadd.f32 1.0, %v12100_v3 }
 0x47c   : > { %v16605_v19 = vmul.f32 0.5, %v10804_v28  ;;  %12115 = verf.f32 %v6092_v24  ;;  %v6106_v31 = vmul.f32 0.70710677, %v16594_v41  ;;  %v16608_v36 = vmul.f32 0.5, %v10755_v25 }
 0x47d   : > { %v12102_v1 = vpop.eup %12101  ;;  %12117 = verf.f32 %v6097_v46  ;;  %v6099_v37 = vmul.f32 0.70710677, %v10805_v21  ;;  %v16612_v42 = vadd.f32 %v19592_v51, %v15674_v38  ;;  %v6100_v2 = vmul.f32 0.70710677, %v10806_v13 }
 0x47e   : > { %v12104_v0 = vpop.eup %12103  ;;  %12119 = verf.f32 %v6098_v18  ;;  %v16616_v3 = vadd.f32 %v19593_v6, %v15700_v32  ;;  %v16620_v28 = vadd.f32 %v16399_v60, %v15693_v12  ;;  %v16623_v25 = vmul.f32 %v6475_v33, %v16534_v14 }
 0x47f   : > { %v12106_v24 = vpop.eup %12105  ;;  %v16626_v46 = vmul.f32 %v6474_v4, %v16536_v40  ;;  %12121 = verf.f32 %v6105_v26  ;;  %v6107_v44 = vmul.f32 0.70710677, %v16603_v9  ;;  %v16630_v18 = vmul.f32 %v6476_v30, %v16542_v53  ;;  %v19596_v26 = vld [vmem:[#allocation135_spill] sm:$0xff] }
 0x480   : > { %19594 = vst [vmem:[#allocation131_spill] sm:$0xff] %v16623_v25  ;;  %v6481_v51 = vadd.f32 1.0, %v12102_v1  ;;  %12123 = verf.f32 %v6106_v31  ;;  %v6113_v6 = vmul.f32 0.70710677, %v16612_v42  ;;  %v16633_v60 = vmul.f32 0.5, %v10805_v21  ;;  %v19597_v1 = vld [vmem:[#allocation108_spill] sm:$0xff] }
 0x481   : > { %19595 = vst [vmem:[#allocation129_spill] sm:$0xff] %v16630_v18  ;;  %v12108_v8 = vpop.eup %12107  ;;  %12125 = verf.f32 %v6099_v37  ;;  %v16637_v14 = vadd.f32 %v16397_v48, %v15677_v62  ;;  %v6114_v40 = vmul.f32 0.70710677, %v16620_v28  ;;  %v16640_v4 = vmul.f32 0.5, %v10756_v23  ;;  %v19600_v18 = vld [vmem:[#allocation90_spill] sm:$0xff] }
 0x482   : > { %v12110_v33 = vpop.eup %12109  ;;  %12127 = verf.f32 %v6100_v2  ;;  %v6108_v53 = vmul.f32 0.70710677, %v16616_v3  ;;  %v16645_v30 = vadd.f32 %v19596_v26, %v15674_v38  ;;  %v6483_v31 = vadd.f32 1.0, %v12104_v0 }
 0x483   : > { %v16647_v21 = vmul.f32 0.5, %v10806_v13  ;;  %12129 = verf.f32 %v6107_v44  ;;  %v16651_v48 = vadd.f32 %v19597_v1, %v15700_v32  ;;  %v12112_v37 = vpop.eup %12111  ;;  %v16654_v23 = vmul.f32 %v6481_v51, %v16550_v27  ;;  %v11669_v51 = vld [vmem:[%s13123_s24 + $0x200] ss:$16 sps:$4 sm:$0xff]  }
 0x484   : > { %v6482_v2 = vadd.f32 1.0, %v12106_v24  ;;  %12131 = verf.f32 %v6113_v6  ;;  %v16658_v25 = vadd.f32 %v16417_v45, %v15677_v62  ;;  %v6484_v13 = vadd.f32 1.0, %v12108_v8  ;;  %v19598_v24 = vld [vmem:[#allocation136_spill] sm:$0xff] }
 0x485   : > { %v12114_v26 = vpop.eup %12113  ;;  %v6115_v0 = vmul.f32 0.70710677, %v16637_v14  ;;  %12133 = verf.f32 %v6114_v40  ;;  %v6121_v44 = vmul.f32 0.70710677, %v16645_v30  ;;  %v6489_v38 = vadd.f32 1.0, %v12110_v33  ;;  %v19599_v40 = vld [vmem:[#allocation137_spill] sm:$0xff] }
 0x486   : > { %v12116_v1 = vpop.eup %12115  ;;  %v16663_v27 = vmul.f32 0.5, %v16584_v59  ;;  %12135 = verf.f32 %v6108_v53  ;;  %v16667_v45 = vadd.f32 %v19598_v24, %v15693_v12  ;;  %v6116_v8 = vmul.f32 0.70710677, %v16651_v48  ;;  %v19601_v33 = vld [vmem:[#allocation92_spill] sm:$0xff] }
 0x487   : > { %v12118_v6 = vpop.eup %12117  ;;  %12137 = verf.f32 %v6121_v44  ;;  %v16673_v62 = vadd.f32 %v19599_v40, %v15700_v32  ;;  %v6738_v55 = vpack.c.bf16 %v19601_v33, %v19600_v18  ;;  %v11672_v59 = vld [vmem:[%s13123_s24 + $0x208] ss:$16 sps:$4 sm:$0xff]   ;;  %v16680_v53 = vmul.f32 %v6483_v31, %v16556_v52 }
 0x488   : > { %v12120_v11 = vpop.eup %12119  ;;  %v16683_v24 = vmul.f32 %v6482_v2, %v16560_v5  ;;  %v6123_v12 = vmul.f32 0.70710677, %v16658_v25  ;;  %v6122_v44 = vmul.f32 0.70710677, %v16667_v45  ;;  %v16689_v40 = vmul.f32 %v6484_v13, %v16570_v50  ;;  %v19604_v2 = vld [vmem:[#allocation88_spill] sm:$0xff] }
 0x489   : > { %19602 = vst [vmem:[#allocation130_spill] sm:$0xff] %v16680_v53  ;;  %v12122_v22 = vpop.eup %12121  ;;  %v6491_v32 = vadd.f32 1.0, %v12112_v37  ;;  %v6490_v18 = vadd.f32 1.0, %v12114_v26  ;;  %12139 = verf.f32 %v6115_v0  ;;  %8409 = vmatprep.mubr.bf16.mxu0 %v6738_v55  ;;  %9053 = vmatprep.mubr.bf16.mxu1 %v6738_v55  ;;  %v6492_v31 = vadd.f32 1.0, %v12116_v1  ;;  %v11675_v26 = vld [vmem:[%s13123_s24 + $0x220] ss:$16 sps:$4 sm:$0xff]  }
 0x48a   : > { %19603 = vst [vmem:[#allocation107_spill] sm:$0xff] %v16689_v40  ;;  %v12124_v52 = vpop.eup %12123  ;;  %v6497_v33 = vadd.f32 1.0, %v12118_v6  ;;  %12141 = verf.f32 %v6122_v44  ;;  %v6124_v5 = vmul.f32 0.70710677, %v16673_v62  ;;  %8410 = vmatmul.mubr.bf16.vlgmr.msra.gmra.mrb[104].mxu0 %v19604_v2  ;;  %9054 = vmatmul.mubr.bf16.vlgmr.msra.gmra.mrb[104].mxu1 %v19604_v2  ;;  %v16695_v50 = vmul.f32 %v6489_v38, %v16576_v7  ;;  %v11678_v38 = vld [vmem:[%s13123_s24 + $0x228] ss:$16 sps:$4 sm:$0xff]  }
 0x48b   : > { %v12126_v53 = vpop.eup %12125  ;;  %v16698_v37 = vmul.f32 0.5, %v16603_v9  ;;  %v5906_v55 = vmul.f32 0.5, %v16594_v41  ;;  %12143 = verf.f32 %v6116_v8  ;;  %8539 = vmatpush1.bf16.msra.mxu0 %v11669_v51  ;;  %9183 = vmatpush1.bf16.msra.mxu1 %v11672_v59  ;;  %v6498_v0 = vadd.f32 1.0, %v12120_v11  ;;  %v19606_v8 = vld [vmem:[#allocation96_spill] sm:$0xff]  ;;  %v11683_v11 = vld [vmem:[%s13123_s24 + $0x244] ss:$16 sps:$4 sm:$0xff]  }
 0x48c   : > { %v12128_v13 = vpop.eup %12127  ;;  %v6505_v1 = vadd.f32 1.0, %v12122_v22  ;;  %v16703_v6 = vmul.f32 0.5, %v16616_v3  ;;  %12145 = verf.f32 %v6123_v12  ;;  %8540 = vmatprep.subr.bf16.mxu0 %v11677_v57  ;;  %9184 = vmatprep.subr.bf16.mxu1 %v11680_v20  ;;  %v16707_v9 = vmul.f32 %v6491_v32, %v16588_v29  ;;  %v19607_v59 = vld [vmem:[#allocation100_spill] sm:$0xff]  ;;  %v19626_v40 = vld [vmem:[#allocation139_spill] sm:$0xff] }
 0x48d   : > { %v12130_v7 = vpop.eup %12129  ;;  %v16710_v41 = vmul.f32 %v6490_v18, %v16596_v16  ;;  %v6506_v51 = vadd.f32 1.0, %v12124_v52  ;;  %v6746_v44 = vpack.c.bf16 %v19607_v59, %v19606_v8  ;;  %v11686_v22 = vld [vmem:[%s13123_s24 + $0x24c] ss:$16 sps:$4 sm:$0xff]   ;;  %v16717_v3 = vmul.f32 %v6492_v31, %v16605_v19 }
 0x48e   : > { %19605 = vst [vmem:[#allocation132_spill] sm:$0xff] %v16707_v9  ;;  %v12132_v2 = vpop.eup %12131  ;;  %v16720_v12 = vmul.f32 %v6497_v33, %v16608_v36  ;;  %v5913_v57 = vmul.f32 0.5, %v16612_v42  ;;  %12147 = verf.f32 %v6124_v5  ;;  %v16723_v20 = vadd.f32 1.0, %v12126_v53  ;;  %v19609_v53 = vld [vmem:[#allocation94_spill] sm:$0xff]  ;;  %v19611_v59 = vld [vmem:[#allocation104_spill] sm:$0xff] }
 0x48f   : > { %19608 = vst [vmem:[#allocation135_spill] sm:$0xff] %v16717_v3  ;;  %v12134_v32 = vpop.eup %12133  ;;  %v16725_v29 = vadd.f32 1.0, %v12128_v13  ;;  %v5914_v16 = vmul.f32 0.5, %v16620_v28  ;;  %v5921_v18 = vmul.f32 0.5, %v16645_v30  ;;  %8419 = vmatprep.mubr.bf16.mxu0 %v6746_v44  ;;  %9063 = vmatprep.mubr.bf16.mxu1 %v6746_v44  ;;  %v6698_v36 = vmul.f32 %v6498_v0, %v16640_v4  ;;  %v19610_v31 = vld [vmem:[#allocation98_spill] sm:$0xff]  ;;  %v19612_v44 = vld [vmem:[#allocation111_spill] sm:$0xff] }
 0x490   : > { %v12136_v19 = vpop.eup %12135  ;;  %v16731_v42 = vmul.f32 %v6505_v1, %v16663_v27  ;;  %v16733_v52 = vadd.f32 1.0, %v12130_v7  ;;  %v6745_v33 = vpack.c.bf16 %v19610_v31, %v19609_v53  ;;  %8541 = vmatpush1.bf16.msra.mxu0 %v11675_v26  ;;  %9185 = vmatpush1.bf16.msra.mxu1 %v11678_v38  ;;  %v11681_v28 = vld [vmem:[%s13123_s24 + $0x240] ss:$16 sps:$4 sm:$0xff]   ;;  %v11684_v5 = vld [vmem:[%s13123_s24 + $0x248] ss:$16 sps:$4 sm:$0xff]   ;;  %v6706_v13 = vmul.f32 %v6506_v51, %v5906_v55 }
 0x491   : > { %v12138_v30 = vpop.eup %12137  ;;  %v6513_v8 = vadd.f32 1.0, %v12132_v2  ;;  %v6754_v9 = vpack.c.bf16 %v19612_v44, %v19611_v59  ;;  %8542 = vmatprep.subr.bf16.mxu0 %v11683_v11  ;;  %9186 = vmatprep.subr.bf16.mxu1 %v11686_v22  ;;  %v19613_v4 = vld [vmem:[#allocation102_spill] sm:$0xff]  ;;  %v19614_v27 = vld [vmem:[#allocation109_spill] sm:$0xff]  ;;  %v6514_v3 = vadd.f32 1.0, %v12134_v32  ;;  %v19615_v26 = vld [vmem:[#allocation115_spill] sm:$0xff]  ;;  %v5922_v22 = vmul.f32 0.5, %v16667_v45 }
 0x492   : > { %v16743_v0 = vpack.c.bf16 %v19614_v27, %v19613_v4  ;;  %v11689_v1 = vld [vmem:[%s13123_s24 + $0x264] ss:$16 sps:$4 sm:$0xff]   ;;  %v11692_v7 = vld [vmem:[%s13123_s24 + $0x26c] ss:$16 sps:$4 sm:$0xff]   ;;  %v6521_v53 = vadd.f32 1.0, %v12138_v30  ;;  %8420 = vmatmul.mubr.bf16.gmra.mrb[108].mxu0 %v6745_v33  ;;  %9064 = vmatmul.mubr.bf16.gmra.mrb[108].mxu1 %v6745_v33 }
 0x493   : > { %v19616_v38 = vld [vmem:[#allocation119_spill] sm:$0xff]  ;;  %v19617_v51 = vld [vmem:[#allocation113_spill] sm:$0xff]  ;;  %v12140_v11 = vpop.eup %12139  ;;  %8429 = vmatprep.mubr.bf16.mxu0 %v6754_v9  ;;  %9073 = vmatprep.mubr.bf16.mxu1 %v6754_v9  ;;  %v11690_v9 = vld [vmem:[%s13123_s24 + $0x268] ss:$16 sps:$4 sm:$0xff]  }
 0x494   : > { %v6762_v55 = vpack.c.bf16 %v19616_v38, %v19615_v26  ;;  %v19618_v2 = vld [vmem:[#allocation117_spill] sm:$0xff]  ;;  %v19620_v59 = vld [vmem:[#allocation123_spill] sm:$0xff]  ;;  %v12142_v38 = vpop.eup %12141  ;;  %8543 = vmatpush1.bf16.msra.mxu0 %v11681_v28  ;;  %9187 = vmatpush1.bf16.msra.mxu1 %v11684_v5  ;;  %v16784_v28 = vpack.c.bf16 %v16548_v10, %v16526_v15  ;;  %v16800_v15 = vpack.c.bf16 %v16710_v41, %v16683_v24 }
 0x495   : > { %v16751_v31 = vpack.c.bf16 %v19618_v2, %v19617_v51  ;;  %v19621_v44 = vld [vmem:[#allocation127_spill] sm:$0xff]  ;;  %v19622_v30 = vld [vmem:[#allocation121_spill] sm:$0xff]  ;;  %v6508_v51 = vadd.f32 1.0, %v12136_v19  ;;  %v6721_v2 = vmul.f32 %v6521_v53, %v5921_v18  ;;  %8544 = vmatprep.subr.bf16.mxu0 %v11689_v1  ;;  %9188 = vmatprep.subr.bf16.mxu1 %v11692_v7  ;;  %v11698_v19 = vld [vmem:[%s13123_s24 + $0x28c] ss:$16 sps:$4 sm:$0xff]   ;;  %v16780_v18 = vpack.c.bf16 %v16499_v49, %v16483_v54 }
 0x496   : > { %v16756_v32 = vpack.c.bf16 %v19621_v44, %v19620_v59  ;;  %v19623_v4 = vld [vmem:[#allocation125_spill] sm:$0xff]  ;;  %v19628_v59 = vld [vmem:[#allocation82_spill] sm:$0xff]  ;;  %v16796_v54 = vpack.c.bf16 %v16586_v63, %v16558_v47  ;;  %v16804_v10 = vpack.c.bf16 %v16695_v50, %v16654_v23 }
 0x497   : > { %19619 = vst [vmem:[#allocation108_spill] sm:$0xff] %v16751_v31  ;;  %v16760_v33 = vpack.c.bf16 %v19623_v4, %v19622_v30  ;;  %v19625_v27 = vld [vmem:[#allocation133_spill] sm:$0xff]  ;;  %v16774_v30 = vpack.c.bf16 %v16515_v34, %v16492_v39  ;;  %v12144_v4 = vpop.eup %12143  ;;  %v6714_v39 = vmul.f32 %v6514_v3, %v5914_v16  ;;  %v16788_v34 = vpack.c.bf16 %v16540_v58, %v16521_v56  ;;  %v11696_v63 = vld [vmem:[%s13123_s24 + $0x288] ss:$16 sps:$4 sm:$0xff]   ;;  %v11704_v50 = vld [vmem:[%s13123_s24 + $0x2ac] ss:$16 sps:$4 sm:$0xff]  }
 0x498   : > { %v16764_v26 = vpack.c.bf16 %v19626_v40, %v19625_v27  ;;  %v11687_v45 = vld [vmem:[%s13123_s24 + $0x260] ss:$16 sps:$4 sm:$0xff]   ;;  %v6522_v40 = vadd.f32 1.0, %v12142_v38  ;;  %v11695_v27 = vld [vmem:[%s13123_s24 + $0x284] ss:$16 sps:$4 sm:$0xff]   ;;  %v12146_v5 = vpop.eup %12145  ;;  %v16806_v56 = vpack.c.bf16 %v6706_v13, %v6698_v36  ;;  %9189 = vmatpush1.bf16.msra.mxu1 %v11690_v9  ;;  %v16812_v3 = vpack.c.bf16 %v16731_v42, %v16720_v12 }
 0x499   : > { %19624 = vst [vmem:[#allocation136_spill] sm:$0xff] %v16760_v33  ;;  %v19627_v31 = vld [vmem:[#allocation81_spill] sm:$0xff]  ;;  %v6713_v33 = vmul.f32 %v6513_v8, %v5913_v57  ;;  %v16792_v57 = vpack.c.bf16 %v16626_v46, %v16574_v61  ;;  %v12148_v58 = vpop.eup %12147  ;;  %v6515_v61 = vadd.f32 1.0, %v12140_v11  ;;  %v6516_v46 = vadd.f32 1.0, %v12144_v4  ;;  %8545 = vmatpush1.bf16.msra.mxu0 %v11687_v45  ;;  %9190 = vmatprep.subr.bf16.mxu1 %v11698_v19  ;;  %v19629_v36 = vld [vmem:[#allocation91_spill] sm:$0xff]  ;;  %v19638_v19 = vld [vmem:[#allocation110_spill] sm:$0xff] }
 0x49a   : > { %v16770_v44 = vpack.c.bf16 %v19628_v59, %v19627_v31  ;;  %v6722_v49 = vmul.f32 %v6522_v40, %v5922_v22  ;;  %v11693_v47 = vld [vmem:[%s13123_s24 + $0x280] ss:$16 sps:$4 sm:$0xff]   ;;  %v6523_v41 = vadd.f32 1.0, %v12146_v5  ;;  %8546 = vmatprep.subr.bf16.mxu0 %v11695_v27  ;;  %v11701_v23 = vld [vmem:[%s13123_s24 + $0x2a4] ss:$16 sps:$4 sm:$0xff]   ;;  %v6699_v12 = vmul.f32 %v16723_v20, %v16633_v60  ;;  %8430 = vmatmul.mubr.bf16.gmra.mrb[112].mxu0 %v16743_v0  ;;  %v19641_v5 = vld [vmem:[#allocation114_spill] sm:$0xff] }
 0x49b   : > { %v16814_v24 = vpack.c.bf16 %v6721_v2, %v6713_v33  ;;  %v19630_v13 = vld [vmem:[#allocation93_spill] sm:$0xff]  ;;  %v6700_v42 = vmul.f32 %v16725_v29, %v16647_v21  ;;  %v5915_v31 = vmul.f32 0.5, %v16637_v14  ;;  %v5916_v11 = vmul.f32 0.5, %v16651_v48  ;;  %9074 = vmatmul.mubr.bf16.gmra.mrb[112].mxu1 %v16743_v0  ;;  %8439 = vmatprep.mubr.bf16.mxu0 %v6762_v55  ;;  %v19633_v60 = vld [vmem:[#allocation95_spill] sm:$0xff]  ;;  %v19636_v14 = vld [vmem:[#allocation112_spill] sm:$0xff] }
 0x49c   : > { %v16818_v16 = vpack.c.bf16 %v6722_v49, %v6714_v39  ;;  %v16822_v8 = vpack.c.bf16 %v19630_v13, %v19629_v36  ;;  %v19631_v1 = vld [vmem:[#allocation97_spill] sm:$0xff]  ;;  %v5923_v22 = vmul.f32 0.5, %v16658_v25  ;;  %v6524_v33 = vadd.f32 1.0, %v12148_v58  ;;  %9083 = vmatprep.mubr.bf16.mxu1 %v6762_v55  ;;  %v19634_v20 = vld [vmem:[#allocation99_spill] sm:$0xff]  ;;  %9191 = vmatpush1.bf16.msra.mxu1 %v11696_v63  ;;  %v11702_v45 = vld [vmem:[%s13123_s24 + $0x2a8] ss:$16 sps:$4 sm:$0xff]  }
 0x49d   : > { %v19632_v7 = vld [vmem:[#allocation101_spill] sm:$0xff]  ;;  %v16839_v21 = vpack.c.bf16 %v19634_v20, %v19633_v60  ;;  %v6707_v48 = vmul.f32 %v16733_v52, %v16698_v37  ;;  %v6708_v0 = vmul.f32 %v6508_v51, %v16703_v6  ;;  %v6715_v2 = vmul.f32 %v6515_v61, %v5915_v31  ;;  %8547 = vmatpush1.bf16.msra.mxu0 %v11693_v47  ;;  %v11710_v40 = vld [vmem:[%s13123_s24 + $0x2cc] ss:$16 sps:$4 sm:$0xff]   ;;  %v19637_v27 = vld [vmem:[#allocation103_spill] sm:$0xff] }
 0x49e   : > { %v16826_v53 = vpack.c.bf16 %v19632_v7, %v19631_v1  ;;  %v19635_v29 = vld [vmem:[#allocation105_spill] sm:$0xff]  ;;  %v6716_v55 = vmul.f32 %v6516_v46, %v5916_v11  ;;  %v6723_v9 = vmul.f32 %v6523_v41, %v5923_v22  ;;  %v5924_v59 = vmul.f32 0.5, %v16673_v62  ;;  %8548 = vmatprep.subr.bf16.mxu0 %v11701_v23  ;;  %9192 = vmatprep.subr.bf16.mxu1 %v11704_v50  ;;  %v19639_v6 = vld [vmem:[#allocation116_spill] sm:$0xff]  ;;  %v19642_v39 = vld [vmem:[#allocation118_spill] sm:$0xff] }
 0x49f   : > { %v16843_v38 = vpack.c.bf16 %v19636_v14, %v19635_v29  ;;  %v11699_v25 = vld [vmem:[%s13123_s24 + $0x2a0] ss:$16 sps:$4 sm:$0xff]   ;;  %v11707_v4 = vld [vmem:[%s13123_s24 + $0x2c4] ss:$16 sps:$4 sm:$0xff]   ;;  %v16855_v37 = vpack.c.bf16 %v19638_v19, %v19637_v27  ;;  %v19640_v52 = vld [vmem:[#allocation120_spill] sm:$0xff]  ;;  %v16863_v49 = vpack.c.bf16 %v19642_v39, %v19641_v5  ;;  %v16883_v31 = vpack.c.bf16 %v16518_v35, %v16495_v43 }
 0x4a0   : > { %v16859_v51 = vpack.c.bf16 %v19640_v52, %v19639_v6  ;;  %v19643_v58 = vld [vmem:[#allocation124_spill] sm:$0xff]  ;;  %v19645_v46 = vld [vmem:[#allocation122_spill] sm:$0xff]  ;;  %v6724_v41 = vmul.f32 %v6524_v33, %v5924_v59  ;;  %v19649_v50 = vld [vmem:[#allocation141_spill] sm:$0xff]  ;;  %9193 = vmatpush1.bf16.msra.mxu1 %v11702_v45 }
 0x4a1   : > { %v19644_v62 = vld [vmem:[#allocation128_spill] sm:$0xff]  ;;  %v19646_v47 = vld [vmem:[#allocation126_spill] sm:$0xff]  ;;  %19654 = vst [vmem:[#allocation88_spill] sm:$0xff] %v16883_v31  ;;  %8549 = vmatpush1.bf16.msra.mxu0 %v11699_v25  ;;  %v11705_v11 = vld [vmem:[%s13123_s24 + $0x2c0] ss:$16 sps:$4 sm:$0xff]   ;;  %9194 = vmatprep.subr.bf16.mxu1 %v11710_v40 }
 0x4a2   : > { %v16867_v61 = vpack.c.bf16 %v19644_v62, %v19643_v58  ;;  %v16871_v63 = vpack.c.bf16 %v19646_v47, %v19645_v46  ;;  %v19648_v23 = vld [vmem:[#allocation134_spill] sm:$0xff]  ;;  %v19655_v60 = vld [vmem:[#allocation145_spill] sm:$0xff]  ;;  %v19657_v33 = vld [vmem:[#allocation147_spill] sm:$0xff]  ;;  %8550 = vmatprep.subr.bf16.mxu0 %v11707_v4 }
 0x4a3   : > { %v16875_v36 = vpack.c.bf16 %v19649_v50, %v19648_v23  ;;  %v19651_v13 = vld [vmem:[#allocation106_spill] sm:$0xff]  ;;  %v16889_v20 = vpack.c.bf16 %v19655_v60, %v16488_v17  ;;  %v19658_v29 = vld [vmem:[#allocation149_spill] sm:$0xff]  ;;  %v19661_v27 = vld [vmem:[#allocation148_spill] sm:$0xff]  ;;  %v16919_v23 = vpack.c.bf16 %v6708_v0, %v6700_v42  ;;  %v16921_v50 = vpack.c.bf16 %v6707_v48, %v6699_v12 }
 0x4a4   : > { %19647 = vst [vmem:[#allocation137_spill] sm:$0xff] %v16871_v63  ;;  %v19652_v1 = vld [vmem:[#allocation138_spill] sm:$0xff]  ;;  %v16893_v14 = vpack.c.bf16 %v19658_v29, %v19657_v33  ;;  %v11713_v43 = vld [vmem:[%s13123_s24 + $0x2e4] ss:$16 sps:$4 sm:$0xff]   ;;  %v19672_v46 = vld [vmem:[#allocation108_spill] sm:$0xff] }
 0x4a5   : > { %19650 = vst [vmem:[#allocation90_spill] sm:$0xff] %v16875_v36  ;;  %v16879_v7 = vpack.c.bf16 %v19652_v1, %v19651_v13  ;;  %v11708_v22 = vld [vmem:[%s13123_s24 + $0x2c8] ss:$16 sps:$4 sm:$0xff]   ;;  %19656 = vst [vmem:[#allocation96_spill] sm:$0xff] %v16889_v20  ;;  %v11716_v35 = vld [vmem:[%s13123_s24 + $0x2ec] ss:$16 sps:$4 sm:$0xff]   ;;  %8440 = vmatmul.mubr.bf16.gmra.mrb[116].mxu0 %v19672_v46  ;;  %9084 = vmatmul.mubr.bf16.gmra.mrb[116].mxu1 %v19672_v46  ;;  %v16925_v13 = vpack.c.bf16 %v6724_v41, %v6716_v55 }
 0x4a6   : > { %19659 = vst [vmem:[#allocation100_spill] sm:$0xff] %v16893_v14  ;;  %v19660_v59 = vld [vmem:[#allocation146_spill] sm:$0xff]  ;;  %v19663_v25 = vld [vmem:[#allocation151_spill] sm:$0xff]  ;;  %v19664_v45 = vld [vmem:[#allocation129_spill] sm:$0xff]  ;;  %8449 = vmatprep.mubr.bf16.mxu0 %v16756_v32  ;;  %9093 = vmatprep.mubr.bf16.mxu1 %v16756_v32  ;;  %v16927_v1 = vpack.c.bf16 %v6723_v9, %v6715_v2 }
 0x4a7   : > { %19653 = vst [vmem:[#allocation92_spill] sm:$0xff] %v16879_v7  ;;  %v16897_v19 = vpack.c.bf16 %v19661_v27, %v19660_v59  ;;  %v16903_v6 = vpack.c.bf16 %v19664_v45, %v19663_v25  ;;  %v19666_v17 = vld [vmem:[#allocation150_spill] sm:$0xff]  ;;  %v19667_v52 = vld [vmem:[#allocation131_spill] sm:$0xff]  ;;  %v19674_v40 = vld [vmem:[#allocation132_spill] sm:$0xff]  ;;  %8551 = vmatpush1.bf16.msra.mxu0 %v11705_v11  ;;  %9195 = vmatpush1.bf16.msra.mxu1 %v11708_v22 }
 0x4a8   : > { %v16907_v5 = vpack.c.bf16 %v19667_v52, %v19666_v17  ;;  %v19669_v39 = vld [vmem:[#allocation107_spill] sm:$0xff]  ;;  %v19673_v4 = vld [vmem:[#allocation130_spill] sm:$0xff]  ;;  %19676 = vst [vmem:[#allocation109_spill] sm:$0xff] %v16919_v23  ;;  %19677 = vst [vmem:[#allocation115_spill] sm:$0xff] %v16921_v50  ;;  %8552 = vmatprep.subr.bf16.mxu0 %v11713_v43  ;;  %9196 = vmatprep.subr.bf16.mxu1 %v11716_v35 }
 0x4a9   : > { %19662 = vst [vmem:[#allocation94_spill] sm:$0xff] %v16897_v19  ;;  %19665 = vst [vmem:[#allocation98_spill] sm:$0xff] %v16903_v6  ;;  %v19670_v58 = vld [vmem:[#allocation135_spill] sm:$0xff]  ;;  %v16917_v47 = vpack.c.bf16 %v19674_v40, %v19673_v4  ;;  %v11714_v33 = vld [vmem:[%s13123_s24 + $0x2e8] ss:$16 sps:$4 sm:$0xff]  }
 0x4aa   : > { %19668 = vst [vmem:[#allocation104_spill] sm:$0xff] %v16907_v5  ;;  %v16911_v62 = vpack.c.bf16 %v19670_v58, %v19669_v39  ;;  %19678 = vst [vmem:[#allocation119_spill] sm:$0xff] %v16925_v13  ;;  %v11711_v60 = vld [vmem:[%s13123_s24 + $0x2e0] ss:$16 sps:$4 sm:$0xff]   ;;  %v11719_v42 = vld [vmem:[%s13123_s24 + $0x304] ss:$16 sps:$4 sm:$0xff]  }
 0x4ab   : > { %19675 = vst [vmem:[#allocation102_spill] sm:$0xff] %v16917_v47  ;;  %19679 = vst [vmem:[#allocation113_spill] sm:$0xff] %v16927_v1  ;;  %v11722_v12 = vld [vmem:[%s13123_s24 + $0x30c] ss:$16 sps:$4 sm:$0xff]   ;;  %8553 = vmatpush1.bf16.msra.mxu0 %v11711_v60  ;;  %9197 = vmatpush1.bf16.msra.mxu1 %v11714_v33  ;;  %v11717_v48 = vld [vmem:[%s13123_s24 + $0x300] ss:$16 sps:$4 sm:$0xff]  }
 0x4ac   : > { %19671 = vst [vmem:[#allocation111_spill] sm:$0xff] %v16911_v62  ;;  %v11720_v32 = vld [vmem:[%s13123_s24 + $0x308] ss:$16 sps:$4 sm:$0xff]   ;;  %8554 = vmatprep.subr.bf16.mxu0 %v11719_v42  ;;  %9198 = vmatprep.subr.bf16.mxu1 %v11722_v12  ;;  %v11725_v0 = vld [vmem:[%s13123_s24 + $0x324] ss:$16 sps:$4 sm:$0xff]  }
 0x4ad   : > { %v11728_v2 = vld [vmem:[%s13123_s24 + $0x32c] ss:$16 sps:$4 sm:$0xff]   ;;  %v11723_v9 = vld [vmem:[%s13123_s24 + $0x320] ss:$16 sps:$4 sm:$0xff]   ;;  %v11726_v41 = vld [vmem:[%s13123_s24 + $0x328] ss:$16 sps:$4 sm:$0xff]  }
 0x4ae   : > { %v19680_v55 = vld [vmem:[#allocation136_spill] sm:$0xff]  ;;  %v11731_v11 = vld [vmem:[%s13123_s24 + $0x344] ss:$16 sps:$4 sm:$0xff]   ;;  %v11729_v29 = vld [vmem:[%s13123_s24 + $0x340] ss:$16 sps:$4 sm:$0xff]  }
 0x4af   : > { %8450 = vmatmul.mubr.bf16.gmra.mrb[120].mxu0 %v19680_v55  ;;  %9094 = vmatmul.mubr.bf16.gmra.mrb[120].mxu1 %v19680_v55  ;;  %v11734_v22 = vld [vmem:[%s13123_s24 + $0x34c] ss:$16 sps:$4 sm:$0xff]   ;;  %v11732_v59 = vld [vmem:[%s13123_s24 + $0x348] ss:$16 sps:$4 sm:$0xff]   ;;  %v11735_v43 = vld [vmem:[%s13123_s24 + $0x360] ss:$16 sps:$4 sm:$0xff]  }
 0x4b0   : > { %8459 = vmatprep.mubr.bf16.mxu0 %v16764_v26  ;;  %9103 = vmatprep.mubr.bf16.mxu1 %v16764_v26  ;;  %v11737_v26 = vld [vmem:[%s13123_s24 + $0x364] ss:$16 sps:$4 sm:$0xff]   ;;  %v11740_v27 = vld [vmem:[%s13123_s24 + $0x36c] ss:$16 sps:$4 sm:$0xff]   ;;  %v11738_v35 = vld [vmem:[%s13123_s24 + $0x368] ss:$16 sps:$4 sm:$0xff]  }
 0x4b1   : > { %8555 = vmatpush1.bf16.msra.mxu0 %v11717_v48  ;;  %9199 = vmatpush1.bf16.msra.mxu1 %v11720_v32  ;;  %v11743_v25 = vld [vmem:[%s13123_s24 + $0x384] ss:$16 sps:$4 sm:$0xff]   ;;  %v11746_v45 = vld [vmem:[%s13123_s24 + $0x38c] ss:$16 sps:$4 sm:$0xff]   ;;  %v11741_v17 = vld [vmem:[%s13123_s24 + $0x380] ss:$16 sps:$4 sm:$0xff]  }
 0x4b2   : > { %8556 = vmatprep.subr.bf16.mxu0 %v11725_v0  ;;  %9200 = vmatprep.subr.bf16.mxu1 %v11728_v2  ;;  %v11752_v52 = vld [vmem:[%s13123_s24 + $0x3ac] ss:$16 sps:$4 sm:$0xff]   ;;  %v11747_v4 = vld [vmem:[%s13123_s24 + $0x3a0] ss:$16 sps:$4 sm:$0xff]   ;;  %v11750_v40 = vld [vmem:[%s13123_s24 + $0x3a8] ss:$16 sps:$4 sm:$0xff]  }
 0x4b3   : > { %v19681_v39 = vld [vmem:[#allocation84_spill] sm:$0xff]  ;;  %v19683_v60 = vld [vmem:[#allocation86_spill] sm:$0xff]  ;;  %v19684_v33 = vld [vmem:[#allocation143_spill] sm:$0xff] }
 0x4b4   : > { %v19682_v58 = vld [vmem:[#allocation140_spill] sm:$0xff]  ;;  %v16973_v42 = vadd.f32 %v19684_v33, %v19683_v60  ;;  %v11753_v2 = vld [vmem:[%s13123_s24 + $0x3c0] ss:$16 sps:$4 sm:$0xff]  }
 0x4b5   : > { %8557 = vmatpush1.bf16.msra.mxu0 %v11723_v9  ;;  %9201 = vmatpush1.bf16.msra.mxu1 %v11726_v41  ;;  %v16967_v46 = vadd.f32 %v19682_v58, %v19681_v39  ;;  %v11758_v12 = vld [vmem:[%s13123_s24 + $0x3cc] ss:$16 sps:$4 sm:$0xff]   ;;  %v11756_v55 = vld [vmem:[%s13123_s24 + $0x3c8] ss:$16 sps:$4 sm:$0xff]   ;;  %v11761_v41 = vld [vmem:[%s13123_s24 + $0x3e4] ss:$16 sps:$4 sm:$0xff]  }
 0x4b6   : > { %8558 = vmatprep.subr.bf16.mxu0 %v11731_v11  ;;  %9202 = vmatprep.subr.bf16.mxu1 %v11734_v22  ;;  %v19686_v48 = vld [vmem:[#allocation144_spill] sm:$0xff]  ;;  %v6130_v9 = vmul.f32 0.70710677, %v16973_v42  ;;  %v19687_v22 = vld [vmem:[#allocation85_spill] sm:$0xff] }
 0x4b7   : > { %8460 = vmatmul.mubr.bf16.gmra.mrb[124].mxu0 %v16770_v44  ;;  %9104 = vmatmul.mubr.bf16.gmra.mrb[124].mxu1 %v16770_v44  ;;  %v11744_v44 = vld [vmem:[%s13123_s24 + $0x388] ss:$16 sps:$4 sm:$0xff]   ;;  %v6129_v0 = vmul.f32 0.70710677, %v16967_v46  ;;  %v11764_v11 = vld [vmem:[%s13123_s24 + $0x3ec] ss:$16 sps:$4 sm:$0xff]  }
 0x4b8   : > { %8469 = vmatprep.mubr.bf16.mxu0 %v16774_v30  ;;  %9113 = vmatprep.mubr.bf16.mxu1 %v16774_v30  ;;  %v11749_v30 = vld [vmem:[%s13123_s24 + $0x3a4] ss:$16 sps:$4 sm:$0xff]   ;;  %v11777_v63 = vld [vmem:[%s13123_s24 + $0x440] ss:$16 sps:$4 sm:$0xff]  }
 0x4b9   : > { %8559 = vmatpush1.bf16.msra.mxu0 %v11729_v29  ;;  %9203 = vmatpush1.bf16.msra.mxu1 %v11732_v59  ;;  %v19688_v29 = vld [vmem:[#allocation142_spill] sm:$0xff]  ;;  %12149 = verf.f32 %v6129_v0 }
 0x4ba   : > { %8560 = vmatprep.subr.bf16.mxu0 %v11737_v26  ;;  %9204 = vmatprep.subr.bf16.mxu1 %v11740_v27  ;;  %v16989_v59 = vadd.f32 %v19688_v29, %v19687_v22  ;;  %v11759_v27 = vld [vmem:[%s13123_s24 + $0x3e0] ss:$16 sps:$4 sm:$0xff]   ;;  %12151 = verf.f32 %v6130_v9 }
 0x4bd   : > { %8561 = vmatpush1.bf16.msra.mxu0 %v11735_v43  ;;  %9205 = vmatpush1.bf16.msra.mxu1 %v11738_v35  ;;  %v11762_v43 = vld [vmem:[%s13123_s24 + $0x3e8] ss:$16 sps:$4 sm:$0xff]   ;;  %v19689_v35 = vld [vmem:[#allocation83_spill] sm:$0xff] }
 0x4be   : > { %8562 = vmatprep.subr.bf16.mxu0 %v11743_v25  ;;  %9206 = vmatprep.subr.bf16.mxu1 %v11746_v45  ;;  %v2893_v25 = vsub.s32 4, %v19689_v35  ;;  %v11767_v45 = vld [vmem:[%s13123_s24 + $0x404] ss:$16 sps:$4 sm:$0xff]   ;;  %v2905_v39 = vsub.s32 7, %v19689_v35 }
 0x4bf   : > { %8470 = vmatmul.mubr.bf16.gmra.mrb[128].mxu0 %v16780_v18  ;;  %9114 = vmatmul.mubr.bf16.gmra.mrb[128].mxu1 %v16780_v18  ;;  %v11755_v18 = vld [vmem:[%s13123_s24 + $0x3c4] ss:$16 sps:$4 sm:$0xff]  }
 0x4c0   : > { %8479 = vmatprep.mubr.bf16.mxu0 %v16784_v28  ;;  %9123 = vmatprep.mubr.bf16.mxu1 %v16784_v28  ;;  %v19685_v28 = vld [vmem:[#allocation87_spill] sm:$0xff] }
 0x4c1   : > { %8563 = vmatpush1.bf16.msra.mxu0 %v11741_v17  ;;  %9207 = vmatpush1.bf16.msra.mxu1 %v11744_v44  ;;  %v16979_v32 = vadd.f32 %v19686_v48, %v19685_v28  ;;  %v11770_v17 = vld [vmem:[%s13123_s24 + $0x40c] ss:$16 sps:$4 sm:$0xff]   ;;  %v2901_v44 = vsub.s32 6, %v19689_v35 }
 0x4c2   : > { %8564 = vmatprep.subr.bf16.mxu0 %v11749_v30  ;;  %9208 = vmatprep.subr.bf16.mxu1 %v11752_v52  ;;  %v12405_v30 = vld [vmem:[%s13133_s16] sm:$0xff] }
 0x4c3   : > { %v6132_v26 = vmul.f32 0.70710677, %v16979_v32  ;;  %v17005_v52 = vrot.slane %v12405_v30, %v2893_v25  ;;  %v17008_v58 = vrot.slane %v12405_v30, %v2901_v44  ;;  %v5929_v25 = vmul.f32 0.5, %v16967_v46 }
 0x4c5   : > { %8565 = vmatpush1.bf16.msra.mxu0 %v11747_v4  ;;  %9209 = vmatpush1.bf16.msra.mxu1 %v11750_v40  ;;  %12153 = verf.f32 %v6132_v26  ;;  %19690 = vst [vmem:[#allocation117_spill] sm:$0xff] %v17005_v52  ;;  %19691 = vst [vmem:[#allocation123_spill] sm:$0xff] %v17008_v58 }
 0x4c6   : > { %8566 = vmatprep.subr.bf16.mxu0 %v11755_v18  ;;  %9210 = vmatprep.subr.bf16.mxu1 %v11758_v12  ;;  %v17019_v12 = vrot.slane %v12405_v30, %v2905_v39 }
 0x4c7   : > { %8480 = vmatmul.mubr.bf16.gmra.mrb[132].mxu0 %v16788_v34  ;;  %9124 = vmatmul.mubr.bf16.gmra.mrb[132].mxu1 %v16788_v34  ;;  %v6131_v34 = vmul.f32 0.70710677, %v16989_v59 }
 0x4c8   : > { %8489 = vmatprep.mubr.bf16.mxu0 %v16792_v57  ;;  %9133 = vmatprep.mubr.bf16.mxu1 %v16792_v57  ;;  %v2897_v57 = vsub.s32 5, %v19689_v35  ;;  %19693 = vst [vmem:[#allocation121_spill] sm:$0xff] %v17019_v12 }
 0x4c9   : > { %8567 = vmatpush1.bf16.msra.mxu0 %v11753_v2  ;;  %9211 = vmatpush1.bf16.msra.mxu1 %v11756_v55  ;;  %12155 = verf.f32 %v6131_v34 }
 0x4ca   : > { %8568 = vmatprep.subr.bf16.mxu0 %v11761_v41  ;;  %9212 = vmatprep.subr.bf16.mxu1 %v11764_v11  ;;  %v17014_v40 = vrot.slane %v12405_v30, %v2897_v57 }
 0x4cb   : > { %v5288_v4 = vpop.f32.mrb[52].mxu0  ;;  %v5610_v33 = vpop.f32.mrb[52].mxu1 }
 0x4cc   : > { %19692 = vst [vmem:[#allocation127_spill] sm:$0xff] %v17014_v40  ;;  %v17017_v60 = vadd.f32 %v5288_v4, %v17005_v52  ;;  %v5290_v18 = vpop.f32.mrb[53].mxu0  ;;  %v17022_v28 = vadd.f32 %v5610_v33, %v17008_v58  ;;  %v5612_v48 = vpop.f32.mrb[53].mxu1  ;;  %v5930_v4 = vmul.f32 0.5, %v16973_v42 }
 0x4cd   : > { %8569 = vmatpush1.bf16.msra.mxu0 %v11759_v27  ;;  %9213 = vmatpush1.bf16.msra.mxu1 %v11762_v43  ;;  %v5292_v0 = vpop.f32.mrb[54].mxu0  ;;  %v5614_v55 = vpop.f32.mrb[54].mxu1  ;;  %v17030_v22 = vadd.f32 %v5290_v18, %v17014_v40  ;;  %v17033_v26 = vadd.f32 %v5612_v48, %v17019_v12 }
 0x4ce   : > { %8699 = vmatprep.subr.bf16.mxu0 %v11767_v45  ;;  %9343 = vmatprep.subr.bf16.mxu1 %v11770_v17  ;;  %v5941_v2 = vmul.f32 0.70710677, %v17017_v60  ;;  %v5294_v9 = vpop.f32.mrb[55].mxu0  ;;  %v5943_v11 = vmul.f32 0.70710677, %v17022_v28  ;;  %v5616_v27 = vpop.f32.mrb[55].mxu1  ;;  %v17037_v35 = vadd.f32 %v5614_v55, %v17008_v58 }
 0x4cf   : > { %8490 = vmatmul.mubr.bf16.gmra.mrb[136].mxu0 %v16796_v54  ;;  %9134 = vmatmul.mubr.bf16.gmra.mrb[136].mxu1 %v16796_v54  ;;  %v12150_v54 = vpop.eup %12149  ;;  %v5942_v34 = vmul.f32 0.70710677, %v17030_v22  ;;  %v17047_v30 = vadd.f32 %v5294_v9, %v17014_v40  ;;  %v5944_v33 = vmul.f32 0.70710677, %v17033_v26 }
 0x4d0   : > { %8499 = vmatprep.mubr.bf16.mxu0 %v16800_v15  ;;  %9143 = vmatprep.mubr.bf16.mxu1 %v16800_v15  ;;  %v17026_v15 = vadd.f32 %v5292_v0, %v17005_v52  ;;  %v12152_v41 = vpop.eup %12151  ;;  %12157 = verf.f32 %v5941_v2  ;;  %v6529_v45 = vadd.f32 1.0, %v12150_v54  ;;  %v5951_v57 = vmul.f32 0.70710677, %v17037_v35 }
 0x4d1   : > { %v12154_v29 = vpop.eup %12153  ;;  %12159 = verf.f32 %v5943_v11  ;;  %v6530_v17 = vadd.f32 1.0, %v12152_v41 }
 0x4d2   : > { %v5949_v43 = vmul.f32 0.70710677, %v17026_v15  ;;  %v6532_v44 = vadd.f32 1.0, %v12154_v29  ;;  %v6729_v55 = vmul.f32 %v6529_v45, %v5929_v25  ;;  %v5950_v29 = vmul.f32 0.70710677, %v17047_v30 }
 0x4d3   : > { %v5298_v39 = vpop.f32.mrb[56].mxu0  ;;  %v12156_v46 = vpop.eup %12155  ;;  %v6730_v2 = vmul.f32 %v6530_v17, %v5930_v4  ;;  %v5931_v25 = vmul.f32 0.5, %v16989_v59 }
 0x4d4   : > { %12161 = verf.f32 %v5949_v43  ;;  %v5620_v18 = vpop.f32.mrb[56].mxu1  ;;  %v17056_v48 = vadd.f32 %v5298_v39, %v17005_v52  ;;  %v5300_v0 = vpop.f32.mrb[57].mxu0  ;;  %v6531_v11 = vadd.f32 1.0, %v12156_v46  ;;  %v17070_v46 = vpack.c.bf16 %v6729_v55, %v6729_v55 }
 0x4d5   : > { %12163 = verf.f32 %v5951_v57  ;;  %v5622_v54 = vpop.f32.mrb[57].mxu1  ;;  %v17059_v9 = vadd.f32 %v5620_v18, %v17008_v58  ;;  %v5302_v42 = vpop.f32.mrb[58].mxu0  ;;  %v17064_v39 = vadd.f32 %v5300_v0, %v17014_v40  ;;  %v5743_v0 = vmul.f32 0.5, %v17022_v28 }
 0x4d6   : > { %v5624_v41 = vpop.f32.mrb[58].mxu1  ;;  %12165 = verf.f32 %v5942_v34  ;;  %v5957_v45 = vmul.f32 0.70710677, %v17056_v48  ;;  %v6834_v34 = vpack.c.bf16 %v6730_v2, %v6730_v2  ;;  %v17076_v59 = vadd.f32 %v5622_v54, %v17019_v12 }
 0x4d7   : > { %8500 = vmatmul.mubr.bf16.gmra.mrb[140].mxu0 %v16804_v10  ;;  %9144 = vmatmul.mubr.bf16.gmra.mrb[140].mxu1 %v16804_v10  ;;  %v17052_v10 = vadd.f32 %v5616_v27, %v17019_v12  ;;  %v5304_v27 = vpop.f32.mrb[59].mxu0  ;;  %v5626_v43 = vpop.f32.mrb[59].mxu1  ;;  %12167 = verf.f32 %v5944_v33  ;;  %v5958_v2 = vmul.f32 0.70710677, %v17064_v39  ;;  %v10821_v54 = vadd.f32 %v5302_v42, %v17005_v52 }
 0x4d8   : > { %8509 = vmatprep.mubr.bf16.mxu0 %v16806_v56  ;;  %9153 = vmatprep.mubr.bf16.mxu1 %v16806_v56  ;;  %v5932_v56 = vmul.f32 0.5, %v16979_v32  ;;  %12169 = verf.f32 %v5950_v29  ;;  %v17088_v29 = vmul.f32 0.5, %v17030_v22  ;;  %v17096_v28 = vmul.f32 0.5, %v17033_v26 }
 0x4d9   : > { %v5952_v57 = vmul.f32 0.70710677, %v17052_v10  ;;  %v5751_v42 = vmul.f32 0.5, %v17037_v35  ;;  %v5960_v13 = vmul.f32 0.70710677, %v17076_v59  ;;  %v10871_v50 = vadd.f32 %v5624_v41, %v17008_v58 }
 0x4da   : > { %v6732_v32 = vmul.f32 %v6532_v44, %v5932_v56  ;;  %v12158_v17 = vpop.eup %12157  ;;  %v5959_v44 = vmul.f32 0.70710677, %v17059_v9  ;;  %v17080_v56 = vmul.f32 %v6531_v11, %v5931_v25  ;;  %v17109_v26 = vmul.f32 0.5, %v17047_v30 }
 0x4db   : > { %v12160_v4 = vpop.eup %12159  ;;  %v5308_v33 = vpop.f32.mrb[60].mxu0  ;;  %12171 = verf.f32 %v5952_v57  ;;  %v5749_v57 = vmul.f32 0.5, %v17026_v15  ;;  %v17112_v15 = vmul.f32 0.5, %v17052_v10  ;;  %v10822_v35 = vadd.f32 %v5304_v27, %v17014_v40 }
 0x4dc   : > { %v17078_v18 = vpack.c.bf16 %v6732_v32, %v6732_v32  ;;  %v5630_v55 = vpop.f32.mrb[60].mxu1  ;;  %v17085_v1 = vpop.f32.mrb[61].mxu0  ;;  %12173 = verf.f32 %v5957_v45  ;;  %v6343_v25 = vadd.f32 1.0, %v12160_v4  ;;  %v17118_v30 = vmul.f32 0.5, %v17056_v48 }
 0x4dd   : > { %v17091_v32 = vpop.f32.mrb[61].mxu1  ;;  %v17093_v11 = vpop.f32.mrb[62].mxu0  ;;  %12175 = verf.f32 %v5959_v44  ;;  %v10872_v10 = vadd.f32 %v5626_v43, %v17019_v12  ;;  %v5967_v27 = vmul.f32 0.70710677, %v10871_v50  ;;  %v10823_v48 = vadd.f32 %v5308_v33, %v17005_v52 }
 0x4de   : > { %19694 = vst [vmem:[#allocation125_spill] sm:$0xff] %v17078_v18  ;;  %v17099_v18 = vpop.f32.mrb[62].mxu1  ;;  %12177 = verf.f32 %v5958_v2  ;;  %v6543_v41 = vmul.f32 %v6343_v25, %v5743_v0  ;;  %v17131_v0 = vmul.f32 0.5, %v17064_v39  ;;  %v17144_v39 = vmul.f32 0.5, %v17076_v59 }
 0x4df   : > { %8510 = vmatmul.mubr.bf16.gmra.mrb[144].mxu0 %v16812_v3  ;;  %9154 = vmatmul.mubr.bf16.gmra.mrb[144].mxu1 %v16812_v3  ;;  %v5741_v3 = vmul.f32 0.5, %v17017_v60  ;;  %v12162_v60 = vpop.eup %12161  ;;  %v17106_v23 = vpop.f32.mrb[63].mxu1  ;;  %12179 = verf.f32 %v5960_v13  ;;  %v10873_v13 = vadd.f32 %v5630_v55, %v17008_v58  ;;  %v5968_v33 = vmul.f32 0.70710677, %v10872_v10 }
 0x4e0   : > { %8519 = vmatprep.mubr.bf16.mxu0 %v16818_v16  ;;  %9163 = vmatprep.mubr.bf16.mxu1 %v16818_v16  ;;  %v6341_v16 = vadd.f32 1.0, %v12158_v17  ;;  %v17101_v17 = vpop.f32.mrb[63].mxu0  ;;  %v12164_v22 = vpop.eup %12163  ;;  %v6349_v45 = vadd.f32 1.0, %v12162_v60  ;;  %v5965_v60 = vmul.f32 0.70710677, %v10821_v54  ;;  %v10824_v59 = vadd.f32 %v17085_v1, %v17014_v40 }
 0x4e1   : > { %v6351_v4 = vadd.f32 1.0, %v12164_v22  ;;  %v12166_v44 = vpop.eup %12165  ;;  %v17167_v19 = vmul.f32 0.5, %v10872_v10  ;;  %v17178_v10 = vadd.f32 %v17093_v11, %v17005_v52  ;;  %v17193_v11 = vmul.f32 0.5, %v10873_v13 }
 0x4e2   : > { %v6541_v47 = vmul.f32 %v6341_v16, %v5741_v3  ;;  %v6549_v62 = vmul.f32 %v6349_v45, %v5749_v57  ;;  %v12168_v5 = vpop.eup %12167  ;;  %v17124_v3 = vmul.f32 0.5, %v17059_v9  ;;  %v6342_v57 = vadd.f32 1.0, %v12166_v44 }
 0x4e3   : > { %v6551_v22 = vmul.f32 %v6351_v4, %v5751_v42  ;;  %v17126_v16 = vpop.f32.mrb[64].mxu0  ;;  %v17134_v43 = vpop.f32.mrb[64].mxu1  ;;  %12181 = verf.f32 %v5965_v60  ;;  %v5966_v9 = vmul.f32 0.70710677, %v10822_v35  ;;  %v17146_v4 = vmul.f32 0.5, %v10821_v54 }
 0x4e4   : > { %v17121_v2 = vpack.c.bf16 %v6549_v62, %v6541_v47  ;;  %v12170_v62 = vpop.eup %12169  ;;  %v6344_v47 = vadd.f32 1.0, %v12168_v5  ;;  %v17139_v25 = vpop.f32.mrb[65].mxu1  ;;  %v17154_v5 = vpack.c.bf16 %v17080_v56, %v17080_v56  ;;  %v17156_v60 = vmul.f32 0.5, %v10871_v50 }
 0x4e5   : > { %v12172_v42 = vpop.eup %12171  ;;  %v17148_v44 = vpop.f32.mrb[66].mxu1  ;;  %12183 = verf.f32 %v5967_v27  ;;  %v6350_v6 = vadd.f32 1.0, %v12170_v62  ;;  %v5973_v56 = vmul.f32 0.70710677, %v10823_v48  ;;  %v5975_v50 = vmul.f32 0.70710677, %v10873_v13 }
 0x4e6   : > { %19695 = vst [vmem:[#allocation133_spill] sm:$0xff] %v17121_v2  ;;  %19697 = vst [vmem:[#allocation81_spill] sm:$0xff] %v17154_v5  ;;  %v12174_v55 = vpop.eup %12173  ;;  %v17162_v54 = vpop.f32.mrb[67].mxu1  ;;  %v17165_v2 = vmul.f32 %v6342_v57, %v17088_v29  ;;  %v17170_v5 = vmul.f32 %v6344_v47, %v17096_v28  ;;  %12185 = verf.f32 %v5966_v9  ;;  %v6352_v1 = vadd.f32 1.0, %v12172_v42 }
 0x4e7   : > { %8520 = vmatmul.mubr.bf16.gmra.mrb[148].mxu0 %v16814_v24  ;;  %9164 = vmatmul.mubr.bf16.gmra.mrb[148].mxu1 %v16814_v24  ;;  %v17128_v24 = vpack.c.bf16 %v6551_v22, %v6543_v41  ;;  %v17158_v22 = vmul.f32 0.5, %v10822_v35  ;;  %v10874_v35 = vadd.f32 %v17091_v32, %v17019_v12  ;;  %v6357_v29 = vadd.f32 1.0, %v12174_v55 }
 0x4e8   : > { %8529 = vmatprep.mubr.bf16.mxu0 %v6834_v34  ;;  %9173 = vmatprep.mubr.bf16.mxu1 %v6834_v34  ;;  %v17136_v34 = vpop.f32.mrb[65].mxu0  ;;  %19698 = vst [vmem:[#allocation82_spill] sm:$0xff] %v17165_v2  ;;  %19699 = vst [vmem:[#allocation91_spill] sm:$0xff] %v17170_v5  ;;  %12187 = verf.f32 %v5968_v33  ;;  %v17182_v57 = vmul.f32 0.5, %v10823_v48  ;;  %v5974_v32 = vmul.f32 0.70710677, %v10824_v59  ;;  %v17186_v62 = vadd.f32 %v17099_v18, %v17008_v58 }
 0x4e9   : > { %19696 = vst [vmem:[#allocation139_spill] sm:$0xff] %v17128_v24  ;;  %v17141_v45 = vpop.f32.mrb[66].mxu0  ;;  %v12176_v24 = vpop.eup %12175  ;;  %v17191_v47 = vmul.f32 %v6350_v6, %v17109_v26  ;;  %12189 = verf.f32 %v5973_v56  ;;  %v17197_v9 = vadd.f32 %v17101_v17, %v17014_v40  ;;  %v5976_v42 = vmul.f32 0.70710677, %v10874_v35  ;;  %v11765_v5 = vld [vmem:[%s13123_s24 + $0x400] ss:$16 sps:$4 sm:$0xff]  }
 0x4ea   : > { %v17150_v41 = vpop.f32.mrb[67].mxu0  ;;  %v12178_v27 = vpop.eup %12177  ;;  %v6359_v28 = vadd.f32 1.0, %v12176_v24  ;;  %12191 = verf.f32 %v5975_v50  ;;  %v17205_v6 = vadd.f32 %v17106_v23, %v17019_v12  ;;  %v17212_v17 = vmul.f32 %v6352_v1, %v17112_v15  ;;  %v11776_v2 = vld [vmem:[%s13123_s24 + $0x42c] ss:$16 sps:$4 sm:$0xff]  }
 0x4eb   : > { %19700 = vst [vmem:[#allocation93_spill] sm:$0xff] %v17191_v47  ;;  %v12180_v48 = vpop.eup %12179  ;;  %v6358_v18 = vadd.f32 1.0, %v12178_v27  ;;  %v17215_v33 = vmul.f32 %v6357_v29, %v17118_v30  ;;  %v5981_v55 = vmul.f32 0.70710677, %v17178_v10  ;;  %v17220_v56 = vadd.f32 %v17126_v16, %v17005_v52  ;;  %v11768_v29 = vld [vmem:[%s13123_s24 + $0x408] ss:$16 sps:$4 sm:$0xff]  }
 0x4ec   : > { %19701 = vst [vmem:[#allocation97_spill] sm:$0xff] %v17212_v17  ;;  %v17228_v15 = vmul.f32 %v6359_v28, %v17124_v3  ;;  %12193 = verf.f32 %v5974_v32  ;;  %v5983_v30 = vmul.f32 0.70710677, %v17186_v62  ;;  %v17233_v1 = vadd.f32 %v17134_v43, %v17008_v58  ;;  %v11771_v32 = vld [vmem:[%s13123_s24 + $0x420] ss:$16 sps:$4 sm:$0xff]  }
 0x4ed   : > { %19702 = vst [vmem:[#allocation101_spill] sm:$0xff] %v17215_v33  ;;  %v12182_v27 = vpop.eup %12181  ;;  %v6360_v17 = vadd.f32 1.0, %v12180_v48  ;;  %v17238_v33 = vmul.f32 0.5, %v10824_v59  ;;  %v5982_v47 = vmul.f32 0.70710677, %v17197_v9  ;;  %v17243_v3 = vadd.f32 %v17136_v34, %v17014_v40  ;;  %v19705_v48 = vld [vmem:[#allocation89_spill] sm:$0xff] }
 0x4ee   : > { %19703 = vst [vmem:[#allocation95_spill] sm:$0xff] %v17228_v15  ;;  %v11773_v15 = vld [vmem:[%s13123_s24 + $0x424] ss:$16 sps:$4 sm:$0xff]   ;;  %v17249_v43 = vmul.f32 %v6358_v18, %v17131_v0  ;;  %12195 = verf.f32 %v5976_v42  ;;  %v5984_v14 = vmul.f32 0.70710677, %v17205_v6  ;;  %v17254_v59 = vadd.f32 %v17139_v25, %v17019_v12 }
 0x4ef   : > { %8530 = vmatmul.mubr.bf16.gmra.mrb[152].mxu0 %v17070_v46  ;;  %9174 = vmatmul.mubr.bf16.gmra.mrb[152].mxu1 %v17070_v46  ;;  %v17188_v46 = vpop.f32.mrb[68].mxu0  ;;  %v12184_v28 = vpop.eup %12183  ;;  %v11774_v34 = vld [vmem:[%s13123_s24 + $0x428] ss:$16 sps:$4 sm:$0xff]   ;;  %v6365_v20 = vadd.f32 1.0, %v12182_v27  ;;  %v17259_v31 = vmul.f32 0.5, %v10874_v35  ;;  %12197 = verf.f32 %v5981_v55  ;;  %v17267_v42 = vadd.f32 %v17141_v45, %v17005_v52 }
 0x4f0   : > { %8570 = vmatprep.mubr.bf16.mxu0 %v16822_v8  ;;  %9214 = vmatprep.mubr.bf16.mxu1 %v16822_v8  ;;  %v17199_v8 = vpop.f32.mrb[68].mxu1  ;;  %v17201_v24 = vpop.f32.mrb[69].mxu0  ;;  %19704 = vst [vmem:[#allocation99_spill] sm:$0xff] %v17249_v43  ;;  %v5989_v7 = vmul.f32 0.70710677, %v17220_v56  ;;  %12199 = verf.f32 %v5983_v30  ;;  %v17271_v35 = vadd.f32 %v17148_v44, %v17008_v58  ;;  %v17286_v44 = vmul.f32 %v6360_v17, %v17144_v39 }
 0x4f1   : > { %v17207_v26 = vpop.f32.mrb[69].mxu1  ;;  %v17209_v13 = vpop.f32.mrb[70].mxu0  ;;  %v11779_v18 = vld [vmem:[%s13123_s24 + $0x444] ss:$16 sps:$4 sm:$0xff]   ;;  %v5991_v25 = vmul.f32 0.70710677, %v17233_v1  ;;  %12201 = verf.f32 %v5982_v47 }
 0x4f2   : > { %v17222_v23 = vpop.f32.mrb[70].mxu1  ;;  %v17224_v50 = vpop.f32.mrb[71].mxu0  ;;  %v5990_v30 = vmul.f32 0.70710677, %v17243_v3  ;;  %19706 = vst [vmem:[#allocation105_spill] sm:$0xff] %v17286_v44  ;;  %12203 = verf.f32 %v5984_v14  ;;  %v17308_v44 = vmul.f32 %v6365_v20, %v17146_v4 }
 0x4f3   : > { %v17235_v16 = vpop.f32.mrb[71].mxu1  ;;  %v12186_v0 = vpop.eup %12185  ;;  %v5992_v47 = vmul.f32 0.70710677, %v17254_v59  ;;  %12205 = verf.f32 %v5989_v7  ;;  %v5997_v14 = vmul.f32 0.70710677, %v17267_v42 }
 0x4f4   : > { %v17273_v55 = vpop.f32.mrb[72].mxu0  ;;  %v12188_v27 = vpop.eup %12187  ;;  %19710 = vst [vmem:[#allocation116_spill] sm:$0xff] %v17308_v44  ;;  %12207 = verf.f32 %v5991_v25 }
 0x4f5   : > { %v17281_v45 = vpop.f32.mrb[72].mxu1  ;;  %v17283_v43 = vpop.f32.mrb[73].mxu0  ;;  %12209 = verf.f32 %v5990_v30 }
 0x4f6   : > { %v12190_v36 = vpop.eup %12189  ;;  %12211 = verf.f32 %v5992_v47  ;;  %v17350_v47 = vadd.f32 %v17201_v24, %v17014_v40 }
 0x4f7   : > { %8571 = vmatmul.mubr.bf16.vlgmr.msra.gmra.mrb[104].mxu0 %v19705_v48  ;;  %9215 = vmatmul.mubr.bf16.vlgmr.msra.gmra.mrb[104].mxu1 %v19705_v48  ;;  %v17279_v48 = vadd.f32 %v17150_v41, %v17014_v40  ;;  %v17294_v41 = vpop.f32.mrb[73].mxu1  ;;  %v6373_v25 = vadd.f32 1.0, %v12190_v36  ;;  %12213 = verf.f32 %v5997_v14  ;;  %v17336_v36 = vadd.f32 %v17199_v8, %v17008_v58 }
 0x4f8   : > { %8580 = vmatprep.mubr.bf16.mxu0 %v16826_v53  ;;  %8700 = vmatpush1.bf16.msra.mxu0 %v11765_v5  ;;  %v6367_v5 = vadd.f32 1.0, %v12184_v28  ;;  %19707 = vst [vmem:[#allocation112_spill] sm:$0xff] %v17294_v41  ;;  %v17296_v28 = vpop.f32.mrb[74].mxu0  ;;  %v17303_v39 = vpop.f32.mrb[74].mxu1  ;;  %v6368_v41 = vadd.f32 1.0, %v12188_v27 }
 0x4f9   : > { %9224 = vmatprep.mubr.bf16.mxu1 %v16826_v53  ;;  %9344 = vmatpush1.bf16.msra.mxu1 %v11768_v29  ;;  %v11782_v53 = vld [vmem:[%s13123_s24 + $0x44c] ss:$16 sps:$4 sm:$0xff]   ;;  %v17292_v29 = vadd.f32 %v17162_v54, %v17019_v12  ;;  %19708 = vst [vmem:[#allocation103_spill] sm:$0xff] %v17296_v28  ;;  %v17305_v17 = vpop.f32.mrb[75].mxu0  ;;  %v12192_v54 = vpop.eup %12191  ;;  %v11780_v28 = vld [vmem:[%s13123_s24 + $0x448] ss:$16 sps:$4 sm:$0xff]  }
 0x4fa   : > { %8701 = vmatprep.subr.bf16.mxu0 %v11773_v15  ;;  %9345 = vmatprep.subr.bf16.mxu1 %v11776_v2  ;;  %v6366_v15 = vadd.f32 1.0, %v12186_v0  ;;  %v17300_v2 = vmul.f32 0.5, %v17178_v10  ;;  %19709 = vst [vmem:[#allocation110_spill] sm:$0xff] %v17305_v17  ;;  %v5999_v10 = vmul.f32 0.70710677, %v17271_v35  ;;  %v17312_v0 = vpop.f32.mrb[75].mxu1  ;;  %v17315_v7 = vmul.f32 %v6367_v5, %v17156_v60  ;;  %v12194_v4 = vpop.eup %12193 }
 0x4fb   : > { %v11785_v17 = vld [vmem:[%s13123_s24 + $0x464] ss:$16 sps:$4 sm:$0xff]   ;;  %v5998_v20 = vmul.f32 0.70710677, %v17279_v48  ;;  %v11788_v27 = vld [vmem:[%s13123_s24 + $0x46c] ss:$16 sps:$4 sm:$0xff]   ;;  %v17326_v60 = vadd.f32 %v17188_v46, %v17005_v52  ;;  %v12196_v30 = vpop.eup %12195  ;;  %v17341_v46 = vmul.f32 %v6368_v41, %v17167_v19 }
 0x4fc   : > { %8702 = vmatpush1.bf16.msra.mxu0 %v11771_v32  ;;  %19711 = vst [vmem:[#allocation120_spill] sm:$0xff] %v17315_v7  ;;  %v17319_v32 = vmul.f32 0.5, %v17186_v62  ;;  %v17331_v62 = vmul.f32 %v6366_v15, %v17158_v22  ;;  %v11783_v5 = vld [vmem:[%s13123_s24 + $0x460] ss:$16 sps:$4 sm:$0xff]   ;;  %v11791_v22 = vld [vmem:[%s13123_s24 + $0x484] ss:$16 sps:$4 sm:$0xff]   ;;  %12215 = verf.f32 %v5999_v10  ;;  %v12198_v15 = vpop.eup %12197 }
 0x4fd   : > { %9346 = vmatpush1.bf16.msra.mxu1 %v11774_v34  ;;  %8703 = vmatprep.subr.bf16.mxu0 %v11779_v18  ;;  %v6000_v34 = vmul.f32 0.70710677, %v17292_v29  ;;  %v6375_v18 = vadd.f32 1.0, %v12192_v54  ;;  %19713 = vst [vmem:[#allocation118_spill] sm:$0xff] %v17341_v46  ;;  %v17352_v8 = vpop.f32.mrb[76].mxu0  ;;  %v17355_v19 = vmul.f32 0.5, %v17205_v6  ;;  %12217 = verf.f32 %v5998_v20  ;;  %v12200_v24 = vpop.eup %12199 }
 0x4fe   : > { %9347 = vmatprep.subr.bf16.mxu1 %v11782_v53  ;;  %19712 = vst [vmem:[#allocation114_spill] sm:$0xff] %v17331_v62  ;;  %v11786_v53 = vld [vmem:[%s13123_s24 + $0x468] ss:$16 sps:$4 sm:$0xff]   ;;  %v17358_v41 = vmul.f32 0.5, %v17220_v56  ;;  %v17362_v14 = vpop.f32.mrb[77].mxu0  ;;  %v17365_v54 = vmul.f32 %v6373_v25, %v17182_v57  ;;  %v17371_v56 = vadd.f32 %v17207_v26, %v17019_v12  ;;  %v12202_v20 = vpop.eup %12201  ;;  %v17388_v26 = vadd.f32 %v17209_v13, %v17005_v52 }
 0x4ff   : > { %8581 = vmatmul.mubr.bf16.gmra.mrb[108].mxu0 %v16839_v21  ;;  %9225 = vmatmul.mubr.bf16.gmra.mrb[108].mxu1 %v16839_v21  ;;  %v17345_v21 = vmul.f32 0.5, %v17197_v9  ;;  %v17360_v9 = vpop.f32.mrb[76].mxu1  ;;  %12219 = verf.f32 %v6000_v34  ;;  %v6005_v6 = vmul.f32 0.70710677, %v17326_v60  ;;  %v17375_v10 = vpop.f32.mrb[78].mxu0  ;;  %v6381_v62 = vadd.f32 1.0, %v12198_v15 }
 0x500   : > { %8590 = vmatprep.mubr.bf16.mxu0 %v16843_v38  ;;  %9234 = vmatprep.mubr.bf16.mxu1 %v16843_v38  ;;  %v6374_v38 = vadd.f32 1.0, %v12194_v4  ;;  %19714 = vst [vmem:[#allocation124_spill] sm:$0xff] %v17365_v54  ;;  %19715 = vst [vmem:[#allocation128_spill] sm:$0xff] %v17375_v10  ;;  %v17378_v4 = vmul.f32 %v6375_v18, %v17193_v11  ;;  %v11789_v57 = vld [vmem:[%s13123_s24 + $0x480] ss:$16 sps:$4 sm:$0xff]   ;;  %v17392_v7 = vpop.f32.mrb[79].mxu0  ;;  %v12204_v46 = vpop.eup %12203 }
 0x501   : > { %8704 = vmatpush1.bf16.msra.mxu0 %v11777_v63  ;;  %9348 = vmatpush1.bf16.msra.mxu1 %v11780_v28  ;;  %v11794_v63 = vld [vmem:[%s13123_s24 + $0x48c] ss:$16 sps:$4 sm:$0xff]   ;;  %v17373_v28 = vpop.f32.mrb[77].mxu1  ;;  %v11792_v25 = vld [vmem:[%s13123_s24 + $0x488] ss:$16 sps:$4 sm:$0xff]   ;;  %19718 = vst [vmem:[#allocation134_spill] sm:$0xff] %v17392_v7  ;;  %v12206_v44 = vpop.eup %12205  ;;  %12221 = verf.f32 %v6005_v6 }
 0x502   : > { %8705 = vmatprep.subr.bf16.mxu0 %v11785_v17  ;;  %9349 = vmatprep.subr.bf16.mxu1 %v11788_v27  ;;  %19716 = vst [vmem:[#allocation122_spill] sm:$0xff] %v17378_v4  ;;  %v17383_v17 = vmul.f32 0.5, %v17233_v1  ;;  %v6007_v27 = vmul.f32 0.70710677, %v17336_v36  ;;  %v17390_v34 = vpop.f32.mrb[78].mxu1  ;;  %v6376_v54 = vadd.f32 1.0, %v12196_v30  ;;  %v17404_v13 = vmul.f32 %v6374_v38, %v17238_v33 }
 0x503   : > { %19717 = vst [vmem:[#allocation126_spill] sm:$0xff] %v17390_v34  ;;  %v17395_v11 = vmul.f32 0.5, %v17243_v3  ;;  %v17398_v1 = vmul.f32 0.5, %v17254_v59  ;;  %v6006_v18 = vmul.f32 0.70710677, %v17350_v47  ;;  %v17401_v4 = vpop.f32.mrb[79].mxu1  ;;  %v12208_v59 = vpop.eup %12207  ;;  %v17425_v38 = vadd.f32 %v17224_v50, %v17014_v40 }
 0x504   : > { %19719 = vst [vmem:[#allocation141_spill] sm:$0xff] %v17404_v13  ;;  %v17407_v30 = vmul.f32 0.5, %v17267_v42  ;;  %v11797_v3 = vld [vmem:[%s13123_s24 + $0x4a4] ss:$16 sps:$4 sm:$0xff]   ;;  %v6008_v7 = vmul.f32 0.70710677, %v17371_v56  ;;  %12223 = verf.f32 %v6007_v27  ;;  %v17451_v13 = vmul.f32 %v6381_v62, %v17300_v2 }
 0x505   : > { %8706 = vmatpush1.bf16.msra.mxu0 %v11783_v5  ;;  %9350 = vmatpush1.bf16.msra.mxu1 %v11786_v53  ;;  %v6383_v34 = vadd.f32 1.0, %v12200_v24  ;;  %v11800_v10 = vld [vmem:[%s13123_s24 + $0x4ac] ss:$16 sps:$4 sm:$0xff]   ;;  %v6013_v33 = vmul.f32 0.70710677, %v17388_v26  ;;  %v17415_v5 = vadd.f32 %v17222_v23, %v17008_v58  ;;  %v12210_v53 = vpop.eup %12209  ;;  %v6382_v42 = vadd.f32 1.0, %v12202_v20 }
 0x506   : > { %8707 = vmatprep.subr.bf16.mxu0 %v11791_v22  ;;  %9351 = vmatprep.subr.bf16.mxu1 %v11794_v63  ;;  %v17420_v15 = vmul.f32 0.5, %v17271_v35  ;;  %v11795_v22 = vld [vmem:[%s13123_s24 + $0x4a0] ss:$16 sps:$4 sm:$0xff]   ;;  %v12212_v24 = vpop.eup %12211  ;;  %v6384_v23 = vadd.f32 1.0, %v12204_v46  ;;  %v17430_v63 = vmul.f32 0.5, %v17279_v48  ;;  %12225 = verf.f32 %v6006_v18  ;;  %v17437_v6 = vpop.f32.mrb[80].mxu0 }
 0x507   : > { %8591 = vmatmul.mubr.bf16.gmra.mrb[112].mxu0 %v16855_v37  ;;  %9235 = vmatmul.mubr.bf16.gmra.mrb[112].mxu1 %v16855_v37  ;;  %v11798_v37 = vld [vmem:[%s13123_s24 + $0x4a8] ss:$16 sps:$4 sm:$0xff]   ;;  %v17435_v35 = vadd.f32 %v17235_v16, %v17019_v12  ;;  %v12214_v50 = vpop.eup %12213  ;;  %v17440_v20 = vmul.f32 %v6376_v54, %v17259_v31  ;;  %v6389_v27 = vadd.f32 1.0, %v12206_v44  ;;  %12227 = verf.f32 %v6008_v7  ;;  %v11803_v48 = vld [vmem:[%s13123_s24 + $0x4c4] ss:$16 sps:$4 sm:$0xff]   ;;  %v17446_v46 = vpop.f32.mrb[80].mxu1 }
 0x508   : > { %8600 = vmatprep.mubr.bf16.mxu0 %v16859_v51  ;;  %9244 = vmatprep.mubr.bf16.mxu1 %v16859_v51  ;;  %v17443_v51 = vmul.f32 0.5, %v17292_v29  ;;  %v17448_v18 = vpop.f32.mrb[81].mxu0  ;;  %v12216_v16 = vpop.eup %12215  ;;  %19721 = vst [vmem:[#allocation138_spill] sm:$0xff] %v17451_v13  ;;  %v17454_v31 = vmul.f32 %v6383_v34, %v17319_v32  ;;  %12229 = verf.f32 %v6013_v33  ;;  %v6015_v44 = vmul.f32 0.70710677, %v17415_v5 }
 0x509   : > { %19720 = vst [vmem:[#allocation106_spill] sm:$0xff] %v17440_v20  ;;  %8708 = vmatpush1.bf16.msra.mxu0 %v11789_v57  ;;  %9352 = vmatpush1.bf16.msra.mxu1 %v11792_v25  ;;  %v11806_v29 = vld [vmem:[%s13123_s24 + $0x4cc] ss:$16 sps:$4 sm:$0xff]   ;;  %v17458_v7 = vpop.f32.mrb[81].mxu1  ;;  %v17460_v54 = vpop.f32.mrb[82].mxu0  ;;  %v17463_v25 = vmul.f32 %v6382_v42, %v17345_v21  ;;  %v17466_v2 = vmul.f32 0.5, %v17326_v60  ;;  %v17487_v20 = vmul.f32 %v6389_v27, %v17358_v41 }
 0x50a   : > { %19722 = vst [vmem:[#allocation145_spill] sm:$0xff] %v17454_v31  ;;  %8709 = vmatprep.subr.bf16.mxu0 %v11797_v3  ;;  %9353 = vmatprep.subr.bf16.mxu1 %v11800_v10  ;;  %v12218_v57 = vpop.eup %12217  ;;  %v17469_v32 = vmul.f32 0.5, %v17336_v36  ;;  %v6014_v62 = vmul.f32 0.70710677, %v17425_v38  ;;  %v11801_v10 = vld [vmem:[%s13123_s24 + $0x4c0] ss:$16 sps:$4 sm:$0xff]   ;;  %v17478_v31 = vmul.f32 %v6384_v23, %v17355_v19  ;;  %v10835_v19 = vadd.f32 %v17273_v55, %v17005_v52 }
 0x50b   : > { %19723 = vst [vmem:[#allocation147_spill] sm:$0xff] %v17463_v25  ;;  %v17473_v34 = vpop.f32.mrb[82].mxu1  ;;  %v17475_v3 = vpop.f32.mrb[83].mxu0  ;;  %v6391_v21 = vadd.f32 1.0, %v12208_v59  ;;  %v17481_v60 = vmul.f32 0.5, %v17350_v47  ;;  %19726 = vst [vmem:[#allocation148_spill] sm:$0xff] %v17487_v20  ;;  %12231 = verf.f32 %v6015_v44  ;;  %v10885_v55 = vadd.f32 %v17281_v45, %v17008_v58 }
 0x50c   : > { %19724 = vst [vmem:[#allocation149_spill] sm:$0xff] %v17475_v3  ;;  %v12220_v33 = vpop.eup %12219  ;;  %19725 = vst [vmem:[#allocation146_spill] sm:$0xff] %v17478_v31  ;;  %v6016_v36 = vmul.f32 0.70710677, %v17435_v35  ;;  %v17484_v42 = vpop.f32.mrb[83].mxu1  ;;  %v6390_v13 = vadd.f32 1.0, %v12210_v53  ;;  %12233 = verf.f32 %v6014_v62 }
 0x50d   : > { %v6392_v25 = vadd.f32 1.0, %v12212_v24  ;;  %8710 = vmatpush1.bf16.msra.mxu0 %v11795_v22  ;;  %9354 = vmatpush1.bf16.msra.mxu1 %v11798_v37  ;;  %v11804_v3 = vld [vmem:[%s13123_s24 + $0x4c8] ss:$16 sps:$4 sm:$0xff]   ;;  %v11809_v59 = vld [vmem:[%s13123_s24 + $0x4e4] ss:$16 sps:$4 sm:$0xff]   ;;  %v6397_v47 = vadd.f32 1.0, %v12214_v50  ;;  %v12222_v37 = vpop.eup %12221 }
 0x50e   : > { %v6399_v23 = vadd.f32 1.0, %v12216_v16  ;;  %v17494_v31 = vmul.f32 0.5, %v17371_v56  ;;  %8711 = vmatprep.subr.bf16.mxu0 %v11803_v48  ;;  %9355 = vmatprep.subr.bf16.mxu1 %v11806_v29  ;;  %v11812_v41 = vld [vmem:[%s13123_s24 + $0x4ec] ss:$16 sps:$4 sm:$0xff]   ;;  %v6398_v53 = vadd.f32 1.0, %v12218_v57  ;;  %v6400_v22 = vadd.f32 1.0, %v12220_v33  ;;  %v12224_v16 = vpop.eup %12223 }
 0x50f   : > { %8601 = vmatmul.mubr.bf16.gmra.mrb[116].mxu0 %v16863_v49  ;;  %9245 = vmatmul.mubr.bf16.gmra.mrb[116].mxu1 %v16863_v49  ;;  %v11807_v24 = vld [vmem:[%s13123_s24 + $0x4e0] ss:$16 sps:$4 sm:$0xff]   ;;  %v17505_v56 = vmul.f32 %v6391_v21, %v17383_v17  ;;  %v17508_v50 = vmul.f32 0.5, %v17388_v26  ;;  %12235 = verf.f32 %v6016_v36  ;;  %v10836_v49 = vadd.f32 %v17283_v43, %v17014_v40  ;;  %v11810_v27 = vld [vmem:[%s13123_s24 + $0x4e8] ss:$16 sps:$4 sm:$0xff]   ;;  %v17514_v45 = vpop.f32.mrb[84].mxu0 }
 0x510   : > { %8610 = vmatprep.mubr.bf16.mxu0 %v16867_v61  ;;  %9254 = vmatprep.mubr.bf16.mxu1 %v16867_v61  ;;  %v11815_v48 = vld [vmem:[%s13123_s24 + $0x504] ss:$16 sps:$4 sm:$0xff]   ;;  %v17517_v44 = vmul.f32 %v6390_v13, %v17395_v11  ;;  %v17520_v61 = vmul.f32 %v6392_v25, %v17398_v1  ;;  %v6021_v17 = vmul.f32 0.70710677, %v10835_v19  ;;  %v19730_v26 = vld [vmem:[#allocation112_spill] sm:$0xff]  ;;  %v17525_v62 = vpop.f32.mrb[84].mxu1  ;;  %v12226_v33 = vpop.eup %12225  ;;  %v17530_v11 = vmul.f32 %v6397_v47, %v17407_v30 }
 0x511   : > { %19727 = vst [vmem:[#allocation151_spill] sm:$0xff] %v17505_v56  ;;  %8712 = vmatpush1.bf16.msra.mxu0 %v11801_v10  ;;  %9356 = vmatpush1.bf16.msra.mxu1 %v11804_v3  ;;  %v10886_v29 = vadd.f32 %v19730_v26, %v17019_v12  ;;  %v11818_v57 = vld [vmem:[%s13123_s24 + $0x50c] ss:$16 sps:$4 sm:$0xff]   ;;  %v17527_v43 = vpop.f32.mrb[85].mxu0  ;;  %v17533_v1 = vmul.f32 0.5, %v17415_v5  ;;  %v17536_v13 = vmul.f32 0.5, %v17425_v38  ;;  %v12228_v21 = vpop.eup %12227  ;;  %v17546_v36 = vmul.f32 %v6399_v23, %v17420_v15 }
 0x512   : > { %19728 = vst [vmem:[#allocation129_spill] sm:$0xff] %v17517_v44  ;;  %19729 = vst [vmem:[#allocation150_spill] sm:$0xff] %v17520_v61  ;;  %v17539_v25 = vmul.f32 0.5, %v17435_v35  ;;  %8713 = vmatprep.subr.bf16.mxu0 %v11809_v59  ;;  %9357 = vmatprep.subr.bf16.mxu1 %v11812_v41  ;;  %v17541_v10 = vpop.f32.mrb[85].mxu1  ;;  %v17543_v3 = vpop.f32.mrb[86].mxu0  ;;  %v17549_v30 = vmul.f32 %v6398_v53, %v17430_v63  ;;  %v17552_v5 = vmul.f32 %v6400_v22, %v17443_v51  ;;  %v19735_v23 = vld [vmem:[#allocation103_spill] sm:$0xff] }
 0x513   : > { %19731 = vst [vmem:[#allocation131_spill] sm:$0xff] %v17530_v11  ;;  %19732 = vst [vmem:[#allocation107_spill] sm:$0xff] %v17546_v36  ;;  %v6023_v38 = vmul.f32 0.70710677, %v10885_v55  ;;  %v11813_v47 = vld [vmem:[%s13123_s24 + $0x500] ss:$16 sps:$4 sm:$0xff]   ;;  %v12230_v26 = vpop.eup %12229  ;;  %v10837_v63 = vadd.f32 %v19735_v23, %v17005_v52  ;;  %12237 = verf.f32 %v6021_v17  ;;  %v10887_v36 = vadd.f32 %v17303_v39, %v17008_v58 }
 0x514   : > { %19733 = vst [vmem:[#allocation135_spill] sm:$0xff] %v17549_v30  ;;  %19734 = vst [vmem:[#allocation108_spill] sm:$0xff] %v17552_v5  ;;  %v11816_v35 = vld [vmem:[%s13123_s24 + $0x508] ss:$16 sps:$4 sm:$0xff]   ;;  %v17556_v59 = vpop.f32.mrb[86].mxu1  ;;  %v17558_v41 = vpop.f32.mrb[87].mxu0 }
 0x515   : > { %v6405_v56 = vadd.f32 1.0, %v12222_v37  ;;  %v17560_v61 = vmul.f32 0.5, %v10835_v19  ;;  %v6022_v15 = vmul.f32 0.70710677, %v10836_v49  ;;  %v17564_v53 = vpop.f32.mrb[87].mxu1  ;;  %v6407_v51 = vadd.f32 1.0, %v12224_v16  ;;  %8714 = vmatpush1.bf16.msra.mxu0 %v11807_v24  ;;  %9358 = vmatpush1.bf16.msra.mxu1 %v11810_v27 }
 0x516   : > { %v6024_v22 = vmul.f32 0.70710677, %v10886_v29  ;;  %v11821_v5 = vld [vmem:[%s13123_s24 + $0x524] ss:$16 sps:$4 sm:$0xff]   ;;  %v6406_v37 = vadd.f32 1.0, %v12226_v33  ;;  %v17569_v19 = vmul.f32 0.5, %v10885_v55  ;;  %8715 = vmatprep.subr.bf16.mxu0 %v11815_v48  ;;  %9359 = vmatprep.subr.bf16.mxu1 %v11818_v57  ;;  %12239 = verf.f32 %v6023_v38 }
 0x517   : > { %v17571_v11 = vmul.f32 0.5, %v10836_v49  ;;  %v19736_v20 = vld [vmem:[#allocation110_spill] sm:$0xff]  ;;  %v19737_v17 = vld [vmem:[#allocation137_spill] sm:$0xff]  ;;  %v6408_v39 = vadd.f32 1.0, %v12228_v21  ;;  %v6413_v24 = vadd.f32 1.0, %v12230_v26  ;;  %v10888_v55 = vadd.f32 %v17312_v0, %v17019_v12  ;;  %v12232_v49 = vpop.eup %12231  ;;  %v17589_v26 = vpop.f32.mrb[88].mxu0 }
 0x518   : > { %v10838_v23 = vadd.f32 %v19736_v20, %v17014_v40  ;;  %v11824_v16 = vld [vmem:[%s13123_s24 + $0x52c] ss:$16 sps:$4 sm:$0xff]   ;;  %8611 = vmatmul.mubr.bf16.gmra.mrb[120].mxu0 %v19737_v17  ;;  %9255 = vmatmul.mubr.bf16.gmra.mrb[120].mxu1 %v19737_v17  ;;  %v11819_v27 = vld [vmem:[%s13123_s24 + $0x520] ss:$16 sps:$4 sm:$0xff]   ;;  %v17584_v20 = vmul.f32 %v6405_v56, %v17466_v2  ;;  %12241 = verf.f32 %v6022_v15  ;;  %v17586_v48 = vmul.f32 0.5, %v10886_v29  ;;  %v12234_v38 = vpop.eup %12233  ;;  %v17597_v56 = vpop.f32.mrb[88].mxu1 }
 0x519   : > { %v19738_v33 = vld [vmem:[#allocation90_spill] sm:$0xff]  ;;  %v6029_v57 = vmul.f32 0.70710677, %v10837_v63  ;;  %v17592_v0 = vmul.f32 %v6407_v51, %v17469_v32  ;;  %12243 = verf.f32 %v6024_v22  ;;  %v6031_v17 = vmul.f32 0.70710677, %v10887_v36  ;;  %8716 = vmatpush1.bf16.msra.mxu0 %v11813_v47  ;;  %9360 = vmatpush1.bf16.msra.mxu1 %v11816_v35  ;;  %v17599_v29 = vpop.f32.mrb[89].mxu0  ;;  %v12236_v15 = vpop.eup %12235 }
 0x51a   : > { %8620 = vmatprep.mubr.bf16.mxu0 %v19738_v33  ;;  %9264 = vmatprep.mubr.bf16.mxu1 %v19738_v33  ;;  %19739 = vst [vmem:[#allocation130_spill] sm:$0xff] %v17584_v20  ;;  %v11822_v21 = vld [vmem:[%s13123_s24 + $0x528] ss:$16 sps:$4 sm:$0xff]   ;;  %v10839_v33 = vadd.f32 %v17352_v8, %v17005_v52  ;;  %v11827_v2 = vld [vmem:[%s13123_s24 + $0x544] ss:$16 sps:$4 sm:$0xff]   ;;  %v17602_v20 = vmul.f32 %v6406_v37, %v17481_v60  ;;  %v17604_v32 = vmul.f32 0.5, %v10837_v63 }
 0x51b   : > { %19740 = vst [vmem:[#allocation132_spill] sm:$0xff] %v17592_v0  ;;  %v6030_v51 = vmul.f32 0.70710677, %v10838_v23  ;;  %v17608_v8 = vadd.f32 %v17360_v9, %v17008_v58  ;;  %8717 = vmatprep.subr.bf16.mxu0 %v11821_v5  ;;  %9361 = vmatprep.subr.bf16.mxu1 %v11824_v16  ;;  %v11830_v47 = vld [vmem:[%s13123_s24 + $0x54c] ss:$16 sps:$4 sm:$0xff]   ;;  %v17611_v35 = vpop.f32.mrb[89].mxu1  ;;  %v17614_v22 = vmul.f32 %v6408_v39, %v17494_v31  ;;  %12245 = verf.f32 %v6029_v57 }
 0x51c   : > { %19741 = vst [vmem:[#allocation136_spill] sm:$0xff] %v17602_v20  ;;  %v17617_v0 = vmul.f32 %v6413_v24, %v17508_v50  ;;  %v17619_v60 = vmul.f32 0.5, %v10887_v36  ;;  %v6032_v63 = vmul.f32 0.70710677, %v10888_v55  ;;  %v11825_v37 = vld [vmem:[%s13123_s24 + $0x540] ss:$16 sps:$4 sm:$0xff]   ;;  %v10840_v9 = vadd.f32 %v17362_v14, %v17014_v40 }
 0x51d   : > { %19742 = vst [vmem:[#allocation84_spill] sm:$0xff] %v17614_v22  ;;  %v11828_v20 = vld [vmem:[%s13123_s24 + $0x548] ss:$16 sps:$4 sm:$0xff]   ;;  %v6415_v30 = vadd.f32 1.0, %v12232_v49  ;;  %v6414_v44 = vadd.f32 1.0, %v12234_v38  ;;  %v17626_v16 = vpop.f32.mrb[90].mxu0  ;;  %12247 = verf.f32 %v6031_v17  ;;  %v10890_v36 = vadd.f32 %v17373_v28, %v17019_v12  ;;  %8718 = vmatpush1.bf16.msra.mxu0 %v11819_v27  ;;  %9362 = vmatpush1.bf16.msra.mxu1 %v11822_v21  ;;  %v12238_v27 = vpop.eup %12237 }
 0x51e   : > { %19743 = vst [vmem:[#allocation140_spill] sm:$0xff] %v17617_v0  ;;  %v11833_v5 = vld [vmem:[%s13123_s24 + $0x564] ss:$16 sps:$4 sm:$0xff]   ;;  %v17628_v31 = vpop.f32.mrb[90].mxu1  ;;  %v6416_v39 = vadd.f32 1.0, %v12236_v15  ;;  %v17632_v24 = vpop.f32.mrb[91].mxu0  ;;  %12249 = verf.f32 %v6030_v51  ;;  %8719 = vmatprep.subr.bf16.mxu0 %v11827_v2  ;;  %9363 = vmatprep.subr.bf16.mxu1 %v11830_v47 }
 0x51f   : > { %19744 = vst [vmem:[#allocation86_spill] sm:$0xff] %v17628_v31  ;;  %v6037_v50 = vmul.f32 0.70710677, %v10839_v33  ;;  %19745 = vst [vmem:[#allocation143_spill] sm:$0xff] %v17632_v24  ;;  %v17634_v49 = vpop.f32.mrb[91].mxu1  ;;  %v17636_v14 = vmul.f32 0.5, %v10838_v23  ;;  %12251 = verf.f32 %v6032_v63  ;;  %v17657_v2 = vmul.f32 %v6415_v30, %v17533_v1 }
 0x520   : > { %19746 = vst [vmem:[#allocation87_spill] sm:$0xff] %v17634_v49  ;;  %v6039_v57 = vmul.f32 0.70710677, %v17608_v8  ;;  %v19747_v38 = vld [vmem:[#allocation128_spill] sm:$0xff]  ;;  %v17646_v15 = vmul.f32 0.5, %v10888_v55  ;;  %v17648_v23 = vmul.f32 0.5, %v10839_v33  ;;  %v17660_v47 = vmul.f32 %v6414_v44, %v17536_v13  ;;  %v12240_v24 = vpop.eup %12239 }
 0x521   : > { %v17641_v17 = vadd.f32 %v19747_v38, %v17005_v52  ;;  %v11836_v28 = vld [vmem:[%s13123_s24 + $0x56c] ss:$16 sps:$4 sm:$0xff]   ;;  %v11831_v38 = vld [vmem:[%s13123_s24 + $0x560] ss:$16 sps:$4 sm:$0xff]   ;;  %v11834_v0 = vld [vmem:[%s13123_s24 + $0x568] ss:$16 sps:$4 sm:$0xff]   ;;  %v17672_v31 = vmul.f32 %v6416_v39, %v17539_v25  ;;  %12253 = verf.f32 %v6037_v50  ;;  %v17676_v44 = vadd.f32 %v17401_v4, %v17019_v12  ;;  %8720 = vmatpush1.bf16.msra.mxu0 %v11825_v37  ;;  %9364 = vmatpush1.bf16.msra.mxu1 %v11828_v20 }
 0x522   : > { %v19748_v21 = vld [vmem:[#allocation92_spill] sm:$0xff]  ;;  %v19749_v51 = vld [vmem:[#allocation126_spill] sm:$0xff]  ;;  %19750 = vst [vmem:[#allocation144_spill] sm:$0xff] %v17657_v2  ;;  %19751 = vst [vmem:[#allocation85_spill] sm:$0xff] %v17660_v47  ;;  %v6038_v55 = vmul.f32 0.70710677, %v10840_v9  ;;  %12255 = verf.f32 %v6039_v57  ;;  %v17684_v25 = vadd.f32 %v17437_v6, %v17005_v52  ;;  %8721 = vmatprep.subr.bf16.mxu0 %v11833_v5  ;;  %9365 = vmatprep.subr.bf16.mxu1 %v11836_v28 }
 0x523   : > { %8621 = vmatmul.mubr.bf16.gmra.mrb[124].mxu0 %v19748_v21  ;;  %9265 = vmatmul.mubr.bf16.gmra.mrb[124].mxu1 %v19748_v21  ;;  %v17652_v22 = vadd.f32 %v19749_v51, %v17008_v58  ;;  %v19752_v49 = vld [vmem:[#allocation88_spill] sm:$0xff]  ;;  %v19753_v33 = vld [vmem:[#allocation134_spill] sm:$0xff]  ;;  %v11839_v21 = vld [vmem:[%s13123_s24 + $0x584] ss:$16 sps:$4 sm:$0xff]   ;;  %v17669_v51 = vpop.f32.mrb[92].mxu0  ;;  %19754 = vst [vmem:[#allocation142_spill] sm:$0xff] %v17672_v31 }
 0x524   : > { %8630 = vmatprep.mubr.bf16.mxu0 %v19752_v49  ;;  %9274 = vmatprep.mubr.bf16.mxu1 %v19752_v49  ;;  %v17666_v63 = vadd.f32 %v19753_v33, %v17014_v40  ;;  %v6040_v1 = vmul.f32 0.70710677, %v10890_v36  ;;  %v11842_v13 = vld [vmem:[%s13123_s24 + $0x58c] ss:$16 sps:$4 sm:$0xff]   ;;  %v17679_v30 = vpop.f32.mrb[92].mxu1  ;;  %v12242_v49 = vpop.eup %12241  ;;  %v6421_v33 = vadd.f32 1.0, %v12238_v27  ;;  %v17698_v27 = vadd.f32 %v17446_v46, %v17008_v58 }
 0x525   : > { %19755 = vst [vmem:[#allocation83_spill] sm:$0xff] %v17679_v30  ;;  %v6045_v2 = vmul.f32 0.70710677, %v17641_v17  ;;  %v17686_v4 = vpop.f32.mrb[93].mxu0  ;;  %v17688_v37 = vpop.f32.mrb[93].mxu1  ;;  %v17691_v39 = vmul.f32 0.5, %v17608_v8  ;;  %12257 = verf.f32 %v6038_v55  ;;  %8722 = vmatpush1.bf16.msra.mxu0 %v11831_v38  ;;  %9366 = vmatpush1.bf16.msra.mxu1 %v11834_v0 }
 0x526   : > { %19756 = vst [vmem:[#allocation89_spill] sm:$0xff] %v17686_v4  ;;  %19757 = vst [vmem:[#allocation112_spill] sm:$0xff] %v17688_v37  ;;  %v12244_v20 = vpop.eup %12243  ;;  %v17693_v50 = vmul.f32 0.5, %v10840_v9  ;;  %v6047_v57 = vmul.f32 0.70710677, %v17652_v22  ;;  %v17702_v28 = vpop.f32.mrb[94].mxu0  ;;  %v17709_v9 = vadd.f32 %v17448_v18, %v17014_v40  ;;  %12259 = verf.f32 %v6040_v1  ;;  %8723 = vmatprep.subr.bf16.mxu0 %v11839_v21  ;;  %9367 = vmatprep.subr.bf16.mxu1 %v11842_v13 }
 0x527   : > { %v11837_v6 = vld [vmem:[%s13123_s24 + $0x580] ss:$16 sps:$4 sm:$0xff]   ;;  %v11840_v5 = vld [vmem:[%s13123_s24 + $0x588] ss:$16 sps:$4 sm:$0xff]   ;;  %19758 = vst [vmem:[#allocation103_spill] sm:$0xff] %v17702_v28  ;;  %v17704_v31 = vpop.f32.mrb[94].mxu1  ;;  %v12246_v55 = vpop.eup %12245  ;;  %12261 = verf.f32 %v6045_v2 }
 0x528   : > { %19759 = vst [vmem:[#allocation110_spill] sm:$0xff] %v17704_v31  ;;  %v6423_v47 = vadd.f32 1.0, %v12240_v24  ;;  %v6046_v8 = vmul.f32 0.70710677, %v17666_v63  ;;  %v17711_v37 = vpop.f32.mrb[95].mxu0  ;;  %v17713_v46 = vpop.f32.mrb[95].mxu1  ;;  %12263 = verf.f32 %v6047_v57 }
 0x529   : > { %19760 = vst [vmem:[#allocation137_spill] sm:$0xff] %v17711_v37  ;;  %19761 = vst [vmem:[#allocation90_spill] sm:$0xff] %v17713_v46  ;;  %v6422_v4 = vadd.f32 1.0, %v12242_v49  ;;  %v17715_v30 = vmul.f32 0.5, %v10890_v36  ;;  %v6048_v28 = vmul.f32 0.70710677, %v17676_v44  ;;  %v17722_v37 = vadd.f32 %v17458_v7, %v17019_v12  ;;  %v12248_v1 = vpop.eup %12247  ;;  %8724 = vmatpush1.bf16.msra.mxu0 %v11837_v6  ;;  %9368 = vmatpush1.bf16.msra.mxu1 %v11840_v5 }
 0x52a   : > { %v11845_v24 = vld [vmem:[%s13123_s24 + $0x5a4] ss:$16 sps:$4 sm:$0xff]   ;;  %v6424_v31 = vadd.f32 1.0, %v12244_v20  ;;  %v6053_v18 = vmul.f32 0.70710677, %v17684_v25  ;;  %v17726_v49 = vmul.f32 %v6421_v33, %v17560_v61  ;;  %v19763_v0 = vld [vmem:[#allocation96_spill] sm:$0xff]  ;;  %v12250_v21 = vpop.eup %12249  ;;  %v17737_v13 = vmul.f32 %v6423_v47, %v17569_v19 }
 0x52b   : > { %v11848_v36 = vld [vmem:[%s13123_s24 + $0x5ac] ss:$16 sps:$4 sm:$0xff]   ;;  %8631 = vmatmul.mubr.bf16.gmra.mrb[128].mxu0 %v19763_v0  ;;  %9275 = vmatmul.mubr.bf16.gmra.mrb[128].mxu1 %v19763_v0  ;;  %v17731_v38 = vmul.f32 0.5, %v17641_v17  ;;  %v6055_v2 = vmul.f32 0.70710677, %v17698_v27  ;;  %12265 = verf.f32 %v6046_v8  ;;  %v17744_v17 = vadd.f32 %v17460_v54, %v17005_v52  ;;  %v17746_v33 = vpop.f32.mrb[96].mxu0  ;;  %v12252_v0 = vpop.eup %12251 }
 0x52c   : > { %19762 = vst [vmem:[#allocation128_spill] sm:$0xff] %v17726_v49  ;;  %v11843_v7 = vld [vmem:[%s13123_s24 + $0x5a0] ss:$16 sps:$4 sm:$0xff]   ;;  %v11846_v20 = vld [vmem:[%s13123_s24 + $0x5a8] ss:$16 sps:$4 sm:$0xff]   ;;  %19764 = vst [vmem:[#allocation92_spill] sm:$0xff] %v17737_v13  ;;  %v17750_v49 = vmul.f32 %v6422_v4, %v17571_v11  ;;  %12267 = verf.f32 %v6048_v28  ;;  %v17754_v47 = vadd.f32 %v17473_v34, %v17008_v58  ;;  %v17762_v13 = vmul.f32 %v6424_v31, %v17586_v48  ;;  %v12254_v6 = vpop.eup %12253 }
 0x52d   : > { %v19765_v46 = vld [vmem:[#allocation100_spill] sm:$0xff]  ;;  %v6054_v61 = vmul.f32 0.70710677, %v17709_v9  ;;  %19766 = vst [vmem:[#allocation126_spill] sm:$0xff] %v17746_v33  ;;  %v11851_v57 = vld [vmem:[%s13123_s24 + $0x5c4] ss:$16 sps:$4 sm:$0xff]   ;;  %12269 = verf.f32 %v6053_v18  ;;  %8725 = vmatprep.subr.bf16.mxu0 %v11845_v24  ;;  %9369 = vmatprep.subr.bf16.mxu1 %v11848_v36  ;;  %v12256_v36 = vpop.eup %12255 }
 0x52e   : > { %8640 = vmatprep.mubr.bf16.mxu0 %v19765_v46  ;;  %9284 = vmatprep.mubr.bf16.mxu1 %v19765_v46  ;;  %19767 = vst [vmem:[#allocation88_spill] sm:$0xff] %v17750_v49  ;;  %v6429_v19 = vadd.f32 1.0, %v12246_v55  ;;  %v17756_v8 = vpop.f32.mrb[96].mxu1  ;;  %v11854_v54 = vld [vmem:[%s13123_s24 + $0x5cc] ss:$16 sps:$4 sm:$0xff]   ;;  %v17759_v46 = vpop.f32.mrb[97].mxu0  ;;  %12271 = verf.f32 %v6055_v2 }
 0x52f   : > { %19768 = vst [vmem:[#allocation134_spill] sm:$0xff] %v17762_v13  ;;  %v6431_v33 = vadd.f32 1.0, %v12248_v1  ;;  %v6056_v11 = vmul.f32 0.70710677, %v17722_v37  ;;  %v17765_v34 = vpop.f32.mrb[97].mxu1  ;;  %v17767_v4 = vpop.f32.mrb[98].mxu0  ;;  %12273 = verf.f32 %v6054_v61  ;;  %v17798_v61 = vadd.f32 %v17514_v45, %v17005_v52  ;;  %8726 = vmatpush1.bf16.msra.mxu0 %v11843_v7  ;;  %9370 = vmatpush1.bf16.msra.mxu1 %v11846_v20 }
 0x530   : > { %19769 = vst [vmem:[#allocation96_spill] sm:$0xff] %v17765_v34  ;;  %v6430_v5 = vadd.f32 1.0, %v12250_v21  ;;  %v17770_v28 = vmul.f32 0.5, %v17652_v22  ;;  %v19770_v48 = vld [vmem:[#allocation149_spill] sm:$0xff]  ;;  %v17777_v18 = vpop.f32.mrb[98].mxu1  ;;  %v17779_v24 = vpop.f32.mrb[99].mxu0  ;;  %v17784_v22 = vadd.f32 %v17484_v42, %v17019_v12  ;;  %8727 = vmatprep.subr.bf16.mxu0 %v11851_v57  ;;  %9371 = vmatprep.subr.bf16.mxu1 %v11854_v54 }
 0x531   : > { %v17774_v31 = vadd.f32 %v19770_v48, %v17014_v40  ;;  %v11849_v55 = vld [vmem:[%s13123_s24 + $0x5c0] ss:$16 sps:$4 sm:$0xff]   ;;  %19771 = vst [vmem:[#allocation100_spill] sm:$0xff] %v17779_v24  ;;  %v6432_v1 = vadd.f32 1.0, %v12252_v0  ;;  %v6061_v13 = vmul.f32 0.70710677, %v17744_v17  ;;  %v17790_v48 = vmul.f32 %v6429_v19, %v17604_v32  ;;  %v12258_v0 = vpop.eup %12257 }
 0x532   : > { %v11852_v2 = vld [vmem:[%s13123_s24 + $0x5c8] ss:$16 sps:$4 sm:$0xff]   ;;  %v17787_v21 = vpop.f32.mrb[99].mxu1  ;;  %v17793_v49 = vmul.f32 0.5, %v17666_v63  ;;  %v6063_v24 = vmul.f32 0.70710677, %v17754_v47  ;;  %12275 = verf.f32 %v6056_v11  ;;  %v12260_v19 = vpop.eup %12259  ;;  %v17807_v45 = vmul.f32 %v6431_v33, %v17619_v60 }
 0x533   : > { %19772 = vst [vmem:[#allocation149_spill] sm:$0xff] %v17787_v21  ;;  %19773 = vst [vmem:[#allocation152_spill] sm:$0xff] %v17790_v48  ;;  %v11857_v42 = vld [vmem:[%s13123_s24 + $0x5e4] ss:$16 sps:$4 sm:$0xff]   ;;  %v6437_v34 = vadd.f32 1.0, %v12254_v6  ;;  %v17802_v21 = vmul.f32 0.5, %v17676_v44  ;;  %v17810_v7 = vmul.f32 %v6430_v5, %v17636_v14  ;;  %v12262_v54 = vpop.eup %12261  ;;  %v17820_v6 = vmul.f32 %v6432_v1, %v17646_v15  ;;  %8728 = vmatpush1.bf16.msra.mxu0 %v11849_v55 }
 0x534   : > { %v6062_v32 = vmul.f32 0.70710677, %v17774_v31  ;;  %v11860_v63 = vld [vmem:[%s13123_s24 + $0x5ec] ss:$16 sps:$4 sm:$0xff]   ;;  %19774 = vst [vmem:[#allocation153_spill] sm:$0xff] %v17807_v45  ;;  %v6439_v20 = vadd.f32 1.0, %v12256_v36  ;;  %12277 = verf.f32 %v6061_v13  ;;  %v12264_v36 = vpop.eup %12263  ;;  %v10897_v1 = vadd.f32 %v17525_v62, %v17008_v58  ;;  %9372 = vmatpush1.bf16.msra.mxu1 %v11852_v2  ;;  %8729 = vmatprep.subr.bf16.mxu0 %v11857_v42 }
 0x535   : > { %v19775_v48 = vld [vmem:[#allocation94_spill] sm:$0xff]  ;;  %v17815_v44 = vmul.f32 0.5, %v17684_v25  ;;  %v11855_v11 = vld [vmem:[%s13123_s24 + $0x5e0] ss:$16 sps:$4 sm:$0xff]   ;;  %v17825_v14 = vmul.f32 0.5, %v17698_v27  ;;  %v17828_v5 = vpop.f32.mrb[100].mxu0  ;;  %12279 = verf.f32 %v6063_v24  ;;  %v12266_v13 = vpop.eup %12265  ;;  %v17839_v45 = vmul.f32 %v6437_v34, %v17648_v23  ;;  %9373 = vmatprep.subr.bf16.mxu1 %v11860_v63 }
 0x536   : > { %8641 = vmatmul.mubr.bf16.gmra.mrb[132].mxu0 %v19775_v48  ;;  %9285 = vmatmul.mubr.bf16.gmra.mrb[132].mxu1 %v19775_v48  ;;  %v11858_v57 = vld [vmem:[%s13123_s24 + $0x5e8] ss:$16 sps:$4 sm:$0xff]   ;;  %v6064_v33 = vmul.f32 0.70710677, %v17784_v22  ;;  %19777 = vst [vmem:[#allocation94_spill] sm:$0xff] %v17828_v5  ;;  %v6438_v48 = vadd.f32 1.0, %v12258_v0  ;;  %12281 = verf.f32 %v6062_v32  ;;  %v12268_v55 = vpop.eup %12267  ;;  %v17848_v2 = vmul.f32 %v6439_v20, %v17691_v39 }
 0x537   : > { %v19776_v60 = vld [vmem:[#allocation98_spill] sm:$0xff]  ;;  %v11863_v25 = vld [vmem:[%s13123_s24 + $0x604] ss:$16 sps:$4 sm:$0xff]   ;;  %v6069_v15 = vmul.f32 0.70710677, %v17798_v61  ;;  %v17836_v27 = vpop.f32.mrb[101].mxu0  ;;  %v10848_v23 = vadd.f32 %v17527_v43, %v17014_v40  ;;  %v12270_v34 = vpop.eup %12269  ;;  %v10898_v42 = vadd.f32 %v17541_v10, %v17019_v12  ;;  %8730 = vmatpush1.bf16.msra.mxu0 %v11855_v11 }
 0x538   : > { %8650 = vmatprep.mubr.bf16.mxu0 %v19776_v60  ;;  %9294 = vmatprep.mubr.bf16.mxu1 %v19776_v60  ;;  %v17834_v60 = vpop.f32.mrb[100].mxu1  ;;  %19779 = vst [vmem:[#allocation154_spill] sm:$0xff] %v17836_v27  ;;  %v6440_v5 = vadd.f32 1.0, %v12260_v19  ;;  %v17842_v0 = vmul.f32 0.5, %v17709_v9  ;;  %v11866_v62 = vld [vmem:[%s13123_s24 + $0x60c] ss:$16 sps:$4 sm:$0xff]   ;;  %12283 = verf.f32 %v6064_v33  ;;  %v12272_v39 = vpop.eup %12271  ;;  %v17861_v20 = vmul.f32 %v6438_v48, %v17693_v50 }
 0x539   : > { %19778 = vst [vmem:[#allocation98_spill] sm:$0xff] %v17834_v60  ;;  %v17844_v24 = vpop.f32.mrb[101].mxu1  ;;  %v6445_v60 = vadd.f32 1.0, %v12262_v54  ;;  %v17851_v27 = vmul.f32 0.5, %v17722_v37  ;;  %v6447_v9 = vadd.f32 1.0, %v12264_v36  ;;  %v17856_v32 = vmul.f32 0.5, %v17744_v17  ;;  %9374 = vmatpush1.bf16.msra.mxu1 %v11858_v57  ;;  %8860 = vmatprep.subr.bf16.mxu0 %v11863_v25 }
 0x53a   : > { %19780 = vst [vmem:[#allocation155_spill] sm:$0xff] %v17844_v24  ;;  %v5412_v63 = vpop.f32.mrb[102].mxu0  ;;  %v5734_v19 = vpop.f32.mrb[102].mxu1  ;;  %v6446_v37 = vadd.f32 1.0, %v12266_v13  ;;  %12285 = verf.f32 %v6069_v15  ;;  %v6071_v54 = vmul.f32 0.70710677, %v10897_v1  ;;  %v17864_v17 = vmul.f32 %v6440_v5, %v17715_v30  ;;  %9504 = vmatprep.subr.bf16.mxu1 %v11866_v62 }
 0x53b   : > { %v5413_v43 = vpop.f32.mrb[103].mxu0  ;;  %v5735_v36 = vpop.f32.mrb[103].mxu1  ;;  %v6448_v33 = vadd.f32 1.0, %v12268_v55  ;;  %v5863_v10 = vmul.f32 0.5, %v17754_v47  ;;  %v10849_v63 = vadd.f32 %v17543_v3, %v17005_v52  ;;  %v17870_v50 = vmul.f32 %v6445_v60, %v17731_v38  ;;  %v19781_v48 = vld [vmem:[#allocation104_spill] sm:$0xff]  ;;  %v19783_v25 = vld [vmem:[#allocation111_spill] sm:$0xff] }
 0x53c   : > { %v12274_v24 = vpop.eup %12273  ;;  %v5862_v11 = vmul.f32 0.5, %v17774_v31  ;;  %v17874_v57 = vmul.f32 0.5, %v17784_v22  ;;  %v6070_v30 = vmul.f32 0.70710677, %v10848_v23  ;;  %v17879_v47 = vmul.f32 %v6447_v9, %v17770_v28 }
 0x53d   : > { %v12276_v5 = vpop.eup %12275  ;;  %v6453_v3 = vadd.f32 1.0, %v12270_v34  ;;  %v17884_v38 = vmul.f32 0.5, %v17798_v61  ;;  %v6072_v31 = vmul.f32 0.70710677, %v10898_v42  ;;  %v17887_v22 = vmul.f32 %v6446_v37, %v17793_v49 }
 0x53e   : > { %8651 = vmatmul.mubr.bf16.gmra.mrb[136].mxu0 %v19781_v48  ;;  %9295 = vmatmul.mubr.bf16.gmra.mrb[136].mxu1 %v19781_v48  ;;  %19782 = vst [vmem:[#allocation104_spill] sm:$0xff] %v17879_v47  ;;  %v6455_v15 = vadd.f32 1.0, %v12272_v39  ;;  %v6454_v60 = vadd.f32 1.0, %v12274_v24  ;;  %12287 = verf.f32 %v6071_v54  ;;  %v12278_v13 = vpop.eup %12277  ;;  %v17890_v62 = vmul.f32 %v6448_v33, %v17802_v21  ;;  %v19786_v48 = vld [vmem:[#allocation102_spill] sm:$0xff]  ;;  %v19817_v47 = vld [vmem:[#allocation133_spill] sm:$0xff] }
 0x53f   : > { %8660 = vmatprep.mubr.bf16.mxu0 %v19783_v25  ;;  %9304 = vmatprep.mubr.bf16.mxu1 %v19783_v25  ;;  %v17892_v28 = vmul.f32 0.5, %v10897_v1  ;;  %v6077_v55 = vmul.f32 0.70710677, %v10849_v63  ;;  %v10899_v34 = vadd.f32 %v17556_v59, %v17008_v58  ;;  %v12280_v9 = vpop.eup %12279  ;;  %v6456_v61 = vadd.f32 1.0, %v12276_v5 }
 0x540   : > { %v17896_v19 = vmul.f32 0.5, %v10848_v23  ;;  %12289 = verf.f32 %v6070_v30  ;;  %v10850_v49 = vadd.f32 %v17558_v41, %v17014_v40  ;;  %v12282_v24 = vpop.eup %12281  ;;  %v17901_v39 = vmul.f32 %v6453_v3, %v17815_v44  ;;  %v19787_v3 = vld [vmem:[#allocation109_spill] sm:$0xff] }
 0x541   : > { %v17903_v21 = vmul.f32 0.5, %v10898_v42  ;;  %12291 = verf.f32 %v6072_v31  ;;  %v10900_v1 = vadd.f32 %v17564_v53, %v17019_v12  ;;  %v17908_v59 = vmul.f32 %v6455_v15, %v17825_v14 }
 0x542   : > { %v17911_v23 = vmul.f32 %v6454_v60, %v17842_v0  ;;  %v6461_v37 = vadd.f32 1.0, %v12278_v13  ;;  %v17913_v54 = vmul.f32 0.5, %v10849_v63  ;;  %v12284_v41 = vpop.eup %12283  ;;  %v6463_v43 = vadd.f32 1.0, %v12280_v9 }
 0x543   : > { %19784 = vst [vmem:[#allocation111_spill] sm:$0xff] %v17908_v59  ;;  %12293 = verf.f32 %v6077_v55  ;;  %v6079_v44 = vmul.f32 0.70710677, %v10899_v34  ;;  %v10851_v42 = vadd.f32 %v17589_v26, %v17005_v52  ;;  %v17918_v33 = vmul.f32 %v6456_v61, %v17851_v27 }
 0x544   : > { %v12286_v36 = vpop.eup %12285  ;;  %v6462_v53 = vadd.f32 1.0, %v12282_v24  ;;  %v6078_v14 = vmul.f32 0.70710677, %v10850_v49  ;;  %v10901_v0 = vadd.f32 %v17597_v56, %v17008_v58  ;;  %v17924_v63 = vmul.f32 0.5, %v10899_v34 }
 0x545   : > { %19785 = vst [vmem:[#allocation156_spill] sm:$0xff] %v17918_v33  ;;  %v17926_v30 = vmul.f32 0.5, %v10850_v49  ;;  %v6080_v5 = vmul.f32 0.70710677, %v10900_v1  ;;  %v10852_v26 = vadd.f32 %v17599_v29, %v17014_v40  ;;  %v17933_v27 = vmul.f32 %v6461_v37, %v17856_v32  ;;  %v19789_v49 = vld [vmem:[#allocation86_spill] sm:$0xff]  ;;  %v19791_v37 = vld [vmem:[#allocation143_spill] sm:$0xff] }
 0x546   : > { %8661 = vmatmul.mubr.bf16.gmra.mrb[140].mxu0 %v19786_v48  ;;  %9305 = vmatmul.mubr.bf16.gmra.mrb[140].mxu1 %v19786_v48  ;;  %v6464_v25 = vadd.f32 1.0, %v12284_v41  ;;  %v17935_v31 = vmul.f32 0.5, %v10900_v1  ;;  %v10902_v56 = vadd.f32 %v17611_v35, %v17019_v12  ;;  %v17939_v15 = vmul.f32 %v6463_v43, %v5863_v10 }
 0x547   : > { %8670 = vmatprep.mubr.bf16.mxu0 %v19787_v3  ;;  %9314 = vmatprep.mubr.bf16.mxu1 %v19787_v3  ;;  %v6469_v60 = vadd.f32 1.0, %v12286_v36  ;;  %12295 = verf.f32 %v6079_v44  ;;  %v6085_v13 = vmul.f32 0.70710677, %v10851_v42  ;;  %v17941_v34 = vmul.f32 %v6462_v53, %v5862_v11  ;;  %v19794_v3 = vld [vmem:[#allocation119_spill] sm:$0xff] }
 0x548   : > { %19788 = vst [vmem:[#allocation102_spill] sm:$0xff] %v17939_v15  ;;  %v12288_v55 = vpop.eup %12287  ;;  %12297 = verf.f32 %v6078_v14  ;;  %v6087_v9 = vmul.f32 0.70710677, %v10901_v0  ;;  %v10853_v29 = vadd.f32 %v17626_v16, %v17005_v52  ;;  %v17945_v32 = vmul.f32 0.5, %v10851_v42  ;;  %v19792_v42 = vld [vmem:[#allocation87_spill] sm:$0xff]  ;;  %v19805_v15 = vld [vmem:[#allocation125_spill] sm:$0xff] }
 0x549   : > { %12299 = verf.f32 %v6080_v5  ;;  %v6086_v61 = vmul.f32 0.70710677, %v10852_v26  ;;  %v10903_v35 = vadd.f32 %v19789_v49, %v17008_v58  ;;  %v17950_v24 = vmul.f32 %v6464_v25, %v17874_v57  ;;  %v19793_v14 = vld [vmem:[#allocation115_spill] sm:$0xff] }
 0x54a   : > { %v12290_v10 = vpop.eup %12289  ;;  %v17952_v1 = vmul.f32 0.5, %v10901_v0  ;;  %v6088_v11 = vmul.f32 0.70710677, %v10902_v56  ;;  %v10854_v41 = vadd.f32 %v19791_v37, %v17014_v40  ;;  %v17957_v16 = vmul.f32 %v6469_v60, %v17884_v38  ;;  %v19795_v25 = vld [vmem:[#allocation83_spill] sm:$0xff] }
 0x54b   : > { %19790 = vst [vmem:[#allocation109_spill] sm:$0xff] %v17950_v24  ;;  %v12292_v43 = vpop.eup %12291  ;;  %v6471_v44 = vadd.f32 1.0, %v12288_v55  ;;  %12301 = verf.f32 %v6085_v13  ;;  %v10904_v36 = vadd.f32 %v19792_v42, %v17019_v12  ;;  %v17961_v53 = vmul.f32 0.5, %v10852_v26  ;;  %v19796_v55 = vld [vmem:[#allocation89_spill] sm:$0xff] }
 0x54c   : > { %12303 = verf.f32 %v6087_v9  ;;  %v6093_v57 = vmul.f32 0.70710677, %v10853_v29  ;;  %v10855_v48 = vadd.f32 %v17669_v51, %v17005_v52  ;;  %v6470_v5 = vadd.f32 1.0, %v12290_v10  ;;  %v19798_v10 = vld [vmem:[#allocation112_spill] sm:$0xff] }
 0x54d   : > { %v12294_v0 = vpop.eup %12293  ;;  %12305 = verf.f32 %v6086_v61  ;;  %v6095_v38 = vmul.f32 0.70710677, %v10903_v35  ;;  %v17971_v26 = vadd.f32 %v19795_v25, %v17008_v58  ;;  %v6472_v60 = vadd.f32 1.0, %v12292_v43 }
 0x54e   : > { %8671 = vmatmul.mubr.bf16.gmra.mrb[144].mxu0 %v19793_v14  ;;  %9315 = vmatmul.mubr.bf16.gmra.mrb[144].mxu1 %v19793_v14  ;;  %12307 = verf.f32 %v6088_v11  ;;  %v6094_v13 = vmul.f32 0.70710677, %v10854_v41  ;;  %v17975_v9 = vadd.f32 %v19796_v55, %v17014_v40  ;;  %v17978_v51 = vmul.f32 %v6471_v44, %v17892_v28  ;;  %v19799_v11 = vld [vmem:[#allocation103_spill] sm:$0xff] }
 0x54f   : > { %8680 = vmatprep.mubr.bf16.mxu0 %v19794_v3  ;;  %9324 = vmatprep.mubr.bf16.mxu1 %v19794_v3  ;;  %v17980_v61 = vmul.f32 0.5, %v10902_v56  ;;  %v6096_v49 = vmul.f32 0.70710677, %v10904_v36  ;;  %v17984_v37 = vadd.f32 %v19798_v10, %v17019_v12  ;;  %v6477_v42 = vadd.f32 1.0, %v12294_v0 }
 0x550   : > { %19797 = vst [vmem:[#allocation86_spill] sm:$0xff] %v17978_v51  ;;  %12309 = verf.f32 %v6093_v57  ;;  %v6101_v14 = vmul.f32 0.70710677, %v10855_v48  ;;  %v17988_v43 = vadd.f32 %v19799_v11, %v17005_v52  ;;  %v17991_v25 = vmul.f32 %v6470_v5, %v17896_v19  ;;  %v19801_v19 = vld [vmem:[#allocation110_spill] sm:$0xff]  ;;  %v19802_v5 = vld [vmem:[#allocation137_spill] sm:$0xff] }
 0x551   : > { %v12296_v3 = vpop.eup %12295  ;;  %v17993_v28 = vmul.f32 0.5, %v10853_v29  ;;  %12311 = verf.f32 %v6095_v38  ;;  %v6103_v56 = vmul.f32 0.70710677, %v17971_v26  ;;  %v17997_v55 = vmul.f32 %v6472_v60, %v17903_v21 }
 0x552   : > { %v12298_v44 = vpop.eup %12297  ;;  %v17999_v0 = vmul.f32 0.5, %v10903_v35  ;;  %12313 = verf.f32 %v6094_v13  ;;  %v6102_v57 = vmul.f32 0.70710677, %v17975_v9  ;;  %v6104_v11 = vmul.f32 0.70710677, %v17984_v37  ;;  %v19803_v13 = vld [vmem:[#allocation113_spill] sm:$0xff] }
 0x553   : > { %19800 = vst [vmem:[#allocation143_spill] sm:$0xff] %v17997_v55  ;;  %v12300_v10 = vpop.eup %12299  ;;  %12315 = verf.f32 %v6096_v49  ;;  %v18005_v29 = vadd.f32 %v19801_v19, %v17008_v58  ;;  %v18009_v38 = vadd.f32 %v19802_v5, %v17014_v40  ;;  %v18012_v21 = vmul.f32 %v6477_v42, %v17913_v54  ;;  %v19804_v55 = vld [vmem:[#allocation90_spill] sm:$0xff] }
 0x554   : > { %v6479_v35 = vadd.f32 1.0, %v12296_v3  ;;  %12317 = verf.f32 %v6101_v14  ;;  %v6109_v60 = vmul.f32 0.70710677, %v17988_v43  ;;  %v6478_v51 = vadd.f32 1.0, %v12298_v44 }
 0x555   : > { %v12302_v49 = vpop.eup %12301  ;;  %12319 = verf.f32 %v6103_v56  ;;  %v6111_v19 = vmul.f32 0.70710677, %v18005_v29  ;;  %v18020_v5 = vadd.f32 %v19804_v55, %v17019_v12  ;;  %v18024_v42 = vmul.f32 0.5, %v10854_v41  ;;  %v19806_v55 = vld [vmem:[#allocation126_spill] sm:$0xff] }
 0x556   : > { %8681 = vmatmul.mubr.bf16.gmra.mrb[148].mxu0 %v19803_v13  ;;  %9325 = vmatmul.mubr.bf16.gmra.mrb[148].mxu1 %v19803_v13  ;;  %v12304_v54 = vpop.eup %12303  ;;  %v18026_v14 = vmul.f32 0.5, %v10904_v36  ;;  %12321 = verf.f32 %v6102_v57  ;;  %v6110_v3 = vmul.f32 0.70710677, %v18009_v38  ;;  %v6480_v56 = vadd.f32 1.0, %v12300_v10 }
 0x557   : > { %8690 = vmatprep.mubr.bf16.mxu0 %v19805_v15  ;;  %9334 = vmatprep.mubr.bf16.mxu1 %v19805_v15  ;;  %v12306_v44 = vpop.eup %12305  ;;  %v18029_v13 = vmul.f32 0.5, %v10855_v48  ;;  %12323 = verf.f32 %v6104_v11  ;;  %v18033_v59 = vadd.f32 %v19806_v55, %v17005_v52  ;;  %v18036_v15 = vmul.f32 %v6479_v35, %v17924_v63 }
 0x558   : > { %v12308_v24 = vpop.eup %12307  ;;  %12325 = verf.f32 %v6109_v60  ;;  %v18040_v41 = vadd.f32 %v17756_v8, %v17008_v58  ;;  %v18044_v36 = vadd.f32 %v17759_v46, %v17014_v40  ;;  %v18047_v48 = vmul.f32 %v6478_v51, %v17926_v30 }
 0x559   : > { %19807 = vst [vmem:[#allocation87_spill] sm:$0xff] %v18036_v15  ;;  %v6485_v57 = vadd.f32 1.0, %v12302_v49  ;;  %12327 = verf.f32 %v6111_v19  ;;  %v6112_v10 = vmul.f32 0.70710677, %v18020_v5  ;;  %v6487_v55 = vadd.f32 1.0, %v12304_v54 }
 0x55a   : > { %v12310_v11 = vpop.eup %12309  ;;  %v6486_v63 = vadd.f32 1.0, %v12306_v44  ;;  %12329 = verf.f32 %v6110_v3  ;;  %v6117_v35 = vmul.f32 0.70710677, %v18033_v59  ;;  %v18052_v8 = vmul.f32 %v6480_v56, %v17935_v31  ;;  %v19809_v31 = vld [vmem:[#allocation81_spill] sm:$0xff] }
 0x55b   : > { %v12312_v60 = vpop.eup %12311  ;;  %v6488_v15 = vadd.f32 1.0, %v12308_v24  ;;  %v18055_v46 = vmul.f32 0.5, %v17971_v26  ;;  %v6118_v30 = vmul.f32 0.70710677, %v18044_v36  ;;  %v18059_v49 = vmul.f32 0.5, %v17975_v9 }
 0x55c   : > { %19808 = vst [vmem:[#allocation115_spill] sm:$0xff] %v18052_v8  ;;  %v12314_v51 = vpop.eup %12313  ;;  %v18062_v19 = vmul.f32 0.5, %v17984_v37  ;;  %v6119_v54 = vmul.f32 0.70710677, %v18040_v41  ;;  %v18067_v3 = vadd.f32 %v17767_v4, %v17005_v52  ;;  %v18072_v26 = vmul.f32 %v6485_v57, %v17945_v32  ;;  %v11864_v52 = vld [vmem:[%s13123_s24 + $0x608] ss:$16 sps:$4 sm:$0xff]  }
 0x55d   : > { %v12316_v24 = vpop.eup %12315  ;;  %v18075_v9 = vmul.f32 0.5, %v17988_v43  ;;  %12331 = verf.f32 %v6112_v10  ;;  %v18079_v37 = vadd.f32 %v17777_v18, %v17008_v58  ;;  %v18082_v4 = vmul.f32 %v6487_v55, %v17952_v1  ;;  %v19812_v1 = vld [vmem:[#allocation96_spill] sm:$0xff] }
 0x55e   : > { %8691 = vmatmul.mubr.bf16.gmra.mrb[156].mxu0 %v19809_v31  ;;  %9335 = vmatmul.mubr.bf16.gmra.mrb[156].mxu1 %v19809_v31  ;;  %v12318_v44 = vpop.eup %12317  ;;  %v18085_v56 = vmul.f32 %v6486_v63, %v17961_v53  ;;  %v6493_v31 = vadd.f32 1.0, %v12310_v11  ;;  %12333 = verf.f32 %v6117_v35  ;;  %v18088_v43 = vmul.f32 %v6488_v15, %v17980_v61  ;;  %v19813_v11 = vld [vmem:[#allocation100_spill] sm:$0xff]  ;;  %v11861_v63 = vld [vmem:[%s13123_s24 + $0x600] ss:$16 sps:$4 sm:$0xff]  }
 0x55f   : > { %19810 = vst [vmem:[#allocation119_spill] sm:$0xff] %v18082_v4  ;;  %v12320_v32 = vpop.eup %12319  ;;  %v6495_v57 = vadd.f32 1.0, %v12312_v60  ;;  %12335 = verf.f32 %v6118_v30  ;;  %v6125_v18 = vmul.f32 0.70710677, %v18067_v3  ;;  %v6494_v58 = vadd.f32 1.0, %v12314_v51  ;;  %v19814_v35 = vld [vmem:[#allocation149_spill] sm:$0xff] }
 0x560   : > { %19811 = vst [vmem:[#allocation83_spill] sm:$0xff] %v18088_v43  ;;  %v12322_v10 = vpop.eup %12321  ;;  %12337 = verf.f32 %v6119_v54  ;;  %v18093_v53 = vadd.f32 %v19812_v1, %v17019_v12  ;;  %v18097_v55 = vadd.f32 %v19813_v11, %v17014_v40  ;;  %v6127_v15 = vmul.f32 0.70710677, %v18079_v37  ;;  %v19815_v30 = vld [vmem:[#allocation82_spill] sm:$0xff]  ;;  %v19816_v51 = vld [vmem:[#allocation93_spill] sm:$0xff] }
 0x561   : > { %v12324_v61 = vpop.eup %12323  ;;  %12339 = verf.f32 %v6125_v18  ;;  %v18103_v60 = vadd.f32 %v19814_v35, %v17019_v12  ;;  %v6742_v54 = vpack.c.bf16 %v19816_v51, %v19815_v30  ;;  %v11869_v4 = vld [vmem:[%s13123_s24 + $0x624] ss:$16 sps:$4 sm:$0xff]   ;;  %v18110_v43 = vmul.f32 %v6493_v31, %v17993_v28  ;;  %v11872_v8 = vld [vmem:[%s13123_s24 + $0x62c] ss:$16 sps:$4 sm:$0xff]  }
 0x562   : > { %v12326_v1 = vpop.eup %12325  ;;  %v5911_v11 = vmul.f32 0.5, %v18005_v29  ;;  %v5910_v40 = vmul.f32 0.5, %v18009_v38  ;;  %v6126_v18 = vmul.f32 0.70710677, %v18097_v55  ;;  %v18117_v35 = vmul.f32 %v6495_v57, %v17999_v0 }
 0x563   : > { %v12328_v33 = vpop.eup %12327  ;;  %v6496_v12 = vadd.f32 1.0, %v12316_v24  ;;  %v18120_v30 = vmul.f32 0.5, %v18020_v5  ;;  %v6128_v51 = vmul.f32 0.70710677, %v18103_v60  ;;  %8731 = vmatprep.mubr.bf16.mxu0 %v6742_v54  ;;  %9375 = vmatprep.mubr.bf16.mxu1 %v6742_v54  ;;  %v6501_v29 = vadd.f32 1.0, %v12318_v44 }
 0x564   : > { %v12330_v28 = vpop.eup %12329  ;;  %v6503_v31 = vadd.f32 1.0, %v12320_v32  ;;  %v6120_v38 = vmul.f32 0.70710677, %v18093_v53  ;;  %12341 = verf.f32 %v6126_v18  ;;  %v18127_v0 = vmul.f32 %v6494_v58, %v18024_v42  ;;  %v11867_v44 = vld [vmem:[%s13123_s24 + $0x620] ss:$16 sps:$4 sm:$0xff]  }
 0x565   : > { %v6502_v5 = vadd.f32 1.0, %v12322_v10  ;;  %v6504_v24 = vadd.f32 1.0, %v12324_v61  ;;  %12343 = verf.f32 %v6127_v15  ;;  %v6509_v32 = vadd.f32 1.0, %v12326_v1  ;;  %v11870_v18 = vld [vmem:[%s13123_s24 + $0x628] ss:$16 sps:$4 sm:$0xff]  }
 0x566   : > { %8732 = vmatmul.mubr.bf16.vlgmr.msra.gmra.mrb[104].mxu0 %v19817_v47  ;;  %9376 = vmatmul.mubr.bf16.vlgmr.msra.gmra.mrb[104].mxu1 %v19817_v47  ;;  %v6511_v57 = vadd.f32 1.0, %v12328_v33  ;;  %v18131_v54 = vmul.f32 0.5, %v18033_v59  ;;  %12345 = verf.f32 %v6128_v51  ;;  %v18135_v58 = vmul.f32 %v6496_v12, %v18026_v14  ;;  %v11875_v15 = vld [vmem:[%s13123_s24 + $0x644] ss:$16 sps:$4 sm:$0xff]   ;;  %v11878_v33 = vld [vmem:[%s13123_s24 + $0x64c] ss:$16 sps:$4 sm:$0xff]  }
 0x567   : > { %8861 = vmatpush1.bf16.msra.mxu0 %v11861_v63  ;;  %9505 = vmatpush1.bf16.msra.mxu1 %v11864_v52  ;;  %v12332_v47 = vpop.eup %12331  ;;  %v6510_v42 = vadd.f32 1.0, %v12330_v28  ;;  %v18138_v10 = vmul.f32 0.5, %v18040_v41  ;;  %v19818_v63 = vld [vmem:[#allocation99_spill] sm:$0xff]  ;;  %v19819_v52 = vld [vmem:[#allocation114_spill] sm:$0xff]  ;;  %v18145_v59 = vmul.f32 %v6501_v29, %v18029_v13  ;;  %12347 = verf.f32 %v6120_v38  ;;  %v19822_v29 = vld [vmem:[#allocation101_spill] sm:$0xff] }
 0x568   : > { %8862 = vmatprep.subr.bf16.mxu0 %v11869_v4  ;;  %9506 = vmatprep.subr.bf16.mxu1 %v11872_v8  ;;  %v6750_v61 = vpack.c.bf16 %v19819_v52, %v19818_v63  ;;  %v12334_v1 = vpop.eup %12333  ;;  %v18148_v4 = vmul.f32 %v6503_v31, %v18055_v46  ;;  %v5918_v8 = vmul.f32 0.5, %v18044_v36  ;;  %v6702_v14 = vmul.f32 %v6502_v5, %v18059_v49  ;;  %v19824_v63 = vld [vmem:[#allocation141_spill] sm:$0xff]  ;;  %v19825_v52 = vld [vmem:[#allocation147_spill] sm:$0xff] }
 0x569   : > { %v12336_v12 = vpop.eup %12335  ;;  %v18153_v41 = vmul.f32 %v6504_v24, %v18062_v19  ;;  %v5925_v51 = vmul.f32 0.5, %v18067_v3  ;;  %v18157_v28 = vmul.f32 0.5, %v18079_v37  ;;  %v18160_v36 = vmul.f32 %v6509_v32, %v18075_v9  ;;  %v19823_v19 = vld [vmem:[#allocation116_spill] sm:$0xff]  ;;  %v11873_v3 = vld [vmem:[%s13123_s24 + $0x640] ss:$16 sps:$4 sm:$0xff]  }
 0x56a   : > { %19820 = vst [vmem:[#allocation89_spill] sm:$0xff] %v18148_v4  ;;  %8741 = vmatprep.mubr.bf16.mxu0 %v6750_v61  ;;  %9385 = vmatprep.mubr.bf16.mxu1 %v6750_v61  ;;  %v12338_v13 = vpop.eup %12337  ;;  %v18162_v46 = vmul.f32 %v6511_v57, %v5911_v11  ;;  %v5926_v49 = vmul.f32 0.5, %v18097_v55  ;;  %v6749_v31 = vpack.c.bf16 %v19823_v19, %v19822_v29  ;;  %v11876_v37 = vld [vmem:[%s13123_s24 + $0x648] ss:$16 sps:$4 sm:$0xff]   ;;  %v6517_v24 = vadd.f32 1.0, %v12334_v1  ;;  %v19831_v1 = vld [vmem:[#allocation131_spill] sm:$0xff] }
 0x56b   : > { %8863 = vmatpush1.bf16.msra.mxu0 %v11867_v44  ;;  %9507 = vmatpush1.bf16.msra.mxu1 %v11870_v18  ;;  %v12340_v38 = vpop.eup %12339  ;;  %v6710_v5 = vmul.f32 %v6510_v42, %v5910_v40  ;;  %v6758_v61 = vpack.c.bf16 %v19825_v52, %v19824_v63  ;;  %v19826_v9 = vld [vmem:[#allocation124_spill] sm:$0xff]  ;;  %v19827_v11 = vld [vmem:[#allocation138_spill] sm:$0xff]  ;;  %v11881_v57 = vld [vmem:[%s13123_s24 + $0x664] ss:$16 sps:$4 sm:$0xff]  }
 0x56c   : > { %19821 = vst [vmem:[#allocation112_spill] sm:$0xff] %v18162_v46  ;;  %8864 = vmatprep.subr.bf16.mxu0 %v11875_v15  ;;  %9508 = vmatprep.subr.bf16.mxu1 %v11878_v33  ;;  %v6757_v32 = vpack.c.bf16 %v19827_v11, %v19826_v9  ;;  %v11884_v55 = vld [vmem:[%s13123_s24 + $0x66c] ss:$16 sps:$4 sm:$0xff]   ;;  %v6518_v46 = vadd.f32 1.0, %v12336_v12  ;;  %v6525_v4 = vadd.f32 1.0, %v12340_v38  ;;  %v19828_v44 = vld [vmem:[#allocation129_spill] sm:$0xff] }
 0x56d   : > { %v19829_v18 = vld [vmem:[#allocation135_spill] sm:$0xff]  ;;  %v19830_v42 = vld [vmem:[#allocation148_spill] sm:$0xff]  ;;  %v6512_v15 = vadd.f32 1.0, %v12332_v47  ;;  %v19833_v19 = vld [vmem:[#allocation85_spill] sm:$0xff] }
 0x56e   : > { %8742 = vmatmul.mubr.bf16.gmra.mrb[108].mxu0 %v6749_v31  ;;  %9386 = vmatmul.mubr.bf16.gmra.mrb[108].mxu1 %v6749_v31  ;;  %v6766_v40 = vpack.c.bf16 %v19829_v18, %v19828_v44  ;;  %v18179_v29 = vpack.c.bf16 %v19831_v1, %v19830_v42  ;;  %v19832_v33 = vld [vmem:[#allocation136_spill] sm:$0xff]  ;;  %v19834_v12 = vld [vmem:[#allocation130_spill] sm:$0xff]  ;;  %v12342_v11 = vpop.eup %12341  ;;  %v6519_v44 = vadd.f32 1.0, %v12338_v13  ;;  %v6725_v18 = vmul.f32 %v6525_v4, %v5925_v51  ;;  %v11879_v47 = vld [vmem:[%s13123_s24 + $0x660] ss:$16 sps:$4 sm:$0xff]  }
 0x56f   : > { %8751 = vmatprep.mubr.bf16.mxu0 %v6758_v61  ;;  %9395 = vmatprep.mubr.bf16.mxu1 %v6758_v61  ;;  %v18183_v63 = vpack.c.bf16 %v19833_v19, %v19832_v33  ;;  %v19835_v38 = vld [vmem:[#allocation140_spill] sm:$0xff]  ;;  %v18201_v19 = vpack.c.bf16 %v17887_v22, %v17861_v20  ;;  %v11887_v13 = vld [vmem:[%s13123_s24 + $0x684] ss:$16 sps:$4 sm:$0xff]   ;;  %v18208_v51 = vpack.c.bf16 %v17870_v50, %v17839_v45 }
 0x570   : > { %v18187_v52 = vpack.c.bf16 %v19835_v38, %v19834_v12  ;;  %v19836_v9 = vld [vmem:[#allocation88_spill] sm:$0xff]  ;;  %8865 = vmatpush1.bf16.msra.mxu0 %v11873_v3  ;;  %9509 = vmatpush1.bf16.msra.mxu1 %v11876_v37  ;;  %v12344_v12 = vpop.eup %12343  ;;  %v6526_v38 = vadd.f32 1.0, %v12342_v11  ;;  %v18212_v3 = vpack.c.bf16 %v17941_v34, %v17911_v23  ;;  %v6718_v22 = vmul.f32 %v6518_v46, %v5918_v8  ;;  %v19839_v46 = vld [vmem:[#allocation91_spill] sm:$0xff]  ;;  %v19845_v11 = vld [vmem:[#allocation106_spill] sm:$0xff] }
 0x571   : > { %v18191_v31 = vpack.c.bf16 %v17810_v7, %v19836_v9  ;;  %v11882_v61 = vld [vmem:[%s13123_s24 + $0x668] ss:$16 sps:$4 sm:$0xff]   ;;  %v6717_v7 = vmul.f32 %v6517_v24, %v18131_v54  ;;  %8866 = vmatprep.subr.bf16.mxu0 %v11881_v57  ;;  %9510 = vmatprep.subr.bf16.mxu1 %v11884_v55  ;;  %v11890_v4 = vld [vmem:[%s13123_s24 + $0x68c] ss:$16 sps:$4 sm:$0xff]   ;;  %v12346_v20 = vpop.eup %12345  ;;  %v18216_v54 = vpack.c.bf16 %v17933_v27, %v17901_v39  ;;  %v19843_v55 = vld [vmem:[#allocation95_spill] sm:$0xff] }
 0x572   : > { %v19837_v42 = vld [vmem:[#allocation128_spill] sm:$0xff]  ;;  %v18220_v37 = vpack.c.bf16 %v18047_v48, %v17991_v25  ;;  %v18224_v45 = vpack.c.bf16 %v18012_v21, %v17957_v16  ;;  %v6726_v50 = vmul.f32 %v6526_v38, %v5926_v49  ;;  %v18228_v23 = vpack.c.bf16 %v18127_v0, %v18085_v56  ;;  %v12348_v27 = vpop.eup %12347  ;;  %v11885_v16 = vld [vmem:[%s13123_s24 + $0x680] ss:$16 sps:$4 sm:$0xff]   ;;  %v19842_v24 = vld [vmem:[#allocation118_spill] sm:$0xff] }
 0x573   : > { %v19838_v1 = vld [vmem:[#allocation152_spill] sm:$0xff]  ;;  %v18232_v34 = vpack.c.bf16 %v18110_v43, %v18072_v26  ;;  %v18234_v39 = vpack.c.bf16 %v6710_v5, %v6702_v14  ;;  %v6712_v25 = vmul.f32 %v6512_v15, %v18120_v30  ;;  %v6527_v48 = vadd.f32 1.0, %v12344_v12  ;;  %v11893_v26 = vld [vmem:[%s13123_s24 + $0x6a4] ss:$16 sps:$4 sm:$0xff]  }
 0x574   : > { %v18197_v33 = vpack.c.bf16 %v19838_v1, %v19837_v42  ;;  %8867 = vmatpush1.bf16.msra.mxu0 %v11879_v47  ;;  %9511 = vmatpush1.bf16.msra.mxu1 %v11882_v61  ;;  %v11888_v21 = vld [vmem:[%s13123_s24 + $0x688] ss:$16 sps:$4 sm:$0xff]   ;;  %v18241_v8 = vpack.c.bf16 %v18160_v36, %v18145_v59  ;;  %v18243_v56 = vpack.c.bf16 %v6725_v18, %v6717_v7  ;;  %v6528_v0 = vadd.f32 1.0, %v12346_v20  ;;  %v11896_v43 = vld [vmem:[%s13123_s24 + $0x6ac] ss:$16 sps:$4 sm:$0xff]   ;;  %v19840_v30 = vld [vmem:[#allocation97_spill] sm:$0xff] }
 0x575   : > { %8868 = vmatprep.subr.bf16.mxu0 %v11887_v13  ;;  %9512 = vmatprep.subr.bf16.mxu1 %v11890_v4  ;;  %v18247_v14 = vpack.c.bf16 %v6726_v50, %v6718_v22  ;;  %v18251_v49 = vpack.c.bf16 %v19840_v30, %v19839_v46  ;;  %v19841_v5 = vld [vmem:[#allocation105_spill] sm:$0xff]  ;;  %v6719_v59 = vmul.f32 %v6519_v44, %v18138_v10  ;;  %v5928_v36 = vmul.f32 0.5, %v18103_v60  ;;  %v19844_v15 = vld [vmem:[#allocation120_spill] sm:$0xff]  ;;  %v19846_v18 = vld [vmem:[#allocation146_spill] sm:$0xff] }
 0x576   : > { %v18255_v57 = vpack.c.bf16 %v19842_v24, %v19841_v5  ;;  %8752 = vmatmul.mubr.bf16.gmra.mrb[112].mxu0 %v6757_v32  ;;  %9396 = vmatmul.mubr.bf16.gmra.mrb[112].mxu1 %v6757_v32  ;;  %v18261_v9 = vpack.c.bf16 %v19844_v15, %v19843_v55  ;;  %v18265_v47 = vpack.c.bf16 %v19846_v18, %v19845_v11  ;;  %v6520_v61 = vadd.f32 1.0, %v12348_v27  ;;  %v19847_v42 = vld [vmem:[#allocation122_spill] sm:$0xff]  ;;  %v19848_v1 = vld [vmem:[#allocation145_spill] sm:$0xff]  ;;  %v19850_v44 = vld [vmem:[#allocation108_spill] sm:$0xff] }
 0x577   : > { %8761 = vmatprep.mubr.bf16.mxu0 %v6766_v40  ;;  %9405 = vmatprep.mubr.bf16.mxu1 %v6766_v40  ;;  %v18269_v10 = vpack.c.bf16 %v19848_v1, %v19847_v42  ;;  %v19849_v60 = vld [vmem:[#allocation150_spill] sm:$0xff]  ;;  %v19851_v12 = vld [vmem:[#allocation151_spill] sm:$0xff]  ;;  %v6727_v13 = vmul.f32 %v6527_v48, %v18157_v28  ;;  %v19853_v40 = vld [vmem:[#allocation84_spill] sm:$0xff]  ;;  %v5920_v5 = vmul.f32 0.5, %v18093_v53  ;;  %v6728_v24 = vmul.f32 %v6528_v0, %v5928_v36 }
 0x578   : > { %v18273_v32 = vpack.c.bf16 %v19850_v44, %v19849_v60  ;;  %v19852_v7 = vld [vmem:[#allocation107_spill] sm:$0xff]  ;;  %8869 = vmatpush1.bf16.msra.mxu0 %v11885_v16  ;;  %9513 = vmatpush1.bf16.msra.mxu1 %v11888_v21  ;;  %v11894_v20 = vld [vmem:[%s13123_s24 + $0x6a8] ss:$16 sps:$4 sm:$0xff]   ;;  %v11902_v48 = vld [vmem:[%s13123_s24 + $0x6cc] ss:$16 sps:$4 sm:$0xff]   ;;  %v18303_v18 = vpack.c.bf16 %v17890_v62, %v17864_v17 }
 0x579   : > { %v18277_v38 = vpack.c.bf16 %v19852_v7, %v19851_v12  ;;  %v11891_v4 = vld [vmem:[%s13123_s24 + $0x6a0] ss:$16 sps:$4 sm:$0xff]   ;;  %v19854_v22 = vld [vmem:[#allocation142_spill] sm:$0xff]  ;;  %v19855_v27 = vld [vmem:[#allocation132_spill] sm:$0xff]  ;;  %8870 = vmatprep.subr.bf16.mxu0 %v11893_v26  ;;  %9514 = vmatprep.subr.bf16.mxu1 %v11896_v43  ;;  %v6720_v60 = vmul.f32 %v6520_v61, %v5920_v5  ;;  %v18336_v5 = vpack.c.bf16 %v6712_v25, %v18153_v41 }
 0x57a   : > { %v18284_v50 = vpack.c.bf16 %v19854_v22, %v19853_v40  ;;  %v19856_v46 = vld [vmem:[#allocation144_spill] sm:$0xff]  ;;  %v11899_v28 = vld [vmem:[%s13123_s24 + $0x6c4] ss:$16 sps:$4 sm:$0xff]   ;;  %v19857_v16 = vld [vmem:[#allocation134_spill] sm:$0xff] }
 0x57b   : > { %v18288_v30 = vpack.c.bf16 %v19856_v46, %v19855_v27  ;;  %v18295_v21 = vpack.c.bf16 %v17820_v6, %v19857_v16  ;;  %v19858_v55 = vld [vmem:[#allocation92_spill] sm:$0xff]  ;;  %v19859_v15 = vld [vmem:[#allocation153_spill] sm:$0xff]  ;;  %v19863_v42 = vld [vmem:[#allocation111_spill] sm:$0xff] }
 0x57c   : > { %v18299_v11 = vpack.c.bf16 %v19859_v15, %v19858_v55  ;;  %v19860_v53 = vld [vmem:[#allocation104_spill] sm:$0xff]  ;;  %v19862_v43 = vld [vmem:[#allocation109_spill] sm:$0xff]  ;;  %v19864_v6 = vld [vmem:[#allocation102_spill] sm:$0xff]  ;;  %8871 = vmatpush1.bf16.msra.mxu0 %v11891_v4  ;;  %9515 = vmatpush1.bf16.msra.mxu1 %v11894_v20  ;;  %v18344_v20 = vpack.c.bf16 %v6728_v24, %v6720_v60 }
 0x57d   : > { %v18307_v0 = vpack.c.bf16 %v19860_v53, %v17848_v2  ;;  %v19861_v26 = vld [vmem:[#allocation156_spill] sm:$0xff]  ;;  %v18315_v1 = vpack.c.bf16 %v19864_v6, %v19863_v42  ;;  %v19865_v44 = vld [vmem:[#allocation143_spill] sm:$0xff]  ;;  %v19867_v17 = vld [vmem:[#allocation86_spill] sm:$0xff]  ;;  %8872 = vmatprep.subr.bf16.mxu0 %v11899_v28  ;;  %9516 = vmatprep.subr.bf16.mxu1 %v11902_v48 }
 0x57e   : > { %v18311_v36 = vpack.c.bf16 %v19862_v43, %v19861_v26  ;;  %v19866_v12 = vld [vmem:[#allocation115_spill] sm:$0xff]  ;;  %v11900_v46 = vld [vmem:[%s13123_s24 + $0x6c8] ss:$16 sps:$4 sm:$0xff]   ;;  %v19871_v55 = vld [vmem:[#allocation89_spill] sm:$0xff]  ;;  %v18346_v26 = vpack.c.bf16 %v6727_v13, %v6719_v59  ;;  %8762 = vmatmul.mubr.bf16.gmra.mrb[116].mxu0 %v18179_v29  ;;  %9406 = vmatmul.mubr.bf16.gmra.mrb[116].mxu1 %v18179_v29 }
 0x57f   : > { %v18319_v7 = vpack.c.bf16 %v19866_v12, %v19865_v44  ;;  %v19868_v62 = vld [vmem:[#allocation87_spill] sm:$0xff]  ;;  %v19872_v15 = vld [vmem:[#allocation112_spill] sm:$0xff]  ;;  %8771 = vmatprep.mubr.bf16.mxu0 %v18183_v63  ;;  %9415 = vmatprep.mubr.bf16.mxu1 %v18183_v63 }
 0x580   : > { %v18323_v40 = vpack.c.bf16 %v19868_v62, %v19867_v17  ;;  %v19869_v2 = vld [vmem:[#allocation83_spill] sm:$0xff]  ;;  %v18340_v53 = vpack.c.bf16 %v19872_v15, %v19871_v55  ;;  %v11908_v4 = vld [vmem:[%s13123_s24 + $0x6ec] ss:$16 sps:$4 sm:$0xff]   ;;  %9517 = vmatpush1.bf16.msra.mxu1 %v11900_v46  ;;  %v11906_v41 = vld [vmem:[%s13123_s24 + $0x6e8] ss:$16 sps:$4 sm:$0xff]  }
 0x581   : > { %v18327_v22 = vpack.c.bf16 %v18135_v58, %v19869_v2  ;;  %v11897_v27 = vld [vmem:[%s13123_s24 + $0x6c0] ss:$16 sps:$4 sm:$0xff]   ;;  %v11905_v58 = vld [vmem:[%s13123_s24 + $0x6e4] ss:$16 sps:$4 sm:$0xff]   ;;  %9518 = vmatprep.subr.bf16.mxu1 %v11908_v4  ;;  %v11914_v59 = vld [vmem:[%s13123_s24 + $0x70c] ss:$16 sps:$4 sm:$0xff]  }
 0x582   : > { %v19870_v16 = vld [vmem:[#allocation119_spill] sm:$0xff]  ;;  %8873 = vmatpush1.bf16.msra.mxu0 %v11897_v27  ;;  %v11912_v29 = vld [vmem:[%s13123_s24 + $0x708] ss:$16 sps:$4 sm:$0xff]   ;;  %v11920_v24 = vld [vmem:[%s13123_s24 + $0x72c] ss:$16 sps:$4 sm:$0xff]  }
 0x583   : > { %v18333_v61 = vpack.c.bf16 %v18117_v35, %v19870_v16  ;;  %v11903_v35 = vld [vmem:[%s13123_s24 + $0x6e0] ss:$16 sps:$4 sm:$0xff]   ;;  %8874 = vmatprep.subr.bf16.mxu0 %v11905_v58  ;;  %v11911_v25 = vld [vmem:[%s13123_s24 + $0x704] ss:$16 sps:$4 sm:$0xff]   ;;  %v11918_v48 = vld [vmem:[%s13123_s24 + $0x728] ss:$16 sps:$4 sm:$0xff]  }
 0x584   : > { %9519 = vmatpush1.bf16.msra.mxu1 %v11906_v41  ;;  %v11909_v13 = vld [vmem:[%s13123_s24 + $0x700] ss:$16 sps:$4 sm:$0xff]   ;;  %v11917_v63 = vld [vmem:[%s13123_s24 + $0x724] ss:$16 sps:$4 sm:$0xff]   ;;  %v11926_v42 = vld [vmem:[%s13123_s24 + $0x74c] ss:$16 sps:$4 sm:$0xff]  }
 0x585   : > { %9520 = vmatprep.subr.bf16.mxu1 %v11914_v59  ;;  %v11915_v28 = vld [vmem:[%s13123_s24 + $0x720] ss:$16 sps:$4 sm:$0xff]   ;;  %v11923_v43 = vld [vmem:[%s13123_s24 + $0x744] ss:$16 sps:$4 sm:$0xff]   ;;  %v11932_v60 = vld [vmem:[%s13123_s24 + $0x76c] ss:$16 sps:$4 sm:$0xff]  }
 0x586   : > { %8875 = vmatpush1.bf16.msra.mxu0 %v11903_v35  ;;  %9416 = vmatmul.mubr.bf16.gmra.mrb[120].mxu1 %v18187_v52  ;;  %v11921_v6 = vld [vmem:[%s13123_s24 + $0x740] ss:$16 sps:$4 sm:$0xff]   ;;  %v11930_v12 = vld [vmem:[%s13123_s24 + $0x768] ss:$16 sps:$4 sm:$0xff]   ;;  %v11935_v17 = vld [vmem:[%s13123_s24 + $0x784] ss:$16 sps:$4 sm:$0xff]  }
 0x587   : > { %8876 = vmatprep.subr.bf16.mxu0 %v11911_v25  ;;  %8772 = vmatmul.mubr.bf16.gmra.mrb[120].mxu0 %v18187_v52  ;;  %v11924_v52 = vld [vmem:[%s13123_s24 + $0x748] ss:$16 sps:$4 sm:$0xff]   ;;  %v11927_v44 = vld [vmem:[%s13123_s24 + $0x760] ss:$16 sps:$4 sm:$0xff]   ;;  %v11938_v62 = vld [vmem:[%s13123_s24 + $0x78c] ss:$16 sps:$4 sm:$0xff]  }
 0x588   : > { %8781 = vmatprep.mubr.bf16.mxu0 %v18191_v31  ;;  %9425 = vmatprep.mubr.bf16.mxu1 %v18191_v31  ;;  %v11929_v31 = vld [vmem:[%s13123_s24 + $0x764] ss:$16 sps:$4 sm:$0xff]   ;;  %v11933_v2 = vld [vmem:[%s13123_s24 + $0x780] ss:$16 sps:$4 sm:$0xff]   ;;  %v11944_v27 = vld [vmem:[%s13123_s24 + $0x7ac] ss:$16 sps:$4 sm:$0xff]  }
 0x589   : > { %9521 = vmatpush1.bf16.msra.mxu1 %v11912_v29  ;;  %v11939_v46 = vld [vmem:[%s13123_s24 + $0x7a0] ss:$16 sps:$4 sm:$0xff]   ;;  %v11942_v16 = vld [vmem:[%s13123_s24 + $0x7a8] ss:$16 sps:$4 sm:$0xff]   ;;  %v11947_v55 = vld [vmem:[%s13123_s24 + $0x7c4] ss:$16 sps:$4 sm:$0xff]  }
 0x58a   : > { %8877 = vmatpush1.bf16.msra.mxu0 %v11909_v13  ;;  %9522 = vmatprep.subr.bf16.mxu1 %v11920_v24  ;;  %v11950_v15 = vld [vmem:[%s13123_s24 + $0x7cc] ss:$16 sps:$4 sm:$0xff]   ;;  %v11945_v58 = vld [vmem:[%s13123_s24 + $0x7c0] ss:$16 sps:$4 sm:$0xff]   ;;  %v11953_v4 = vld [vmem:[%s13123_s24 + $0x7e4] ss:$16 sps:$4 sm:$0xff]  }
 0x58b   : > { %8878 = vmatprep.subr.bf16.mxu0 %v11917_v63  ;;  %v11956_v35 = vld [vmem:[%s13123_s24 + $0x7ec] ss:$16 sps:$4 sm:$0xff]   ;;  %v11951_v59 = vld [vmem:[%s13123_s24 + $0x7e0] ss:$16 sps:$4 sm:$0xff]   ;;  %v11954_v13 = vld [vmem:[%s13123_s24 + $0x7e8] ss:$16 sps:$4 sm:$0xff]  }
 0x58c   : > { %v19874_v41 = vld [vmem:[#allocation154_spill] sm:$0xff] }
 0x58d   : > { %9523 = vmatpush1.bf16.msra.mxu1 %v11918_v48  ;;  %v19876_v63 = vld [vmem:[#allocation94_spill] sm:$0xff] }
 0x58e   : > { %8879 = vmatpush1.bf16.msra.mxu0 %v11915_v28  ;;  %9524 = vmatprep.subr.bf16.mxu1 %v11926_v42 }
 0x58f   : > { %8880 = vmatprep.subr.bf16.mxu0 %v11923_v43  ;;  %8782 = vmatmul.mubr.bf16.gmra.mrb[124].mxu0 %v18197_v33 }
 0x590   : > { %9426 = vmatmul.mubr.bf16.gmra.mrb[124].mxu1 %v18197_v33  ;;  %8791 = vmatprep.mubr.bf16.mxu0 %v18201_v19  ;;  %v11936_v33 = vld [vmem:[%s13123_s24 + $0x788] ss:$16 sps:$4 sm:$0xff]  }
 0x591   : > { %9435 = vmatprep.mubr.bf16.mxu1 %v18201_v19  ;;  %9525 = vmatpush1.bf16.msra.mxu1 %v11924_v52  ;;  %v11941_v19 = vld [vmem:[%s13123_s24 + $0x7a4] ss:$16 sps:$4 sm:$0xff]  }
 0x592   : > { %8881 = vmatpush1.bf16.msra.mxu0 %v11921_v6  ;;  %9526 = vmatprep.subr.bf16.mxu1 %v11932_v60 }
 0x593   : > { %8882 = vmatprep.subr.bf16.mxu0 %v11929_v31 }
 0x595   : > { %9527 = vmatpush1.bf16.msra.mxu1 %v11930_v12 }
 0x596   : > { %8883 = vmatpush1.bf16.msra.mxu0 %v11927_v44  ;;  %9528 = vmatprep.subr.bf16.mxu1 %v11938_v62  ;;  %v19877_v62 = vld [vmem:[#allocation139_spill] sm:$0xff] }
 0x597   : > { %8884 = vmatprep.subr.bf16.mxu0 %v11935_v17  ;;  %8792 = vmatmul.mubr.bf16.gmra.mrb[128].mxu0 %v18208_v51 }
 0x598   : > { %9436 = vmatmul.mubr.bf16.gmra.mrb[128].mxu1 %v18208_v51  ;;  %8801 = vmatprep.mubr.bf16.mxu0 %v18212_v3  ;;  %v11948_v51 = vld [vmem:[%s13123_s24 + $0x7c8] ss:$16 sps:$4 sm:$0xff]  }
 0x599   : > { %9445 = vmatprep.mubr.bf16.mxu1 %v18212_v3  ;;  %9529 = vmatpush1.bf16.msra.mxu1 %v11936_v33  ;;  %v19873_v3 = vld [vmem:[#allocation127_spill] sm:$0xff] }
 0x59a   : > { %8885 = vmatpush1.bf16.msra.mxu0 %v11933_v2  ;;  %9530 = vmatprep.subr.bf16.mxu1 %v11944_v27  ;;  %v10864_v25 = vadd.f32 %v19874_v41, %v19873_v3 }
 0x59b   : > { %8886 = vmatprep.subr.bf16.mxu0 %v11941_v19 }
 0x59c   : > { %v6134_v29 = vmul.f32 0.70710677, %v10864_v25  ;;  %v5934_v48 = vmul.f32 0.5, %v10864_v25 }
 0x59d   : > { %9531 = vmatpush1.bf16.msra.mxu1 %v11942_v16 }
 0x59e   : > { %8887 = vmatpush1.bf16.msra.mxu0 %v11939_v46  ;;  %9532 = vmatprep.subr.bf16.mxu1 %v11950_v15  ;;  %12349 = verf.f32 %v6134_v29 }
 0x59f   : > { %8888 = vmatprep.subr.bf16.mxu0 %v11947_v55  ;;  %8802 = vmatmul.mubr.bf16.gmra.mrb[132].mxu0 %v18216_v54 }
 0x5a0   : > { %9446 = vmatmul.mubr.bf16.gmra.mrb[132].mxu1 %v18216_v54  ;;  %8811 = vmatprep.mubr.bf16.mxu0 %v18220_v37  ;;  %v19875_v54 = vld [vmem:[#allocation117_spill] sm:$0xff] }
 0x5a1   : > { %9455 = vmatprep.mubr.bf16.mxu1 %v18220_v37  ;;  %9533 = vmatpush1.bf16.msra.mxu1 %v11948_v51  ;;  %v10863_v24 = vadd.f32 %v19876_v63, %v19875_v54  ;;  %v9665_v63 = vld [vmem:[%s19117_s8] sm:$0xff] }
 0x5a2   : > { %8889 = vmatpush1.bf16.msra.mxu0 %v11945_v58  ;;  %9534 = vmatprep.subr.bf16.mxu1 %v11956_v35 }
 0x5a3   : > { %8890 = vmatprep.subr.bf16.mxu0 %v11953_v4  ;;  %v6133_v37 = vmul.f32 0.70710677, %v10863_v24  ;;  %v5933_v6 = vmul.f32 0.5, %v10863_v24  ;;  %v9667_v24 = vld [vmem:[%s19117_s8 + $0x10] sm:$0xff] }
 0x5a5   : > { %9535 = vmatpush1.bf16.msra.mxu1 %v11954_v13  ;;  %12351 = verf.f32 %v6133_v37  ;;  %v9666_v37 = vld [vmem:[%s19117_s8 + $0x8] sm:$0xff] }
 0x5a6   : > { %8891 = vmatpush1.bf16.msra.mxu0 %v11951_v59 }
 0x5a7   : > { %8812 = vmatmul.mubr.bf16.gmra.mrb[136].mxu0 %v18224_v45 }
 0x5a8   : > { %9456 = vmatmul.mubr.bf16.gmra.mrb[136].mxu1 %v18224_v45  ;;  %8821 = vmatprep.mubr.bf16.mxu0 %v18228_v23  ;;  %v12350_v28 = vpop.eup %12349 }
 0x5a9   : > { %9465 = vmatprep.mubr.bf16.mxu1 %v18228_v23  ;;  %v6534_v45 = vadd.f32 1.0, %v12350_v28  ;;  %v9668_v28 = vld [vmem:[%s19117_s8 + $0x18] sm:$0xff] }
 0x5ab   : > { %v6734_v43 = vmul.f32 %v6534_v45, %v5934_v48 }
 0x5af   : > { %8822 = vmatmul.mubr.bf16.gmra.mrb[140].mxu0 %v18232_v34  ;;  %v12352_v23 = vpop.eup %12351 }
 0x5b0   : > { %9466 = vmatmul.mubr.bf16.gmra.mrb[140].mxu1 %v18232_v34  ;;  %8831 = vmatprep.mubr.bf16.mxu0 %v18234_v39  ;;  %v6533_v42 = vadd.f32 1.0, %v12352_v23  ;;  %v6838_v34 = vpack.c.bf16 %v6734_v43, %v6734_v43  ;;  %v9669_v23 = vld [vmem:[%s19117_s8 + $0x20] sm:$0xff]  ;;  %v9671_v43 = vld [vmem:[%s19117_s8 + $0x30] sm:$0xff] }
 0x5b1   : > { %9475 = vmatprep.mubr.bf16.mxu1 %v18234_v39 }
 0x5b2   : > { %v6733_v39 = vmul.f32 %v6533_v42, %v5933_v6 }
 0x5b4   : > { %v6837_v52 = vpack.c.bf16 %v6733_v39, %v6733_v39 }
 0x5b7   : > { %8832 = vmatmul.mubr.bf16.gmra.mrb[144].mxu0 %v18241_v8 }
 0x5b8   : > { %9476 = vmatmul.mubr.bf16.gmra.mrb[144].mxu1 %v18241_v8  ;;  %8841 = vmatprep.mubr.bf16.mxu0 %v18247_v14 }
 0x5b9   : > { %9485 = vmatprep.mubr.bf16.mxu1 %v18247_v14 }
 0x5bf   : > { %8842 = vmatmul.mubr.bf16.gmra.mrb[148].mxu0 %v18243_v56 }
 0x5c0   : > { %9486 = vmatmul.mubr.bf16.gmra.mrb[148].mxu1 %v18243_v56  ;;  %8851 = vmatprep.mubr.bf16.mxu0 %v6838_v34 }
 0x5c1   : > { %9495 = vmatprep.mubr.bf16.mxu1 %v6838_v34 }
 0x5c2   : > { %v18422_v8 = vpop.f32.mrb[152].mxu0  ;;  %v18424_v14 = vpop.f32.mrb[152].mxu1 }
 0x5c3   : > { %v18426_v31 = vpop.f32.mrb[153].mxu0  ;;  %v18428_v60 = vpop.f32.mrb[153].mxu1 }
 0x5c4   : > { %v8535_v44 = vpop.f32.mrb[154].mxu0  ;;  %v9179_v56 = vpop.f32.mrb[154].mxu1 }
 0x5c5   : > { %v8536_v12 = vpop.f32.mrb[155].mxu0  ;;  %v9180_v17 = vpop.f32.mrb[155].mxu1 }
 0x5c7   : > { %8852 = vmatmul.mubr.bf16.gmra.mrb[160].mxu0 %v6837_v52 }
 0x5c8   : > { %9496 = vmatmul.mubr.bf16.gmra.mrb[160].mxu1 %v6837_v52  ;;  %8892 = vmatprep.mubr.bf16.mxu0 %v18251_v49  ;;  %v9670_v52 = vld [vmem:[%s19117_s8 + $0x28] sm:$0xff] }
 0x5c9   : > { %9536 = vmatprep.mubr.bf16.mxu1 %v18251_v49  ;;  %v19878_v49 = vld [vmem:[#allocation121_spill] sm:$0xff] }
 0x5cf   : > { %8893 = vmatmul.mubr.bf16.vlgmr.msra.gmra.mrb[104].mxu0 %v19877_v62 }
 0x5d0   : > { %9537 = vmatmul.mubr.bf16.vlgmr.msra.gmra.mrb[104].mxu1 %v19877_v62  ;;  %8902 = vmatprep.mubr.bf16.mxu0 %v18255_v57 }
 0x5d1   : > { %9546 = vmatprep.mubr.bf16.mxu1 %v18255_v57  ;;  %v19879_v57 = vld [vmem:[#allocation155_spill] sm:$0xff] }
 0x5d7   : > { %8903 = vmatmul.mubr.bf16.gmra.mrb[108].mxu0 %v18261_v9 }
 0x5d8   : > { %9547 = vmatmul.mubr.bf16.gmra.mrb[108].mxu1 %v18261_v9  ;;  %8912 = vmatprep.mubr.bf16.mxu0 %v18265_v47  ;;  %v10914_v9 = vadd.f32 %v19879_v57, %v19878_v49 }
 0x5d9   : > { %9556 = vmatprep.mubr.bf16.mxu1 %v18265_v47 }
 0x5da   : > { %v6136_v47 = vmul.f32 0.70710677, %v10914_v9 }
 0x5dc   : > { %12353 = verf.f32 %v6136_v47  ;;  %v9675_v47 = vld [vmem:[%s19117_s8 + $0x50] sm:$0xff] }
 0x5df   : > { %8913 = vmatmul.mubr.bf16.gmra.mrb[112].mxu0 %v18269_v10 }
 0x5e0   : > { %9557 = vmatmul.mubr.bf16.gmra.mrb[112].mxu1 %v18269_v10  ;;  %8922 = vmatprep.mubr.bf16.mxu0 %v18273_v32  ;;  %v19880_v10 = vld [vmem:[#allocation123_spill] sm:$0xff] }
 0x5e1   : > { %9566 = vmatprep.mubr.bf16.mxu1 %v18273_v32  ;;  %v19881_v32 = vld [vmem:[#allocation98_spill] sm:$0xff] }
 0x5e7   : > { %8923 = vmatmul.mubr.bf16.gmra.mrb[116].mxu0 %v18277_v38 }
 0x5e8   : > { %9567 = vmatmul.mubr.bf16.gmra.mrb[116].mxu1 %v18277_v38  ;;  %8932 = vmatprep.mubr.bf16.mxu0 %v18284_v50  ;;  %v10913_v38 = vadd.f32 %v19881_v32, %v19880_v10  ;;  %v9674_v10 = vld [vmem:[%s19117_s8 + $0x48] sm:$0xff]  ;;  %v9676_v32 = vld [vmem:[%s19117_s8 + $0x58] sm:$0xff] }
 0x5e9   : > { %9576 = vmatprep.mubr.bf16.mxu1 %v18284_v50 }
 0x5ea   : > { %v6135_v50 = vmul.f32 0.70710677, %v10913_v38 }
 0x5ec   : > { %12355 = verf.f32 %v6135_v50 }
 0x5ef   : > { %8933 = vmatmul.mubr.bf16.gmra.mrb[120].mxu0 %v18288_v30 }
 0x5f0   : > { %9577 = vmatmul.mubr.bf16.gmra.mrb[120].mxu1 %v18288_v30  ;;  %8942 = vmatprep.mubr.bf16.mxu0 %v18295_v21  ;;  %v12354_v30 = vpop.eup %12353 }
 0x5f1   : > { %9586 = vmatprep.mubr.bf16.mxu1 %v18295_v21  ;;  %v6536_v21 = vadd.f32 1.0, %v12354_v30  ;;  %v9677_v30 = vld [vmem:[%s19117_s8 + $0x60] sm:$0xff] }
 0x5f7   : > { %8943 = vmatmul.mubr.bf16.gmra.mrb[124].mxu0 %v18299_v11 }
 0x5f8   : > { %9587 = vmatmul.mubr.bf16.gmra.mrb[124].mxu1 %v18299_v11  ;;  %8952 = vmatprep.mubr.bf16.mxu0 %v18303_v18  ;;  %v5936_v11 = vmul.f32 0.5, %v10914_v9  ;;  %v9673_v9 = vld [vmem:[%s19117_s8 + $0x40] sm:$0xff] }
 0x5f9   : > { %9596 = vmatprep.mubr.bf16.mxu1 %v18303_v18  ;;  %v12356_v18 = vpop.eup %12355 }
 0x5ff   : > { %8953 = vmatmul.mubr.bf16.gmra.mrb[128].mxu0 %v18307_v0 }
 0x600   : > { %9597 = vmatmul.mubr.bf16.gmra.mrb[128].mxu1 %v18307_v0  ;;  %8962 = vmatprep.mubr.bf16.mxu0 %v18311_v36  ;;  %v6736_v0 = vmul.f32 %v6536_v21, %v5936_v11  ;;  %v9679_v21 = vld [vmem:[%s19117_s8 + $0x70] sm:$0xff] }
 0x601   : > { %9606 = vmatprep.mubr.bf16.mxu1 %v18311_v36  ;;  %v6535_v36 = vadd.f32 1.0, %v12356_v18 }
 0x607   : > { %8963 = vmatmul.mubr.bf16.gmra.mrb[132].mxu0 %v18315_v1 }
 0x608   : > { %9607 = vmatmul.mubr.bf16.gmra.mrb[132].mxu1 %v18315_v1  ;;  %8972 = vmatprep.mubr.bf16.mxu0 %v18319_v7  ;;  %v6840_v1 = vpack.c.bf16 %v6736_v0, %v6736_v0 }
 0x609   : > { %9616 = vmatprep.mubr.bf16.mxu1 %v18319_v7  ;;  %v5935_v7 = vmul.f32 0.5, %v10913_v38 }
 0x60f   : > { %8973 = vmatmul.mubr.bf16.gmra.mrb[136].mxu0 %v18323_v40 }
 0x610   : > { %9617 = vmatmul.mubr.bf16.gmra.mrb[136].mxu1 %v18323_v40  ;;  %8982 = vmatprep.mubr.bf16.mxu0 %v18327_v22  ;;  %v6735_v40 = vmul.f32 %v6535_v36, %v5935_v7  ;;  %v9680_v7 = vld [vmem:[%s19117_s8 + $0x78] sm:$0xff] }
 0x611   : > { %9626 = vmatprep.mubr.bf16.mxu1 %v18327_v22 }
 0x612   : > { %v6839_v22 = vpack.c.bf16 %v6735_v40, %v6735_v40 }
 0x617   : > { %8983 = vmatmul.mubr.bf16.gmra.mrb[140].mxu0 %v18333_v61 }
 0x618   : > { %9627 = vmatmul.mubr.bf16.gmra.mrb[140].mxu1 %v18333_v61  ;;  %8992 = vmatprep.mubr.bf16.mxu0 %v18336_v5 }
 0x619   : > { %9636 = vmatprep.mubr.bf16.mxu1 %v18336_v5 }
 0x61f   : > { %8993 = vmatmul.mubr.bf16.gmra.mrb[144].mxu0 %v18340_v53 }
 0x620   : > { %9637 = vmatmul.mubr.bf16.gmra.mrb[144].mxu1 %v18340_v53  ;;  %9002 = vmatprep.mubr.bf16.mxu0 %v18344_v20 }
 0x621   : > { %9646 = vmatprep.mubr.bf16.mxu1 %v18344_v20 }
 0x627   : > { %9003 = vmatmul.mubr.bf16.gmra.mrb[148].mxu0 %v18346_v26 }
 0x628   : > { %9647 = vmatmul.mubr.bf16.gmra.mrb[148].mxu1 %v18346_v26  ;;  %9012 = vmatprep.mubr.bf16.mxu0 %v6840_v1 }
 0x629   : > { %9656 = vmatprep.mubr.bf16.mxu1 %v6840_v1  ;;  %v9678_v1 = vld [vmem:[%s19117_s8 + $0x68] sm:$0xff] }
 0x62f   : > { %9013 = vmatmul.mubr.bf16.gmra.mrb[164].mxu0 %v6839_v22 }
 0x630   : > { %9657 = vmatmul.mubr.bf16.gmra.mrb[164].mxu1 %v6839_v22 }
 0x631   : > { %v8692_v61 = vpop.f32.mrb[156].mxu0  ;;  %v9336_v5 = vpop.f32.mrb[156].mxu1 }
 0x632   : > { %v8693_v53 = vadd.f32 %v8692_v61, %v18422_v8  ;;  %v9337_v20 = vadd.f32 %v9336_v5, %v18424_v14  ;;  %v8694_v2 = vpop.f32.mrb[157].mxu0  ;;  %v9338_v33 = vpop.f32.mrb[157].mxu1  ;;  %v9672_v8 = vld [vmem:[%s19117_s8 + $0x38] sm:$0xff] }
 0x633   : > { %v8695_v19 = vadd.f32 %v8694_v2, %v18426_v31  ;;  %v9339_v27 = vadd.f32 %v9338_v33, %v18428_v60  ;;  %v8696_v46 = vpop.f32.mrb[158].mxu0  ;;  %v9340_v26 = vpop.f32.mrb[158].mxu1 }
 0x634   : > { %v8697_v16 = vpop.f32.mrb[159].mxu0  ;;  %v9341_v55 = vpop.f32.mrb[159].mxu1  ;;  %v9681_v46 = vld [vmem:[%s19117_s8 + $0x80] sm:$0xff]  ;;  %v9683_v26 = vld [vmem:[%s19117_s8 + $0x90] sm:$0xff] }
 0x635   : > { %v9682_v16 = vld [vmem:[%s19117_s8 + $0x88] sm:$0xff]  ;;  %v9684_v55 = vld [vmem:[%s19117_s8 + $0x98] sm:$0xff] }
 0x69a   : > { %v8853_v15 = vpop.f32.mrb[160].mxu0 }
 0x69b   : > { %v9497_v58 = vpop.f32.mrb[160].mxu1  ;;  %v18484_v51 = vadd.f32 %v8853_v15, %v8693_v53  ;;  %v8855_v35 = vpop.f32.mrb[161].mxu0 }
 0x69c   : > { %v18486_v4 = vadd.f32 %v9497_v58, %v9337_v20  ;;  %v9499_v3 = vpop.f32.mrb[161].mxu1  ;;  %v18488_v41 = vadd.f32 %v8855_v35, %v8695_v19  ;;  %v8857_v59 = vpop.f32.mrb[162].mxu0  ;;  %v9685_v35 = vld [vmem:[%s19117_s8 + $0xa0] sm:$0xff] }
 0x69d   : > { %v18490_v25 = vadd.f32 %v9499_v3, %v9339_v27  ;;  %v9501_v13 = vpop.f32.mrb[162].mxu1  ;;  %v8858_v29 = vpop.f32.mrb[163].mxu0  ;;  %v9687_v3 = vld [vmem:[%s19117_s8 + $0xb0] sm:$0xff] }
 0x69e   : > { %v9502_v54 = vpop.f32.mrb[163].mxu1 }
 0x6a2   : > { %v8894_v45 = vpop.f32.mrb[104].mxu0 }
 0x6a3   : > { %v9538_v48 = vpop.f32.mrb[104].mxu1  ;;  %v9765_v42 = vadd.f32 %v9665_v63, %v8894_v45  ;;  %v8896_v6 = vpop.f32.mrb[105].mxu0  ;;  %v9686_v63 = vld [vmem:[%s19117_s8 + $0xa8] sm:$0xff] }
 0x6a4   : > { %v9767_v34 = vadd.f32 %v9667_v24, %v9538_v48  ;;  %v9540_v39 = vpop.f32.mrb[105].mxu1  ;;  %v9766_v14 = vadd.f32 %v9666_v37, %v8896_v6  ;;  %v8898_v60 = vpop.f32.mrb[106].mxu0  ;;  %v9688_v24 = vld [vmem:[%s19117_s8 + $0xb8] sm:$0xff] }
 0x6a5   : > { %v9768_v31 = vadd.f32 %v9668_v28, %v9540_v39  ;;  %v9542_v44 = vpop.f32.mrb[106].mxu1  ;;  %9865 = vst [vmem:[%s19117_s8] sm:$0xff] %v9765_v42  ;;  %v9769_v56 = vadd.f32 %v9669_v23, %v8898_v60  ;;  %v8900_v17 = vpop.f32.mrb[107].mxu0 }
 0x6a6   : > { %9867 = vst [vmem:[%s19117_s8 + $0x10] sm:$0xff] %v9767_v34  ;;  %v9771_v12 = vadd.f32 %v9671_v43, %v9542_v44  ;;  %v9544_v62 = vpop.f32.mrb[107].mxu1  ;;  %9866 = vst [vmem:[%s19117_s8 + $0x8] sm:$0xff] %v9766_v14  ;;  %v9770_v49 = vadd.f32 %v9670_v52, %v8900_v17  ;;  %v9689_v52 = vld [vmem:[%s19117_s8 + $0xc0] sm:$0xff]  ;;  %v9690_v14 = vld [vmem:[%s19117_s8 + $0xc8] sm:$0xff] }
 0x6a7   : > { %9868 = vst [vmem:[%s19117_s8 + $0x18] sm:$0xff] %v9768_v31  ;;  %v9772_v57 = vadd.f32 %v9672_v8, %v9544_v62  ;;  %9869 = vst [vmem:[%s19117_s8 + $0x20] sm:$0xff] %v9769_v56  ;;  %v9691_v8 = vld [vmem:[%s19117_s8 + $0xd0] sm:$0xff]  ;;  %v9692_v31 = vld [vmem:[%s19117_s8 + $0xd8] sm:$0xff] }
 0x6a8   : > { %9871 = vst [vmem:[%s19117_s8 + $0x30] sm:$0xff] %v9771_v12  ;;  %9870 = vst [vmem:[%s19117_s8 + $0x28] sm:$0xff] %v9770_v49  ;;  %v9693_v56 = vld [vmem:[%s19117_s8 + $0xe0] sm:$0xff]  ;;  %v9695_v12 = vld [vmem:[%s19117_s8 + $0xf0] sm:$0xff] }
 0x6a9   : > { %9872 = vst [vmem:[%s19117_s8 + $0x38] sm:$0xff] %v9772_v57 }
 0x6aa   : > { %v8904_v38 = vpop.f32.mrb[108].mxu0 }
 0x6ab   : > { %v9548_v50 = vpop.f32.mrb[108].mxu1  ;;  %v9773_v11 = vadd.f32 %v9673_v9, %v8904_v38  ;;  %v8906_v0 = vpop.f32.mrb[109].mxu0  ;;  %v9694_v9 = vld [vmem:[%s19117_s8 + $0xe8] sm:$0xff] }
 0x6ac   : > { %v9775_v18 = vadd.f32 %v9675_v47, %v9548_v50  ;;  %v9550_v36 = vpop.f32.mrb[109].mxu1  ;;  %v9774_v40 = vadd.f32 %v9674_v10, %v8906_v0  ;;  %v8908_v61 = vpop.f32.mrb[110].mxu0  ;;  %v9696_v47 = vld [vmem:[%s19117_s8 + $0xf8] sm:$0xff] }
 0x6ad   : > { %v9776_v22 = vadd.f32 %v9676_v32, %v9550_v36  ;;  %v9552_v5 = vpop.f32.mrb[110].mxu1  ;;  %9873 = vst [vmem:[%s19117_s8 + $0x40] sm:$0xff] %v9773_v11  ;;  %v9777_v53 = vadd.f32 %v9677_v30, %v8908_v61  ;;  %v8910_v2 = vpop.f32.mrb[111].mxu0 }
 0x6ae   : > { %9875 = vst [vmem:[%s19117_s8 + $0x50] sm:$0xff] %v9775_v18  ;;  %v9779_v20 = vadd.f32 %v9679_v21, %v9552_v5  ;;  %v9554_v33 = vpop.f32.mrb[111].mxu1  ;;  %9874 = vst [vmem:[%s19117_s8 + $0x48] sm:$0xff] %v9774_v40  ;;  %v9778_v19 = vadd.f32 %v9678_v1, %v8910_v2  ;;  %v9697_v1 = vld [vmem:[%s19117_s8 + $0x100] sm:$0xff]  ;;  %v9698_v40 = vld [vmem:[%s19117_s8 + $0x108] sm:$0xff] }
 0x6af   : > { %9876 = vst [vmem:[%s19117_s8 + $0x58] sm:$0xff] %v9776_v22  ;;  %v9780_v27 = vadd.f32 %v9680_v7, %v9554_v33  ;;  %9877 = vst [vmem:[%s19117_s8 + $0x60] sm:$0xff] %v9777_v53  ;;  %v9699_v7 = vld [vmem:[%s19117_s8 + $0x110] sm:$0xff]  ;;  %v9700_v22 = vld [vmem:[%s19117_s8 + $0x118] sm:$0xff] }
 0x6b0   : > { %9879 = vst [vmem:[%s19117_s8 + $0x70] sm:$0xff] %v9779_v20  ;;  %9878 = vst [vmem:[%s19117_s8 + $0x68] sm:$0xff] %v9778_v19  ;;  %v9701_v53 = vld [vmem:[%s19117_s8 + $0x120] sm:$0xff]  ;;  %v9703_v20 = vld [vmem:[%s19117_s8 + $0x130] sm:$0xff] }
 0x6b1   : > { %9880 = vst [vmem:[%s19117_s8 + $0x78] sm:$0xff] %v9780_v27 }
 0x6b2   : > { %v8914_v15 = vpop.f32.mrb[112].mxu0 }
 0x6b3   : > { %v9558_v58 = vpop.f32.mrb[112].mxu1  ;;  %v9781_v59 = vadd.f32 %v9681_v46, %v8914_v15  ;;  %v8916_v29 = vpop.f32.mrb[113].mxu0  ;;  %v9702_v46 = vld [vmem:[%s19117_s8 + $0x128] sm:$0xff] }
 0x6b4   : > { %v9783_v13 = vadd.f32 %v9683_v26, %v9558_v58  ;;  %v9560_v54 = vpop.f32.mrb[113].mxu1  ;;  %v9782_v37 = vadd.f32 %v9682_v16, %v8916_v29  ;;  %v8918_v45 = vpop.f32.mrb[114].mxu0  ;;  %v9704_v26 = vld [vmem:[%s19117_s8 + $0x138] sm:$0xff] }
 0x6b5   : > { %v9784_v28 = vadd.f32 %v9684_v55, %v9560_v54  ;;  %v9562_v48 = vpop.f32.mrb[114].mxu1  ;;  %9881 = vst [vmem:[%s19117_s8 + $0x80] sm:$0xff] %v9781_v59  ;;  %v9785_v23 = vadd.f32 %v9685_v35, %v8918_v45  ;;  %v8920_v42 = vpop.f32.mrb[115].mxu0 }
 0x6b6   : > { %9883 = vst [vmem:[%s19117_s8 + $0x90] sm:$0xff] %v9783_v13  ;;  %v9787_v43 = vadd.f32 %v9687_v3, %v9562_v48  ;;  %v9564_v34 = vpop.f32.mrb[115].mxu1  ;;  %9882 = vst [vmem:[%s19117_s8 + $0x88] sm:$0xff] %v9782_v37  ;;  %v9786_v6 = vadd.f32 %v9686_v63, %v8920_v42  ;;  %v9705_v63 = vld [vmem:[%s19117_s8 + $0x140] sm:$0xff]  ;;  %v9706_v37 = vld [vmem:[%s19117_s8 + $0x148] sm:$0xff] }
 0x6b7   : > { %9884 = vst [vmem:[%s19117_s8 + $0x98] sm:$0xff] %v9784_v28  ;;  %v9788_v39 = vadd.f32 %v9688_v24, %v9564_v34  ;;  %9885 = vst [vmem:[%s19117_s8 + $0xa0] sm:$0xff] %v9785_v23  ;;  %v9707_v24 = vld [vmem:[%s19117_s8 + $0x150] sm:$0xff]  ;;  %v9708_v28 = vld [vmem:[%s19117_s8 + $0x158] sm:$0xff] }
 0x6b8   : > { %9887 = vst [vmem:[%s19117_s8 + $0xb0] sm:$0xff] %v9787_v43  ;;  %9886 = vst [vmem:[%s19117_s8 + $0xa8] sm:$0xff] %v9786_v6  ;;  %v9709_v23 = vld [vmem:[%s19117_s8 + $0x160] sm:$0xff]  ;;  %v9711_v43 = vld [vmem:[%s19117_s8 + $0x170] sm:$0xff] }
 0x6b9   : > { %9888 = vst [vmem:[%s19117_s8 + $0xb8] sm:$0xff] %v9788_v39 }
 0x6ba   : > { %v8924_v60 = vpop.f32.mrb[116].mxu0 }
 0x6bb   : > { %v9568_v44 = vpop.f32.mrb[116].mxu1  ;;  %v9789_v17 = vadd.f32 %v9689_v52, %v8924_v60  ;;  %v8926_v49 = vpop.f32.mrb[117].mxu0  ;;  %v9710_v52 = vld [vmem:[%s19117_s8 + $0x168] sm:$0xff] }
 0x6bc   : > { %v9791_v62 = vadd.f32 %v9691_v8, %v9568_v44  ;;  %v9570_v57 = vpop.f32.mrb[117].mxu1  ;;  %v9790_v10 = vadd.f32 %v9690_v14, %v8926_v49  ;;  %v8928_v38 = vpop.f32.mrb[118].mxu0  ;;  %v9712_v8 = vld [vmem:[%s19117_s8 + $0x178] sm:$0xff] }
 0x6bd   : > { %v9792_v32 = vadd.f32 %v9692_v31, %v9570_v57  ;;  %v9572_v50 = vpop.f32.mrb[118].mxu1  ;;  %9889 = vst [vmem:[%s19117_s8 + $0xc0] sm:$0xff] %v9789_v17  ;;  %v9793_v30 = vadd.f32 %v9693_v56, %v8928_v38  ;;  %v8930_v11 = vpop.f32.mrb[119].mxu0 }
 0x6be   : > { %9891 = vst [vmem:[%s19117_s8 + $0xd0] sm:$0xff] %v9791_v62  ;;  %v9795_v21 = vadd.f32 %v9695_v12, %v9572_v50  ;;  %v9574_v18 = vpop.f32.mrb[119].mxu1  ;;  %9890 = vst [vmem:[%s19117_s8 + $0xc8] sm:$0xff] %v9790_v10  ;;  %v9794_v0 = vadd.f32 %v9694_v9, %v8930_v11  ;;  %v9713_v9 = vld [vmem:[%s19117_s8 + $0x180] sm:$0xff]  ;;  %v9714_v10 = vld [vmem:[%s19117_s8 + $0x188] sm:$0xff] }
 0x6bf   : > { %9892 = vst [vmem:[%s19117_s8 + $0xd8] sm:$0xff] %v9792_v32  ;;  %v9796_v36 = vadd.f32 %v9696_v47, %v9574_v18  ;;  %9893 = vst [vmem:[%s19117_s8 + $0xe0] sm:$0xff] %v9793_v30  ;;  %v9715_v47 = vld [vmem:[%s19117_s8 + $0x190] sm:$0xff]  ;;  %v9716_v32 = vld [vmem:[%s19117_s8 + $0x198] sm:$0xff] }
 0x6c0   : > { %9895 = vst [vmem:[%s19117_s8 + $0xf0] sm:$0xff] %v9795_v21  ;;  %9894 = vst [vmem:[%s19117_s8 + $0xe8] sm:$0xff] %v9794_v0  ;;  %v9717_v30 = vld [vmem:[%s19117_s8 + $0x1a0] sm:$0xff]  ;;  %v9719_v21 = vld [vmem:[%s19117_s8 + $0x1b0] sm:$0xff] }
 0x6c1   : > { %9896 = vst [vmem:[%s19117_s8 + $0xf8] sm:$0xff] %v9796_v36 }
 0x6c2   : > { %v8934_v61 = vpop.f32.mrb[120].mxu0 }
 0x6c3   : > { %v9578_v5 = vpop.f32.mrb[120].mxu1  ;;  %v9797_v2 = vadd.f32 %v9697_v1, %v8934_v61  ;;  %v8936_v19 = vpop.f32.mrb[121].mxu0  ;;  %v9718_v1 = vld [vmem:[%s19117_s8 + $0x1a8] sm:$0xff] }
 0x6c4   : > { %v9799_v33 = vadd.f32 %v9699_v7, %v9578_v5  ;;  %v9580_v27 = vpop.f32.mrb[121].mxu1  ;;  %v9798_v16 = vadd.f32 %v9698_v40, %v8936_v19  ;;  %v8938_v15 = vpop.f32.mrb[122].mxu0  ;;  %v9720_v7 = vld [vmem:[%s19117_s8 + $0x1b8] sm:$0xff] }
 0x6c5   : > { %v9800_v55 = vadd.f32 %v9700_v22, %v9580_v27  ;;  %v9582_v58 = vpop.f32.mrb[122].mxu1  ;;  %9897 = vst [vmem:[%s19117_s8 + $0x100] sm:$0xff] %v9797_v2  ;;  %v9801_v35 = vadd.f32 %v9701_v53, %v8938_v15  ;;  %v8940_v59 = vpop.f32.mrb[123].mxu0 }
 0x6c6   : > { %9899 = vst [vmem:[%s19117_s8 + $0x110] sm:$0xff] %v9799_v33  ;;  %v9803_v3 = vadd.f32 %v9703_v20, %v9582_v58  ;;  %v9584_v13 = vpop.f32.mrb[123].mxu1  ;;  %9898 = vst [vmem:[%s19117_s8 + $0x108] sm:$0xff] %v9798_v16  ;;  %v9802_v29 = vadd.f32 %v9702_v46, %v8940_v59  ;;  %v9721_v46 = vld [vmem:[%s19117_s8 + $0x1c0] sm:$0xff]  ;;  %v9722_v16 = vld [vmem:[%s19117_s8 + $0x1c8] sm:$0xff] }
 0x6c7   : > { %9900 = vst [vmem:[%s19117_s8 + $0x118] sm:$0xff] %v9800_v55  ;;  %v9804_v54 = vadd.f32 %v9704_v26, %v9584_v13  ;;  %9901 = vst [vmem:[%s19117_s8 + $0x120] sm:$0xff] %v9801_v35  ;;  %v9723_v26 = vld [vmem:[%s19117_s8 + $0x1d0] sm:$0xff]  ;;  %v9724_v55 = vld [vmem:[%s19117_s8 + $0x1d8] sm:$0xff] }
 0x6c8   : > { %9903 = vst [vmem:[%s19117_s8 + $0x130] sm:$0xff] %v9803_v3  ;;  %9902 = vst [vmem:[%s19117_s8 + $0x128] sm:$0xff] %v9802_v29  ;;  %v9725_v35 = vld [vmem:[%s19117_s8 + $0x1e0] sm:$0xff]  ;;  %v9727_v3 = vld [vmem:[%s19117_s8 + $0x1f0] sm:$0xff] }
 0x6c9   : > { %9904 = vst [vmem:[%s19117_s8 + $0x138] sm:$0xff] %v9804_v54 }
 0x6ca   : > { %v8944_v45 = vpop.f32.mrb[124].mxu0 }
 0x6cb   : > { %v9588_v48 = vpop.f32.mrb[124].mxu1  ;;  %v9805_v42 = vadd.f32 %v9705_v63, %v8944_v45  ;;  %v8946_v6 = vpop.f32.mrb[125].mxu0  ;;  %v9726_v63 = vld [vmem:[%s19117_s8 + $0x1e8] sm:$0xff] }
 0x6cc   : > { %v9807_v34 = vadd.f32 %v9707_v24, %v9588_v48  ;;  %v9590_v39 = vpop.f32.mrb[125].mxu1  ;;  %v9806_v14 = vadd.f32 %v9706_v37, %v8946_v6  ;;  %v8948_v60 = vpop.f32.mrb[126].mxu0  ;;  %v9728_v24 = vld [vmem:[%s19117_s8 + $0x1f8] sm:$0xff] }
 0x6cd   : > { %v9808_v31 = vadd.f32 %v9708_v28, %v9590_v39  ;;  %v9592_v44 = vpop.f32.mrb[126].mxu1  ;;  %9905 = vst [vmem:[%s19117_s8 + $0x140] sm:$0xff] %v9805_v42  ;;  %v9809_v56 = vadd.f32 %v9709_v23, %v8948_v60  ;;  %v8950_v17 = vpop.f32.mrb[127].mxu0 }
 0x6ce   : > { %9907 = vst [vmem:[%s19117_s8 + $0x150] sm:$0xff] %v9807_v34  ;;  %v9811_v12 = vadd.f32 %v9711_v43, %v9592_v44  ;;  %v9594_v62 = vpop.f32.mrb[127].mxu1  ;;  %9906 = vst [vmem:[%s19117_s8 + $0x148] sm:$0xff] %v9806_v14  ;;  %v9810_v49 = vadd.f32 %v9710_v52, %v8950_v17  ;;  %v9729_v52 = vld [vmem:[%s19117_s8 + $0x200] sm:$0xff]  ;;  %v9730_v14 = vld [vmem:[%s19117_s8 + $0x208] sm:$0xff] }
 0x6cf   : > { %9908 = vst [vmem:[%s19117_s8 + $0x158] sm:$0xff] %v9808_v31  ;;  %v9812_v57 = vadd.f32 %v9712_v8, %v9594_v62  ;;  %9909 = vst [vmem:[%s19117_s8 + $0x160] sm:$0xff] %v9809_v56  ;;  %v9731_v8 = vld [vmem:[%s19117_s8 + $0x210] sm:$0xff]  ;;  %v9732_v31 = vld [vmem:[%s19117_s8 + $0x218] sm:$0xff] }
 0x6d0   : > { %9911 = vst [vmem:[%s19117_s8 + $0x170] sm:$0xff] %v9811_v12  ;;  %9910 = vst [vmem:[%s19117_s8 + $0x168] sm:$0xff] %v9810_v49  ;;  %v9733_v56 = vld [vmem:[%s19117_s8 + $0x220] sm:$0xff]  ;;  %v9735_v12 = vld [vmem:[%s19117_s8 + $0x230] sm:$0xff] }
 0x6d1   : > { %9912 = vst [vmem:[%s19117_s8 + $0x178] sm:$0xff] %v9812_v57 }
 0x6d2   : > { %v8954_v38 = vpop.f32.mrb[128].mxu0 }
 0x6d3   : > { %v9598_v50 = vpop.f32.mrb[128].mxu1  ;;  %v9813_v11 = vadd.f32 %v9713_v9, %v8954_v38  ;;  %v8956_v0 = vpop.f32.mrb[129].mxu0  ;;  %v9734_v9 = vld [vmem:[%s19117_s8 + $0x228] sm:$0xff] }
 0x6d4   : > { %v9815_v18 = vadd.f32 %v9715_v47, %v9598_v50  ;;  %v9600_v36 = vpop.f32.mrb[129].mxu1  ;;  %v9814_v40 = vadd.f32 %v9714_v10, %v8956_v0  ;;  %v8958_v61 = vpop.f32.mrb[130].mxu0  ;;  %v9736_v47 = vld [vmem:[%s19117_s8 + $0x238] sm:$0xff] }
 0x6d5   : > { %v9816_v22 = vadd.f32 %v9716_v32, %v9600_v36  ;;  %v9602_v5 = vpop.f32.mrb[130].mxu1  ;;  %9913 = vst [vmem:[%s19117_s8 + $0x180] sm:$0xff] %v9813_v11  ;;  %v9817_v53 = vadd.f32 %v9717_v30, %v8958_v61  ;;  %v8960_v2 = vpop.f32.mrb[131].mxu0 }
 0x6d6   : > { %9915 = vst [vmem:[%s19117_s8 + $0x190] sm:$0xff] %v9815_v18  ;;  %v9819_v20 = vadd.f32 %v9719_v21, %v9602_v5  ;;  %v9604_v33 = vpop.f32.mrb[131].mxu1  ;;  %9914 = vst [vmem:[%s19117_s8 + $0x188] sm:$0xff] %v9814_v40  ;;  %v9818_v19 = vadd.f32 %v9718_v1, %v8960_v2  ;;  %v9737_v1 = vld [vmem:[%s19117_s8 + $0x240] sm:$0xff]  ;;  %v9738_v40 = vld [vmem:[%s19117_s8 + $0x248] sm:$0xff] }
 0x6d7   : > { %9916 = vst [vmem:[%s19117_s8 + $0x198] sm:$0xff] %v9816_v22  ;;  %v9820_v27 = vadd.f32 %v9720_v7, %v9604_v33  ;;  %9917 = vst [vmem:[%s19117_s8 + $0x1a0] sm:$0xff] %v9817_v53  ;;  %v9739_v7 = vld [vmem:[%s19117_s8 + $0x250] sm:$0xff]  ;;  %v9740_v22 = vld [vmem:[%s19117_s8 + $0x258] sm:$0xff] }
 0x6d8   : > { %9919 = vst [vmem:[%s19117_s8 + $0x1b0] sm:$0xff] %v9819_v20  ;;  %9918 = vst [vmem:[%s19117_s8 + $0x1a8] sm:$0xff] %v9818_v19  ;;  %v9741_v53 = vld [vmem:[%s19117_s8 + $0x260] sm:$0xff]  ;;  %v9743_v20 = vld [vmem:[%s19117_s8 + $0x270] sm:$0xff] }
 0x6d9   : > { %9920 = vst [vmem:[%s19117_s8 + $0x1b8] sm:$0xff] %v9820_v27 }
 0x6da   : > { %v8964_v15 = vpop.f32.mrb[132].mxu0 }
 0x6db   : > { %v9608_v58 = vpop.f32.mrb[132].mxu1  ;;  %v9821_v59 = vadd.f32 %v9721_v46, %v8964_v15  ;;  %v8966_v29 = vpop.f32.mrb[133].mxu0  ;;  %v9742_v46 = vld [vmem:[%s19117_s8 + $0x268] sm:$0xff] }
 0x6dc   : > { %v9823_v13 = vadd.f32 %v9723_v26, %v9608_v58  ;;  %v9610_v54 = vpop.f32.mrb[133].mxu1  ;;  %v9822_v37 = vadd.f32 %v9722_v16, %v8966_v29  ;;  %v8968_v45 = vpop.f32.mrb[134].mxu0  ;;  %v9744_v26 = vld [vmem:[%s19117_s8 + $0x278] sm:$0xff] }
 0x6dd   : > { %v9824_v28 = vadd.f32 %v9724_v55, %v9610_v54  ;;  %v9612_v48 = vpop.f32.mrb[134].mxu1  ;;  %9921 = vst [vmem:[%s19117_s8 + $0x1c0] sm:$0xff] %v9821_v59  ;;  %v9825_v23 = vadd.f32 %v9725_v35, %v8968_v45  ;;  %v8970_v42 = vpop.f32.mrb[135].mxu0 }
 0x6de   : > { %9923 = vst [vmem:[%s19117_s8 + $0x1d0] sm:$0xff] %v9823_v13  ;;  %v9827_v43 = vadd.f32 %v9727_v3, %v9612_v48  ;;  %v9614_v34 = vpop.f32.mrb[135].mxu1  ;;  %9922 = vst [vmem:[%s19117_s8 + $0x1c8] sm:$0xff] %v9822_v37  ;;  %v9826_v6 = vadd.f32 %v9726_v63, %v8970_v42  ;;  %v9745_v63 = vld [vmem:[%s19117_s8 + $0x280] sm:$0xff]  ;;  %v9746_v37 = vld [vmem:[%s19117_s8 + $0x288] sm:$0xff] }
 0x6df   : > { %9924 = vst [vmem:[%s19117_s8 + $0x1d8] sm:$0xff] %v9824_v28  ;;  %v9828_v39 = vadd.f32 %v9728_v24, %v9614_v34  ;;  %9925 = vst [vmem:[%s19117_s8 + $0x1e0] sm:$0xff] %v9825_v23  ;;  %v9747_v24 = vld [vmem:[%s19117_s8 + $0x290] sm:$0xff]  ;;  %v9748_v28 = vld [vmem:[%s19117_s8 + $0x298] sm:$0xff] }
 0x6e0   : > { %9927 = vst [vmem:[%s19117_s8 + $0x1f0] sm:$0xff] %v9827_v43  ;;  %9926 = vst [vmem:[%s19117_s8 + $0x1e8] sm:$0xff] %v9826_v6  ;;  %v9749_v23 = vld [vmem:[%s19117_s8 + $0x2a0] sm:$0xff]  ;;  %v9751_v43 = vld [vmem:[%s19117_s8 + $0x2b0] sm:$0xff] }
 0x6e1   : > { %9928 = vst [vmem:[%s19117_s8 + $0x1f8] sm:$0xff] %v9828_v39 }
 0x6e2   : > { %v8974_v60 = vpop.f32.mrb[136].mxu0 }
 0x6e3   : > { %v9618_v44 = vpop.f32.mrb[136].mxu1  ;;  %v9829_v17 = vadd.f32 %v9729_v52, %v8974_v60  ;;  %v8976_v49 = vpop.f32.mrb[137].mxu0  ;;  %v9750_v52 = vld [vmem:[%s19117_s8 + $0x2a8] sm:$0xff] }
 0x6e4   : > { %v9831_v62 = vadd.f32 %v9731_v8, %v9618_v44  ;;  %v9620_v57 = vpop.f32.mrb[137].mxu1  ;;  %v9830_v10 = vadd.f32 %v9730_v14, %v8976_v49  ;;  %v8978_v38 = vpop.f32.mrb[138].mxu0  ;;  %v9752_v8 = vld [vmem:[%s19117_s8 + $0x2b8] sm:$0xff] }
 0x6e5   : > { %v9832_v32 = vadd.f32 %v9732_v31, %v9620_v57  ;;  %v9622_v50 = vpop.f32.mrb[138].mxu1  ;;  %9929 = vst [vmem:[%s19117_s8 + $0x200] sm:$0xff] %v9829_v17  ;;  %v9833_v30 = vadd.f32 %v9733_v56, %v8978_v38  ;;  %v8980_v11 = vpop.f32.mrb[139].mxu0 }
 0x6e6   : > { %9931 = vst [vmem:[%s19117_s8 + $0x210] sm:$0xff] %v9831_v62  ;;  %v9835_v21 = vadd.f32 %v9735_v12, %v9622_v50  ;;  %v9624_v18 = vpop.f32.mrb[139].mxu1  ;;  %9930 = vst [vmem:[%s19117_s8 + $0x208] sm:$0xff] %v9830_v10  ;;  %v9834_v0 = vadd.f32 %v9734_v9, %v8980_v11  ;;  %v9753_v9 = vld [vmem:[%s19117_s8 + $0x2c0] sm:$0xff]  ;;  %v9754_v10 = vld [vmem:[%s19117_s8 + $0x2c8] sm:$0xff] }
 0x6e7   : > { %9932 = vst [vmem:[%s19117_s8 + $0x218] sm:$0xff] %v9832_v32  ;;  %v9836_v36 = vadd.f32 %v9736_v47, %v9624_v18  ;;  %9933 = vst [vmem:[%s19117_s8 + $0x220] sm:$0xff] %v9833_v30  ;;  %v9755_v47 = vld [vmem:[%s19117_s8 + $0x2d0] sm:$0xff]  ;;  %v9756_v32 = vld [vmem:[%s19117_s8 + $0x2d8] sm:$0xff] }
 0x6e8   : > { %9935 = vst [vmem:[%s19117_s8 + $0x230] sm:$0xff] %v9835_v21  ;;  %9934 = vst [vmem:[%s19117_s8 + $0x228] sm:$0xff] %v9834_v0  ;;  %v9757_v30 = vld [vmem:[%s19117_s8 + $0x2e0] sm:$0xff]  ;;  %v9759_v21 = vld [vmem:[%s19117_s8 + $0x2f0] sm:$0xff] }
 0x6e9   : > { %9936 = vst [vmem:[%s19117_s8 + $0x238] sm:$0xff] %v9836_v36 }
 0x6ea   : > { %v8984_v61 = vpop.f32.mrb[140].mxu0 }
 0x6eb   : > { %v9628_v5 = vpop.f32.mrb[140].mxu1  ;;  %v9837_v2 = vadd.f32 %v9737_v1, %v8984_v61  ;;  %v8986_v19 = vpop.f32.mrb[141].mxu0  ;;  %v9758_v1 = vld [vmem:[%s19117_s8 + $0x2e8] sm:$0xff] }
 0x6ec   : > { %v9839_v33 = vadd.f32 %v9739_v7, %v9628_v5  ;;  %v9630_v27 = vpop.f32.mrb[141].mxu1  ;;  %v9838_v16 = vadd.f32 %v9738_v40, %v8986_v19  ;;  %v8988_v15 = vpop.f32.mrb[142].mxu0  ;;  %v9760_v7 = vld [vmem:[%s19117_s8 + $0x2f8] sm:$0xff] }
 0x6ed   : > { %v9840_v55 = vadd.f32 %v9740_v22, %v9630_v27  ;;  %v9632_v58 = vpop.f32.mrb[142].mxu1  ;;  %9937 = vst [vmem:[%s19117_s8 + $0x240] sm:$0xff] %v9837_v2  ;;  %v9841_v35 = vadd.f32 %v9741_v53, %v8988_v15  ;;  %v8990_v59 = vpop.f32.mrb[143].mxu0 }
 0x6ee   : > { %9939 = vst [vmem:[%s19117_s8 + $0x250] sm:$0xff] %v9839_v33  ;;  %v9843_v3 = vadd.f32 %v9743_v20, %v9632_v58  ;;  %v9634_v13 = vpop.f32.mrb[143].mxu1  ;;  %9938 = vst [vmem:[%s19117_s8 + $0x248] sm:$0xff] %v9838_v16  ;;  %v9842_v29 = vadd.f32 %v9742_v46, %v8990_v59 }
 0x6ef   : > { %9940 = vst [vmem:[%s19117_s8 + $0x258] sm:$0xff] %v9840_v55  ;;  %v9844_v54 = vadd.f32 %v9744_v26, %v9634_v13  ;;  %9941 = vst [vmem:[%s19117_s8 + $0x260] sm:$0xff] %v9841_v35  ;;  %v9761_v26 = vld [vmem:[%s19117_s8 + $0x300] sm:$0xf]  ;;  %v9763_v55 = vld [vmem:[%s19117_s8 + $0x310] sm:$0xf] }
 0x6f0   : > { %9943 = vst [vmem:[%s19117_s8 + $0x270] sm:$0xff] %v9843_v3  ;;  %9942 = vst [vmem:[%s19117_s8 + $0x268] sm:$0xff] %v9842_v29  ;;  %v9762_v3 = vld [vmem:[%s19117_s8 + $0x308] sm:$0xf]  ;;  %v9764_v13 = vld [vmem:[%s19117_s8 + $0x318] sm:$0xf] }
 0x6f1   : > { %9944 = vst [vmem:[%s19117_s8 + $0x278] sm:$0xff] %v9844_v54 }
 0x6f2   : > { %v8994_v45 = vpop.f32.mrb[144].mxu0 }
 0x6f3   : > { %v9638_v48 = vpop.f32.mrb[144].mxu1  ;;  %v9845_v42 = vadd.f32 %v9745_v63, %v8994_v45  ;;  %v8996_v6 = vpop.f32.mrb[145].mxu0 }
 0x6f4   : > { %v9847_v34 = vadd.f32 %v9747_v24, %v9638_v48  ;;  %v9640_v39 = vpop.f32.mrb[145].mxu1  ;;  %v9846_v14 = vadd.f32 %v9746_v37, %v8996_v6  ;;  %v8998_v60 = vpop.f32.mrb[146].mxu0 }
 0x6f5   : > { %v9848_v31 = vadd.f32 %v9748_v28, %v9640_v39  ;;  %v9642_v44 = vpop.f32.mrb[146].mxu1  ;;  %9945 = vst [vmem:[%s19117_s8 + $0x280] sm:$0xff] %v9845_v42  ;;  %v9849_v56 = vadd.f32 %v9749_v23, %v8998_v60  ;;  %v9000_v17 = vpop.f32.mrb[147].mxu0 }
 0x6f6   : > { %9947 = vst [vmem:[%s19117_s8 + $0x290] sm:$0xff] %v9847_v34  ;;  %v9851_v12 = vadd.f32 %v9751_v43, %v9642_v44  ;;  %v9644_v62 = vpop.f32.mrb[147].mxu1  ;;  %9946 = vst [vmem:[%s19117_s8 + $0x288] sm:$0xff] %v9846_v14  ;;  %v9850_v49 = vadd.f32 %v9750_v52, %v9000_v17 }
 0x6f7   : > { %9948 = vst [vmem:[%s19117_s8 + $0x298] sm:$0xff] %v9848_v31  ;;  %v9852_v57 = vadd.f32 %v9752_v8, %v9644_v62  ;;  %9949 = vst [vmem:[%s19117_s8 + $0x2a0] sm:$0xff] %v9849_v56 }
 0x6f8   : > { %9951 = vst [vmem:[%s19117_s8 + $0x2b0] sm:$0xff] %v9851_v12  ;;  %9950 = vst [vmem:[%s19117_s8 + $0x2a8] sm:$0xff] %v9850_v49 }
 0x6f9   : > { %9952 = vst [vmem:[%s19117_s8 + $0x2b8] sm:$0xff] %v9852_v57 }
 0x6fa   : > { %v9004_v38 = vpop.f32.mrb[148].mxu0 }
 0x6fb   : > { %v9648_v50 = vpop.f32.mrb[148].mxu1  ;;  %v9853_v11 = vadd.f32 %v9753_v9, %v9004_v38  ;;  %v9006_v0 = vpop.f32.mrb[149].mxu0 }
 0x6fc   : > { %v9855_v18 = vadd.f32 %v9755_v47, %v9648_v50  ;;  %v9650_v36 = vpop.f32.mrb[149].mxu1  ;;  %v9854_v40 = vadd.f32 %v9754_v10, %v9006_v0  ;;  %v9008_v61 = vpop.f32.mrb[150].mxu0 }
 0x6fd   : > { %v9856_v22 = vadd.f32 %v9756_v32, %v9650_v36  ;;  %v9652_v5 = vpop.f32.mrb[150].mxu1  ;;  %9953 = vst [vmem:[%s19117_s8 + $0x2c0] sm:$0xff] %v9853_v11  ;;  %v9857_v53 = vadd.f32 %v9757_v30, %v9008_v61  ;;  %v9010_v2 = vpop.f32.mrb[151].mxu0 }
 0x6fe   : > { %9955 = vst [vmem:[%s19117_s8 + $0x2d0] sm:$0xff] %v9855_v18  ;;  %v9859_v20 = vadd.f32 %v9759_v21, %v9652_v5  ;;  %v9654_v33 = vpop.f32.mrb[151].mxu1  ;;  %9954 = vst [vmem:[%s19117_s8 + $0x2c8] sm:$0xff] %v9854_v40  ;;  %v9858_v19 = vadd.f32 %v9758_v1, %v9010_v2 }
 0x6ff   : > { %9956 = vst [vmem:[%s19117_s8 + $0x2d8] sm:$0xff] %v9856_v22  ;;  %v9860_v27 = vadd.f32 %v9760_v7, %v9654_v33  ;;  %9957 = vst [vmem:[%s19117_s8 + $0x2e0] sm:$0xff] %v9857_v53 }
 0x700   : > { %9959 = vst [vmem:[%s19117_s8 + $0x2f0] sm:$0xff] %v9859_v20  ;;  %9958 = vst [vmem:[%s19117_s8 + $0x2e8] sm:$0xff] %v9858_v19 }
 0x701   : > { %9960 = vst [vmem:[%s19117_s8 + $0x2f8] sm:$0xff] %v9860_v27 }
 0x702   : > { %v9014_v46 = vpop.f32.mrb[164].mxu0 }
 0x703   : > { %v9658_v16 = vpop.f32.mrb[164].mxu1  ;;  %v9015_v15 = vadd.f32 %v9014_v46, %v18484_v51  ;;  %v9016_v35 = vpop.f32.mrb[165].mxu0 }
 0x704   : > { %v9659_v58 = vadd.f32 %v9658_v16, %v18486_v4  ;;  %v9660_v59 = vpop.f32.mrb[165].mxu1  ;;  %v9017_v29 = vadd.f32 %v9016_v35, %v18488_v41  ;;  %v9018_v63 = vpop.f32.mrb[166].mxu0 }
 0x705   : > { %v9661_v54 = vadd.f32 %v9660_v59, %v18490_v25  ;;  %v9662_v24 = vpop.f32.mrb[166].mxu1  ;;  %v9861_v37 = vadd.f32 %v9761_v26, %v9015_v15  ;;  %v9019_v28 = vpop.f32.mrb[167].mxu0 }
 0x706   : > { %v9863_v51 = vadd.f32 %v9763_v55, %v9659_v58  ;;  %v9663_v4 = vpop.f32.mrb[167].mxu1  ;;  %v9862_v45 = vadd.f32 %v9762_v3, %v9017_v29 }
 0x707   : > { %v9864_v48 = vadd.f32 %v9764_v13, %v9661_v54  ;;  %9961 = vst [vmem:[%s19117_s8 + $0x300] sm:$0xf] %v9861_v37 }
 0x708   : > { %9963 = vst [vmem:[%s19117_s8 + $0x310] sm:$0xf] %v9863_v51  ;;  %9962 = vst [vmem:[%s19117_s8 + $0x308] sm:$0xf] %v9862_v45 }
 0x709   : > { %9964 = vst [vmem:[%s19117_s8 + $0x318] sm:$0xf] %v9864_v48 }
 0x70a PF: > { %p18_p6 = scmp.ge.s32.totalorder %s12540_s10, 4   ;;  %s19882_s27 = smov %s12460_s28 }
 0x70b   : > { %s19883_s28 = smov %s12464_s29  ;;  %s19884_s29 = smov %s12550_s13 }
 0x70c   : > { %s19885_s30 = smov %s12540_s10  ;;  %20 = sbr.rel (!%p18_p6) target bundleno = 3 (0x3), region = 126 }
 0x713   :  { %9976 = vsyncpa [#allocation5], 1 }
 0x714   :  { %9978 = vsyncpa [#allocation5 + $0x1], 1 }

</bundles_post_ra>
